<compile_context>
chip_gen: v7x
topology: tpu7x:2x2x1
jax: 0.10.0
libtpu: 0.0.40
codegen_flags: <defaults>
</compile_context>

<pallas_src>
import functools

import numpy as np
import jax
import jax.numpy as jnp
from jax.experimental import pallas as pl
from jax.experimental.pallas import tpu as pltpu

EPS = 1e-5


# ----------------------------- Pallas kernels ------------------------------

def _vmem_specs(n):
    return [pl.BlockSpec(memory_space=pltpu.MemorySpace.VMEM) for _ in range(n)]


def _make_residual_kernel(has_branch, use_roll, shifts):
    """Fused Residual block kernel.

    Activations are (C, M), M = N*H*W on lanes.  The 3x3 conv (padding=1) is
    9 accumulated matmuls over shifted copies of the activation:
      * use_roll: pltpu.roll (jnp.roll semantics: out[m] = in[m - shift]) along
        the lane axis + a (1, M) validity mask per tap (kills cross-row /
        cross-batch / wrap bleed);
      * else: matmul with a precomputed (M, M) shift+mask gather matrix per tap.
    Tap order t = (dy+1)*3 + (dx+1), i.e. conv weight W[:, :, dy+1, dx+1].
    """

    def kernel(x_ref, aux_ref,
               sA, tA, wA, bA,
               sB, tB, wB, bB,
               sC, tC, wC, bC, *rest):
        if has_branch:
            sR, tR, wR, bR, o_ref = rest
        else:
            (o_ref,) = rest

        x = x_ref[...]                                                   # (Cin, M)

        # --- A: BN + ReLU + 1x1 conv (lane-dense matmul) ---
        a = jnp.maximum(x * sA[...] + tA[...], 0.0)
        h = jnp.dot(wA[...], a, preferred_element_type=jnp.float32) + bA[...]   # (mid, M)

        # --- B: BN + ReLU + 3x3 conv, accumulated in VMEM (no im2col) ---
        hb = jnp.maximum(h * sB[...] + tB[...], 0.0)                     # (mid, M)
        aux = aux_ref[...]            # (9, M) masks  |  (9, M, M) gather matrices
        acc = None
        for t in range(9):
            if use_roll:
                s = shifts[t]
                if s == 0:
                    src = hb
                else:
                    src = pltpu.roll(hb, shift=s, axis=1) * aux[t:t + 1, :]
            else:
                src = jnp.dot(hb, aux[t], preferred_element_type=jnp.float32)
            term = jnp.dot(wB[t], src, preferred_element_type=jnp.float32)
            acc = term if acc is None else acc + term
        hb = acc + bB[...]                                               # (mid, M)

        # --- C: BN + ReLU + 1x1 conv ---
        c = jnp.maximum(hb * sC[...] + tC[...], 0.0)
        main = jnp.dot(wC[...], c, preferred_element_type=jnp.float32) + bC[...]  # (Cout, M)

        # --- residual branch (BN+ReLU+1x1) or identity; add fused before store ---
        if has_branch:
            r = jnp.maximum(x * sR[...] + tR[...], 0.0)
            res = jnp.dot(wR[...], r, preferred_element_type=jnp.float32) + bR[...]
        else:
            res = x
        o_ref[...] = main + res

    return kernel


def _skip_add_kernel(d_ref, xu_ref, s_ref, t_ref, w_ref, b_ref, o_ref):
    # out = (Conv1x1(relu(BN(d)))) + x_upsampled   (skip connect fused with add)
    a = jnp.maximum(d_ref[...] * s_ref[...] + t_ref[...], 0.0)
    o_ref[...] = (jnp.dot(w_ref[...], a, preferred_element_type=jnp.float32)
                  + b_ref[...] + xu_ref[...])


def _resize_kernel(x_ref, r_ref, o_ref):
    # bilinear align_corners=True resize as a single matmul with a precomputed
    # block-diagonal interpolation matrix (no bias, lane-dense output).
    o_ref[...] = jnp.dot(x_ref[...], r_ref[...], preferred_element_type=jnp.float32)


def _bn_relu_kernel(x_ref, s_ref, t_ref, o_ref):
    o_ref[...] = jnp.maximum(x_ref[...] * s_ref[...] + t_ref[...], 0.0)


# -------------------- trace-time constants (numpy, cached) ------------------

@functools.lru_cache(maxsize=None)
def _tap_masks_np(N, H, W):
    # (9, M) f32 validity masks for the 9 taps of a padding=1 3x3 conv on the
    # flattened (n, y, x) -> m = n*H*W + y*W + x spatial axis.
    M = N * H * W
    idx = np.arange(M)
    y = (idx // W) % H
    x = idx % W
    rows = []
    for dy in (-1, 0, 1):
        for dx in (-1, 0, 1):
            ok = (y + dy >= 0) & (y + dy < H) & (x + dx >= 0) & (x + dx < W)
            rows.append(ok.astype(np.float32))
    return np.stack(rows, axis=0)


@functools.lru_cache(maxsize=None)
def _gather_mats_np(N, H, W):
    # (9, M, M): T[t, m+off, m] = 1 when tap t is valid at output position m.
    # Used when M is not a multiple of 128 (deepest, tiny level only).
    M = N * H * W
    idx = np.arange(M)
    n = idx // (H * W)
    y = (idx // W) % H
    x = idx % W
    mats = np.zeros((9, M, M), np.float32)
    t = 0
    for dy in (-1, 0, 1):
        for dx in (-1, 0, 1):
            yy, xx = y + dy, x + dx
            ok = (yy >= 0) & (yy < H) & (xx >= 0) & (xx < W)
            src = n * H * W + yy * W + xx
            mats[t, src[ok], idx[ok]] = 1.0
            t += 1
    return mats


@functools.lru_cache(maxsize=None)
def _interp_matrix_np(n_in, n_out):
    # (n_in, n_out) bilinear align_corners=True interpolation weights (columns).
    A = np.zeros((n_in, n_out), np.float32)
    if n_out == 1:
        A[0, 0] = 1.0
        return A
    for j in range(n_out):
        src = j * (n_in - 1) / (n_out - 1)
        lo = min(max(int(np.floor(src)), 0), n_in - 1)
        hi = min(lo + 1, n_in - 1)
        f = src - lo
        A[lo, j] += 1.0 - f
        A[hi, j] += f
    return A


@functools.lru_cache(maxsize=None)
def _resize_matrix_np(N, H, W, Ho, Wo):
    # (N*H*W, N*Ho*Wo): block-diagonal over batch, kron of per-axis interp.
    K = np.kron(_interp_matrix_np(H, Ho), _interp_matrix_np(W, Wo))
    return np.kron(np.eye(N, dtype=np.float32), K).astype(np.float32)


# ------------------------------- layer glue ---------------------------------

def residual_forward(p, x_cm, N, H, W):
    # One fused pallas_call per Residual block.
    Cin, M = x_cm.shape
    Cout = p["C"]["w"].shape[0]
    has_branch = "branch" in p
    use_roll = (M % 128 == 0)
    if use_roll:
        aux = jnp.asarray(_tap_masks_np(N, H, W))                 # (9, M)
        shifts = tuple((-(dy * W + dx)) % M
                       for dy in (-1, 0, 1) for dx in (-1, 0, 1))
    else:
        aux = jnp.asarray(_gather_mats_np(N, H, W))               # (9, M, M)
        shifts = None
    kernel = _make_residual_kernel(has_branch, use_roll, shifts)

    args = [x_cm, aux,
            p["A"]["scale"], p["A"]["shift"], p["A"]["w"], p["A"]["b"],
            p["B"]["scale"], p["B"]["shift"], p["B"]["w"], p["B"]["b"],
            p["C"]["scale"], p["C"]["shift"], p["C"]["w"], p["C"]["b"]]
    if has_branch:
        args += [p["branch"]["scale"], p["branch"]["shift"],
                 p["branch"]["w"], p["branch"]["b"]]

    return pl.pallas_call(
        kernel,
        out_shape=jax.ShapeDtypeStruct((Cout, M), jnp.float32),
        in_specs=_vmem_specs(len(args)),
        out_specs=pl.BlockSpec(memory_space=pltpu.MemorySpace.VMEM),
    )(*args)


def seq_forward(layers, x_cm, N, H, W):
    for p in layers:
        x_cm = residual_forward(p, x_cm, N, H, W)
    return x_cm


def skip_add_forward(p, d_cm, xup_cm):
    M = d_cm.shape[1]
    F = p["w"].shape[0]
    return pl.pallas_call(
        _skip_add_kernel,
        out_shape=jax.ShapeDtypeStruct((F, M), jnp.float32),
        in_specs=_vmem_specs(6),
        out_specs=pl.BlockSpec(memory_space=pltpu.MemorySpace.VMEM),
    )(d_cm, xup_cm, p["scale"], p["shift"], p["w"], p["b"])


def resize_cm(x_cm, N, H, W, Ho, Wo):
    # (C, N*H*W) -> (C, N*Ho*Wo); bilinear align_corners=True, one matmul kernel.
    if (H, W) == (Ho, Wo):
        return x_cm
    C = x_cm.shape[0]
    R = jnp.asarray(_resize_matrix_np(N, H, W, Ho, Wo))
    Mo = N * Ho * Wo
    return pl.pallas_call(
        _resize_kernel,
        out_shape=jax.ShapeDtypeStruct((C, Mo), jnp.float32),
        in_specs=_vmem_specs(2),
        out_specs=pl.BlockSpec(memory_space=pltpu.MemorySpace.VMEM),
    )(x_cm, R)


def bn_relu_cm(x_cm, scale, shift):
    return pl.pallas_call(
        _bn_relu_kernel,
        out_shape=jax.ShapeDtypeStruct(x_cm.shape, jnp.float32),
        in_specs=_vmem_specs(3),
        out_specs=pl.BlockSpec(memory_space=pltpu.MemorySpace.VMEM),
    )(x_cm, scale, shift)


# ---------------------------- parameter building ----------------------------

class ParamGen:
    def __init__(self, seed=0):
        self.key = jax.random.PRNGKey(seed)
        self.count = 0

    def next(self, shape, scale=0.1):
        self.count += 1
        k = jax.random.fold_in(self.key, self.count)
        return jax.random.normal(k, shape, jnp.float32) * scale


def make_bn(pg, C):
    # inference-mode BN folded into per-channel scale/shift, stored as (C, 1).
    gamma = 1.0 + pg.next((C, 1), 0.1)
    beta = pg.next((C, 1), 0.1)
    rmean = pg.next((C, 1), 0.1)
    rvar = 1.0 + jnp.abs(pg.next((C, 1), 0.1))
    scale = gamma / jnp.sqrt(rvar + EPS)
    shift = beta - rmean * scale
    return scale, shift


def make_bn_relu_conv1x1(pg, Cin, Cout):
    scale, shift = make_bn(pg, Cin)
    w = pg.next((Cout, Cin), 0.2)            # out = w @ act
    b = pg.next((Cout, 1), 0.1)
    return dict(scale=scale, shift=shift, w=w, b=b)


def make_bn_relu_conv3x3(pg, Cin, Cout):
    scale, shift = make_bn(pg, Cin)
    # tap t = (dy+1)*3 + (dx+1)  <->  PyTorch conv weight W[:, :, dy+1, dx+1]
    w = pg.next((9, Cout, Cin), 0.2)
    b = pg.next((Cout, 1), 0.1)
    return dict(scale=scale, shift=shift, w=w, b=b)


def make_residual(pg, numIn, numOut):
    mid = numOut // 2
    p = dict(
        A=make_bn_relu_conv1x1(pg, numIn, mid),
        B=make_bn_relu_conv3x3(pg, mid, mid),
        C=make_bn_relu_conv1x1(pg, mid, numOut),
    )
    if numIn != numOut:
        p["branch"] = make_bn_relu_conv1x1(pg, numIn, numOut)
    return p


def make_seq(pg, ichannel, ochannel, n):
    layers = []
    for i in range(n):
        if i + 1 < n:
            layers.append(make_residual(pg, ichannel, ichannel))
        else:
            layers.append(make_residual(pg, ichannel, ochannel))
    return layers


def make_hourglass(pg, nDepth, nModules, nFeats):
    down, skip, up = [], [], []
    for i in range(nDepth):
        iC = nFeats * 2 ** i
        oC = min(nFeats * 2 ** (i + 1), nFeats * 2 ** (nDepth - 1))
        down.append(make_seq(pg, iC, oC, nModules))
        skip.append(make_bn_relu_conv1x1(pg, oC, nFeats))     # BN_ReLU_C1x1(oC, nFeats)
        up.append(make_seq(pg, nFeats, nFeats, nModules))
    middle = make_seq(pg, nFeats * 2 ** (nDepth - 1), nFeats, nModules)
    norm_scale, norm_shift = make_bn(pg, nFeats)
    return dict(down=down, skip=skip, up=up, middle=middle,
                norm=dict(scale=norm_scale, shift=norm_shift))


# ------------------------------ Hourglass fwd -------------------------------

def hourglass_forward(params, x_nchw, cache_features, nDepth):
    assert cache_features is None or len(cache_features) == nDepth, \
        "invalid length : {:}".format(None if cache_features is None else len(cache_features))

    N, C0, H0, W0 = x_nchw.shape
    # NCHW -> channels-first slab (C, N*H*W): spatial on the lane axis.
    x = jnp.transpose(x_nchw, (1, 0, 2, 3)).reshape(C0, N * H0 * W0)

    def from_cm(t_cm, H, W):
        C = t_cm.shape[0]
        return jnp.transpose(t_cm.reshape(C, N, H, W), (1, 0, 2, 3))

    down_outputs = [None] * nDepth
    up_outputs = [None] * nDepth
    cache_shapes = []
    H, W = H0, W0
    for i in range(nDepth):
        cache_shapes.append((H, W))
        temp = seq_forward(params["down"][i], x, N, H, W)
        if cache_features is not None:
            cf = jnp.transpose(cache_features[i], (1, 0, 2, 3)).reshape(temp.shape)
            temp = temp + cf
        down_outputs[i] = (temp, H, W)
        x = resize_cm(temp, N, H, W, H // 2, W // 2)
        H, W = H // 2, W // 2

    x = seq_forward(params["middle"], x, N, H, W)

    for i in range(nDepth - 1, -1, -1):
        Ht, Wt = cache_shapes[i]
        x = resize_cm(x, N, H, W, Ht, Wt)
        H, W = Ht, Wt
        temp = skip_add_forward(params["skip"][i], down_outputs[i][0], x)
        x = seq_forward(params["up"][i], temp, N, H, W)
        up_outputs[i] = (x, H, W)

    out = bn_relu_cm(x, params["norm"]["scale"], params["norm"]["shift"])

    return (from_cm(out, H0, W0),
            [from_cm(t, h, w) for (t, h, w) in down_outputs],
            [from_cm(t, h, w) for (t, h, w) in up_outputs])


# ---------------------------------- main ------------------------------------

if __name__ == "__main__":
    nDepth, nModules, nFeats = 2, 2, 4
    N, H, W = 2, 16, 16

    pg = ParamGen(seed=0)
    params = make_hourglass(pg, nDepth, nModules, nFeats)

    key = jax.random.PRNGKey(0)
    x = jax.random.normal(key, (N, nFeats, H, W), jnp.float32)   # NCHW, like PyTorch

    @jax.jit
    def run(xx):
        return hourglass_forward(params, xx, None, nDepth)

    out, down_outputs, up_outputs = run(x)
    jax.block_until_ready(out)
    jax.block_until_ready(down_outputs)
    jax.block_until_ready(up_outputs)

    # sanity checks on shapes implied by the PyTorch forward
    assert out.shape == (N, nFeats, H, W)
    assert down_outputs[0].shape == (N, 2 * nFeats, H, W)
    assert down_outputs[1].shape == (N, 2 * nFeats, H // 2, W // 2)
    assert up_outputs[0].shape == (N, nFeats, H, W)
    assert up_outputs[1].shape == (N, nFeats, H // 2, W // 2)
    assert bool(jnp.all(jnp.isfinite(out)))

    print("KERNEL_OK")
</pallas_src>

<mosaic_0001>
module attributes {stable_mosaic.version = 11 : i64} {
  func.func @kernel(%arg0: memref<4x512xf32, #tpu.memory_space<vmem>>, %arg1: memref<9x512xf32, #tpu.memory_space<vmem>>, %arg2: memref<4x1xf32, #tpu.memory_space<vmem>>, %arg3: memref<4x1xf32, #tpu.memory_space<vmem>>, %arg4: memref<4x4xf32, #tpu.memory_space<vmem>>, %arg5: memref<4x1xf32, #tpu.memory_space<vmem>>, %arg6: memref<4x1xf32, #tpu.memory_space<vmem>>, %arg7: memref<4x1xf32, #tpu.memory_space<vmem>>, %arg8: memref<9x4x4xf32, #tpu.memory_space<vmem>>, %arg9: memref<4x1xf32, #tpu.memory_space<vmem>>, %arg10: memref<4x1xf32, #tpu.memory_space<vmem>>, %arg11: memref<4x1xf32, #tpu.memory_space<vmem>>, %arg12: memref<8x4xf32, #tpu.memory_space<vmem>>, %arg13: memref<8x1xf32, #tpu.memory_space<vmem>>, %arg14: memref<4x1xf32, #tpu.memory_space<vmem>>, %arg15: memref<4x1xf32, #tpu.memory_space<vmem>>, %arg16: memref<8x4xf32, #tpu.memory_space<vmem>>, %arg17: memref<8x1xf32, #tpu.memory_space<vmem>>, %arg18: memref<8x512xf32, #tpu.memory_space<vmem>>) attributes {dimension_semantics = [], scalar_prefetch = 0 : i64, scratch_operands = 0 : i64, tpu.core_type = #tpu.core_type<tc>} {
    %c0 = arith.constant 0 : index
    %c0_0 = arith.constant 0 : index
    %0 = vector.load %arg0[%c0, %c0_0] : memref<4x512xf32, #tpu.memory_space<vmem>>, vector<4x512xf32>
    %c0_1 = arith.constant 0 : index
    %c0_2 = arith.constant 0 : index
    %1 = vector.load %arg2[%c0_1, %c0_2] : memref<4x1xf32, #tpu.memory_space<vmem>>, vector<4x1xf32>
    %2 = vector.broadcast %1 : vector<4x1xf32> to vector<4x512xf32>
    %3 = arith.mulf %0, %2 : vector<4x512xf32>
    %c0_3 = arith.constant 0 : index
    %c0_4 = arith.constant 0 : index
    %4 = vector.load %arg3[%c0_3, %c0_4] : memref<4x1xf32, #tpu.memory_space<vmem>>, vector<4x1xf32>
    %5 = vector.broadcast %4 : vector<4x1xf32> to vector<4x512xf32>
    %6 = arith.addf %3, %5 : vector<4x512xf32>
    %cst = arith.constant 0.000000e+00 : f32
    %7 = vector.broadcast %cst : f32 to vector<4x512xf32>
    %8 = arith.maximumf %6, %7 : vector<4x512xf32>
    %c0_5 = arith.constant 0 : index
    %c0_6 = arith.constant 0 : index
    %9 = vector.load %arg4[%c0_5, %c0_6] : memref<4x4xf32, #tpu.memory_space<vmem>>, vector<4x4xf32>
    %cst_7 = arith.constant dense<0.000000e+00> : vector<4x512xf32>
    %10 = tpu.matmul %9, %8, %cst_7 {dimension_numbers = #tpu.dot_dimension_numbers<[1], [0], [0], [1], [0, 0, 1, 1], [], []>} : vector<4x4xf32>, vector<4x512xf32>, vector<4x512xf32> -> vector<4x512xf32>
    %c0_8 = arith.constant 0 : index
    %c0_9 = arith.constant 0 : index
    %11 = vector.load %arg5[%c0_8, %c0_9] : memref<4x1xf32, #tpu.memory_space<vmem>>, vector<4x1xf32>
    %12 = vector.broadcast %11 : vector<4x1xf32> to vector<4x512xf32>
    %13 = arith.addf %10, %12 : vector<4x512xf32>
    %c0_10 = arith.constant 0 : index
    %c0_11 = arith.constant 0 : index
    %14 = vector.load %arg6[%c0_10, %c0_11] : memref<4x1xf32, #tpu.memory_space<vmem>>, vector<4x1xf32>
    %15 = vector.broadcast %14 : vector<4x1xf32> to vector<4x512xf32>
    %16 = arith.mulf %13, %15 : vector<4x512xf32>
    %c0_12 = arith.constant 0 : index
    %c0_13 = arith.constant 0 : index
    %17 = vector.load %arg7[%c0_12, %c0_13] : memref<4x1xf32, #tpu.memory_space<vmem>>, vector<4x1xf32>
    %18 = vector.broadcast %17 : vector<4x1xf32> to vector<4x512xf32>
    %19 = arith.addf %16, %18 : vector<4x512xf32>
    %cst_14 = arith.constant 0.000000e+00 : f32
    %20 = vector.broadcast %cst_14 : f32 to vector<4x512xf32>
    %21 = arith.maximumf %19, %20 : vector<4x512xf32>
    %c0_15 = arith.constant 0 : index
    %c0_16 = arith.constant 0 : index
    %22 = vector.load %arg1[%c0_15, %c0_16] : memref<9x512xf32, #tpu.memory_space<vmem>>, vector<9x512xf32>
    %c17_i32 = arith.constant 17 : i32
    %23 = tpu.dynamic_rotate %21 by %c17_i32 dim 1 : vector<4x512xf32>, i32 -> vector<4x512xf32>
    %24 = vector.extract_strided_slice %22 {offsets = [0, 0], sizes = [1, 512], strides = [1, 1]} : vector<9x512xf32> to vector<1x512xf32>
    %25 = vector.broadcast %24 : vector<1x512xf32> to vector<4x512xf32>
    %26 = arith.mulf %23, %25 : vector<4x512xf32>
    %c0_17 = arith.constant 0 : index
    %c0_18 = arith.constant 0 : index
    %c0_19 = arith.constant 0 : index
    %27 = vector.load %arg8[%c0_17, %c0_18, %c0_19] : memref<9x4x4xf32, #tpu.memory_space<vmem>>, vector<1x4x4xf32>
    %28 = vector.shape_cast %27 : vector<1x4x4xf32> to vector<4x4xf32>
    %cst_20 = arith.constant dense<0.000000e+00> : vector<4x512xf32>
    %29 = tpu.matmul %28, %26, %cst_20 {dimension_numbers = #tpu.dot_dimension_numbers<[1], [0], [0], [1], [0, 0, 1, 1], [], []>} : vector<4x4xf32>, vector<4x512xf32>, vector<4x512xf32> -> vector<4x512xf32>
    %c16_i32 = arith.constant 16 : i32
    %30 = tpu.dynamic_rotate %21 by %c16_i32 dim 1 : vector<4x512xf32>, i32 -> vector<4x512xf32>
    %31 = vector.extract_strided_slice %22 {offsets = [1, 0], sizes = [1, 512], strides = [1, 1]} : vector<9x512xf32> to vector<1x512xf32>
    %32 = vector.broadcast %31 : vector<1x512xf32> to vector<4x512xf32>
    %33 = arith.mulf %30, %32 : vector<4x512xf32>
    %c1 = arith.constant 1 : index
    %c0_21 = arith.constant 0 : index
    %c0_22 = arith.constant 0 : index
    %34 = vector.load %arg8[%c1, %c0_21, %c0_22] : memref<9x4x4xf32, #tpu.memory_space<vmem>>, vector<1x4x4xf32>
    %35 = vector.shape_cast %34 : vector<1x4x4xf32> to vector<4x4xf32>
    %cst_23 = arith.constant dense<0.000000e+00> : vector<4x512xf32>
    %36 = tpu.matmul %35, %33, %cst_23 {dimension_numbers = #tpu.dot_dimension_numbers<[1], [0], [0], [1], [0, 0, 1, 1], [], []>} : vector<4x4xf32>, vector<4x512xf32>, vector<4x512xf32> -> vector<4x512xf32>
    %37 = arith.addf %29, %36 : vector<4x512xf32>
    %c15_i32 = arith.constant 15 : i32
    %38 = tpu.dynamic_rotate %21 by %c15_i32 dim 1 : vector<4x512xf32>, i32 -> vector<4x512xf32>
    %39 = vector.extract_strided_slice %22 {offsets = [2, 0], sizes = [1, 512], strides = [1, 1]} : vector<9x512xf32> to vector<1x512xf32>
    %40 = vector.broadcast %39 : vector<1x512xf32> to vector<4x512xf32>
    %41 = arith.mulf %38, %40 : vector<4x512xf32>
    %c2 = arith.constant 2 : index
    %c0_24 = arith.constant 0 : index
    %c0_25 = arith.constant 0 : index
    %42 = vector.load %arg8[%c2, %c0_24, %c0_25] : memref<9x4x4xf32, #tpu.memory_space<vmem>>, vector<1x4x4xf32>
    %43 = vector.shape_cast %42 : vector<1x4x4xf32> to vector<4x4xf32>
    %cst_26 = arith.constant dense<0.000000e+00> : vector<4x512xf32>
    %44 = tpu.matmul %43, %41, %cst_26 {dimension_numbers = #tpu.dot_dimension_numbers<[1], [0], [0], [1], [0, 0, 1, 1], [], []>} : vector<4x4xf32>, vector<4x512xf32>, vector<4x512xf32> -> vector<4x512xf32>
    %45 = arith.addf %37, %44 : vector<4x512xf32>
    %c1_i32 = arith.constant 1 : i32
    %46 = tpu.dynamic_rotate %21 by %c1_i32 dim 1 : vector<4x512xf32>, i32 -> vector<4x512xf32>
    %47 = vector.extract_strided_slice %22 {offsets = [3, 0], sizes = [1, 512], strides = [1, 1]} : vector<9x512xf32> to vector<1x512xf32>
    %48 = vector.broadcast %47 : vector<1x512xf32> to vector<4x512xf32>
    %49 = arith.mulf %46, %48 : vector<4x512xf32>
    %c3 = arith.constant 3 : index
    %c0_27 = arith.constant 0 : index
    %c0_28 = arith.constant 0 : index
    %50 = vector.load %arg8[%c3, %c0_27, %c0_28] : memref<9x4x4xf32, #tpu.memory_space<vmem>>, vector<1x4x4xf32>
    %51 = vector.shape_cast %50 : vector<1x4x4xf32> to vector<4x4xf32>
    %cst_29 = arith.constant dense<0.000000e+00> : vector<4x512xf32>
    %52 = tpu.matmul %51, %49, %cst_29 {dimension_numbers = #tpu.dot_dimension_numbers<[1], [0], [0], [1], [0, 0, 1, 1], [], []>} : vector<4x4xf32>, vector<4x512xf32>, vector<4x512xf32> -> vector<4x512xf32>
    %53 = arith.addf %45, %52 : vector<4x512xf32>
    %c4 = arith.constant 4 : index
    %c0_30 = arith.constant 0 : index
    %c0_31 = arith.constant 0 : index
    %54 = vector.load %arg8[%c4, %c0_30, %c0_31] : memref<9x4x4xf32, #tpu.memory_space<vmem>>, vector<1x4x4xf32>
    %55 = vector.shape_cast %54 : vector<1x4x4xf32> to vector<4x4xf32>
    %cst_32 = arith.constant dense<0.000000e+00> : vector<4x512xf32>
    %56 = tpu.matmul %55, %21, %cst_32 {dimension_numbers = #tpu.dot_dimension_numbers<[1], [0], [0], [1], [0, 0, 1, 1], [], []>} : vector<4x4xf32>, vector<4x512xf32>, vector<4x512xf32> -> vector<4x512xf32>
    %57 = arith.addf %53, %56 : vector<4x512xf32>
    %c511_i32 = arith.constant 511 : i32
    %58 = tpu.dynamic_rotate %21 by %c511_i32 dim 1 : vector<4x512xf32>, i32 -> vector<4x512xf32>
    %59 = vector.extract_strided_slice %22 {offsets = [5, 0], sizes = [1, 512], strides = [1, 1]} : vector<9x512xf32> to vector<1x512xf32>
    %60 = vector.broadcast %59 : vector<1x512xf32> to vector<4x512xf32>
    %61 = arith.mulf %58, %60 : vector<4x512xf32>
    %c5 = arith.constant 5 : index
    %c0_33 = arith.constant 0 : index
    %c0_34 = arith.constant 0 : index
    %62 = vector.load %arg8[%c5, %c0_33, %c0_34] : memref<9x4x4xf32, #tpu.memory_space<vmem>>, vector<1x4x4xf32>
    %63 = vector.shape_cast %62 : vector<1x4x4xf32> to vector<4x4xf32>
    %cst_35 = arith.constant dense<0.000000e+00> : vector<4x512xf32>
    %64 = tpu.matmul %63, %61, %cst_35 {dimension_numbers = #tpu.dot_dimension_numbers<[1], [0], [0], [1], [0, 0, 1, 1], [], []>} : vector<4x4xf32>, vector<4x512xf32>, vector<4x512xf32> -> vector<4x512xf32>
    %65 = arith.addf %57, %64 : vector<4x512xf32>
    %c497_i32 = arith.constant 497 : i32
    %66 = tpu.dynamic_rotate %21 by %c497_i32 dim 1 : vector<4x512xf32>, i32 -> vector<4x512xf32>
    %67 = vector.extract_strided_slice %22 {offsets = [6, 0], sizes = [1, 512], strides = [1, 1]} : vector<9x512xf32> to vector<1x512xf32>
    %68 = vector.broadcast %67 : vector<1x512xf32> to vector<4x512xf32>
    %69 = arith.mulf %66, %68 : vector<4x512xf32>
    %c6 = arith.constant 6 : index
    %c0_36 = arith.constant 0 : index
    %c0_37 = arith.constant 0 : index
    %70 = vector.load %arg8[%c6, %c0_36, %c0_37] : memref<9x4x4xf32, #tpu.memory_space<vmem>>, vector<1x4x4xf32>
    %71 = vector.shape_cast %70 : vector<1x4x4xf32> to vector<4x4xf32>
    %cst_38 = arith.constant dense<0.000000e+00> : vector<4x512xf32>
    %72 = tpu.matmul %71, %69, %cst_38 {dimension_numbers = #tpu.dot_dimension_numbers<[1], [0], [0], [1], [0, 0, 1, 1], [], []>} : vector<4x4xf32>, vector<4x512xf32>, vector<4x512xf32> -> vector<4x512xf32>
    %73 = arith.addf %65, %72 : vector<4x512xf32>
    %c496_i32 = arith.constant 496 : i32
    %74 = tpu.dynamic_rotate %21 by %c496_i32 dim 1 : vector<4x512xf32>, i32 -> vector<4x512xf32>
    %75 = vector.extract_strided_slice %22 {offsets = [7, 0], sizes = [1, 512], strides = [1, 1]} : vector<9x512xf32> to vector<1x512xf32>
    %76 = vector.broadcast %75 : vector<1x512xf32> to vector<4x512xf32>
    %77 = arith.mulf %74, %76 : vector<4x512xf32>
    %c7 = arith.constant 7 : index
    %c0_39 = arith.constant 0 : index
    %c0_40 = arith.constant 0 : index
    %78 = vector.load %arg8[%c7, %c0_39, %c0_40] : memref<9x4x4xf32, #tpu.memory_space<vmem>>, vector<1x4x4xf32>
    %79 = vector.shape_cast %78 : vector<1x4x4xf32> to vector<4x4xf32>
    %cst_41 = arith.constant dense<0.000000e+00> : vector<4x512xf32>
    %80 = tpu.matmul %79, %77, %cst_41 {dimension_numbers = #tpu.dot_dimension_numbers<[1], [0], [0], [1], [0, 0, 1, 1], [], []>} : vector<4x4xf32>, vector<4x512xf32>, vector<4x512xf32> -> vector<4x512xf32>
    %81 = arith.addf %73, %80 : vector<4x512xf32>
    %c495_i32 = arith.constant 495 : i32
    %82 = tpu.dynamic_rotate %21 by %c495_i32 dim 1 : vector<4x512xf32>, i32 -> vector<4x512xf32>
    %83 = vector.extract_strided_slice %22 {offsets = [8, 0], sizes = [1, 512], strides = [1, 1]} : vector<9x512xf32> to vector<1x512xf32>
    %84 = vector.broadcast %83 : vector<1x512xf32> to vector<4x512xf32>
    %85 = arith.mulf %82, %84 : vector<4x512xf32>
    %c8 = arith.constant 8 : index
    %c0_42 = arith.constant 0 : index
    %c0_43 = arith.constant 0 : index
    %86 = vector.load %arg8[%c8, %c0_42, %c0_43] : memref<9x4x4xf32, #tpu.memory_space<vmem>>, vector<1x4x4xf32>
    %87 = vector.shape_cast %86 : vector<1x4x4xf32> to vector<4x4xf32>
    %cst_44 = arith.constant dense<0.000000e+00> : vector<4x512xf32>
    %88 = tpu.matmul %87, %85, %cst_44 {dimension_numbers = #tpu.dot_dimension_numbers<[1], [0], [0], [1], [0, 0, 1, 1], [], []>} : vector<4x4xf32>, vector<4x512xf32>, vector<4x512xf32> -> vector<4x512xf32>
    %89 = arith.addf %81, %88 : vector<4x512xf32>
    %c0_45 = arith.constant 0 : index
    %c0_46 = arith.constant 0 : index
    %90 = vector.load %arg9[%c0_45, %c0_46] : memref<4x1xf32, #tpu.memory_space<vmem>>, vector<4x1xf32>
    %91 = vector.broadcast %90 : vector<4x1xf32> to vector<4x512xf32>
    %92 = arith.addf %89, %91 : vector<4x512xf32>
    %c0_47 = arith.constant 0 : index
    %c0_48 = arith.constant 0 : index
    %93 = vector.load %arg10[%c0_47, %c0_48] : memref<4x1xf32, #tpu.memory_space<vmem>>, vector<4x1xf32>
    %94 = vector.broadcast %93 : vector<4x1xf32> to vector<4x512xf32>
    %95 = arith.mulf %92, %94 : vector<4x512xf32>
    %c0_49 = arith.constant 0 : index
    %c0_50 = arith.constant 0 : index
    %96 = vector.load %arg11[%c0_49, %c0_50] : memref<4x1xf32, #tpu.memory_space<vmem>>, vector<4x1xf32>
    %97 = vector.broadcast %96 : vector<4x1xf32> to vector<4x512xf32>
    %98 = arith.addf %95, %97 : vector<4x512xf32>
    %cst_51 = arith.constant 0.000000e+00 : f32
    %99 = vector.broadcast %cst_51 : f32 to vector<4x512xf32>
    %100 = arith.maximumf %98, %99 : vector<4x512xf32>
    %c0_52 = arith.constant 0 : index
    %c0_53 = arith.constant 0 : index
    %101 = vector.load %arg12[%c0_52, %c0_53] : memref<8x4xf32, #tpu.memory_space<vmem>>, vector<8x4xf32>
    %cst_54 = arith.constant dense<0.000000e+00> : vector<8x512xf32>
    %102 = tpu.matmul %101, %100, %cst_54 {dimension_numbers = #tpu.dot_dimension_numbers<[1], [0], [0], [1], [0, 0, 1, 1], [], []>} : vector<8x4xf32>, vector<4x512xf32>, vector<8x512xf32> -> vector<8x512xf32>
    %c0_55 = arith.constant 0 : index
    %c0_56 = arith.constant 0 : index
    %103 = vector.load %arg13[%c0_55, %c0_56] : memref<8x1xf32, #tpu.memory_space<vmem>>, vector<8x1xf32>
    %104 = vector.broadcast %103 : vector<8x1xf32> to vector<8x512xf32>
    %105 = arith.addf %102, %104 : vector<8x512xf32>
    %c0_57 = arith.constant 0 : index
    %c0_58 = arith.constant 0 : index
    %106 = vector.load %arg14[%c0_57, %c0_58] : memref<4x1xf32, #tpu.memory_space<vmem>>, vector<4x1xf32>
    %107 = vector.broadcast %106 : vector<4x1xf32> to vector<4x512xf32>
    %108 = arith.mulf %0, %107 : vector<4x512xf32>
    %c0_59 = arith.constant 0 : index
    %c0_60 = arith.constant 0 : index
    %109 = vector.load %arg15[%c0_59, %c0_60] : memref<4x1xf32, #tpu.memory_space<vmem>>, vector<4x1xf32>
    %110 = vector.broadcast %109 : vector<4x1xf32> to vector<4x512xf32>
    %111 = arith.addf %108, %110 : vector<4x512xf32>
    %cst_61 = arith.constant 0.000000e+00 : f32
    %112 = vector.broadcast %cst_61 : f32 to vector<4x512xf32>
    %113 = arith.maximumf %111, %112 : vector<4x512xf32>
    %c0_62 = arith.constant 0 : index
    %c0_63 = arith.constant 0 : index
    %114 = vector.load %arg16[%c0_62, %c0_63] : memref<8x4xf32, #tpu.memory_space<vmem>>, vector<8x4xf32>
    %cst_64 = arith.constant dense<0.000000e+00> : vector<8x512xf32>
    %115 = tpu.matmul %114, %113, %cst_64 {dimension_numbers = #tpu.dot_dimension_numbers<[1], [0], [0], [1], [0, 0, 1, 1], [], []>} : vector<8x4xf32>, vector<4x512xf32>, vector<8x512xf32> -> vector<8x512xf32>
    %c0_65 = arith.constant 0 : index
    %c0_66 = arith.constant 0 : index
    %116 = vector.load %arg17[%c0_65, %c0_66] : memref<8x1xf32, #tpu.memory_space<vmem>>, vector<8x1xf32>
    %117 = vector.broadcast %116 : vector<8x1xf32> to vector<8x512xf32>
    %118 = arith.addf %115, %117 : vector<8x512xf32>
    %119 = arith.addf %105, %118 : vector<8x512xf32>
    %c0_67 = arith.constant 0 : index
    %c0_68 = arith.constant 0 : index
    %120 = vector.load %arg18[%c0_67, %c0_68] : memref<8x512xf32, #tpu.memory_space<vmem>>, vector<8x512xf32>
    tpu.vector_store %arg18[%c0_67, %c0_68], %119 {strides = array<i32>} : memref<8x512xf32, #tpu.memory_space<vmem>>, vector<8x512xf32>,
    return
  }
}

module attributes {stable_mosaic.version = 11 : i64} {
  func.func @kernel(%arg0: memref<4x512xf32, #tpu.memory_space<vmem>>, %arg1: memref<9x512xf32, #tpu.memory_space<vmem>>, %arg2: memref<4x1xf32, #tpu.memory_space<vmem>>, %arg3: memref<4x1xf32, #tpu.memory_space<vmem>>, %arg4: memref<2x4xf32, #tpu.memory_space<vmem>>, %arg5: memref<2x1xf32, #tpu.memory_space<vmem>>, %arg6: memref<2x1xf32, #tpu.memory_space<vmem>>, %arg7: memref<2x1xf32, #tpu.memory_space<vmem>>, %arg8: memref<9x2x2xf32, #tpu.memory_space<vmem>>, %arg9: memref<2x1xf32, #tpu.memory_space<vmem>>, %arg10: memref<2x1xf32, #tpu.memory_space<vmem>>, %arg11: memref<2x1xf32, #tpu.memory_space<vmem>>, %arg12: memref<4x2xf32, #tpu.memory_space<vmem>>, %arg13: memref<4x1xf32, #tpu.memory_space<vmem>>, %arg14: memref<4x512xf32, #tpu.memory_space<vmem>>) attributes {dimension_semantics = [], scalar_prefetch = 0 : i64, scratch_operands = 0 : i64, tpu.core_type = #tpu.core_type<tc>} {
    %c0 = arith.constant 0 : index
    %c0_0 = arith.constant 0 : index
    %0 = vector.load %arg0[%c0, %c0_0] : memref<4x512xf32, #tpu.memory_space<vmem>>, vector<4x512xf32>
    %c0_1 = arith.constant 0 : index
    %c0_2 = arith.constant 0 : index
    %1 = vector.load %arg2[%c0_1, %c0_2] : memref<4x1xf32, #tpu.memory_space<vmem>>, vector<4x1xf32>
    %2 = vector.broadcast %1 : vector<4x1xf32> to vector<4x512xf32>
    %3 = arith.mulf %0, %2 : vector<4x512xf32>
    %c0_3 = arith.constant 0 : index
    %c0_4 = arith.constant 0 : index
    %4 = vector.load %arg3[%c0_3, %c0_4] : memref<4x1xf32, #tpu.memory_space<vmem>>, vector<4x1xf32>
    %5 = vector.broadcast %4 : vector<4x1xf32> to vector<4x512xf32>
    %6 = arith.addf %3, %5 : vector<4x512xf32>
    %cst = arith.constant 0.000000e+00 : f32
    %7 = vector.broadcast %cst : f32 to vector<4x512xf32>
    %8 = arith.maximumf %6, %7 : vector<4x512xf32>
    %c0_5 = arith.constant 0 : index
    %c0_6 = arith.constant 0 : index
    %9 = vector.load %arg4[%c0_5, %c0_6] : memref<2x4xf32, #tpu.memory_space<vmem>>, vector<2x4xf32>
    %cst_7 = arith.constant dense<0.000000e+00> : vector<2x512xf32>
    %10 = tpu.matmul %9, %8, %cst_7 {dimension_numbers = #tpu.dot_dimension_numbers<[1], [0], [0], [1], [0, 0, 1, 1], [], []>} : vector<2x4xf32>, vector<4x512xf32>, vector<2x512xf32> -> vector<2x512xf32>
    %c0_8 = arith.constant 0 : index
    %c0_9 = arith.constant 0 : index
    %11 = vector.load %arg5[%c0_8, %c0_9] : memref<2x1xf32, #tpu.memory_space<vmem>>, vector<2x1xf32>
    %12 = vector.broadcast %11 : vector<2x1xf32> to vector<2x512xf32>
    %13 = arith.addf %10, %12 : vector<2x512xf32>
    %c0_10 = arith.constant 0 : index
    %c0_11 = arith.constant 0 : index
    %14 = vector.load %arg6[%c0_10, %c0_11] : memref<2x1xf32, #tpu.memory_space<vmem>>, vector<2x1xf32>
    %15 = vector.broadcast %14 : vector<2x1xf32> to vector<2x512xf32>
    %16 = arith.mulf %13, %15 : vector<2x512xf32>
    %c0_12 = arith.constant 0 : index
    %c0_13 = arith.constant 0 : index
    %17 = vector.load %arg7[%c0_12, %c0_13] : memref<2x1xf32, #tpu.memory_space<vmem>>, vector<2x1xf32>
    %18 = vector.broadcast %17 : vector<2x1xf32> to vector<2x512xf32>
    %19 = arith.addf %16, %18 : vector<2x512xf32>
    %cst_14 = arith.constant 0.000000e+00 : f32
    %20 = vector.broadcast %cst_14 : f32 to vector<2x512xf32>
    %21 = arith.maximumf %19, %20 : vector<2x512xf32>
    %c0_15 = arith.constant 0 : index
    %c0_16 = arith.constant 0 : index
    %22 = vector.load %arg1[%c0_15, %c0_16] : memref<9x512xf32, #tpu.memory_space<vmem>>, vector<9x512xf32>
    %c17_i32 = arith.constant 17 : i32
    %23 = tpu.dynamic_rotate %21 by %c17_i32 dim 1 : vector<2x512xf32>, i32 -> vector<2x512xf32>
    %24 = vector.extract_strided_slice %22 {offsets = [0, 0], sizes = [1, 512], strides = [1, 1]} : vector<9x512xf32> to vector<1x512xf32>
    %25 = vector.broadcast %24 : vector<1x512xf32> to vector<2x512xf32>
    %26 = arith.mulf %23, %25 : vector<2x512xf32>
    %c0_17 = arith.constant 0 : index
    %c0_18 = arith.constant 0 : index
    %c0_19 = arith.constant 0 : index
    %27 = vector.load %arg8[%c0_17, %c0_18, %c0_19] : memref<9x2x2xf32, #tpu.memory_space<vmem>>, vector<1x2x2xf32>
    %28 = vector.shape_cast %27 : vector<1x2x2xf32> to vector<2x2xf32>
    %cst_20 = arith.constant dense<0.000000e+00> : vector<2x512xf32>
    %29 = tpu.matmul %28, %26, %cst_20 {dimension_numbers = #tpu.dot_dimension_numbers<[1], [0], [0], [1], [0, 0, 1, 1], [], []>} : vector<2x2xf32>, vector<2x512xf32>, vector<2x512xf32> -> vector<2x512xf32>
    %c16_i32 = arith.constant 16 : i32
    %30 = tpu.dynamic_rotate %21 by %c16_i32 dim 1 : vector<2x512xf32>, i32 -> vector<2x512xf32>
    %31 = vector.extract_strided_slice %22 {offsets = [1, 0], sizes = [1, 512], strides = [1, 1]} : vector<9x512xf32> to vector<1x512xf32>
    %32 = vector.broadcast %31 : vector<1x512xf32> to vector<2x512xf32>
    %33 = arith.mulf %30, %32 : vector<2x512xf32>
    %c1 = arith.constant 1 : index
    %c0_21 = arith.constant 0 : index
    %c0_22 = arith.constant 0 : index
    %34 = vector.load %arg8[%c1, %c0_21, %c0_22] : memref<9x2x2xf32, #tpu.memory_space<vmem>>, vector<1x2x2xf32>
    %35 = vector.shape_cast %34 : vector<1x2x2xf32> to vector<2x2xf32>
    %cst_23 = arith.constant dense<0.000000e+00> : vector<2x512xf32>
    %36 = tpu.matmul %35, %33, %cst_23 {dimension_numbers = #tpu.dot_dimension_numbers<[1], [0], [0], [1], [0, 0, 1, 1], [], []>} : vector<2x2xf32>, vector<2x512xf32>, vector<2x512xf32> -> vector<2x512xf32>
    %37 = arith.addf %29, %36 : vector<2x512xf32>
    %c15_i32 = arith.constant 15 : i32
    %38 = tpu.dynamic_rotate %21 by %c15_i32 dim 1 : vector<2x512xf32>, i32 -> vector<2x512xf32>
    %39 = vector.extract_strided_slice %22 {offsets = [2, 0], sizes = [1, 512], strides = [1, 1]} : vector<9x512xf32> to vector<1x512xf32>
    %40 = vector.broadcast %39 : vector<1x512xf32> to vector<2x512xf32>
    %41 = arith.mulf %38, %40 : vector<2x512xf32>
    %c2 = arith.constant 2 : index
    %c0_24 = arith.constant 0 : index
    %c0_25 = arith.constant 0 : index
    %42 = vector.load %arg8[%c2, %c0_24, %c0_25] : memref<9x2x2xf32, #tpu.memory_space<vmem>>, vector<1x2x2xf32>
    %43 = vector.shape_cast %42 : vector<1x2x2xf32> to vector<2x2xf32>
    %cst_26 = arith.constant dense<0.000000e+00> : vector<2x512xf32>
    %44 = tpu.matmul %43, %41, %cst_26 {dimension_numbers = #tpu.dot_dimension_numbers<[1], [0], [0], [1], [0, 0, 1, 1], [], []>} : vector<2x2xf32>, vector<2x512xf32>, vector<2x512xf32> -> vector<2x512xf32>
    %45 = arith.addf %37, %44 : vector<2x512xf32>
    %c1_i32 = arith.constant 1 : i32
    %46 = tpu.dynamic_rotate %21 by %c1_i32 dim 1 : vector<2x512xf32>, i32 -> vector<2x512xf32>
    %47 = vector.extract_strided_slice %22 {offsets = [3, 0], sizes = [1, 512], strides = [1, 1]} : vector<9x512xf32> to vector<1x512xf32>
    %48 = vector.broadcast %47 : vector<1x512xf32> to vector<2x512xf32>
    %49 = arith.mulf %46, %48 : vector<2x512xf32>
    %c3 = arith.constant 3 : index
    %c0_27 = arith.constant 0 : index
    %c0_28 = arith.constant 0 : index
    %50 = vector.load %arg8[%c3, %c0_27, %c0_28] : memref<9x2x2xf32, #tpu.memory_space<vmem>>, vector<1x2x2xf32>
    %51 = vector.shape_cast %50 : vector<1x2x2xf32> to vector<2x2xf32>
    %cst_29 = arith.constant dense<0.000000e+00> : vector<2x512xf32>
    %52 = tpu.matmul %51, %49, %cst_29 {dimension_numbers = #tpu.dot_dimension_numbers<[1], [0], [0], [1], [0, 0, 1, 1], [], []>} : vector<2x2xf32>, vector<2x512xf32>, vector<2x512xf32> -> vector<2x512xf32>
    %53 = arith.addf %45, %52 : vector<2x512xf32>
    %c4 = arith.constant 4 : index
    %c0_30 = arith.constant 0 : index
    %c0_31 = arith.constant 0 : index
    %54 = vector.load %arg8[%c4, %c0_30, %c0_31] : memref<9x2x2xf32, #tpu.memory_space<vmem>>, vector<1x2x2xf32>
    %55 = vector.shape_cast %54 : vector<1x2x2xf32> to vector<2x2xf32>
    %cst_32 = arith.constant dense<0.000000e+00> : vector<2x512xf32>
    %56 = tpu.matmul %55, %21, %cst_32 {dimension_numbers = #tpu.dot_dimension_numbers<[1], [0], [0], [1], [0, 0, 1, 1], [], []>} : vector<2x2xf32>, vector<2x512xf32>, vector<2x512xf32> -> vector<2x512xf32>
    %57 = arith.addf %53, %56 : vector<2x512xf32>
    %c511_i32 = arith.constant 511 : i32
    %58 = tpu.dynamic_rotate %21 by %c511_i32 dim 1 : vector<2x512xf32>, i32 -> vector<2x512xf32>
    %59 = vector.extract_strided_slice %22 {offsets = [5, 0], sizes = [1, 512], strides = [1, 1]} : vector<9x512xf32> to vector<1x512xf32>
    %60 = vector.broadcast %59 : vector<1x512xf32> to vector<2x512xf32>
    %61 = arith.mulf %58, %60 : vector<2x512xf32>
    %c5 = arith.constant 5 : index
    %c0_33 = arith.constant 0 : index
    %c0_34 = arith.constant 0 : index
    %62 = vector.load %arg8[%c5, %c0_33, %c0_34] : memref<9x2x2xf32, #tpu.memory_space<vmem>>, vector<1x2x2xf32>
    %63 = vector.shape_cast %62 : vector<1x2x2xf32> to vector<2x2xf32>
    %cst_35 = arith.constant dense<0.000000e+00> : vector<2x512xf32>
    %64 = tpu.matmul %63, %61, %cst_35 {dimension_numbers = #tpu.dot_dimension_numbers<[1], [0], [0], [1], [0, 0, 1, 1], [], []>} : vector<2x2xf32>, vector<2x512xf32>, vector<2x512xf32> -> vector<2x512xf32>
    %65 = arith.addf %57, %64 : vector<2x512xf32>
    %c497_i32 = arith.constant 497 : i32
    %66 = tpu.dynamic_rotate %21 by %c497_i32 dim 1 : vector<2x512xf32>, i32 -> vector<2x512xf32>
    %67 = vector.extract_strided_slice %22 {offsets = [6, 0], sizes = [1, 512], strides = [1, 1]} : vector<9x512xf32> to vector<1x512xf32>
    %68 = vector.broadcast %67 : vector<1x512xf32> to vector<2x512xf32>
    %69 = arith.mulf %66, %68 : vector<2x512xf32>
    %c6 = arith.constant 6 : index
    %c0_36 = arith.constant 0 : index
    %c0_37 = arith.constant 0 : index
    %70 = vector.load %arg8[%c6, %c0_36, %c0_37] : memref<9x2x2xf32, #tpu.memory_space<vmem>>, vector<1x2x2xf32>
    %71 = vector.shape_cast %70 : vector<1x2x2xf32> to vector<2x2xf32>
    %cst_38 = arith.constant dense<0.000000e+00> : vector<2x512xf32>
    %72 = tpu.matmul %71, %69, %cst_38 {dimension_numbers = #tpu.dot_dimension_numbers<[1], [0], [0], [1], [0, 0, 1, 1], [], []>} : vector<2x2xf32>, vector<2x512xf32>, vector<2x512xf32> -> vector<2x512xf32>
    %73 = arith.addf %65, %72 : vector<2x512xf32>
    %c496_i32 = arith.constant 496 : i32
    %74 = tpu.dynamic_rotate %21 by %c496_i32 dim 1 : vector<2x512xf32>, i32 -> vector<2x512xf32>
    %75 = vector.extract_strided_slice %22 {offsets = [7, 0], sizes = [1, 512], strides = [1, 1]} : vector<9x512xf32> to vector<1x512xf32>
    %76 = vector.broadcast %75 : vector<1x512xf32> to vector<2x512xf32>
    %77 = arith.mulf %74, %76 : vector<2x512xf32>
    %c7 = arith.constant 7 : index
    %c0_39 = arith.constant 0 : index
    %c0_40 = arith.constant 0 : index
    %78 = vector.load %arg8[%c7, %c0_39, %c0_40] : memref<9x2x2xf32, #tpu.memory_space<vmem>>, vector<1x2x2xf32>
    %79 = vector.shape_cast %78 : vector<1x2x2xf32> to vector<2x2xf32>
    %cst_41 = arith.constant dense<0.000000e+00> : vector<2x512xf32>
    %80 = tpu.matmul %79, %77, %cst_41 {dimension_numbers = #tpu.dot_dimension_numbers<[1], [0], [0], [1], [0, 0, 1, 1], [], []>} : vector<2x2xf32>, vector<2x512xf32>, vector<2x512xf32> -> vector<2x512xf32>
    %81 = arith.addf %73, %80 : vector<2x512xf32>
    %c495_i32 = arith.constant 495 : i32
    %82 = tpu.dynamic_rotate %21 by %c495_i32 dim 1 : vector<2x512xf32>, i32 -> vector<2x512xf32>
    %83 = vector.extract_strided_slice %22 {offsets = [8, 0], sizes = [1, 512], strides = [1, 1]} : vector<9x512xf32> to vector<1x512xf32>
    %84 = vector.broadcast %83 : vector<1x512xf32> to vector<2x512xf32>
    %85 = arith.mulf %82, %84 : vector<2x512xf32>
    %c8 = arith.constant 8 : index
    %c0_42 = arith.constant 0 : index
    %c0_43 = arith.constant 0 : index
    %86 = vector.load %arg8[%c8, %c0_42, %c0_43] : memref<9x2x2xf32, #tpu.memory_space<vmem>>, vector<1x2x2xf32>
    %87 = vector.shape_cast %86 : vector<1x2x2xf32> to vector<2x2xf32>
    %cst_44 = arith.constant dense<0.000000e+00> : vector<2x512xf32>
    %88 = tpu.matmul %87, %85, %cst_44 {dimension_numbers = #tpu.dot_dimension_numbers<[1], [0], [0], [1], [0, 0, 1, 1], [], []>} : vector<2x2xf32>, vector<2x512xf32>, vector<2x512xf32> -> vector<2x512xf32>
    %89 = arith.addf %81, %88 : vector<2x512xf32>
    %c0_45 = arith.constant 0 : index
    %c0_46 = arith.constant 0 : index
    %90 = vector.load %arg9[%c0_45, %c0_46] : memref<2x1xf32, #tpu.memory_space<vmem>>, vector<2x1xf32>
    %91 = vector.broadcast %90 : vector<2x1xf32> to vector<2x512xf32>
    %92 = arith.addf %89, %91 : vector<2x512xf32>
    %c0_47 = arith.constant 0 : index
    %c0_48 = arith.constant 0 : index
    %93 = vector.load %arg10[%c0_47, %c0_48] : memref<2x1xf32, #tpu.memory_space<vmem>>, vector<2x1xf32>
    %94 = vector.broadcast %93 : vector<2x1xf32> to vector<2x512xf32>
    %95 = arith.mulf %92, %94 : vector<2x512xf32>
    %c0_49 = arith.constant 0 : index
    %c0_50 = arith.constant 0 : index
    %96 = vector.load %arg11[%c0_49, %c0_50] : memref<2x1xf32, #tpu.memory_space<vmem>>, vector<2x1xf32>
    %97 = vector.broadcast %96 : vector<2x1xf32> to vector<2x512xf32>
    %98 = arith.addf %95, %97 : vector<2x512xf32>
    %cst_51 = arith.constant 0.000000e+00 : f32
    %99 = vector.broadcast %cst_51 : f32 to vector<2x512xf32>
    %100 = arith.maximumf %98, %99 : vector<2x512xf32>
    %c0_52 = arith.constant 0 : index
    %c0_53 = arith.constant 0 : index
    %101 = vector.load %arg12[%c0_52, %c0_53] : memref<4x2xf32, #tpu.memory_space<vmem>>, vector<4x2xf32>
    %cst_54 = arith.constant dense<0.000000e+00> : vector<4x512xf32>
    %102 = tpu.matmul %101, %100, %cst_54 {dimension_numbers = #tpu.dot_dimension_numbers<[1], [0], [0], [1], [0, 0, 1, 1], [], []>} : vector<4x2xf32>, vector<2x512xf32>, vector<4x512xf32> -> vector<4x512xf32>
    %c0_55 = arith.constant 0 : index
    %c0_56 = arith.constant 0 : index
    %103 = vector.load %arg13[%c0_55, %c0_56] : memref<4x1xf32, #tpu.memory_space<vmem>>, vector<4x1xf32>
    %104 = vector.broadcast %103 : vector<4x1xf32> to vector<4x512xf32>
    %105 = arith.addf %102, %104 : vector<4x512xf32>
    %106 = arith.addf %105, %0 : vector<4x512xf32>
    %c0_57 = arith.constant 0 : index
    %c0_58 = arith.constant 0 : index
    %107 = vector.load %arg14[%c0_57, %c0_58] : memref<4x512xf32, #tpu.memory_space<vmem>>, vector<4x512xf32>
    tpu.vector_store %arg14[%c0_57, %c0_58], %106 {strides = array<i32>} : memref<4x512xf32, #tpu.memory_space<vmem>>, vector<4x512xf32>,
    return
  }
}

module attributes {stable_mosaic.version = 11 : i64} {
  func.func @_resize_kernel(%arg0: memref<8x512xf32, #tpu.memory_space<vmem>>, %arg1: memref<512x128xf32, #tpu.memory_space<vmem>>, %arg2: memref<8x128xf32, #tpu.memory_space<vmem>>) attributes {dimension_semantics = [], scalar_prefetch = 0 : i64, scratch_operands = 0 : i64, tpu.core_type = #tpu.core_type<tc>} {
    %c0 = arith.constant 0 : index
    %c0_0 = arith.constant 0 : index
    %0 = vector.load %arg0[%c0, %c0_0] : memref<8x512xf32, #tpu.memory_space<vmem>>, vector<8x512xf32>
    %c0_1 = arith.constant 0 : index
    %c0_2 = arith.constant 0 : index
    %1 = vector.load %arg1[%c0_1, %c0_2] : memref<512x128xf32, #tpu.memory_space<vmem>>, vector<512x128xf32>
    %cst = arith.constant dense<0.000000e+00> : vector<8x128xf32>
    %2 = tpu.matmul %0, %1, %cst {dimension_numbers = #tpu.dot_dimension_numbers<[1], [0], [0], [1], [0, 0, 1, 1], [], []>} : vector<8x512xf32>, vector<512x128xf32>, vector<8x128xf32> -> vector<8x128xf32>
    %c0_3 = arith.constant 0 : index
    %c0_4 = arith.constant 0 : index
    %3 = vector.load %arg2[%c0_3, %c0_4] : memref<8x128xf32, #tpu.memory_space<vmem>>, vector<8x128xf32>
    tpu.vector_store %arg2[%c0_3, %c0_4], %2 {strides = array<i32>} : memref<8x128xf32, #tpu.memory_space<vmem>>, vector<8x128xf32>,
    return
  }
}

module attributes {stable_mosaic.version = 11 : i64} {
  func.func @kernel(%arg0: memref<8x128xf32, #tpu.memory_space<vmem>>, %arg1: memref<9x128xf32, #tpu.memory_space<vmem>>, %arg2: memref<8x1xf32, #tpu.memory_space<vmem>>, %arg3: memref<8x1xf32, #tpu.memory_space<vmem>>, %arg4: memref<4x8xf32, #tpu.memory_space<vmem>>, %arg5: memref<4x1xf32, #tpu.memory_space<vmem>>, %arg6: memref<4x1xf32, #tpu.memory_space<vmem>>, %arg7: memref<4x1xf32, #tpu.memory_space<vmem>>, %arg8: memref<9x4x4xf32, #tpu.memory_space<vmem>>, %arg9: memref<4x1xf32, #tpu.memory_space<vmem>>, %arg10: memref<4x1xf32, #tpu.memory_space<vmem>>, %arg11: memref<4x1xf32, #tpu.memory_space<vmem>>, %arg12: memref<8x4xf32, #tpu.memory_space<vmem>>, %arg13: memref<8x1xf32, #tpu.memory_space<vmem>>, %arg14: memref<8x128xf32, #tpu.memory_space<vmem>>) attributes {dimension_semantics = [], scalar_prefetch = 0 : i64, scratch_operands = 0 : i64, tpu.core_type = #tpu.core_type<tc>} {
    %c0 = arith.constant 0 : index
    %c0_0 = arith.constant 0 : index
    %0 = vector.load %arg0[%c0, %c0_0] : memref<8x128xf32, #tpu.memory_space<vmem>>, vector<8x128xf32>
    %c0_1 = arith.constant 0 : index
    %c0_2 = arith.constant 0 : index
    %1 = vector.load %arg2[%c0_1, %c0_2] : memref<8x1xf32, #tpu.memory_space<vmem>>, vector<8x1xf32>
    %2 = vector.broadcast %1 : vector<8x1xf32> to vector<8x128xf32>
    %3 = arith.mulf %0, %2 : vector<8x128xf32>
    %c0_3 = arith.constant 0 : index
    %c0_4 = arith.constant 0 : index
    %4 = vector.load %arg3[%c0_3, %c0_4] : memref<8x1xf32, #tpu.memory_space<vmem>>, vector<8x1xf32>
    %5 = vector.broadcast %4 : vector<8x1xf32> to vector<8x128xf32>
    %6 = arith.addf %3, %5 : vector<8x128xf32>
    %cst = arith.constant 0.000000e+00 : f32
    %7 = vector.broadcast %cst : f32 to vector<8x128xf32>
    %8 = arith.maximumf %6, %7 : vector<8x128xf32>
    %c0_5 = arith.constant 0 : index
    %c0_6 = arith.constant 0 : index
    %9 = vector.load %arg4[%c0_5, %c0_6] : memref<4x8xf32, #tpu.memory_space<vmem>>, vector<4x8xf32>
    %cst_7 = arith.constant dense<0.000000e+00> : vector<4x128xf32>
    %10 = tpu.matmul %9, %8, %cst_7 {dimension_numbers = #tpu.dot_dimension_numbers<[1], [0], [0], [1], [0, 0, 1, 1], [], []>} : vector<4x8xf32>, vector<8x128xf32>, vector<4x128xf32> -> vector<4x128xf32>
    %c0_8 = arith.constant 0 : index
    %c0_9 = arith.constant 0 : index
    %11 = vector.load %arg5[%c0_8, %c0_9] : memref<4x1xf32, #tpu.memory_space<vmem>>, vector<4x1xf32>
    %12 = vector.broadcast %11 : vector<4x1xf32> to vector<4x128xf32>
    %13 = arith.addf %10, %12 : vector<4x128xf32>
    %c0_10 = arith.constant 0 : index
    %c0_11 = arith.constant 0 : index
    %14 = vector.load %arg6[%c0_10, %c0_11] : memref<4x1xf32, #tpu.memory_space<vmem>>, vector<4x1xf32>
    %15 = vector.broadcast %14 : vector<4x1xf32> to vector<4x128xf32>
    %16 = arith.mulf %13, %15 : vector<4x128xf32>
    %c0_12 = arith.constant 0 : index
    %c0_13 = arith.constant 0 : index
    %17 = vector.load %arg7[%c0_12, %c0_13] : memref<4x1xf32, #tpu.memory_space<vmem>>, vector<4x1xf32>
    %18 = vector.broadcast %17 : vector<4x1xf32> to vector<4x128xf32>
    %19 = arith.addf %16, %18 : vector<4x128xf32>
    %cst_14 = arith.constant 0.000000e+00 : f32
    %20 = vector.broadcast %cst_14 : f32 to vector<4x128xf32>
    %21 = arith.maximumf %19, %20 : vector<4x128xf32>
    %c0_15 = arith.constant 0 : index
    %c0_16 = arith.constant 0 : index
    %22 = vector.load %arg1[%c0_15, %c0_16] : memref<9x128xf32, #tpu.memory_space<vmem>>, vector<9x128xf32>
    %c9_i32 = arith.constant 9 : i32
    %23 = tpu.dynamic_rotate %21 by %c9_i32 dim 1 : vector<4x128xf32>, i32 -> vector<4x128xf32>
    %24 = vector.extract_strided_slice %22 {offsets = [0, 0], sizes = [1, 128], strides = [1, 1]} : vector<9x128xf32> to vector<1x128xf32>
    %25 = vector.broadcast %24 : vector<1x128xf32> to vector<4x128xf32>
    %26 = arith.mulf %23, %25 : vector<4x128xf32>
    %c0_17 = arith.constant 0 : index
    %c0_18 = arith.constant 0 : index
    %c0_19 = arith.constant 0 : index
    %27 = vector.load %arg8[%c0_17, %c0_18, %c0_19] : memref<9x4x4xf32, #tpu.memory_space<vmem>>, vector<1x4x4xf32>
    %28 = vector.shape_cast %27 : vector<1x4x4xf32> to vector<4x4xf32>
    %cst_20 = arith.constant dense<0.000000e+00> : vector<4x128xf32>
    %29 = tpu.matmul %28, %26, %cst_20 {dimension_numbers = #tpu.dot_dimension_numbers<[1], [0], [0], [1], [0, 0, 1, 1], [], []>} : vector<4x4xf32>, vector<4x128xf32>, vector<4x128xf32> -> vector<4x128xf32>
    %c8_i32 = arith.constant 8 : i32
    %30 = tpu.dynamic_rotate %21 by %c8_i32 dim 1 : vector<4x128xf32>, i32 -> vector<4x128xf32>
    %31 = vector.extract_strided_slice %22 {offsets = [1, 0], sizes = [1, 128], strides = [1, 1]} : vector<9x128xf32> to vector<1x128xf32>
    %32 = vector.broadcast %31 : vector<1x128xf32> to vector<4x128xf32>
    %33 = arith.mulf %30, %32 : vector<4x128xf32>
    %c1 = arith.constant 1 : index
    %c0_21 = arith.constant 0 : index
    %c0_22 = arith.constant 0 : index
    %34 = vector.load %arg8[%c1, %c0_21, %c0_22] : memref<9x4x4xf32, #tpu.memory_space<vmem>>, vector<1x4x4xf32>
    %35 = vector.shape_cast %34 : vector<1x4x4xf32> to vector<4x4xf32>
    %cst_23 = arith.constant dense<0.000000e+00> : vector<4x128xf32>
    %36 = tpu.matmul %35, %33, %cst_23 {dimension_numbers = #tpu.dot_dimension_numbers<[1], [0], [0], [1], [0, 0, 1, 1], [], []>} : vector<4x4xf32>, vector<4x128xf32>, vector<4x128xf32> -> vector<4x128xf32>
    %37 = arith.addf %29, %36 : vector<4x128xf32>
    %c7_i32 = arith.constant 7 : i32
    %38 = tpu.dynamic_rotate %21 by %c7_i32 dim 1 : vector<4x128xf32>, i32 -> vector<4x128xf32>
    %39 = vector.extract_strided_slice %22 {offsets = [2, 0], sizes = [1, 128], strides = [1, 1]} : vector<9x128xf32> to vector<1x128xf32>
    %40 = vector.broadcast %39 : vector<1x128xf32> to vector<4x128xf32>
    %41 = arith.mulf %38, %40 : vector<4x128xf32>
    %c2 = arith.constant 2 : index
    %c0_24 = arith.constant 0 : index
    %c0_25 = arith.constant 0 : index
    %42 = vector.load %arg8[%c2, %c0_24, %c0_25] : memref<9x4x4xf32, #tpu.memory_space<vmem>>, vector<1x4x4xf32>
    %43 = vector.shape_cast %42 : vector<1x4x4xf32> to vector<4x4xf32>
    %cst_26 = arith.constant dense<0.000000e+00> : vector<4x128xf32>
    %44 = tpu.matmul %43, %41, %cst_26 {dimension_numbers = #tpu.dot_dimension_numbers<[1], [0], [0], [1], [0, 0, 1, 1], [], []>} : vector<4x4xf32>, vector<4x128xf32>, vector<4x128xf32> -> vector<4x128xf32>
    %45 = arith.addf %37, %44 : vector<4x128xf32>
    %c1_i32 = arith.constant 1 : i32
    %46 = tpu.dynamic_rotate %21 by %c1_i32 dim 1 : vector<4x128xf32>, i32 -> vector<4x128xf32>
    %47 = vector.extract_strided_slice %22 {offsets = [3, 0], sizes = [1, 128], strides = [1, 1]} : vector<9x128xf32> to vector<1x128xf32>
    %48 = vector.broadcast %47 : vector<1x128xf32> to vector<4x128xf32>
    %49 = arith.mulf %46, %48 : vector<4x128xf32>
    %c3 = arith.constant 3 : index
    %c0_27 = arith.constant 0 : index
    %c0_28 = arith.constant 0 : index
    %50 = vector.load %arg8[%c3, %c0_27, %c0_28] : memref<9x4x4xf32, #tpu.memory_space<vmem>>, vector<1x4x4xf32>
    %51 = vector.shape_cast %50 : vector<1x4x4xf32> to vector<4x4xf32>
    %cst_29 = arith.constant dense<0.000000e+00> : vector<4x128xf32>
    %52 = tpu.matmul %51, %49, %cst_29 {dimension_numbers = #tpu.dot_dimension_numbers<[1], [0], [0], [1], [0, 0, 1, 1], [], []>} : vector<4x4xf32>, vector<4x128xf32>, vector<4x128xf32> -> vector<4x128xf32>
    %53 = arith.addf %45, %52 : vector<4x128xf32>
    %c4 = arith.constant 4 : index
    %c0_30 = arith.constant 0 : index
    %c0_31 = arith.constant 0 : index
    %54 = vector.load %arg8[%c4, %c0_30, %c0_31] : memref<9x4x4xf32, #tpu.memory_space<vmem>>, vector<1x4x4xf32>
    %55 = vector.shape_cast %54 : vector<1x4x4xf32> to vector<4x4xf32>
    %cst_32 = arith.constant dense<0.000000e+00> : vector<4x128xf32>
    %56 = tpu.matmul %55, %21, %cst_32 {dimension_numbers = #tpu.dot_dimension_numbers<[1], [0], [0], [1], [0, 0, 1, 1], [], []>} : vector<4x4xf32>, vector<4x128xf32>, vector<4x128xf32> -> vector<4x128xf32>
    %57 = arith.addf %53, %56 : vector<4x128xf32>
    %c127_i32 = arith.constant 127 : i32
    %58 = tpu.dynamic_rotate %21 by %c127_i32 dim 1 : vector<4x128xf32>, i32 -> vector<4x128xf32>
    %59 = vector.extract_strided_slice %22 {offsets = [5, 0], sizes = [1, 128], strides = [1, 1]} : vector<9x128xf32> to vector<1x128xf32>
    %60 = vector.broadcast %59 : vector<1x128xf32> to vector<4x128xf32>
    %61 = arith.mulf %58, %60 : vector<4x128xf32>
    %c5 = arith.constant 5 : index
    %c0_33 = arith.constant 0 : index
    %c0_34 = arith.constant 0 : index
    %62 = vector.load %arg8[%c5, %c0_33, %c0_34] : memref<9x4x4xf32, #tpu.memory_space<vmem>>, vector<1x4x4xf32>
    %63 = vector.shape_cast %62 : vector<1x4x4xf32> to vector<4x4xf32>
    %cst_35 = arith.constant dense<0.000000e+00> : vector<4x128xf32>
    %64 = tpu.matmul %63, %61, %cst_35 {dimension_numbers = #tpu.dot_dimension_numbers<[1], [0], [0], [1], [0, 0, 1, 1], [], []>} : vector<4x4xf32>, vector<4x128xf32>, vector<4x128xf32> -> vector<4x128xf32>
    %65 = arith.addf %57, %64 : vector<4x128xf32>
    %c121_i32 = arith.constant 121 : i32
    %66 = tpu.dynamic_rotate %21 by %c121_i32 dim 1 : vector<4x128xf32>, i32 -> vector<4x128xf32>
    %67 = vector.extract_strided_slice %22 {offsets = [6, 0], sizes = [1, 128], strides = [1, 1]} : vector<9x128xf32> to vector<1x128xf32>
    %68 = vector.broadcast %67 : vector<1x128xf32> to vector<4x128xf32>
    %69 = arith.mulf %66, %68 : vector<4x128xf32>
    %c6 = arith.constant 6 : index
    %c0_36 = arith.constant 0 : index
    %c0_37 = arith.constant 0 : index
    %70 = vector.load %arg8[%c6, %c0_36, %c0_37] : memref<9x4x4xf32, #tpu.memory_space<vmem>>, vector<1x4x4xf32>
    %71 = vector.shape_cast %70 : vector<1x4x4xf32> to vector<4x4xf32>
    %cst_38 = arith.constant dense<0.000000e+00> : vector<4x128xf32>
    %72 = tpu.matmul %71, %69, %cst_38 {dimension_numbers = #tpu.dot_dimension_numbers<[1], [0], [0], [1], [0, 0, 1, 1], [], []>} : vector<4x4xf32>, vector<4x128xf32>, vector<4x128xf32> -> vector<4x128xf32>
    %73 = arith.addf %65, %72 : vector<4x128xf32>
    %c120_i32 = arith.constant 120 : i32
    %74 = tpu.dynamic_rotate %21 by %c120_i32 dim 1 : vector<4x128xf32>, i32 -> vector<4x128xf32>
    %75 = vector.extract_strided_slice %22 {offsets = [7, 0], sizes = [1, 128], strides = [1, 1]} : vector<9x128xf32> to vector<1x128xf32>
    %76 = vector.broadcast %75 : vector<1x128xf32> to vector<4x128xf32>
    %77 = arith.mulf %74, %76 : vector<4x128xf32>
    %c7 = arith.constant 7 : index
    %c0_39 = arith.constant 0 : index
    %c0_40 = arith.constant 0 : index
    %78 = vector.load %arg8[%c7, %c0_39, %c0_40] : memref<9x4x4xf32, #tpu.memory_space<vmem>>, vector<1x4x4xf32>
    %79 = vector.shape_cast %78 : vector<1x4x4xf32> to vector<4x4xf32>
    %cst_41 = arith.constant dense<0.000000e+00> : vector<4x128xf32>
    %80 = tpu.matmul %79, %77, %cst_41 {dimension_numbers = #tpu.dot_dimension_numbers<[1], [0], [0], [1], [0, 0, 1, 1], [], []>} : vector<4x4xf32>, vector<4x128xf32>, vector<4x128xf32> -> vector<4x128xf32>
    %81 = arith.addf %73, %80 : vector<4x128xf32>
    %c119_i32 = arith.constant 119 : i32
    %82 = tpu.dynamic_rotate %21 by %c119_i32 dim 1 : vector<4x128xf32>, i32 -> vector<4x128xf32>
    %83 = vector.extract_strided_slice %22 {offsets = [8, 0], sizes = [1, 128], strides = [1, 1]} : vector<9x128xf32> to vector<1x128xf32>
    %84 = vector.broadcast %83 : vector<1x128xf32> to vector<4x128xf32>
    %85 = arith.mulf %82, %84 : vector<4x128xf32>
    %c8 = arith.constant 8 : index
    %c0_42 = arith.constant 0 : index
    %c0_43 = arith.constant 0 : index
    %86 = vector.load %arg8[%c8, %c0_42, %c0_43] : memref<9x4x4xf32, #tpu.memory_space<vmem>>, vector<1x4x4xf32>
    %87 = vector.shape_cast %86 : vector<1x4x4xf32> to vector<4x4xf32>
    %cst_44 = arith.constant dense<0.000000e+00> : vector<4x128xf32>
    %88 = tpu.matmul %87, %85, %cst_44 {dimension_numbers = #tpu.dot_dimension_numbers<[1], [0], [0], [1], [0, 0, 1, 1], [], []>} : vector<4x4xf32>, vector<4x128xf32>, vector<4x128xf32> -> vector<4x128xf32>
    %89 = arith.addf %81, %88 : vector<4x128xf32>
    %c0_45 = arith.constant 0 : index
    %c0_46 = arith.constant 0 : index
    %90 = vector.load %arg9[%c0_45, %c0_46] : memref<4x1xf32, #tpu.memory_space<vmem>>, vector<4x1xf32>
    %91 = vector.broadcast %90 : vector<4x1xf32> to vector<4x128xf32>
    %92 = arith.addf %89, %91 : vector<4x128xf32>
    %c0_47 = arith.constant 0 : index
    %c0_48 = arith.constant 0 : index
    %93 = vector.load %arg10[%c0_47, %c0_48] : memref<4x1xf32, #tpu.memory_space<vmem>>, vector<4x1xf32>
    %94 = vector.broadcast %93 : vector<4x1xf32> to vector<4x128xf32>
    %95 = arith.mulf %92, %94 : vector<4x128xf32>
    %c0_49 = arith.constant 0 : index
    %c0_50 = arith.constant 0 : index
    %96 = vector.load %arg11[%c0_49, %c0_50] : memref<4x1xf32, #tpu.memory_space<vmem>>, vector<4x1xf32>
    %97 = vector.broadcast %96 : vector<4x1xf32> to vector<4x128xf32>
    %98 = arith.addf %95, %97 : vector<4x128xf32>
    %cst_51 = arith.constant 0.000000e+00 : f32
    %99 = vector.broadcast %cst_51 : f32 to vector<4x128xf32>
    %100 = arith.maximumf %98, %99 : vector<4x128xf32>
    %c0_52 = arith.constant 0 : index
    %c0_53 = arith.constant 0 : index
    %101 = vector.load %arg12[%c0_52, %c0_53] : memref<8x4xf32, #tpu.memory_space<vmem>>, vector<8x4xf32>
    %cst_54 = arith.constant dense<0.000000e+00> : vector<8x128xf32>
    %102 = tpu.matmul %101, %100, %cst_54 {dimension_numbers = #tpu.dot_dimension_numbers<[1], [0], [0], [1], [0, 0, 1, 1], [], []>} : vector<8x4xf32>, vector<4x128xf32>, vector<8x128xf32> -> vector<8x128xf32>
    %c0_55 = arith.constant 0 : index
    %c0_56 = arith.constant 0 : index
    %103 = vector.load %arg13[%c0_55, %c0_56] : memref<8x1xf32, #tpu.memory_space<vmem>>, vector<8x1xf32>
    %104 = vector.broadcast %103 : vector<8x1xf32> to vector<8x128xf32>
    %105 = arith.addf %102, %104 : vector<8x128xf32>
    %106 = arith.addf %105, %0 : vector<8x128xf32>
    %c0_57 = arith.constant 0 : index
    %c0_58 = arith.constant 0 : index
    %107 = vector.load %arg14[%c0_57, %c0_58] : memref<8x128xf32, #tpu.memory_space<vmem>>, vector<8x128xf32>
    tpu.vector_store %arg14[%c0_57, %c0_58], %106 {strides = array<i32>} : memref<8x128xf32, #tpu.memory_space<vmem>>, vector<8x128xf32>,
    return
  }
}

module attributes {stable_mosaic.version = 11 : i64} {
  func.func @kernel(%arg0: memref<8x128xf32, #tpu.memory_space<vmem>>, %arg1: memref<9x128xf32, #tpu.memory_space<vmem>>, %arg2: memref<8x1xf32, #tpu.memory_space<vmem>>, %arg3: memref<8x1xf32, #tpu.memory_space<vmem>>, %arg4: memref<4x8xf32, #tpu.memory_space<vmem>>, %arg5: memref<4x1xf32, #tpu.memory_space<vmem>>, %arg6: memref<4x1xf32, #tpu.memory_space<vmem>>, %arg7: memref<4x1xf32, #tpu.memory_space<vmem>>, %arg8: memref<9x4x4xf32, #tpu.memory_space<vmem>>, %arg9: memref<4x1xf32, #tpu.memory_space<vmem>>, %arg10: memref<4x1xf32, #tpu.memory_space<vmem>>, %arg11: memref<4x1xf32, #tpu.memory_space<vmem>>, %arg12: memref<8x4xf32, #tpu.memory_space<vmem>>, %arg13: memref<8x1xf32, #tpu.memory_space<vmem>>, %arg14: memref<8x128xf32, #tpu.memory_space<vmem>>) attributes {dimension_semantics = [], scalar_prefetch = 0 : i64, scratch_operands = 0 : i64, tpu.core_type = #tpu.core_type<tc>} {
    %c0 = arith.constant 0 : index
    %c0_0 = arith.constant 0 : index
    %0 = vector.load %arg0[%c0, %c0_0] : memref<8x128xf32, #tpu.memory_space<vmem>>, vector<8x128xf32>
    %c0_1 = arith.constant 0 : index
    %c0_2 = arith.constant 0 : index
    %1 = vector.load %arg2[%c0_1, %c0_2] : memref<8x1xf32, #tpu.memory_space<vmem>>, vector<8x1xf32>
    %2 = vector.broadcast %1 : vector<8x1xf32> to vector<8x128xf32>
    %3 = arith.mulf %0, %2 : vector<8x128xf32>
    %c0_3 = arith.constant 0 : index
    %c0_4 = arith.constant 0 : index
    %4 = vector.load %arg3[%c0_3, %c0_4] : memref<8x1xf32, #tpu.memory_space<vmem>>, vector<8x1xf32>
    %5 = vector.broadcast %4 : vector<8x1xf32> to vector<8x128xf32>
    %6 = arith.addf %3, %5 : vector<8x128xf32>
    %cst = arith.constant 0.000000e+00 : f32
    %7 = vector.broadcast %cst : f32 to vector<8x128xf32>
    %8 = arith.maximumf %6, %7 : vector<8x128xf32>
    %c0_5 = arith.constant 0 : index
    %c0_6 = arith.constant 0 : index
    %9 = vector.load %arg4[%c0_5, %c0_6] : memref<4x8xf32, #tpu.memory_space<vmem>>, vector<4x8xf32>
    %cst_7 = arith.constant dense<0.000000e+00> : vector<4x128xf32>
    %10 = tpu.matmul %9, %8, %cst_7 {dimension_numbers = #tpu.dot_dimension_numbers<[1], [0], [0], [1], [0, 0, 1, 1], [], []>} : vector<4x8xf32>, vector<8x128xf32>, vector<4x128xf32> -> vector<4x128xf32>
    %c0_8 = arith.constant 0 : index
    %c0_9 = arith.constant 0 : index
    %11 = vector.load %arg5[%c0_8, %c0_9] : memref<4x1xf32, #tpu.memory_space<vmem>>, vector<4x1xf32>
    %12 = vector.broadcast %11 : vector<4x1xf32> to vector<4x128xf32>
    %13 = arith.addf %10, %12 : vector<4x128xf32>
    %c0_10 = arith.constant 0 : index
    %c0_11 = arith.constant 0 : index
    %14 = vector.load %arg6[%c0_10, %c0_11] : memref<4x1xf32, #tpu.memory_space<vmem>>, vector<4x1xf32>
    %15 = vector.broadcast %14 : vector<4x1xf32> to vector<4x128xf32>
    %16 = arith.mulf %13, %15 : vector<4x128xf32>
    %c0_12 = arith.constant 0 : index
    %c0_13 = arith.constant 0 : index
    %17 = vector.load %arg7[%c0_12, %c0_13] : memref<4x1xf32, #tpu.memory_space<vmem>>, vector<4x1xf32>
    %18 = vector.broadcast %17 : vector<4x1xf32> to vector<4x128xf32>
    %19 = arith.addf %16, %18 : vector<4x128xf32>
    %cst_14 = arith.constant 0.000000e+00 : f32
    %20 = vector.broadcast %cst_14 : f32 to vector<4x128xf32>
    %21 = arith.maximumf %19, %20 : vector<4x128xf32>
    %c0_15 = arith.constant 0 : index
    %c0_16 = arith.constant 0 : index
    %22 = vector.load %arg1[%c0_15, %c0_16] : memref<9x128xf32, #tpu.memory_space<vmem>>, vector<9x128xf32>
    %c9_i32 = arith.constant 9 : i32
    %23 = tpu.dynamic_rotate %21 by %c9_i32 dim 1 : vector<4x128xf32>, i32 -> vector<4x128xf32>
    %24 = vector.extract_strided_slice %22 {offsets = [0, 0], sizes = [1, 128], strides = [1, 1]} : vector<9x128xf32> to vector<1x128xf32>
    %25 = vector.broadcast %24 : vector<1x128xf32> to vector<4x128xf32>
    %26 = arith.mulf %23, %25 : vector<4x128xf32>
    %c0_17 = arith.constant 0 : index
    %c0_18 = arith.constant 0 : index
    %c0_19 = arith.constant 0 : index
    %27 = vector.load %arg8[%c0_17, %c0_18, %c0_19] : memref<9x4x4xf32, #tpu.memory_space<vmem>>, vector<1x4x4xf32>
    %28 = vector.shape_cast %27 : vector<1x4x4xf32> to vector<4x4xf32>
    %cst_20 = arith.constant dense<0.000000e+00> : vector<4x128xf32>
    %29 = tpu.matmul %28, %26, %cst_20 {dimension_numbers = #tpu.dot_dimension_numbers<[1], [0], [0], [1], [0, 0, 1, 1], [], []>} : vector<4x4xf32>, vector<4x128xf32>, vector<4x128xf32> -> vector<4x128xf32>
    %c8_i32 = arith.constant 8 : i32
    %30 = tpu.dynamic_rotate %21 by %c8_i32 dim 1 : vector<4x128xf32>, i32 -> vector<4x128xf32>
    %31 = vector.extract_strided_slice %22 {offsets = [1, 0], sizes = [1, 128], strides = [1, 1]} : vector<9x128xf32> to vector<1x128xf32>
    %32 = vector.broadcast %31 : vector<1x128xf32> to vector<4x128xf32>
    %33 = arith.mulf %30, %32 : vector<4x128xf32>
    %c1 = arith.constant 1 : index
    %c0_21 = arith.constant 0 : index
    %c0_22 = arith.constant 0 : index
    %34 = vector.load %arg8[%c1, %c0_21, %c0_22] : memref<9x4x4xf32, #tpu.memory_space<vmem>>, vector<1x4x4xf32>
    %35 = vector.shape_cast %34 : vector<1x4x4xf32> to vector<4x4xf32>
    %cst_23 = arith.constant dense<0.000000e+00> : vector<4x128xf32>
    %36 = tpu.matmul %35, %33, %cst_23 {dimension_numbers = #tpu.dot_dimension_numbers<[1], [0], [0], [1], [0, 0, 1, 1], [], []>} : vector<4x4xf32>, vector<4x128xf32>, vector<4x128xf32> -> vector<4x128xf32>
    %37 = arith.addf %29, %36 : vector<4x128xf32>
    %c7_i32 = arith.constant 7 : i32
    %38 = tpu.dynamic_rotate %21 by %c7_i32 dim 1 : vector<4x128xf32>, i32 -> vector<4x128xf32>
    %39 = vector.extract_strided_slice %22 {offsets = [2, 0], sizes = [1, 128], strides = [1, 1]} : vector<9x128xf32> to vector<1x128xf32>
    %40 = vector.broadcast %39 : vector<1x128xf32> to vector<4x128xf32>
    %41 = arith.mulf %38, %40 : vector<4x128xf32>
    %c2 = arith.constant 2 : index
    %c0_24 = arith.constant 0 : index
    %c0_25 = arith.constant 0 : index
    %42 = vector.load %arg8[%c2, %c0_24, %c0_25] : memref<9x4x4xf32, #tpu.memory_space<vmem>>, vector<1x4x4xf32>
    %43 = vector.shape_cast %42 : vector<1x4x4xf32> to vector<4x4xf32>
    %cst_26 = arith.constant dense<0.000000e+00> : vector<4x128xf32>
    %44 = tpu.matmul %43, %41, %cst_26 {dimension_numbers = #tpu.dot_dimension_numbers<[1], [0], [0], [1], [0, 0, 1, 1], [], []>} : vector<4x4xf32>, vector<4x128xf32>, vector<4x128xf32> -> vector<4x128xf32>
    %45 = arith.addf %37, %44 : vector<4x128xf32>
    %c1_i32 = arith.constant 1 : i32
    %46 = tpu.dynamic_rotate %21 by %c1_i32 dim 1 : vector<4x128xf32>, i32 -> vector<4x128xf32>
    %47 = vector.extract_strided_slice %22 {offsets = [3, 0], sizes = [1, 128], strides = [1, 1]} : vector<9x128xf32> to vector<1x128xf32>
    %48 = vector.broadcast %47 : vector<1x128xf32> to vector<4x128xf32>
    %49 = arith.mulf %46, %48 : vector<4x128xf32>
    %c3 = arith.constant 3 : index
    %c0_27 = arith.constant 0 : index
    %c0_28 = arith.constant 0 : index
    %50 = vector.load %arg8[%c3, %c0_27, %c0_28] : memref<9x4x4xf32, #tpu.memory_space<vmem>>, vector<1x4x4xf32>
    %51 = vector.shape_cast %50 : vector<1x4x4xf32> to vector<4x4xf32>
    %cst_29 = arith.constant dense<0.000000e+00> : vector<4x128xf32>
    %52 = tpu.matmul %51, %49, %cst_29 {dimension_numbers = #tpu.dot_dimension_numbers<[1], [0], [0], [1], [0, 0, 1, 1], [], []>} : vector<4x4xf32>, vector<4x128xf32>, vector<4x128xf32> -> vector<4x128xf32>
    %53 = arith.addf %45, %52 : vector<4x128xf32>
    %c4 = arith.constant 4 : index
    %c0_30 = arith.constant 0 : index
    %c0_31 = arith.constant 0 : index
    %54 = vector.load %arg8[%c4, %c0_30, %c0_31] : memref<9x4x4xf32, #tpu.memory_space<vmem>>, vector<1x4x4xf32>
    %55 = vector.shape_cast %54 : vector<1x4x4xf32> to vector<4x4xf32>
    %cst_32 = arith.constant dense<0.000000e+00> : vector<4x128xf32>
    %56 = tpu.matmul %55, %21, %cst_32 {dimension_numbers = #tpu.dot_dimension_numbers<[1], [0], [0], [1], [0, 0, 1, 1], [], []>} : vector<4x4xf32>, vector<4x128xf32>, vector<4x128xf32> -> vector<4x128xf32>
    %57 = arith.addf %53, %56 : vector<4x128xf32>
    %c127_i32 = arith.constant 127 : i32
    %58 = tpu.dynamic_rotate %21 by %c127_i32 dim 1 : vector<4x128xf32>, i32 -> vector<4x128xf32>
    %59 = vector.extract_strided_slice %22 {offsets = [5, 0], sizes = [1, 128], strides = [1, 1]} : vector<9x128xf32> to vector<1x128xf32>
    %60 = vector.broadcast %59 : vector<1x128xf32> to vector<4x128xf32>
    %61 = arith.mulf %58, %60 : vector<4x128xf32>
    %c5 = arith.constant 5 : index
    %c0_33 = arith.constant 0 : index
    %c0_34 = arith.constant 0 : index
    %62 = vector.load %arg8[%c5, %c0_33, %c0_34] : memref<9x4x4xf32, #tpu.memory_space<vmem>>, vector<1x4x4xf32>
    %63 = vector.shape_cast %62 : vector<1x4x4xf32> to vector<4x4xf32>
    %cst_35 = arith.constant dense<0.000000e+00> : vector<4x128xf32>
    %64 = tpu.matmul %63, %61, %cst_35 {dimension_numbers = #tpu.dot_dimension_numbers<[1], [0], [0], [1], [0, 0, 1, 1], [], []>} : vector<4x4xf32>, vector<4x128xf32>, vector<4x128xf32> -> vector<4x128xf32>
    %65 = arith.addf %57, %64 : vector<4x128xf32>
    %c121_i32 = arith.constant 121 : i32
    %66 = tpu.dynamic_rotate %21 by %c121_i32 dim 1 : vector<4x128xf32>, i32 -> vector<4x128xf32>
    %67 = vector.extract_strided_slice %22 {offsets = [6, 0], sizes = [1, 128], strides = [1, 1]} : vector<9x128xf32> to vector<1x128xf32>
    %68 = vector.broadcast %67 : vector<1x128xf32> to vector<4x128xf32>
    %69 = arith.mulf %66, %68 : vector<4x128xf32>
    %c6 = arith.constant 6 : index
    %c0_36 = arith.constant 0 : index
    %c0_37 = arith.constant 0 : index
    %70 = vector.load %arg8[%c6, %c0_36, %c0_37] : memref<9x4x4xf32, #tpu.memory_space<vmem>>, vector<1x4x4xf32>
    %71 = vector.shape_cast %70 : vector<1x4x4xf32> to vector<4x4xf32>
    %cst_38 = arith.constant dense<0.000000e+00> : vector<4x128xf32>
    %72 = tpu.matmul %71, %69, %cst_38 {dimension_numbers = #tpu.dot_dimension_numbers<[1], [0], [0], [1], [0, 0, 1, 1], [], []>} : vector<4x4xf32>, vector<4x128xf32>, vector<4x128xf32> -> vector<4x128xf32>
    %73 = arith.addf %65, %72 : vector<4x128xf32>
    %c120_i32 = arith.constant 120 : i32
    %74 = tpu.dynamic_rotate %21 by %c120_i32 dim 1 : vector<4x128xf32>, i32 -> vector<4x128xf32>
    %75 = vector.extract_strided_slice %22 {offsets = [7, 0], sizes = [1, 128], strides = [1, 1]} : vector<9x128xf32> to vector<1x128xf32>
    %76 = vector.broadcast %75 : vector<1x128xf32> to vector<4x128xf32>
    %77 = arith.mulf %74, %76 : vector<4x128xf32>
    %c7 = arith.constant 7 : index
    %c0_39 = arith.constant 0 : index
    %c0_40 = arith.constant 0 : index
    %78 = vector.load %arg8[%c7, %c0_39, %c0_40] : memref<9x4x4xf32, #tpu.memory_space<vmem>>, vector<1x4x4xf32>
    %79 = vector.shape_cast %78 : vector<1x4x4xf32> to vector<4x4xf32>
    %cst_41 = arith.constant dense<0.000000e+00> : vector<4x128xf32>
    %80 = tpu.matmul %79, %77, %cst_41 {dimension_numbers = #tpu.dot_dimension_numbers<[1], [0], [0], [1], [0, 0, 1, 1], [], []>} : vector<4x4xf32>, vector<4x128xf32>, vector<4x128xf32> -> vector<4x128xf32>
    %81 = arith.addf %73, %80 : vector<4x128xf32>
    %c119_i32 = arith.constant 119 : i32
    %82 = tpu.dynamic_rotate %21 by %c119_i32 dim 1 : vector<4x128xf32>, i32 -> vector<4x128xf32>
    %83 = vector.extract_strided_slice %22 {offsets = [8, 0], sizes = [1, 128], strides = [1, 1]} : vector<9x128xf32> to vector<1x128xf32>
    %84 = vector.broadcast %83 : vector<1x128xf32> to vector<4x128xf32>
    %85 = arith.mulf %82, %84 : vector<4x128xf32>
    %c8 = arith.constant 8 : index
    %c0_42 = arith.constant 0 : index
    %c0_43 = arith.constant 0 : index
    %86 = vector.load %arg8[%c8, %c0_42, %c0_43] : memref<9x4x4xf32, #tpu.memory_space<vmem>>, vector<1x4x4xf32>
    %87 = vector.shape_cast %86 : vector<1x4x4xf32> to vector<4x4xf32>
    %cst_44 = arith.constant dense<0.000000e+00> : vector<4x128xf32>
    %88 = tpu.matmul %87, %85, %cst_44 {dimension_numbers = #tpu.dot_dimension_numbers<[1], [0], [0], [1], [0, 0, 1, 1], [], []>} : vector<4x4xf32>, vector<4x128xf32>, vector<4x128xf32> -> vector<4x128xf32>
    %89 = arith.addf %81, %88 : vector<4x128xf32>
    %c0_45 = arith.constant 0 : index
    %c0_46 = arith.constant 0 : index
    %90 = vector.load %arg9[%c0_45, %c0_46] : memref<4x1xf32, #tpu.memory_space<vmem>>, vector<4x1xf32>
    %91 = vector.broadcast %90 : vector<4x1xf32> to vector<4x128xf32>
    %92 = arith.addf %89, %91 : vector<4x128xf32>
    %c0_47 = arith.constant 0 : index
    %c0_48 = arith.constant 0 : index
    %93 = vector.load %arg10[%c0_47, %c0_48] : memref<4x1xf32, #tpu.memory_space<vmem>>, vector<4x1xf32>
    %94 = vector.broadcast %93 : vector<4x1xf32> to vector<4x128xf32>
    %95 = arith.mulf %92, %94 : vector<4x128xf32>
    %c0_49 = arith.constant 0 : index
    %c0_50 = arith.constant 0 : index
    %96 = vector.load %arg11[%c0_49, %c0_50] : memref<4x1xf32, #tpu.memory_space<vmem>>, vector<4x1xf32>
    %97 = vector.broadcast %96 : vector<4x1xf32> to vector<4x128xf32>
    %98 = arith.addf %95, %97 : vector<4x128xf32>
    %cst_51 = arith.constant 0.000000e+00 : f32
    %99 = vector.broadcast %cst_51 : f32 to vector<4x128xf32>
    %100 = arith.maximumf %98, %99 : vector<4x128xf32>
    %c0_52 = arith.constant 0 : index
    %c0_53 = arith.constant 0 : index
    %101 = vector.load %arg12[%c0_52, %c0_53] : memref<8x4xf32, #tpu.memory_space<vmem>>, vector<8x4xf32>
    %cst_54 = arith.constant dense<0.000000e+00> : vector<8x128xf32>
    %102 = tpu.matmul %101, %100, %cst_54 {dimension_numbers = #tpu.dot_dimension_numbers<[1], [0], [0], [1], [0, 0, 1, 1], [], []>} : vector<8x4xf32>, vector<4x128xf32>, vector<8x128xf32> -> vector<8x128xf32>
    %c0_55 = arith.constant 0 : index
    %c0_56 = arith.constant 0 : index
    %103 = vector.load %arg13[%c0_55, %c0_56] : memref<8x1xf32, #tpu.memory_space<vmem>>, vector<8x1xf32>
    %104 = vector.broadcast %103 : vector<8x1xf32> to vector<8x128xf32>
    %105 = arith.addf %102, %104 : vector<8x128xf32>
    %106 = arith.addf %105, %0 : vector<8x128xf32>
    %c0_57 = arith.constant 0 : index
    %c0_58 = arith.constant 0 : index
    %107 = vector.load %arg14[%c0_57, %c0_58] : memref<8x128xf32, #tpu.memory_space<vmem>>, vector<8x128xf32>
    tpu.vector_store %arg14[%c0_57, %c0_58], %106 {strides = array<i32>} : memref<8x128xf32, #tpu.memory_space<vmem>>, vector<8x128xf32>,
    return
  }
}

module attributes {stable_mosaic.version = 11 : i64} {
  func.func @_resize_kernel(%arg0: memref<8x128xf32, #tpu.memory_space<vmem>>, %arg1: memref<128x32xf32, #tpu.memory_space<vmem>>, %arg2: memref<8x32xf32, #tpu.memory_space<vmem>>) attributes {dimension_semantics = [], scalar_prefetch = 0 : i64, scratch_operands = 0 : i64, tpu.core_type = #tpu.core_type<tc>} {
    %c0 = arith.constant 0 : index
    %c0_0 = arith.constant 0 : index
    %0 = vector.load %arg0[%c0, %c0_0] : memref<8x128xf32, #tpu.memory_space<vmem>>, vector<8x128xf32>
    %c0_1 = arith.constant 0 : index
    %c0_2 = arith.constant 0 : index
    %1 = vector.load %arg1[%c0_1, %c0_2] : memref<128x32xf32, #tpu.memory_space<vmem>>, vector<128x32xf32>
    %cst = arith.constant dense<0.000000e+00> : vector<8x32xf32>
    %2 = tpu.matmul %0, %1, %cst {dimension_numbers = #tpu.dot_dimension_numbers<[1], [0], [0], [1], [0, 0, 1, 1], [], []>} : vector<8x128xf32>, vector<128x32xf32>, vector<8x32xf32> -> vector<8x32xf32>
    %c0_3 = arith.constant 0 : index
    %c0_4 = arith.constant 0 : index
    %3 = vector.load %arg2[%c0_3, %c0_4] : memref<8x32xf32, #tpu.memory_space<vmem>>, vector<8x32xf32>
    tpu.vector_store %arg2[%c0_3, %c0_4], %2 {strides = array<i32>} : memref<8x32xf32, #tpu.memory_space<vmem>>, vector<8x32xf32>,
    return
  }
}

module attributes {stable_mosaic.version = 11 : i64} {
  func.func @kernel(%arg0: memref<8x32xf32, #tpu.memory_space<vmem>>, %arg1: memref<9x32x32xf32, #tpu.memory_space<vmem>>, %arg2: memref<8x1xf32, #tpu.memory_space<vmem>>, %arg3: memref<8x1xf32, #tpu.memory_space<vmem>>, %arg4: memref<4x8xf32, #tpu.memory_space<vmem>>, %arg5: memref<4x1xf32, #tpu.memory_space<vmem>>, %arg6: memref<4x1xf32, #tpu.memory_space<vmem>>, %arg7: memref<4x1xf32, #tpu.memory_space<vmem>>, %arg8: memref<9x4x4xf32, #tpu.memory_space<vmem>>, %arg9: memref<4x1xf32, #tpu.memory_space<vmem>>, %arg10: memref<4x1xf32, #tpu.memory_space<vmem>>, %arg11: memref<4x1xf32, #tpu.memory_space<vmem>>, %arg12: memref<8x4xf32, #tpu.memory_space<vmem>>, %arg13: memref<8x1xf32, #tpu.memory_space<vmem>>, %arg14: memref<8x32xf32, #tpu.memory_space<vmem>>) attributes {dimension_semantics = [], scalar_prefetch = 0 : i64, scratch_operands = 0 : i64, tpu.core_type = #tpu.core_type<tc>} {
    %c0 = arith.constant 0 : index
    %c0_0 = arith.constant 0 : index
    %0 = vector.load %arg0[%c0, %c0_0] : memref<8x32xf32, #tpu.memory_space<vmem>>, vector<8x32xf32>
    %c0_1 = arith.constant 0 : index
    %c0_2 = arith.constant 0 : index
    %1 = vector.load %arg2[%c0_1, %c0_2] : memref<8x1xf32, #tpu.memory_space<vmem>>, vector<8x1xf32>
    %2 = vector.broadcast %1 : vector<8x1xf32> to vector<8x32xf32>
    %3 = arith.mulf %0, %2 : vector<8x32xf32>
    %c0_3 = arith.constant 0 : index
    %c0_4 = arith.constant 0 : index
    %4 = vector.load %arg3[%c0_3, %c0_4] : memref<8x1xf32, #tpu.memory_space<vmem>>, vector<8x1xf32>
    %5 = vector.broadcast %4 : vector<8x1xf32> to vector<8x32xf32>
    %6 = arith.addf %3, %5 : vector<8x32xf32>
    %cst = arith.constant 0.000000e+00 : f32
    %7 = vector.broadcast %cst : f32 to vector<8x32xf32>
    %8 = arith.maximumf %6, %7 : vector<8x32xf32>
    %c0_5 = arith.constant 0 : index
    %c0_6 = arith.constant 0 : index
    %9 = vector.load %arg4[%c0_5, %c0_6] : memref<4x8xf32, #tpu.memory_space<vmem>>, vector<4x8xf32>
    %cst_7 = arith.constant dense<0.000000e+00> : vector<4x32xf32>
    %10 = tpu.matmul %9, %8, %cst_7 {dimension_numbers = #tpu.dot_dimension_numbers<[1], [0], [0], [1], [0, 0, 1, 1], [], []>} : vector<4x8xf32>, vector<8x32xf32>, vector<4x32xf32> -> vector<4x32xf32>
    %c0_8 = arith.constant 0 : index
    %c0_9 = arith.constant 0 : index
    %11 = vector.load %arg5[%c0_8, %c0_9] : memref<4x1xf32, #tpu.memory_space<vmem>>, vector<4x1xf32>
    %12 = vector.broadcast %11 : vector<4x1xf32> to vector<4x32xf32>
    %13 = arith.addf %10, %12 : vector<4x32xf32>
    %c0_10 = arith.constant 0 : index
    %c0_11 = arith.constant 0 : index
    %14 = vector.load %arg6[%c0_10, %c0_11] : memref<4x1xf32, #tpu.memory_space<vmem>>, vector<4x1xf32>
    %15 = vector.broadcast %14 : vector<4x1xf32> to vector<4x32xf32>
    %16 = arith.mulf %13, %15 : vector<4x32xf32>
    %c0_12 = arith.constant 0 : index
    %c0_13 = arith.constant 0 : index
    %17 = vector.load %arg7[%c0_12, %c0_13] : memref<4x1xf32, #tpu.memory_space<vmem>>, vector<4x1xf32>
    %18 = vector.broadcast %17 : vector<4x1xf32> to vector<4x32xf32>
    %19 = arith.addf %16, %18 : vector<4x32xf32>
    %cst_14 = arith.constant 0.000000e+00 : f32
    %20 = vector.broadcast %cst_14 : f32 to vector<4x32xf32>
    %21 = arith.maximumf %19, %20 : vector<4x32xf32>
    %c0_15 = arith.constant 0 : index
    %c0_16 = arith.constant 0 : index
    %c0_17 = arith.constant 0 : index
    %22 = vector.load %arg1[%c0_15, %c0_16, %c0_17] : memref<9x32x32xf32, #tpu.memory_space<vmem>>, vector<9x32x32xf32>
    %23 = vector.extract_strided_slice %22 {offsets = [0, 0, 0], sizes = [1, 32, 32], strides = [1, 1, 1]} : vector<9x32x32xf32> to vector<1x32x32xf32>
    %24 = vector.shape_cast %23 : vector<1x32x32xf32> to vector<32x32xf32>
    %cst_18 = arith.constant dense<0.000000e+00> : vector<4x32xf32>
    %25 = tpu.matmul %21, %24, %cst_18 {dimension_numbers = #tpu.dot_dimension_numbers<[1], [0], [0], [1], [0, 0, 1, 1], [], []>} : vector<4x32xf32>, vector<32x32xf32>, vector<4x32xf32> -> vector<4x32xf32>
    %c0_19 = arith.constant 0 : index
    %c0_20 = arith.constant 0 : index
    %c0_21 = arith.constant 0 : index
    %26 = vector.load %arg8[%c0_19, %c0_20, %c0_21] : memref<9x4x4xf32, #tpu.memory_space<vmem>>, vector<1x4x4xf32>
    %27 = vector.shape_cast %26 : vector<1x4x4xf32> to vector<4x4xf32>
    %cst_22 = arith.constant dense<0.000000e+00> : vector<4x32xf32>
    %28 = tpu.matmul %27, %25, %cst_22 {dimension_numbers = #tpu.dot_dimension_numbers<[1], [0], [0], [1], [0, 0, 1, 1], [], []>} : vector<4x4xf32>, vector<4x32xf32>, vector<4x32xf32> -> vector<4x32xf32>
    %29 = vector.extract_strided_slice %22 {offsets = [1, 0, 0], sizes = [1, 32, 32], strides = [1, 1, 1]} : vector<9x32x32xf32> to vector<1x32x32xf32>
    %30 = vector.shape_cast %29 : vector<1x32x32xf32> to vector<32x32xf32>
    %cst_23 = arith.constant dense<0.000000e+00> : vector<4x32xf32>
    %31 = tpu.matmul %21, %30, %cst_23 {dimension_numbers = #tpu.dot_dimension_numbers<[1], [0], [0], [1], [0, 0, 1, 1], [], []>} : vector<4x32xf32>, vector<32x32xf32>, vector<4x32xf32> -> vector<4x32xf32>
    %c1 = arith.constant 1 : index
    %c0_24 = arith.constant 0 : index
    %c0_25 = arith.constant 0 : index
    %32 = vector.load %arg8[%c1, %c0_24, %c0_25] : memref<9x4x4xf32, #tpu.memory_space<vmem>>, vector<1x4x4xf32>
    %33 = vector.shape_cast %32 : vector<1x4x4xf32> to vector<4x4xf32>
    %cst_26 = arith.constant dense<0.000000e+00> : vector<4x32xf32>
    %34 = tpu.matmul %33, %31, %cst_26 {dimension_numbers = #tpu.dot_dimension_numbers<[1], [0], [0], [1], [0, 0, 1, 1], [], []>} : vector<4x4xf32>, vector<4x32xf32>, vector<4x32xf32> -> vector<4x32xf32>
    %35 = arith.addf %28, %34 : vector<4x32xf32>
    %36 = vector.extract_strided_slice %22 {offsets = [2, 0, 0], sizes = [1, 32, 32], strides = [1, 1, 1]} : vector<9x32x32xf32> to vector<1x32x32xf32>
    %37 = vector.shape_cast %36 : vector<1x32x32xf32> to vector<32x32xf32>
    %cst_27 = arith.constant dense<0.000000e+00> : vector<4x32xf32>
    %38 = tpu.matmul %21, %37, %cst_27 {dimension_numbers = #tpu.dot_dimension_numbers<[1], [0], [0], [1], [0, 0, 1, 1], [], []>} : vector<4x32xf32>, vector<32x32xf32>, vector<4x32xf32> -> vector<4x32xf32>
    %c2 = arith.constant 2 : index
    %c0_28 = arith.constant 0 : index
    %c0_29 = arith.constant 0 : index
    %39 = vector.load %arg8[%c2, %c0_28, %c0_29] : memref<9x4x4xf32, #tpu.memory_space<vmem>>, vector<1x4x4xf32>
    %40 = vector.shape_cast %39 : vector<1x4x4xf32> to vector<4x4xf32>
    %cst_30 = arith.constant dense<0.000000e+00> : vector<4x32xf32>
    %41 = tpu.matmul %40, %38, %cst_30 {dimension_numbers = #tpu.dot_dimension_numbers<[1], [0], [0], [1], [0, 0, 1, 1], [], []>} : vector<4x4xf32>, vector<4x32xf32>, vector<4x32xf32> -> vector<4x32xf32>
    %42 = arith.addf %35, %41 : vector<4x32xf32>
    %43 = vector.extract_strided_slice %22 {offsets = [3, 0, 0], sizes = [1, 32, 32], strides = [1, 1, 1]} : vector<9x32x32xf32> to vector<1x32x32xf32>
    %44 = vector.shape_cast %43 : vector<1x32x32xf32> to vector<32x32xf32>
    %cst_31 = arith.constant dense<0.000000e+00> : vector<4x32xf32>
    %45 = tpu.matmul %21, %44, %cst_31 {dimension_numbers = #tpu.dot_dimension_numbers<[1], [0], [0], [1], [0, 0, 1, 1], [], []>} : vector<4x32xf32>, vector<32x32xf32>, vector<4x32xf32> -> vector<4x32xf32>
    %c3 = arith.constant 3 : index
    %c0_32 = arith.constant 0 : index
    %c0_33 = arith.constant 0 : index
    %46 = vector.load %arg8[%c3, %c0_32, %c0_33] : memref<9x4x4xf32, #tpu.memory_space<vmem>>, vector<1x4x4xf32>
    %47 = vector.shape_cast %46 : vector<1x4x4xf32> to vector<4x4xf32>
    %cst_34 = arith.constant dense<0.000000e+00> : vector<4x32xf32>
    %48 = tpu.matmul %47, %45, %cst_34 {dimension_numbers = #tpu.dot_dimension_numbers<[1], [0], [0], [1], [0, 0, 1, 1], [], []>} : vector<4x4xf32>, vector<4x32xf32>, vector<4x32xf32> -> vector<4x32xf32>
    %49 = arith.addf %42, %48 : vector<4x32xf32>
    %50 = vector.extract_strided_slice %22 {offsets = [4, 0, 0], sizes = [1, 32, 32], strides = [1, 1, 1]} : vector<9x32x32xf32> to vector<1x32x32xf32>
    %51 = vector.shape_cast %50 : vector<1x32x32xf32> to vector<32x32xf32>
    %cst_35 = arith.constant dense<0.000000e+00> : vector<4x32xf32>
    %52 = tpu.matmul %21, %51, %cst_35 {dimension_numbers = #tpu.dot_dimension_numbers<[1], [0], [0], [1], [0, 0, 1, 1], [], []>} : vector<4x32xf32>, vector<32x32xf32>, vector<4x32xf32> -> vector<4x32xf32>
    %c4 = arith.constant 4 : index
    %c0_36 = arith.constant 0 : index
    %c0_37 = arith.constant 0 : index
    %53 = vector.load %arg8[%c4, %c0_36, %c0_37] : memref<9x4x4xf32, #tpu.memory_space<vmem>>, vector<1x4x4xf32>
    %54 = vector.shape_cast %53 : vector<1x4x4xf32> to vector<4x4xf32>
    %cst_38 = arith.constant dense<0.000000e+00> : vector<4x32xf32>
    %55 = tpu.matmul %54, %52, %cst_38 {dimension_numbers = #tpu.dot_dimension_numbers<[1], [0], [0], [1], [0, 0, 1, 1], [], []>} : vector<4x4xf32>, vector<4x32xf32>, vector<4x32xf32> -> vector<4x32xf32>
    %56 = arith.addf %49, %55 : vector<4x32xf32>
    %57 = vector.extract_strided_slice %22 {offsets = [5, 0, 0], sizes = [1, 32, 32], strides = [1, 1, 1]} : vector<9x32x32xf32> to vector<1x32x32xf32>
    %58 = vector.shape_cast %57 : vector<1x32x32xf32> to vector<32x32xf32>
    %cst_39 = arith.constant dense<0.000000e+00> : vector<4x32xf32>
    %59 = tpu.matmul %21, %58, %cst_39 {dimension_numbers = #tpu.dot_dimension_numbers<[1], [0], [0], [1], [0, 0, 1, 1], [], []>} : vector<4x32xf32>, vector<32x32xf32>, vector<4x32xf32> -> vector<4x32xf32>
    %c5 = arith.constant 5 : index
    %c0_40 = arith.constant 0 : index
    %c0_41 = arith.constant 0 : index
    %60 = vector.load %arg8[%c5, %c0_40, %c0_41] : memref<9x4x4xf32, #tpu.memory_space<vmem>>, vector<1x4x4xf32>
    %61 = vector.shape_cast %60 : vector<1x4x4xf32> to vector<4x4xf32>
    %cst_42 = arith.constant dense<0.000000e+00> : vector<4x32xf32>
    %62 = tpu.matmul %61, %59, %cst_42 {dimension_numbers = #tpu.dot_dimension_numbers<[1], [0], [0], [1], [0, 0, 1, 1], [], []>} : vector<4x4xf32>, vector<4x32xf32>, vector<4x32xf32> -> vector<4x32xf32>
    %63 = arith.addf %56, %62 : vector<4x32xf32>
    %64 = vector.extract_strided_slice %22 {offsets = [6, 0, 0], sizes = [1, 32, 32], strides = [1, 1, 1]} : vector<9x32x32xf32> to vector<1x32x32xf32>
    %65 = vector.shape_cast %64 : vector<1x32x32xf32> to vector<32x32xf32>
    %cst_43 = arith.constant dense<0.000000e+00> : vector<4x32xf32>
    %66 = tpu.matmul %21, %65, %cst_43 {dimension_numbers = #tpu.dot_dimension_numbers<[1], [0], [0], [1], [0, 0, 1, 1], [], []>} : vector<4x32xf32>, vector<32x32xf32>, vector<4x32xf32> -> vector<4x32xf32>
    %c6 = arith.constant 6 : index
    %c0_44 = arith.constant 0 : index
    %c0_45 = arith.constant 0 : index
    %67 = vector.load %arg8[%c6, %c0_44, %c0_45] : memref<9x4x4xf32, #tpu.memory_space<vmem>>, vector<1x4x4xf32>
    %68 = vector.shape_cast %67 : vector<1x4x4xf32> to vector<4x4xf32>
    %cst_46 = arith.constant dense<0.000000e+00> : vector<4x32xf32>
    %69 = tpu.matmul %68, %66, %cst_46 {dimension_numbers = #tpu.dot_dimension_numbers<[1], [0], [0], [1], [0, 0, 1, 1], [], []>} : vector<4x4xf32>, vector<4x32xf32>, vector<4x32xf32> -> vector<4x32xf32>
    %70 = arith.addf %63, %69 : vector<4x32xf32>
    %71 = vector.extract_strided_slice %22 {offsets = [7, 0, 0], sizes = [1, 32, 32], strides = [1, 1, 1]} : vector<9x32x32xf32> to vector<1x32x32xf32>
    %72 = vector.shape_cast %71 : vector<1x32x32xf32> to vector<32x32xf32>
    %cst_47 = arith.constant dense<0.000000e+00> : vector<4x32xf32>
    %73 = tpu.matmul %21, %72, %cst_47 {dimension_numbers = #tpu.dot_dimension_numbers<[1], [0], [0], [1], [0, 0, 1, 1], [], []>} : vector<4x32xf32>, vector<32x32xf32>, vector<4x32xf32> -> vector<4x32xf32>
    %c7 = arith.constant 7 : index
    %c0_48 = arith.constant 0 : index
    %c0_49 = arith.constant 0 : index
    %74 = vector.load %arg8[%c7, %c0_48, %c0_49] : memref<9x4x4xf32, #tpu.memory_space<vmem>>, vector<1x4x4xf32>
    %75 = vector.shape_cast %74 : vector<1x4x4xf32> to vector<4x4xf32>
    %cst_50 = arith.constant dense<0.000000e+00> : vector<4x32xf32>
    %76 = tpu.matmul %75, %73, %cst_50 {dimension_numbers = #tpu.dot_dimension_numbers<[1], [0], [0], [1], [0, 0, 1, 1], [], []>} : vector<4x4xf32>, vector<4x32xf32>, vector<4x32xf32> -> vector<4x32xf32>
    %77 = arith.addf %70, %76 : vector<4x32xf32>
    %78 = vector.extract_strided_slice %22 {offsets = [8, 0, 0], sizes = [1, 32, 32], strides = [1, 1, 1]} : vector<9x32x32xf32> to vector<1x32x32xf32>
    %79 = vector.shape_cast %78 : vector<1x32x32xf32> to vector<32x32xf32>
    %cst_51 = arith.constant dense<0.000000e+00> : vector<4x32xf32>
    %80 = tpu.matmul %21, %79, %cst_51 {dimension_numbers = #tpu.dot_dimension_numbers<[1], [0], [0], [1], [0, 0, 1, 1], [], []>} : vector<4x32xf32>, vector<32x32xf32>, vector<4x32xf32> -> vector<4x32xf32>
    %c8 = arith.constant 8 : index
    %c0_52 = arith.constant 0 : index
    %c0_53 = arith.constant 0 : index
    %81 = vector.load %arg8[%c8, %c0_52, %c0_53] : memref<9x4x4xf32, #tpu.memory_space<vmem>>, vector<1x4x4xf32>
    %82 = vector.shape_cast %81 : vector<1x4x4xf32> to vector<4x4xf32>
    %cst_54 = arith.constant dense<0.000000e+00> : vector<4x32xf32>
    %83 = tpu.matmul %82, %80, %cst_54 {dimension_numbers = #tpu.dot_dimension_numbers<[1], [0], [0], [1], [0, 0, 1, 1], [], []>} : vector<4x4xf32>, vector<4x32xf32>, vector<4x32xf32> -> vector<4x32xf32>
    %84 = arith.addf %77, %83 : vector<4x32xf32>
    %c0_55 = arith.constant 0 : index
    %c0_56 = arith.constant 0 : index
    %85 = vector.load %arg9[%c0_55, %c0_56] : memref<4x1xf32, #tpu.memory_space<vmem>>, vector<4x1xf32>
    %86 = vector.broadcast %85 : vector<4x1xf32> to vector<4x32xf32>
    %87 = arith.addf %84, %86 : vector<4x32xf32>
    %c0_57 = arith.constant 0 : index
    %c0_58 = arith.constant 0 : index
    %88 = vector.load %arg10[%c0_57, %c0_58] : memref<4x1xf32, #tpu.memory_space<vmem>>, vector<4x1xf32>
    %89 = vector.broadcast %88 : vector<4x1xf32> to vector<4x32xf32>
    %90 = arith.mulf %87, %89 : vector<4x32xf32>
    %c0_59 = arith.constant 0 : index
    %c0_60 = arith.constant 0 : index
    %91 = vector.load %arg11[%c0_59, %c0_60] : memref<4x1xf32, #tpu.memory_space<vmem>>, vector<4x1xf32>
    %92 = vector.broadcast %91 : vector<4x1xf32> to vector<4x32xf32>
    %93 = arith.addf %90, %92 : vector<4x32xf32>
    %cst_61 = arith.constant 0.000000e+00 : f32
    %94 = vector.broadcast %cst_61 : f32 to vector<4x32xf32>
    %95 = arith.maximumf %93, %94 : vector<4x32xf32>
    %c0_62 = arith.constant 0 : index
    %c0_63 = arith.constant 0 : index
    %96 = vector.load %arg12[%c0_62, %c0_63] : memref<8x4xf32, #tpu.memory_space<vmem>>, vector<8x4xf32>
    %cst_64 = arith.constant dense<0.000000e+00> : vector<8x32xf32>
    %97 = tpu.matmul %96, %95, %cst_64 {dimension_numbers = #tpu.dot_dimension_numbers<[1], [0], [0], [1], [0, 0, 1, 1], [], []>} : vector<8x4xf32>, vector<4x32xf32>, vector<8x32xf32> -> vector<8x32xf32>
    %c0_65 = arith.constant 0 : index
    %c0_66 = arith.constant 0 : index
    %98 = vector.load %arg13[%c0_65, %c0_66] : memref<8x1xf32, #tpu.memory_space<vmem>>, vector<8x1xf32>
    %99 = vector.broadcast %98 : vector<8x1xf32> to vector<8x32xf32>
    %100 = arith.addf %97, %99 : vector<8x32xf32>
    %101 = arith.addf %100, %0 : vector<8x32xf32>
    %c0_67 = arith.constant 0 : index
    %c0_68 = arith.constant 0 : index
    %102 = vector.load %arg14[%c0_67, %c0_68] : memref<8x32xf32, #tpu.memory_space<vmem>>, vector<8x32xf32>
    tpu.vector_store %arg14[%c0_67, %c0_68], %101 {strides = array<i32>} : memref<8x32xf32, #tpu.memory_space<vmem>>, vector<8x32xf32>,
    return
  }
}

module attributes {stable_mosaic.version = 11 : i64} {
  func.func @kernel(%arg0: memref<8x32xf32, #tpu.memory_space<vmem>>, %arg1: memref<9x32x32xf32, #tpu.memory_space<vmem>>, %arg2: memref<8x1xf32, #tpu.memory_space<vmem>>, %arg3: memref<8x1xf32, #tpu.memory_space<vmem>>, %arg4: memref<2x8xf32, #tpu.memory_space<vmem>>, %arg5: memref<2x1xf32, #tpu.memory_space<vmem>>, %arg6: memref<2x1xf32, #tpu.memory_space<vmem>>, %arg7: memref<2x1xf32, #tpu.memory_space<vmem>>, %arg8: memref<9x2x2xf32, #tpu.memory_space<vmem>>, %arg9: memref<2x1xf32, #tpu.memory_space<vmem>>, %arg10: memref<2x1xf32, #tpu.memory_space<vmem>>, %arg11: memref<2x1xf32, #tpu.memory_space<vmem>>, %arg12: memref<4x2xf32, #tpu.memory_space<vmem>>, %arg13: memref<4x1xf32, #tpu.memory_space<vmem>>, %arg14: memref<8x1xf32, #tpu.memory_space<vmem>>, %arg15: memref<8x1xf32, #tpu.memory_space<vmem>>, %arg16: memref<4x8xf32, #tpu.memory_space<vmem>>, %arg17: memref<4x1xf32, #tpu.memory_space<vmem>>, %arg18: memref<4x32xf32, #tpu.memory_space<vmem>>) attributes {dimension_semantics = [], scalar_prefetch = 0 : i64, scratch_operands = 0 : i64, tpu.core_type = #tpu.core_type<tc>} {
    %c0 = arith.constant 0 : index
    %c0_0 = arith.constant 0 : index
    %0 = vector.load %arg0[%c0, %c0_0] : memref<8x32xf32, #tpu.memory_space<vmem>>, vector<8x32xf32>
    %c0_1 = arith.constant 0 : index
    %c0_2 = arith.constant 0 : index
    %1 = vector.load %arg2[%c0_1, %c0_2] : memref<8x1xf32, #tpu.memory_space<vmem>>, vector<8x1xf32>
    %2 = vector.broadcast %1 : vector<8x1xf32> to vector<8x32xf32>
    %3 = arith.mulf %0, %2 : vector<8x32xf32>
    %c0_3 = arith.constant 0 : index
    %c0_4 = arith.constant 0 : index
    %4 = vector.load %arg3[%c0_3, %c0_4] : memref<8x1xf32, #tpu.memory_space<vmem>>, vector<8x1xf32>
    %5 = vector.broadcast %4 : vector<8x1xf32> to vector<8x32xf32>
    %6 = arith.addf %3, %5 : vector<8x32xf32>
    %cst = arith.constant 0.000000e+00 : f32
    %7 = vector.broadcast %cst : f32 to vector<8x32xf32>
    %8 = arith.maximumf %6, %7 : vector<8x32xf32>
    %c0_5 = arith.constant 0 : index
    %c0_6 = arith.constant 0 : index
    %9 = vector.load %arg4[%c0_5, %c0_6] : memref<2x8xf32, #tpu.memory_space<vmem>>, vector<2x8xf32>
    %cst_7 = arith.constant dense<0.000000e+00> : vector<2x32xf32>
    %10 = tpu.matmul %9, %8, %cst_7 {dimension_numbers = #tpu.dot_dimension_numbers<[1], [0], [0], [1], [0, 0, 1, 1], [], []>} : vector<2x8xf32>, vector<8x32xf32>, vector<2x32xf32> -> vector<2x32xf32>
    %c0_8 = arith.constant 0 : index
    %c0_9 = arith.constant 0 : index
    %11 = vector.load %arg5[%c0_8, %c0_9] : memref<2x1xf32, #tpu.memory_space<vmem>>, vector<2x1xf32>
    %12 = vector.broadcast %11 : vector<2x1xf32> to vector<2x32xf32>
    %13 = arith.addf %10, %12 : vector<2x32xf32>
    %c0_10 = arith.constant 0 : index
    %c0_11 = arith.constant 0 : index
    %14 = vector.load %arg6[%c0_10, %c0_11] : memref<2x1xf32, #tpu.memory_space<vmem>>, vector<2x1xf32>
    %15 = vector.broadcast %14 : vector<2x1xf32> to vector<2x32xf32>
    %16 = arith.mulf %13, %15 : vector<2x32xf32>
    %c0_12 = arith.constant 0 : index
    %c0_13 = arith.constant 0 : index
    %17 = vector.load %arg7[%c0_12, %c0_13] : memref<2x1xf32, #tpu.memory_space<vmem>>, vector<2x1xf32>
    %18 = vector.broadcast %17 : vector<2x1xf32> to vector<2x32xf32>
    %19 = arith.addf %16, %18 : vector<2x32xf32>
    %cst_14 = arith.constant 0.000000e+00 : f32
    %20 = vector.broadcast %cst_14 : f32 to vector<2x32xf32>
    %21 = arith.maximumf %19, %20 : vector<2x32xf32>
    %c0_15 = arith.constant 0 : index
    %c0_16 = arith.constant 0 : index
    %c0_17 = arith.constant 0 : index
    %22 = vector.load %arg1[%c0_15, %c0_16, %c0_17] : memref<9x32x32xf32, #tpu.memory_space<vmem>>, vector<9x32x32xf32>
    %23 = vector.extract_strided_slice %22 {offsets = [0, 0, 0], sizes = [1, 32, 32], strides = [1, 1, 1]} : vector<9x32x32xf32> to vector<1x32x32xf32>
    %24 = vector.shape_cast %23 : vector<1x32x32xf32> to vector<32x32xf32>
    %cst_18 = arith.constant dense<0.000000e+00> : vector<2x32xf32>
    %25 = tpu.matmul %21, %24, %cst_18 {dimension_numbers = #tpu.dot_dimension_numbers<[1], [0], [0], [1], [0, 0, 1, 1], [], []>} : vector<2x32xf32>, vector<32x32xf32>, vector<2x32xf32> -> vector<2x32xf32>
    %c0_19 = arith.constant 0 : index
    %c0_20 = arith.constant 0 : index
    %c0_21 = arith.constant 0 : index
    %26 = vector.load %arg8[%c0_19, %c0_20, %c0_21] : memref<9x2x2xf32, #tpu.memory_space<vmem>>, vector<1x2x2xf32>
    %27 = vector.shape_cast %26 : vector<1x2x2xf32> to vector<2x2xf32>
    %cst_22 = arith.constant dense<0.000000e+00> : vector<2x32xf32>
    %28 = tpu.matmul %27, %25, %cst_22 {dimension_numbers = #tpu.dot_dimension_numbers<[1], [0], [0], [1], [0, 0, 1, 1], [], []>} : vector<2x2xf32>, vector<2x32xf32>, vector<2x32xf32> -> vector<2x32xf32>
    %29 = vector.extract_strided_slice %22 {offsets = [1, 0, 0], sizes = [1, 32, 32], strides = [1, 1, 1]} : vector<9x32x32xf32> to vector<1x32x32xf32>
    %30 = vector.shape_cast %29 : vector<1x32x32xf32> to vector<32x32xf32>
    %cst_23 = arith.constant dense<0.000000e+00> : vector<2x32xf32>
    %31 = tpu.matmul %21, %30, %cst_23 {dimension_numbers = #tpu.dot_dimension_numbers<[1], [0], [0], [1], [0, 0, 1, 1], [], []>} : vector<2x32xf32>, vector<32x32xf32>, vector<2x32xf32> -> vector<2x32xf32>
    %c1 = arith.constant 1 : index
    %c0_24 = arith.constant 0 : index
    %c0_25 = arith.constant 0 : index
    %32 = vector.load %arg8[%c1, %c0_24, %c0_25] : memref<9x2x2xf32, #tpu.memory_space<vmem>>, vector<1x2x2xf32>
    %33 = vector.shape_cast %32 : vector<1x2x2xf32> to vector<2x2xf32>
    %cst_26 = arith.constant dense<0.000000e+00> : vector<2x32xf32>
    %34 = tpu.matmul %33, %31, %cst_26 {dimension_numbers = #tpu.dot_dimension_numbers<[1], [0], [0], [1], [0, 0, 1, 1], [], []>} : vector<2x2xf32>, vector<2x32xf32>, vector<2x32xf32> -> vector<2x32xf32>
    %35 = arith.addf %28, %34 : vector<2x32xf32>
    %36 = vector.extract_strided_slice %22 {offsets = [2, 0, 0], sizes = [1, 32, 32], strides = [1, 1, 1]} : vector<9x32x32xf32> to vector<1x32x32xf32>
    %37 = vector.shape_cast %36 : vector<1x32x32xf32> to vector<32x32xf32>
    %cst_27 = arith.constant dense<0.000000e+00> : vector<2x32xf32>
    %38 = tpu.matmul %21, %37, %cst_27 {dimension_numbers = #tpu.dot_dimension_numbers<[1], [0], [0], [1], [0, 0, 1, 1], [], []>} : vector<2x32xf32>, vector<32x32xf32>, vector<2x32xf32> -> vector<2x32xf32>
    %c2 = arith.constant 2 : index
    %c0_28 = arith.constant 0 : index
    %c0_29 = arith.constant 0 : index
    %39 = vector.load %arg8[%c2, %c0_28, %c0_29] : memref<9x2x2xf32, #tpu.memory_space<vmem>>, vector<1x2x2xf32>
    %40 = vector.shape_cast %39 : vector<1x2x2xf32> to vector<2x2xf32>
    %cst_30 = arith.constant dense<0.000000e+00> : vector<2x32xf32>
    %41 = tpu.matmul %40, %38, %cst_30 {dimension_numbers = #tpu.dot_dimension_numbers<[1], [0], [0], [1], [0, 0, 1, 1], [], []>} : vector<2x2xf32>, vector<2x32xf32>, vector<2x32xf32> -> vector<2x32xf32>
    %42 = arith.addf %35, %41 : vector<2x32xf32>
    %43 = vector.extract_strided_slice %22 {offsets = [3, 0, 0], sizes = [1, 32, 32], strides = [1, 1, 1]} : vector<9x32x32xf32> to vector<1x32x32xf32>
    %44 = vector.shape_cast %43 : vector<1x32x32xf32> to vector<32x32xf32>
    %cst_31 = arith.constant dense<0.000000e+00> : vector<2x32xf32>
    %45 = tpu.matmul %21, %44, %cst_31 {dimension_numbers = #tpu.dot_dimension_numbers<[1], [0], [0], [1], [0, 0, 1, 1], [], []>} : vector<2x32xf32>, vector<32x32xf32>, vector<2x32xf32> -> vector<2x32xf32>
    %c3 = arith.constant 3 : index
    %c0_32 = arith.constant 0 : index
    %c0_33 = arith.constant 0 : index
    %46 = vector.load %arg8[%c3, %c0_32, %c0_33] : memref<9x2x2xf32, #tpu.memory_space<vmem>>, vector<1x2x2xf32>
    %47 = vector.shape_cast %46 : vector<1x2x2xf32> to vector<2x2xf32>
    %cst_34 = arith.constant dense<0.000000e+00> : vector<2x32xf32>
    %48 = tpu.matmul %47, %45, %cst_34 {dimension_numbers = #tpu.dot_dimension_numbers<[1], [0], [0], [1], [0, 0, 1, 1], [], []>} : vector<2x2xf32>, vector<2x32xf32>, vector<2x32xf32> -> vector<2x32xf32>
    %49 = arith.addf %42, %48 : vector<2x32xf32>
    %50 = vector.extract_strided_slice %22 {offsets = [4, 0, 0], sizes = [1, 32, 32], strides = [1, 1, 1]} : vector<9x32x32xf32> to vector<1x32x32xf32>
    %51 = vector.shape_cast %50 : vector<1x32x32xf32> to vector<32x32xf32>
    %cst_35 = arith.constant dense<0.000000e+00> : vector<2x32xf32>
    %52 = tpu.matmul %21, %51, %cst_35 {dimension_numbers = #tpu.dot_dimension_numbers<[1], [0], [0], [1], [0, 0, 1, 1], [], []>} : vector<2x32xf32>, vector<32x32xf32>, vector<2x32xf32> -> vector<2x32xf32>
    %c4 = arith.constant 4 : index
    %c0_36 = arith.constant 0 : index
    %c0_37 = arith.constant 0 : index
    %53 = vector.load %arg8[%c4, %c0_36, %c0_37] : memref<9x2x2xf32, #tpu.memory_space<vmem>>, vector<1x2x2xf32>
    %54 = vector.shape_cast %53 : vector<1x2x2xf32> to vector<2x2xf32>
    %cst_38 = arith.constant dense<0.000000e+00> : vector<2x32xf32>
    %55 = tpu.matmul %54, %52, %cst_38 {dimension_numbers = #tpu.dot_dimension_numbers<[1], [0], [0], [1], [0, 0, 1, 1], [], []>} : vector<2x2xf32>, vector<2x32xf32>, vector<2x32xf32> -> vector<2x32xf32>
    %56 = arith.addf %49, %55 : vector<2x32xf32>
    %57 = vector.extract_strided_slice %22 {offsets = [5, 0, 0], sizes = [1, 32, 32], strides = [1, 1, 1]} : vector<9x32x32xf32> to vector<1x32x32xf32>
    %58 = vector.shape_cast %57 : vector<1x32x32xf32> to vector<32x32xf32>
    %cst_39 = arith.constant dense<0.000000e+00> : vector<2x32xf32>
    %59 = tpu.matmul %21, %58, %cst_39 {dimension_numbers = #tpu.dot_dimension_numbers<[1], [0], [0], [1], [0, 0, 1, 1], [], []>} : vector<2x32xf32>, vector<32x32xf32>, vector<2x32xf32> -> vector<2x32xf32>
    %c5 = arith.constant 5 : index
    %c0_40 = arith.constant 0 : index
    %c0_41 = arith.constant 0 : index
    %60 = vector.load %arg8[%c5, %c0_40, %c0_41] : memref<9x2x2xf32, #tpu.memory_space<vmem>>, vector<1x2x2xf32>
    %61 = vector.shape_cast %60 : vector<1x2x2xf32> to vector<2x2xf32>
    %cst_42 = arith.constant dense<0.000000e+00> : vector<2x32xf32>
    %62 = tpu.matmul %61, %59, %cst_42 {dimension_numbers = #tpu.dot_dimension_numbers<[1], [0], [0], [1], [0, 0, 1, 1], [], []>} : vector<2x2xf32>, vector<2x32xf32>, vector<2x32xf32> -> vector<2x32xf32>
    %63 = arith.addf %56, %62 : vector<2x32xf32>
    %64 = vector.extract_strided_slice %22 {offsets = [6, 0, 0], sizes = [1, 32, 32], strides = [1, 1, 1]} : vector<9x32x32xf32> to vector<1x32x32xf32>
    %65 = vector.shape_cast %64 : vector<1x32x32xf32> to vector<32x32xf32>
    %cst_43 = arith.constant dense<0.000000e+00> : vector<2x32xf32>
    %66 = tpu.matmul %21, %65, %cst_43 {dimension_numbers = #tpu.dot_dimension_numbers<[1], [0], [0], [1], [0, 0, 1, 1], [], []>} : vector<2x32xf32>, vector<32x32xf32>, vector<2x32xf32> -> vector<2x32xf32>
    %c6 = arith.constant 6 : index
    %c0_44 = arith.constant 0 : index
    %c0_45 = arith.constant 0 : index
    %67 = vector.load %arg8[%c6, %c0_44, %c0_45] : memref<9x2x2xf32, #tpu.memory_space<vmem>>, vector<1x2x2xf32>
    %68 = vector.shape_cast %67 : vector<1x2x2xf32> to vector<2x2xf32>
    %cst_46 = arith.constant dense<0.000000e+00> : vector<2x32xf32>
    %69 = tpu.matmul %68, %66, %cst_46 {dimension_numbers = #tpu.dot_dimension_numbers<[1], [0], [0], [1], [0, 0, 1, 1], [], []>} : vector<2x2xf32>, vector<2x32xf32>, vector<2x32xf32> -> vector<2x32xf32>
    %70 = arith.addf %63, %69 : vector<2x32xf32>
    %71 = vector.extract_strided_slice %22 {offsets = [7, 0, 0], sizes = [1, 32, 32], strides = [1, 1, 1]} : vector<9x32x32xf32> to vector<1x32x32xf32>
    %72 = vector.shape_cast %71 : vector<1x32x32xf32> to vector<32x32xf32>
    %cst_47 = arith.constant dense<0.000000e+00> : vector<2x32xf32>
    %73 = tpu.matmul %21, %72, %cst_47 {dimension_numbers = #tpu.dot_dimension_numbers<[1], [0], [0], [1], [0, 0, 1, 1], [], []>} : vector<2x32xf32>, vector<32x32xf32>, vector<2x32xf32> -> vector<2x32xf32>
    %c7 = arith.constant 7 : index
    %c0_48 = arith.constant 0 : index
    %c0_49 = arith.constant 0 : index
    %74 = vector.load %arg8[%c7, %c0_48, %c0_49] : memref<9x2x2xf32, #tpu.memory_space<vmem>>, vector<1x2x2xf32>
    %75 = vector.shape_cast %74 : vector<1x2x2xf32> to vector<2x2xf32>
    %cst_50 = arith.constant dense<0.000000e+00> : vector<2x32xf32>
    %76 = tpu.matmul %75, %73, %cst_50 {dimension_numbers = #tpu.dot_dimension_numbers<[1], [0], [0], [1], [0, 0, 1, 1], [], []>} : vector<2x2xf32>, vector<2x32xf32>, vector<2x32xf32> -> vector<2x32xf32>
    %77 = arith.addf %70, %76 : vector<2x32xf32>
    %78 = vector.extract_strided_slice %22 {offsets = [8, 0, 0], sizes = [1, 32, 32], strides = [1, 1, 1]} : vector<9x32x32xf32> to vector<1x32x32xf32>
    %79 = vector.shape_cast %78 : vector<1x32x32xf32> to vector<32x32xf32>
    %cst_51 = arith.constant dense<0.000000e+00> : vector<2x32xf32>
    %80 = tpu.matmul %21, %79, %cst_51 {dimension_numbers = #tpu.dot_dimension_numbers<[1], [0], [0], [1], [0, 0, 1, 1], [], []>} : vector<2x32xf32>, vector<32x32xf32>, vector<2x32xf32> -> vector<2x32xf32>
    %c8 = arith.constant 8 : index
    %c0_52 = arith.constant 0 : index
    %c0_53 = arith.constant 0 : index
    %81 = vector.load %arg8[%c8, %c0_52, %c0_53] : memref<9x2x2xf32, #tpu.memory_space<vmem>>, vector<1x2x2xf32>
    %82 = vector.shape_cast %81 : vector<1x2x2xf32> to vector<2x2xf32>
    %cst_54 = arith.constant dense<0.000000e+00> : vector<2x32xf32>
    %83 = tpu.matmul %82, %80, %cst_54 {dimension_numbers = #tpu.dot_dimension_numbers<[1], [0], [0], [1], [0, 0, 1, 1], [], []>} : vector<2x2xf32>, vector<2x32xf32>, vector<2x32xf32> -> vector<2x32xf32>
    %84 = arith.addf %77, %83 : vector<2x32xf32>
    %c0_55 = arith.constant 0 : index
    %c0_56 = arith.constant 0 : index
    %85 = vector.load %arg9[%c0_55, %c0_56] : memref<2x1xf32, #tpu.memory_space<vmem>>, vector<2x1xf32>
    %86 = vector.broadcast %85 : vector<2x1xf32> to vector<2x32xf32>
    %87 = arith.addf %84, %86 : vector<2x32xf32>
    %c0_57 = arith.constant 0 : index
    %c0_58 = arith.constant 0 : index
    %88 = vector.load %arg10[%c0_57, %c0_58] : memref<2x1xf32, #tpu.memory_space<vmem>>, vector<2x1xf32>
    %89 = vector.broadcast %88 : vector<2x1xf32> to vector<2x32xf32>
    %90 = arith.mulf %87, %89 : vector<2x32xf32>
    %c0_59 = arith.constant 0 : index
    %c0_60 = arith.constant 0 : index
    %91 = vector.load %arg11[%c0_59, %c0_60] : memref<2x1xf32, #tpu.memory_space<vmem>>, vector<2x1xf32>
    %92 = vector.broadcast %91 : vector<2x1xf32> to vector<2x32xf32>
    %93 = arith.addf %90, %92 : vector<2x32xf32>
    %cst_61 = arith.constant 0.000000e+00 : f32
    %94 = vector.broadcast %cst_61 : f32 to vector<2x32xf32>
    %95 = arith.maximumf %93, %94 : vector<2x32xf32>
    %c0_62 = arith.constant 0 : index
    %c0_63 = arith.constant 0 : index
    %96 = vector.load %arg12[%c0_62, %c0_63] : memref<4x2xf32, #tpu.memory_space<vmem>>, vector<4x2xf32>
    %cst_64 = arith.constant dense<0.000000e+00> : vector<4x32xf32>
    %97 = tpu.matmul %96, %95, %cst_64 {dimension_numbers = #tpu.dot_dimension_numbers<[1], [0], [0], [1], [0, 0, 1, 1], [], []>} : vector<4x2xf32>, vector<2x32xf32>, vector<4x32xf32> -> vector<4x32xf32>
    %c0_65 = arith.constant 0 : index
    %c0_66 = arith.constant 0 : index
    %98 = vector.load %arg13[%c0_65, %c0_66] : memref<4x1xf32, #tpu.memory_space<vmem>>, vector<4x1xf32>
    %99 = vector.broadcast %98 : vector<4x1xf32> to vector<4x32xf32>
    %100 = arith.addf %97, %99 : vector<4x32xf32>
    %c0_67 = arith.constant 0 : index
    %c0_68 = arith.constant 0 : index
    %101 = vector.load %arg14[%c0_67, %c0_68] : memref<8x1xf32, #tpu.memory_space<vmem>>, vector<8x1xf32>
    %102 = vector.broadcast %101 : vector<8x1xf32> to vector<8x32xf32>
    %103 = arith.mulf %0, %102 : vector<8x32xf32>
    %c0_69 = arith.constant 0 : index
    %c0_70 = arith.constant 0 : index
    %104 = vector.load %arg15[%c0_69, %c0_70] : memref<8x1xf32, #tpu.memory_space<vmem>>, vector<8x1xf32>
    %105 = vector.broadcast %104 : vector<8x1xf32> to vector<8x32xf32>
    %106 = arith.addf %103, %105 : vector<8x32xf32>
    %cst_71 = arith.constant 0.000000e+00 : f32
    %107 = vector.broadcast %cst_71 : f32 to vector<8x32xf32>
    %108 = arith.maximumf %106, %107 : vector<8x32xf32>
    %c0_72 = arith.constant 0 : index
    %c0_73 = arith.constant 0 : index
    %109 = vector.load %arg16[%c0_72, %c0_73] : memref<4x8xf32, #tpu.memory_space<vmem>>, vector<4x8xf32>
    %cst_74 = arith.constant dense<0.000000e+00> : vector<4x32xf32>
    %110 = tpu.matmul %109, %108, %cst_74 {dimension_numbers = #tpu.dot_dimension_numbers<[1], [0], [0], [1], [0, 0, 1, 1], [], []>} : vector<4x8xf32>, vector<8x32xf32>, vector<4x32xf32> -> vector<4x32xf32>
    %c0_75 = arith.constant 0 : index
    %c0_76 = arith.constant 0 : index
    %111 = vector.load %arg17[%c0_75, %c0_76] : memref<4x1xf32, #tpu.memory_space<vmem>>, vector<4x1xf32>
    %112 = vector.broadcast %111 : vector<4x1xf32> to vector<4x32xf32>
    %113 = arith.addf %110, %112 : vector<4x32xf32>
    %114 = arith.addf %100, %113 : vector<4x32xf32>
    %c0_77 = arith.constant 0 : index
    %c0_78 = arith.constant 0 : index
    %115 = vector.load %arg18[%c0_77, %c0_78] : memref<4x32xf32, #tpu.memory_space<vmem>>, vector<4x32xf32>
    tpu.vector_store %arg18[%c0_77, %c0_78], %114 {strides = array<i32>} : memref<4x32xf32, #tpu.memory_space<vmem>>, vector<4x32xf32>,
    return
  }
}

module attributes {stable_mosaic.version = 11 : i64} {
  func.func @_skip_add_kernel(%arg0: memref<8x128xf32, #tpu.memory_space<vmem>>, %arg1: memref<4x128xf32, #tpu.memory_space<vmem>>, %arg2: memref<8x1xf32, #tpu.memory_space<vmem>>, %arg3: memref<8x1xf32, #tpu.memory_space<vmem>>, %arg4: memref<4x8xf32, #tpu.memory_space<vmem>>, %arg5: memref<4x1xf32, #tpu.memory_space<vmem>>, %arg6: memref<4x128xf32, #tpu.memory_space<vmem>>) attributes {dimension_semantics = [], scalar_prefetch = 0 : i64, scratch_operands = 0 : i64, tpu.core_type = #tpu.core_type<tc>} {
    %c0 = arith.constant 0 : index
    %c0_0 = arith.constant 0 : index
    %0 = vector.load %arg0[%c0, %c0_0] : memref<8x128xf32, #tpu.memory_space<vmem>>, vector<8x128xf32>
    %c0_1 = arith.constant 0 : index
    %c0_2 = arith.constant 0 : index
    %1 = vector.load %arg2[%c0_1, %c0_2] : memref<8x1xf32, #tpu.memory_space<vmem>>, vector<8x1xf32>
    %2 = vector.broadcast %1 : vector<8x1xf32> to vector<8x128xf32>
    %3 = arith.mulf %0, %2 : vector<8x128xf32>
    %c0_3 = arith.constant 0 : index
    %c0_4 = arith.constant 0 : index
    %4 = vector.load %arg3[%c0_3, %c0_4] : memref<8x1xf32, #tpu.memory_space<vmem>>, vector<8x1xf32>
    %5 = vector.broadcast %4 : vector<8x1xf32> to vector<8x128xf32>
    %6 = arith.addf %3, %5 : vector<8x128xf32>
    %cst = arith.constant 0.000000e+00 : f32
    %7 = vector.broadcast %cst : f32 to vector<8x128xf32>
    %8 = arith.maximumf %6, %7 : vector<8x128xf32>
    %c0_5 = arith.constant 0 : index
    %c0_6 = arith.constant 0 : index
    %9 = vector.load %arg4[%c0_5, %c0_6] : memref<4x8xf32, #tpu.memory_space<vmem>>, vector<4x8xf32>
    %cst_7 = arith.constant dense<0.000000e+00> : vector<4x128xf32>
    %10 = tpu.matmul %9, %8, %cst_7 {dimension_numbers = #tpu.dot_dimension_numbers<[1], [0], [0], [1], [0, 0, 1, 1], [], []>} : vector<4x8xf32>, vector<8x128xf32>, vector<4x128xf32> -> vector<4x128xf32>
    %c0_8 = arith.constant 0 : index
    %c0_9 = arith.constant 0 : index
    %11 = vector.load %arg5[%c0_8, %c0_9] : memref<4x1xf32, #tpu.memory_space<vmem>>, vector<4x1xf32>
    %12 = vector.broadcast %11 : vector<4x1xf32> to vector<4x128xf32>
    %13 = arith.addf %10, %12 : vector<4x128xf32>
    %c0_10 = arith.constant 0 : index
    %c0_11 = arith.constant 0 : index
    %14 = vector.load %arg1[%c0_10, %c0_11] : memref<4x128xf32, #tpu.memory_space<vmem>>, vector<4x128xf32>
    %15 = arith.addf %13, %14 : vector<4x128xf32>
    %c0_12 = arith.constant 0 : index
    %c0_13 = arith.constant 0 : index
    %16 = vector.load %arg6[%c0_12, %c0_13] : memref<4x128xf32, #tpu.memory_space<vmem>>, vector<4x128xf32>
    tpu.vector_store %arg6[%c0_12, %c0_13], %15 {strides = array<i32>} : memref<4x128xf32, #tpu.memory_space<vmem>>, vector<4x128xf32>,
    return
  }
}

module attributes {stable_mosaic.version = 11 : i64} {
  func.func @_resize_kernel(%arg0: memref<4x32xf32, #tpu.memory_space<vmem>>, %arg1: memref<32x128xf32, #tpu.memory_space<vmem>>, %arg2: memref<4x128xf32, #tpu.memory_space<vmem>>) attributes {dimension_semantics = [], scalar_prefetch = 0 : i64, scratch_operands = 0 : i64, tpu.core_type = #tpu.core_type<tc>} {
    %c0 = arith.constant 0 : index
    %c0_0 = arith.constant 0 : index
    %0 = vector.load %arg0[%c0, %c0_0] : memref<4x32xf32, #tpu.memory_space<vmem>>, vector<4x32xf32>
    %c0_1 = arith.constant 0 : index
    %c0_2 = arith.constant 0 : index
    %1 = vector.load %arg1[%c0_1, %c0_2] : memref<32x128xf32, #tpu.memory_space<vmem>>, vector<32x128xf32>
    %cst = arith.constant dense<0.000000e+00> : vector<4x128xf32>
    %2 = tpu.matmul %0, %1, %cst {dimension_numbers = #tpu.dot_dimension_numbers<[1], [0], [0], [1], [0, 0, 1, 1], [], []>} : vector<4x32xf32>, vector<32x128xf32>, vector<4x128xf32> -> vector<4x128xf32>
    %c0_3 = arith.constant 0 : index
    %c0_4 = arith.constant 0 : index
    %3 = vector.load %arg2[%c0_3, %c0_4] : memref<4x128xf32, #tpu.memory_space<vmem>>, vector<4x128xf32>
    tpu.vector_store %arg2[%c0_3, %c0_4], %2 {strides = array<i32>} : memref<4x128xf32, #tpu.memory_space<vmem>>, vector<4x128xf32>,
    return
  }
}

module attributes {stable_mosaic.version = 11 : i64} {
  func.func @kernel(%arg0: memref<4x128xf32, #tpu.memory_space<vmem>>, %arg1: memref<9x128xf32, #tpu.memory_space<vmem>>, %arg2: memref<4x1xf32, #tpu.memory_space<vmem>>, %arg3: memref<4x1xf32, #tpu.memory_space<vmem>>, %arg4: memref<2x4xf32, #tpu.memory_space<vmem>>, %arg5: memref<2x1xf32, #tpu.memory_space<vmem>>, %arg6: memref<2x1xf32, #tpu.memory_space<vmem>>, %arg7: memref<2x1xf32, #tpu.memory_space<vmem>>, %arg8: memref<9x2x2xf32, #tpu.memory_space<vmem>>, %arg9: memref<2x1xf32, #tpu.memory_space<vmem>>, %arg10: memref<2x1xf32, #tpu.memory_space<vmem>>, %arg11: memref<2x1xf32, #tpu.memory_space<vmem>>, %arg12: memref<4x2xf32, #tpu.memory_space<vmem>>, %arg13: memref<4x1xf32, #tpu.memory_space<vmem>>, %arg14: memref<4x128xf32, #tpu.memory_space<vmem>>) attributes {dimension_semantics = [], scalar_prefetch = 0 : i64, scratch_operands = 0 : i64, tpu.core_type = #tpu.core_type<tc>} {
    %c0 = arith.constant 0 : index
    %c0_0 = arith.constant 0 : index
    %0 = vector.load %arg0[%c0, %c0_0] : memref<4x128xf32, #tpu.memory_space<vmem>>, vector<4x128xf32>
    %c0_1 = arith.constant 0 : index
    %c0_2 = arith.constant 0 : index
    %1 = vector.load %arg2[%c0_1, %c0_2] : memref<4x1xf32, #tpu.memory_space<vmem>>, vector<4x1xf32>
    %2 = vector.broadcast %1 : vector<4x1xf32> to vector<4x128xf32>
    %3 = arith.mulf %0, %2 : vector<4x128xf32>
    %c0_3 = arith.constant 0 : index
    %c0_4 = arith.constant 0 : index
    %4 = vector.load %arg3[%c0_3, %c0_4] : memref<4x1xf32, #tpu.memory_space<vmem>>, vector<4x1xf32>
    %5 = vector.broadcast %4 : vector<4x1xf32> to vector<4x128xf32>
    %6 = arith.addf %3, %5 : vector<4x128xf32>
    %cst = arith.constant 0.000000e+00 : f32
    %7 = vector.broadcast %cst : f32 to vector<4x128xf32>
    %8 = arith.maximumf %6, %7 : vector<4x128xf32>
    %c0_5 = arith.constant 0 : index
    %c0_6 = arith.constant 0 : index
    %9 = vector.load %arg4[%c0_5, %c0_6] : memref<2x4xf32, #tpu.memory_space<vmem>>, vector<2x4xf32>
    %cst_7 = arith.constant dense<0.000000e+00> : vector<2x128xf32>
    %10 = tpu.matmul %9, %8, %cst_7 {dimension_numbers = #tpu.dot_dimension_numbers<[1], [0], [0], [1], [0, 0, 1, 1], [], []>} : vector<2x4xf32>, vector<4x128xf32>, vector<2x128xf32> -> vector<2x128xf32>
    %c0_8 = arith.constant 0 : index
    %c0_9 = arith.constant 0 : index
    %11 = vector.load %arg5[%c0_8, %c0_9] : memref<2x1xf32, #tpu.memory_space<vmem>>, vector<2x1xf32>
    %12 = vector.broadcast %11 : vector<2x1xf32> to vector<2x128xf32>
    %13 = arith.addf %10, %12 : vector<2x128xf32>
    %c0_10 = arith.constant 0 : index
    %c0_11 = arith.constant 0 : index
    %14 = vector.load %arg6[%c0_10, %c0_11] : memref<2x1xf32, #tpu.memory_space<vmem>>, vector<2x1xf32>
    %15 = vector.broadcast %14 : vector<2x1xf32> to vector<2x128xf32>
    %16 = arith.mulf %13, %15 : vector<2x128xf32>
    %c0_12 = arith.constant 0 : index
    %c0_13 = arith.constant 0 : index
    %17 = vector.load %arg7[%c0_12, %c0_13] : memref<2x1xf32, #tpu.memory_space<vmem>>, vector<2x1xf32>
    %18 = vector.broadcast %17 : vector<2x1xf32> to vector<2x128xf32>
    %19 = arith.addf %16, %18 : vector<2x128xf32>
    %cst_14 = arith.constant 0.000000e+00 : f32
    %20 = vector.broadcast %cst_14 : f32 to vector<2x128xf32>
    %21 = arith.maximumf %19, %20 : vector<2x128xf32>
    %c0_15 = arith.constant 0 : index
    %c0_16 = arith.constant 0 : index
    %22 = vector.load %arg1[%c0_15, %c0_16] : memref<9x128xf32, #tpu.memory_space<vmem>>, vector<9x128xf32>
    %c9_i32 = arith.constant 9 : i32
    %23 = tpu.dynamic_rotate %21 by %c9_i32 dim 1 : vector<2x128xf32>, i32 -> vector<2x128xf32>
    %24 = vector.extract_strided_slice %22 {offsets = [0, 0], sizes = [1, 128], strides = [1, 1]} : vector<9x128xf32> to vector<1x128xf32>
    %25 = vector.broadcast %24 : vector<1x128xf32> to vector<2x128xf32>
    %26 = arith.mulf %23, %25 : vector<2x128xf32>
    %c0_17 = arith.constant 0 : index
    %c0_18 = arith.constant 0 : index
    %c0_19 = arith.constant 0 : index
    %27 = vector.load %arg8[%c0_17, %c0_18, %c0_19] : memref<9x2x2xf32, #tpu.memory_space<vmem>>, vector<1x2x2xf32>
    %28 = vector.shape_cast %27 : vector<1x2x2xf32> to vector<2x2xf32>
    %cst_20 = arith.constant dense<0.000000e+00> : vector<2x128xf32>
    %29 = tpu.matmul %28, %26, %cst_20 {dimension_numbers = #tpu.dot_dimension_numbers<[1], [0], [0], [1], [0, 0, 1, 1], [], []>} : vector<2x2xf32>, vector<2x128xf32>, vector<2x128xf32> -> vector<2x128xf32>
    %c8_i32 = arith.constant 8 : i32
    %30 = tpu.dynamic_rotate %21 by %c8_i32 dim 1 : vector<2x128xf32>, i32 -> vector<2x128xf32>
    %31 = vector.extract_strided_slice %22 {offsets = [1, 0], sizes = [1, 128], strides = [1, 1]} : vector<9x128xf32> to vector<1x128xf32>
    %32 = vector.broadcast %31 : vector<1x128xf32> to vector<2x128xf32>
    %33 = arith.mulf %30, %32 : vector<2x128xf32>
    %c1 = arith.constant 1 : index
    %c0_21 = arith.constant 0 : index
    %c0_22 = arith.constant 0 : index
    %34 = vector.load %arg8[%c1, %c0_21, %c0_22] : memref<9x2x2xf32, #tpu.memory_space<vmem>>, vector<1x2x2xf32>
    %35 = vector.shape_cast %34 : vector<1x2x2xf32> to vector<2x2xf32>
    %cst_23 = arith.constant dense<0.000000e+00> : vector<2x128xf32>
    %36 = tpu.matmul %35, %33, %cst_23 {dimension_numbers = #tpu.dot_dimension_numbers<[1], [0], [0], [1], [0, 0, 1, 1], [], []>} : vector<2x2xf32>, vector<2x128xf32>, vector<2x128xf32> -> vector<2x128xf32>
    %37 = arith.addf %29, %36 : vector<2x128xf32>
    %c7_i32 = arith.constant 7 : i32
    %38 = tpu.dynamic_rotate %21 by %c7_i32 dim 1 : vector<2x128xf32>, i32 -> vector<2x128xf32>
    %39 = vector.extract_strided_slice %22 {offsets = [2, 0], sizes = [1, 128], strides = [1, 1]} : vector<9x128xf32> to vector<1x128xf32>
    %40 = vector.broadcast %39 : vector<1x128xf32> to vector<2x128xf32>
    %41 = arith.mulf %38, %40 : vector<2x128xf32>
    %c2 = arith.constant 2 : index
    %c0_24 = arith.constant 0 : index
    %c0_25 = arith.constant 0 : index
    %42 = vector.load %arg8[%c2, %c0_24, %c0_25] : memref<9x2x2xf32, #tpu.memory_space<vmem>>, vector<1x2x2xf32>
    %43 = vector.shape_cast %42 : vector<1x2x2xf32> to vector<2x2xf32>
    %cst_26 = arith.constant dense<0.000000e+00> : vector<2x128xf32>
    %44 = tpu.matmul %43, %41, %cst_26 {dimension_numbers = #tpu.dot_dimension_numbers<[1], [0], [0], [1], [0, 0, 1, 1], [], []>} : vector<2x2xf32>, vector<2x128xf32>, vector<2x128xf32> -> vector<2x128xf32>
    %45 = arith.addf %37, %44 : vector<2x128xf32>
    %c1_i32 = arith.constant 1 : i32
    %46 = tpu.dynamic_rotate %21 by %c1_i32 dim 1 : vector<2x128xf32>, i32 -> vector<2x128xf32>
    %47 = vector.extract_strided_slice %22 {offsets = [3, 0], sizes = [1, 128], strides = [1, 1]} : vector<9x128xf32> to vector<1x128xf32>
    %48 = vector.broadcast %47 : vector<1x128xf32> to vector<2x128xf32>
    %49 = arith.mulf %46, %48 : vector<2x128xf32>
    %c3 = arith.constant 3 : index
    %c0_27 = arith.constant 0 : index
    %c0_28 = arith.constant 0 : index
    %50 = vector.load %arg8[%c3, %c0_27, %c0_28] : memref<9x2x2xf32, #tpu.memory_space<vmem>>, vector<1x2x2xf32>
    %51 = vector.shape_cast %50 : vector<1x2x2xf32> to vector<2x2xf32>
    %cst_29 = arith.constant dense<0.000000e+00> : vector<2x128xf32>
    %52 = tpu.matmul %51, %49, %cst_29 {dimension_numbers = #tpu.dot_dimension_numbers<[1], [0], [0], [1], [0, 0, 1, 1], [], []>} : vector<2x2xf32>, vector<2x128xf32>, vector<2x128xf32> -> vector<2x128xf32>
    %53 = arith.addf %45, %52 : vector<2x128xf32>
    %c4 = arith.constant 4 : index
    %c0_30 = arith.constant 0 : index
    %c0_31 = arith.constant 0 : index
    %54 = vector.load %arg8[%c4, %c0_30, %c0_31] : memref<9x2x2xf32, #tpu.memory_space<vmem>>, vector<1x2x2xf32>
    %55 = vector.shape_cast %54 : vector<1x2x2xf32> to vector<2x2xf32>
    %cst_32 = arith.constant dense<0.000000e+00> : vector<2x128xf32>
    %56 = tpu.matmul %55, %21, %cst_32 {dimension_numbers = #tpu.dot_dimension_numbers<[1], [0], [0], [1], [0, 0, 1, 1], [], []>} : vector<2x2xf32>, vector<2x128xf32>, vector<2x128xf32> -> vector<2x128xf32>
    %57 = arith.addf %53, %56 : vector<2x128xf32>
    %c127_i32 = arith.constant 127 : i32
    %58 = tpu.dynamic_rotate %21 by %c127_i32 dim 1 : vector<2x128xf32>, i32 -> vector<2x128xf32>
    %59 = vector.extract_strided_slice %22 {offsets = [5, 0], sizes = [1, 128], strides = [1, 1]} : vector<9x128xf32> to vector<1x128xf32>
    %60 = vector.broadcast %59 : vector<1x128xf32> to vector<2x128xf32>
    %61 = arith.mulf %58, %60 : vector<2x128xf32>
    %c5 = arith.constant 5 : index
    %c0_33 = arith.constant 0 : index
    %c0_34 = arith.constant 0 : index
    %62 = vector.load %arg8[%c5, %c0_33, %c0_34] : memref<9x2x2xf32, #tpu.memory_space<vmem>>, vector<1x2x2xf32>
    %63 = vector.shape_cast %62 : vector<1x2x2xf32> to vector<2x2xf32>
    %cst_35 = arith.constant dense<0.000000e+00> : vector<2x128xf32>
    %64 = tpu.matmul %63, %61, %cst_35 {dimension_numbers = #tpu.dot_dimension_numbers<[1], [0], [0], [1], [0, 0, 1, 1], [], []>} : vector<2x2xf32>, vector<2x128xf32>, vector<2x128xf32> -> vector<2x128xf32>
    %65 = arith.addf %57, %64 : vector<2x128xf32>
    %c121_i32 = arith.constant 121 : i32
    %66 = tpu.dynamic_rotate %21 by %c121_i32 dim 1 : vector<2x128xf32>, i32 -> vector<2x128xf32>
    %67 = vector.extract_strided_slice %22 {offsets = [6, 0], sizes = [1, 128], strides = [1, 1]} : vector<9x128xf32> to vector<1x128xf32>
    %68 = vector.broadcast %67 : vector<1x128xf32> to vector<2x128xf32>
    %69 = arith.mulf %66, %68 : vector<2x128xf32>
    %c6 = arith.constant 6 : index
    %c0_36 = arith.constant 0 : index
    %c0_37 = arith.constant 0 : index
    %70 = vector.load %arg8[%c6, %c0_36, %c0_37] : memref<9x2x2xf32, #tpu.memory_space<vmem>>, vector<1x2x2xf32>
    %71 = vector.shape_cast %70 : vector<1x2x2xf32> to vector<2x2xf32>
    %cst_38 = arith.constant dense<0.000000e+00> : vector<2x128xf32>
    %72 = tpu.matmul %71, %69, %cst_38 {dimension_numbers = #tpu.dot_dimension_numbers<[1], [0], [0], [1], [0, 0, 1, 1], [], []>} : vector<2x2xf32>, vector<2x128xf32>, vector<2x128xf32> -> vector<2x128xf32>
    %73 = arith.addf %65, %72 : vector<2x128xf32>
    %c120_i32 = arith.constant 120 : i32
    %74 = tpu.dynamic_rotate %21 by %c120_i32 dim 1 : vector<2x128xf32>, i32 -> vector<2x128xf32>
    %75 = vector.extract_strided_slice %22 {offsets = [7, 0], sizes = [1, 128], strides = [1, 1]} : vector<9x128xf32> to vector<1x128xf32>
    %76 = vector.broadcast %75 : vector<1x128xf32> to vector<2x128xf32>
    %77 = arith.mulf %74, %76 : vector<2x128xf32>
    %c7 = arith.constant 7 : index
    %c0_39 = arith.constant 0 : index
    %c0_40 = arith.constant 0 : index
    %78 = vector.load %arg8[%c7, %c0_39, %c0_40] : memref<9x2x2xf32, #tpu.memory_space<vmem>>, vector<1x2x2xf32>
    %79 = vector.shape_cast %78 : vector<1x2x2xf32> to vector<2x2xf32>
    %cst_41 = arith.constant dense<0.000000e+00> : vector<2x128xf32>
    %80 = tpu.matmul %79, %77, %cst_41 {dimension_numbers = #tpu.dot_dimension_numbers<[1], [0], [0], [1], [0, 0, 1, 1], [], []>} : vector<2x2xf32>, vector<2x128xf32>, vector<2x128xf32> -> vector<2x128xf32>
    %81 = arith.addf %73, %80 : vector<2x128xf32>
    %c119_i32 = arith.constant 119 : i32
    %82 = tpu.dynamic_rotate %21 by %c119_i32 dim 1 : vector<2x128xf32>, i32 -> vector<2x128xf32>
    %83 = vector.extract_strided_slice %22 {offsets = [8, 0], sizes = [1, 128], strides = [1, 1]} : vector<9x128xf32> to vector<1x128xf32>
    %84 = vector.broadcast %83 : vector<1x128xf32> to vector<2x128xf32>
    %85 = arith.mulf %82, %84 : vector<2x128xf32>
    %c8 = arith.constant 8 : index
    %c0_42 = arith.constant 0 : index
    %c0_43 = arith.constant 0 : index
    %86 = vector.load %arg8[%c8, %c0_42, %c0_43] : memref<9x2x2xf32, #tpu.memory_space<vmem>>, vector<1x2x2xf32>
    %87 = vector.shape_cast %86 : vector<1x2x2xf32> to vector<2x2xf32>
    %cst_44 = arith.constant dense<0.000000e+00> : vector<2x128xf32>
    %88 = tpu.matmul %87, %85, %cst_44 {dimension_numbers = #tpu.dot_dimension_numbers<[1], [0], [0], [1], [0, 0, 1, 1], [], []>} : vector<2x2xf32>, vector<2x128xf32>, vector<2x128xf32> -> vector<2x128xf32>
    %89 = arith.addf %81, %88 : vector<2x128xf32>
    %c0_45 = arith.constant 0 : index
    %c0_46 = arith.constant 0 : index
    %90 = vector.load %arg9[%c0_45, %c0_46] : memref<2x1xf32, #tpu.memory_space<vmem>>, vector<2x1xf32>
    %91 = vector.broadcast %90 : vector<2x1xf32> to vector<2x128xf32>
    %92 = arith.addf %89, %91 : vector<2x128xf32>
    %c0_47 = arith.constant 0 : index
    %c0_48 = arith.constant 0 : index
    %93 = vector.load %arg10[%c0_47, %c0_48] : memref<2x1xf32, #tpu.memory_space<vmem>>, vector<2x1xf32>
    %94 = vector.broadcast %93 : vector<2x1xf32> to vector<2x128xf32>
    %95 = arith.mulf %92, %94 : vector<2x128xf32>
    %c0_49 = arith.constant 0 : index
    %c0_50 = arith.constant 0 : index
    %96 = vector.load %arg11[%c0_49, %c0_50] : memref<2x1xf32, #tpu.memory_space<vmem>>, vector<2x1xf32>
    %97 = vector.broadcast %96 : vector<2x1xf32> to vector<2x128xf32>
    %98 = arith.addf %95, %97 : vector<2x128xf32>
    %cst_51 = arith.constant 0.000000e+00 : f32
    %99 = vector.broadcast %cst_51 : f32 to vector<2x128xf32>
    %100 = arith.maximumf %98, %99 : vector<2x128xf32>
    %c0_52 = arith.constant 0 : index
    %c0_53 = arith.constant 0 : index
    %101 = vector.load %arg12[%c0_52, %c0_53] : memref<4x2xf32, #tpu.memory_space<vmem>>, vector<4x2xf32>
    %cst_54 = arith.constant dense<0.000000e+00> : vector<4x128xf32>
    %102 = tpu.matmul %101, %100, %cst_54 {dimension_numbers = #tpu.dot_dimension_numbers<[1], [0], [0], [1], [0, 0, 1, 1], [], []>} : vector<4x2xf32>, vector<2x128xf32>, vector<4x128xf32> -> vector<4x128xf32>
    %c0_55 = arith.constant 0 : index
    %c0_56 = arith.constant 0 : index
    %103 = vector.load %arg13[%c0_55, %c0_56] : memref<4x1xf32, #tpu.memory_space<vmem>>, vector<4x1xf32>
    %104 = vector.broadcast %103 : vector<4x1xf32> to vector<4x128xf32>
    %105 = arith.addf %102, %104 : vector<4x128xf32>
    %106 = arith.addf %105, %0 : vector<4x128xf32>
    %c0_57 = arith.constant 0 : index
    %c0_58 = arith.constant 0 : index
    %107 = vector.load %arg14[%c0_57, %c0_58] : memref<4x128xf32, #tpu.memory_space<vmem>>, vector<4x128xf32>
    tpu.vector_store %arg14[%c0_57, %c0_58], %106 {strides = array<i32>} : memref<4x128xf32, #tpu.memory_space<vmem>>, vector<4x128xf32>,
    return
  }
}

module attributes {stable_mosaic.version = 11 : i64} {
  func.func @kernel(%arg0: memref<4x128xf32, #tpu.memory_space<vmem>>, %arg1: memref<9x128xf32, #tpu.memory_space<vmem>>, %arg2: memref<4x1xf32, #tpu.memory_space<vmem>>, %arg3: memref<4x1xf32, #tpu.memory_space<vmem>>, %arg4: memref<2x4xf32, #tpu.memory_space<vmem>>, %arg5: memref<2x1xf32, #tpu.memory_space<vmem>>, %arg6: memref<2x1xf32, #tpu.memory_space<vmem>>, %arg7: memref<2x1xf32, #tpu.memory_space<vmem>>, %arg8: memref<9x2x2xf32, #tpu.memory_space<vmem>>, %arg9: memref<2x1xf32, #tpu.memory_space<vmem>>, %arg10: memref<2x1xf32, #tpu.memory_space<vmem>>, %arg11: memref<2x1xf32, #tpu.memory_space<vmem>>, %arg12: memref<4x2xf32, #tpu.memory_space<vmem>>, %arg13: memref<4x1xf32, #tpu.memory_space<vmem>>, %arg14: memref<4x128xf32, #tpu.memory_space<vmem>>) attributes {dimension_semantics = [], scalar_prefetch = 0 : i64, scratch_operands = 0 : i64, tpu.core_type = #tpu.core_type<tc>} {
    %c0 = arith.constant 0 : index
    %c0_0 = arith.constant 0 : index
    %0 = vector.load %arg0[%c0, %c0_0] : memref<4x128xf32, #tpu.memory_space<vmem>>, vector<4x128xf32>
    %c0_1 = arith.constant 0 : index
    %c0_2 = arith.constant 0 : index
    %1 = vector.load %arg2[%c0_1, %c0_2] : memref<4x1xf32, #tpu.memory_space<vmem>>, vector<4x1xf32>
    %2 = vector.broadcast %1 : vector<4x1xf32> to vector<4x128xf32>
    %3 = arith.mulf %0, %2 : vector<4x128xf32>
    %c0_3 = arith.constant 0 : index
    %c0_4 = arith.constant 0 : index
    %4 = vector.load %arg3[%c0_3, %c0_4] : memref<4x1xf32, #tpu.memory_space<vmem>>, vector<4x1xf32>
    %5 = vector.broadcast %4 : vector<4x1xf32> to vector<4x128xf32>
    %6 = arith.addf %3, %5 : vector<4x128xf32>
    %cst = arith.constant 0.000000e+00 : f32
    %7 = vector.broadcast %cst : f32 to vector<4x128xf32>
    %8 = arith.maximumf %6, %7 : vector<4x128xf32>
    %c0_5 = arith.constant 0 : index
    %c0_6 = arith.constant 0 : index
    %9 = vector.load %arg4[%c0_5, %c0_6] : memref<2x4xf32, #tpu.memory_space<vmem>>, vector<2x4xf32>
    %cst_7 = arith.constant dense<0.000000e+00> : vector<2x128xf32>
    %10 = tpu.matmul %9, %8, %cst_7 {dimension_numbers = #tpu.dot_dimension_numbers<[1], [0], [0], [1], [0, 0, 1, 1], [], []>} : vector<2x4xf32>, vector<4x128xf32>, vector<2x128xf32> -> vector<2x128xf32>
    %c0_8 = arith.constant 0 : index
    %c0_9 = arith.constant 0 : index
    %11 = vector.load %arg5[%c0_8, %c0_9] : memref<2x1xf32, #tpu.memory_space<vmem>>, vector<2x1xf32>
    %12 = vector.broadcast %11 : vector<2x1xf32> to vector<2x128xf32>
    %13 = arith.addf %10, %12 : vector<2x128xf32>
    %c0_10 = arith.constant 0 : index
    %c0_11 = arith.constant 0 : index
    %14 = vector.load %arg6[%c0_10, %c0_11] : memref<2x1xf32, #tpu.memory_space<vmem>>, vector<2x1xf32>
    %15 = vector.broadcast %14 : vector<2x1xf32> to vector<2x128xf32>
    %16 = arith.mulf %13, %15 : vector<2x128xf32>
    %c0_12 = arith.constant 0 : index
    %c0_13 = arith.constant 0 : index
    %17 = vector.load %arg7[%c0_12, %c0_13] : memref<2x1xf32, #tpu.memory_space<vmem>>, vector<2x1xf32>
    %18 = vector.broadcast %17 : vector<2x1xf32> to vector<2x128xf32>
    %19 = arith.addf %16, %18 : vector<2x128xf32>
    %cst_14 = arith.constant 0.000000e+00 : f32
    %20 = vector.broadcast %cst_14 : f32 to vector<2x128xf32>
    %21 = arith.maximumf %19, %20 : vector<2x128xf32>
    %c0_15 = arith.constant 0 : index
    %c0_16 = arith.constant 0 : index
    %22 = vector.load %arg1[%c0_15, %c0_16] : memref<9x128xf32, #tpu.memory_space<vmem>>, vector<9x128xf32>
    %c9_i32 = arith.constant 9 : i32
    %23 = tpu.dynamic_rotate %21 by %c9_i32 dim 1 : vector<2x128xf32>, i32 -> vector<2x128xf32>
    %24 = vector.extract_strided_slice %22 {offsets = [0, 0], sizes = [1, 128], strides = [1, 1]} : vector<9x128xf32> to vector<1x128xf32>
    %25 = vector.broadcast %24 : vector<1x128xf32> to vector<2x128xf32>
    %26 = arith.mulf %23, %25 : vector<2x128xf32>
    %c0_17 = arith.constant 0 : index
    %c0_18 = arith.constant 0 : index
    %c0_19 = arith.constant 0 : index
    %27 = vector.load %arg8[%c0_17, %c0_18, %c0_19] : memref<9x2x2xf32, #tpu.memory_space<vmem>>, vector<1x2x2xf32>
    %28 = vector.shape_cast %27 : vector<1x2x2xf32> to vector<2x2xf32>
    %cst_20 = arith.constant dense<0.000000e+00> : vector<2x128xf32>
    %29 = tpu.matmul %28, %26, %cst_20 {dimension_numbers = #tpu.dot_dimension_numbers<[1], [0], [0], [1], [0, 0, 1, 1], [], []>} : vector<2x2xf32>, vector<2x128xf32>, vector<2x128xf32> -> vector<2x128xf32>
    %c8_i32 = arith.constant 8 : i32
    %30 = tpu.dynamic_rotate %21 by %c8_i32 dim 1 : vector<2x128xf32>, i32 -> vector<2x128xf32>
    %31 = vector.extract_strided_slice %22 {offsets = [1, 0], sizes = [1, 128], strides = [1, 1]} : vector<9x128xf32> to vector<1x128xf32>
    %32 = vector.broadcast %31 : vector<1x128xf32> to vector<2x128xf32>
    %33 = arith.mulf %30, %32 : vector<2x128xf32>
    %c1 = arith.constant 1 : index
    %c0_21 = arith.constant 0 : index
    %c0_22 = arith.constant 0 : index
    %34 = vector.load %arg8[%c1, %c0_21, %c0_22] : memref<9x2x2xf32, #tpu.memory_space<vmem>>, vector<1x2x2xf32>
    %35 = vector.shape_cast %34 : vector<1x2x2xf32> to vector<2x2xf32>
    %cst_23 = arith.constant dense<0.000000e+00> : vector<2x128xf32>
    %36 = tpu.matmul %35, %33, %cst_23 {dimension_numbers = #tpu.dot_dimension_numbers<[1], [0], [0], [1], [0, 0, 1, 1], [], []>} : vector<2x2xf32>, vector<2x128xf32>, vector<2x128xf32> -> vector<2x128xf32>
    %37 = arith.addf %29, %36 : vector<2x128xf32>
    %c7_i32 = arith.constant 7 : i32
    %38 = tpu.dynamic_rotate %21 by %c7_i32 dim 1 : vector<2x128xf32>, i32 -> vector<2x128xf32>
    %39 = vector.extract_strided_slice %22 {offsets = [2, 0], sizes = [1, 128], strides = [1, 1]} : vector<9x128xf32> to vector<1x128xf32>
    %40 = vector.broadcast %39 : vector<1x128xf32> to vector<2x128xf32>
    %41 = arith.mulf %38, %40 : vector<2x128xf32>
    %c2 = arith.constant 2 : index
    %c0_24 = arith.constant 0 : index
    %c0_25 = arith.constant 0 : index
    %42 = vector.load %arg8[%c2, %c0_24, %c0_25] : memref<9x2x2xf32, #tpu.memory_space<vmem>>, vector<1x2x2xf32>
    %43 = vector.shape_cast %42 : vector<1x2x2xf32> to vector<2x2xf32>
    %cst_26 = arith.constant dense<0.000000e+00> : vector<2x128xf32>
    %44 = tpu.matmul %43, %41, %cst_26 {dimension_numbers = #tpu.dot_dimension_numbers<[1], [0], [0], [1], [0, 0, 1, 1], [], []>} : vector<2x2xf32>, vector<2x128xf32>, vector<2x128xf32> -> vector<2x128xf32>
    %45 = arith.addf %37, %44 : vector<2x128xf32>
    %c1_i32 = arith.constant 1 : i32
    %46 = tpu.dynamic_rotate %21 by %c1_i32 dim 1 : vector<2x128xf32>, i32 -> vector<2x128xf32>
    %47 = vector.extract_strided_slice %22 {offsets = [3, 0], sizes = [1, 128], strides = [1, 1]} : vector<9x128xf32> to vector<1x128xf32>
    %48 = vector.broadcast %47 : vector<1x128xf32> to vector<2x128xf32>
    %49 = arith.mulf %46, %48 : vector<2x128xf32>
    %c3 = arith.constant 3 : index
    %c0_27 = arith.constant 0 : index
    %c0_28 = arith.constant 0 : index
    %50 = vector.load %arg8[%c3, %c0_27, %c0_28] : memref<9x2x2xf32, #tpu.memory_space<vmem>>, vector<1x2x2xf32>
    %51 = vector.shape_cast %50 : vector<1x2x2xf32> to vector<2x2xf32>
    %cst_29 = arith.constant dense<0.000000e+00> : vector<2x128xf32>
    %52 = tpu.matmul %51, %49, %cst_29 {dimension_numbers = #tpu.dot_dimension_numbers<[1], [0], [0], [1], [0, 0, 1, 1], [], []>} : vector<2x2xf32>, vector<2x128xf32>, vector<2x128xf32> -> vector<2x128xf32>
    %53 = arith.addf %45, %52 : vector<2x128xf32>
    %c4 = arith.constant 4 : index
    %c0_30 = arith.constant 0 : index
    %c0_31 = arith.constant 0 : index
    %54 = vector.load %arg8[%c4, %c0_30, %c0_31] : memref<9x2x2xf32, #tpu.memory_space<vmem>>, vector<1x2x2xf32>
    %55 = vector.shape_cast %54 : vector<1x2x2xf32> to vector<2x2xf32>
    %cst_32 = arith.constant dense<0.000000e+00> : vector<2x128xf32>
    %56 = tpu.matmul %55, %21, %cst_32 {dimension_numbers = #tpu.dot_dimension_numbers<[1], [0], [0], [1], [0, 0, 1, 1], [], []>} : vector<2x2xf32>, vector<2x128xf32>, vector<2x128xf32> -> vector<2x128xf32>
    %57 = arith.addf %53, %56 : vector<2x128xf32>
    %c127_i32 = arith.constant 127 : i32
    %58 = tpu.dynamic_rotate %21 by %c127_i32 dim 1 : vector<2x128xf32>, i32 -> vector<2x128xf32>
    %59 = vector.extract_strided_slice %22 {offsets = [5, 0], sizes = [1, 128], strides = [1, 1]} : vector<9x128xf32> to vector<1x128xf32>
    %60 = vector.broadcast %59 : vector<1x128xf32> to vector<2x128xf32>
    %61 = arith.mulf %58, %60 : vector<2x128xf32>
    %c5 = arith.constant 5 : index
    %c0_33 = arith.constant 0 : index
    %c0_34 = arith.constant 0 : index
    %62 = vector.load %arg8[%c5, %c0_33, %c0_34] : memref<9x2x2xf32, #tpu.memory_space<vmem>>, vector<1x2x2xf32>
    %63 = vector.shape_cast %62 : vector<1x2x2xf32> to vector<2x2xf32>
    %cst_35 = arith.constant dense<0.000000e+00> : vector<2x128xf32>
    %64 = tpu.matmul %63, %61, %cst_35 {dimension_numbers = #tpu.dot_dimension_numbers<[1], [0], [0], [1], [0, 0, 1, 1], [], []>} : vector<2x2xf32>, vector<2x128xf32>, vector<2x128xf32> -> vector<2x128xf32>
    %65 = arith.addf %57, %64 : vector<2x128xf32>
    %c121_i32 = arith.constant 121 : i32
    %66 = tpu.dynamic_rotate %21 by %c121_i32 dim 1 : vector<2x128xf32>, i32 -> vector<2x128xf32>
    %67 = vector.extract_strided_slice %22 {offsets = [6, 0], sizes = [1, 128], strides = [1, 1]} : vector<9x128xf32> to vector<1x128xf32>
    %68 = vector.broadcast %67 : vector<1x128xf32> to vector<2x128xf32>
    %69 = arith.mulf %66, %68 : vector<2x128xf32>
    %c6 = arith.constant 6 : index
    %c0_36 = arith.constant 0 : index
    %c0_37 = arith.constant 0 : index
    %70 = vector.load %arg8[%c6, %c0_36, %c0_37] : memref<9x2x2xf32, #tpu.memory_space<vmem>>, vector<1x2x2xf32>
    %71 = vector.shape_cast %70 : vector<1x2x2xf32> to vector<2x2xf32>
    %cst_38 = arith.constant dense<0.000000e+00> : vector<2x128xf32>
    %72 = tpu.matmul %71, %69, %cst_38 {dimension_numbers = #tpu.dot_dimension_numbers<[1], [0], [0], [1], [0, 0, 1, 1], [], []>} : vector<2x2xf32>, vector<2x128xf32>, vector<2x128xf32> -> vector<2x128xf32>
    %73 = arith.addf %65, %72 : vector<2x128xf32>
    %c120_i32 = arith.constant 120 : i32
    %74 = tpu.dynamic_rotate %21 by %c120_i32 dim 1 : vector<2x128xf32>, i32 -> vector<2x128xf32>
    %75 = vector.extract_strided_slice %22 {offsets = [7, 0], sizes = [1, 128], strides = [1, 1]} : vector<9x128xf32> to vector<1x128xf32>
    %76 = vector.broadcast %75 : vector<1x128xf32> to vector<2x128xf32>
    %77 = arith.mulf %74, %76 : vector<2x128xf32>
    %c7 = arith.constant 7 : index
    %c0_39 = arith.constant 0 : index
    %c0_40 = arith.constant 0 : index
    %78 = vector.load %arg8[%c7, %c0_39, %c0_40] : memref<9x2x2xf32, #tpu.memory_space<vmem>>, vector<1x2x2xf32>
    %79 = vector.shape_cast %78 : vector<1x2x2xf32> to vector<2x2xf32>
    %cst_41 = arith.constant dense<0.000000e+00> : vector<2x128xf32>
    %80 = tpu.matmul %79, %77, %cst_41 {dimension_numbers = #tpu.dot_dimension_numbers<[1], [0], [0], [1], [0, 0, 1, 1], [], []>} : vector<2x2xf32>, vector<2x128xf32>, vector<2x128xf32> -> vector<2x128xf32>
    %81 = arith.addf %73, %80 : vector<2x128xf32>
    %c119_i32 = arith.constant 119 : i32
    %82 = tpu.dynamic_rotate %21 by %c119_i32 dim 1 : vector<2x128xf32>, i32 -> vector<2x128xf32>
    %83 = vector.extract_strided_slice %22 {offsets = [8, 0], sizes = [1, 128], strides = [1, 1]} : vector<9x128xf32> to vector<1x128xf32>
    %84 = vector.broadcast %83 : vector<1x128xf32> to vector<2x128xf32>
    %85 = arith.mulf %82, %84 : vector<2x128xf32>
    %c8 = arith.constant 8 : index
    %c0_42 = arith.constant 0 : index
    %c0_43 = arith.constant 0 : index
    %86 = vector.load %arg8[%c8, %c0_42, %c0_43] : memref<9x2x2xf32, #tpu.memory_space<vmem>>, vector<1x2x2xf32>
    %87 = vector.shape_cast %86 : vector<1x2x2xf32> to vector<2x2xf32>
    %cst_44 = arith.constant dense<0.000000e+00> : vector<2x128xf32>
    %88 = tpu.matmul %87, %85, %cst_44 {dimension_numbers = #tpu.dot_dimension_numbers<[1], [0], [0], [1], [0, 0, 1, 1], [], []>} : vector<2x2xf32>, vector<2x128xf32>, vector<2x128xf32> -> vector<2x128xf32>
    %89 = arith.addf %81, %88 : vector<2x128xf32>
    %c0_45 = arith.constant 0 : index
    %c0_46 = arith.constant 0 : index
    %90 = vector.load %arg9[%c0_45, %c0_46] : memref<2x1xf32, #tpu.memory_space<vmem>>, vector<2x1xf32>
    %91 = vector.broadcast %90 : vector<2x1xf32> to vector<2x128xf32>
    %92 = arith.addf %89, %91 : vector<2x128xf32>
    %c0_47 = arith.constant 0 : index
    %c0_48 = arith.constant 0 : index
    %93 = vector.load %arg10[%c0_47, %c0_48] : memref<2x1xf32, #tpu.memory_space<vmem>>, vector<2x1xf32>
    %94 = vector.broadcast %93 : vector<2x1xf32> to vector<2x128xf32>
    %95 = arith.mulf %92, %94 : vector<2x128xf32>
    %c0_49 = arith.constant 0 : index
    %c0_50 = arith.constant 0 : index
    %96 = vector.load %arg11[%c0_49, %c0_50] : memref<2x1xf32, #tpu.memory_space<vmem>>, vector<2x1xf32>
    %97 = vector.broadcast %96 : vector<2x1xf32> to vector<2x128xf32>
    %98 = arith.addf %95, %97 : vector<2x128xf32>
    %cst_51 = arith.constant 0.000000e+00 : f32
    %99 = vector.broadcast %cst_51 : f32 to vector<2x128xf32>
    %100 = arith.maximumf %98, %99 : vector<2x128xf32>
    %c0_52 = arith.constant 0 : index
    %c0_53 = arith.constant 0 : index
    %101 = vector.load %arg12[%c0_52, %c0_53] : memref<4x2xf32, #tpu.memory_space<vmem>>, vector<4x2xf32>
    %cst_54 = arith.constant dense<0.000000e+00> : vector<4x128xf32>
    %102 = tpu.matmul %101, %100, %cst_54 {dimension_numbers = #tpu.dot_dimension_numbers<[1], [0], [0], [1], [0, 0, 1, 1], [], []>} : vector<4x2xf32>, vector<2x128xf32>, vector<4x128xf32> -> vector<4x128xf32>
    %c0_55 = arith.constant 0 : index
    %c0_56 = arith.constant 0 : index
    %103 = vector.load %arg13[%c0_55, %c0_56] : memref<4x1xf32, #tpu.memory_space<vmem>>, vector<4x1xf32>
    %104 = vector.broadcast %103 : vector<4x1xf32> to vector<4x128xf32>
    %105 = arith.addf %102, %104 : vector<4x128xf32>
    %106 = arith.addf %105, %0 : vector<4x128xf32>
    %c0_57 = arith.constant 0 : index
    %c0_58 = arith.constant 0 : index
    %107 = vector.load %arg14[%c0_57, %c0_58] : memref<4x128xf32, #tpu.memory_space<vmem>>, vector<4x128xf32>
    tpu.vector_store %arg14[%c0_57, %c0_58], %106 {strides = array<i32>} : memref<4x128xf32, #tpu.memory_space<vmem>>, vector<4x128xf32>,
    return
  }
}

module attributes {stable_mosaic.version = 11 : i64} {
  func.func @_resize_kernel(%arg0: memref<4x128xf32, #tpu.memory_space<vmem>>, %arg1: memref<128x512xf32, #tpu.memory_space<vmem>>, %arg2: memref<4x512xf32, #tpu.memory_space<vmem>>) attributes {dimension_semantics = [], scalar_prefetch = 0 : i64, scratch_operands = 0 : i64, tpu.core_type = #tpu.core_type<tc>} {
    %c0 = arith.constant 0 : index
    %c0_0 = arith.constant 0 : index
    %0 = vector.load %arg0[%c0, %c0_0] : memref<4x128xf32, #tpu.memory_space<vmem>>, vector<4x128xf32>
    %c0_1 = arith.constant 0 : index
    %c0_2 = arith.constant 0 : index
    %1 = vector.load %arg1[%c0_1, %c0_2] : memref<128x512xf32, #tpu.memory_space<vmem>>, vector<128x512xf32>
    %cst = arith.constant dense<0.000000e+00> : vector<4x512xf32>
    %2 = tpu.matmul %0, %1, %cst {dimension_numbers = #tpu.dot_dimension_numbers<[1], [0], [0], [1], [0, 0, 1, 1], [], []>} : vector<4x128xf32>, vector<128x512xf32>, vector<4x512xf32> -> vector<4x512xf32>
    %c0_3 = arith.constant 0 : index
    %c0_4 = arith.constant 0 : index
    %3 = vector.load %arg2[%c0_3, %c0_4] : memref<4x512xf32, #tpu.memory_space<vmem>>, vector<4x512xf32>
    tpu.vector_store %arg2[%c0_3, %c0_4], %2 {strides = array<i32>} : memref<4x512xf32, #tpu.memory_space<vmem>>, vector<4x512xf32>,
    return
  }
}

module attributes {stable_mosaic.version = 11 : i64} {
  func.func @_skip_add_kernel(%arg0: memref<8x512xf32, #tpu.memory_space<vmem>>, %arg1: memref<4x512xf32, #tpu.memory_space<vmem>>, %arg2: memref<8x1xf32, #tpu.memory_space<vmem>>, %arg3: memref<8x1xf32, #tpu.memory_space<vmem>>, %arg4: memref<4x8xf32, #tpu.memory_space<vmem>>, %arg5: memref<4x1xf32, #tpu.memory_space<vmem>>, %arg6: memref<4x512xf32, #tpu.memory_space<vmem>>) attributes {dimension_semantics = [], scalar_prefetch = 0 : i64, scratch_operands = 0 : i64, tpu.core_type = #tpu.core_type<tc>} {
    %c0 = arith.constant 0 : index
    %c0_0 = arith.constant 0 : index
    %0 = vector.load %arg0[%c0, %c0_0] : memref<8x512xf32, #tpu.memory_space<vmem>>, vector<8x512xf32>
    %c0_1 = arith.constant 0 : index
    %c0_2 = arith.constant 0 : index
    %1 = vector.load %arg2[%c0_1, %c0_2] : memref<8x1xf32, #tpu.memory_space<vmem>>, vector<8x1xf32>
    %2 = vector.broadcast %1 : vector<8x1xf32> to vector<8x512xf32>
    %3 = arith.mulf %0, %2 : vector<8x512xf32>
    %c0_3 = arith.constant 0 : index
    %c0_4 = arith.constant 0 : index
    %4 = vector.load %arg3[%c0_3, %c0_4] : memref<8x1xf32, #tpu.memory_space<vmem>>, vector<8x1xf32>
    %5 = vector.broadcast %4 : vector<8x1xf32> to vector<8x512xf32>
    %6 = arith.addf %3, %5 : vector<8x512xf32>
    %cst = arith.constant 0.000000e+00 : f32
    %7 = vector.broadcast %cst : f32 to vector<8x512xf32>
    %8 = arith.maximumf %6, %7 : vector<8x512xf32>
    %c0_5 = arith.constant 0 : index
    %c0_6 = arith.constant 0 : index
    %9 = vector.load %arg4[%c0_5, %c0_6] : memref<4x8xf32, #tpu.memory_space<vmem>>, vector<4x8xf32>
    %cst_7 = arith.constant dense<0.000000e+00> : vector<4x512xf32>
    %10 = tpu.matmul %9, %8, %cst_7 {dimension_numbers = #tpu.dot_dimension_numbers<[1], [0], [0], [1], [0, 0, 1, 1], [], []>} : vector<4x8xf32>, vector<8x512xf32>, vector<4x512xf32> -> vector<4x512xf32>
    %c0_8 = arith.constant 0 : index
    %c0_9 = arith.constant 0 : index
    %11 = vector.load %arg5[%c0_8, %c0_9] : memref<4x1xf32, #tpu.memory_space<vmem>>, vector<4x1xf32>
    %12 = vector.broadcast %11 : vector<4x1xf32> to vector<4x512xf32>
    %13 = arith.addf %10, %12 : vector<4x512xf32>
    %c0_10 = arith.constant 0 : index
    %c0_11 = arith.constant 0 : index
    %14 = vector.load %arg1[%c0_10, %c0_11] : memref<4x512xf32, #tpu.memory_space<vmem>>, vector<4x512xf32>
    %15 = arith.addf %13, %14 : vector<4x512xf32>
    %c0_12 = arith.constant 0 : index
    %c0_13 = arith.constant 0 : index
    %16 = vector.load %arg6[%c0_12, %c0_13] : memref<4x512xf32, #tpu.memory_space<vmem>>, vector<4x512xf32>
    tpu.vector_store %arg6[%c0_12, %c0_13], %15 {strides = array<i32>} : memref<4x512xf32, #tpu.memory_space<vmem>>, vector<4x512xf32>,
    return
  }
}

module attributes {stable_mosaic.version = 11 : i64} {
  func.func @_bn_relu_kernel(%arg0: memref<4x512xf32, #tpu.memory_space<vmem>>, %arg1: memref<4x1xf32, #tpu.memory_space<vmem>>, %arg2: memref<4x1xf32, #tpu.memory_space<vmem>>, %arg3: memref<4x512xf32, #tpu.memory_space<vmem>>) attributes {dimension_semantics = [], scalar_prefetch = 0 : i64, scratch_operands = 0 : i64, tpu.core_type = #tpu.core_type<tc>} {
    %c0 = arith.constant 0 : index
    %c0_0 = arith.constant 0 : index
    %0 = vector.load %arg0[%c0, %c0_0] : memref<4x512xf32, #tpu.memory_space<vmem>>, vector<4x512xf32>
    %c0_1 = arith.constant 0 : index
    %c0_2 = arith.constant 0 : index
    %1 = vector.load %arg1[%c0_1, %c0_2] : memref<4x1xf32, #tpu.memory_space<vmem>>, vector<4x1xf32>
    %2 = vector.broadcast %1 : vector<4x1xf32> to vector<4x512xf32>
    %3 = arith.mulf %0, %2 : vector<4x512xf32>
    %c0_3 = arith.constant 0 : index
    %c0_4 = arith.constant 0 : index
    %4 = vector.load %arg2[%c0_3, %c0_4] : memref<4x1xf32, #tpu.memory_space<vmem>>, vector<4x1xf32>
    %5 = vector.broadcast %4 : vector<4x1xf32> to vector<4x512xf32>
    %6 = arith.addf %3, %5 : vector<4x512xf32>
    %cst = arith.constant 0.000000e+00 : f32
    %7 = vector.broadcast %cst : f32 to vector<4x512xf32>
    %8 = arith.maximumf %6, %7 : vector<4x512xf32>
    %c0_5 = arith.constant 0 : index
    %c0_6 = arith.constant 0 : index
    %9 = vector.load %arg3[%c0_5, %c0_6] : memref<4x512xf32, #tpu.memory_space<vmem>>, vector<4x512xf32>
    tpu.vector_store %arg3[%c0_5, %c0_6], %8 {strides = array<i32>} : memref<4x512xf32, #tpu.memory_space<vmem>>, vector<4x512xf32>,
    return
  }
}

</mosaic_0001>

<bundles_post_ra>
// kernel: run.19
= control target key start
LH: loop header
LB: loop body
LE: loop exit
PB: predicated region body
PF: predicated region fallthrough
CT: control target
= control target key end

     0   :  { %s580_s1 = inlined_call_operand.vmem [shape: f32[512,128], index: 1, kind: input, shape index: {}]   ;;  %s581_s0 = inlined_call_operand.vmem [shape: f32[8,512], index: 0, kind: input, shape index: {}]   ;;  %s582_s2 = inlined_call_operand.vmem [shape: f32[8,128], index: 2, kind: output, shape index: {}]  }
   0x1   :  { %v31_v0 = vld [vmem:[%s580_s1 + $0x80] sm:$0xff]  ;;  %v32_v1 = vld [vmem:[%s580_s1 + $0x88] sm:$0xff]  ;;  %v33_v11 = vld [vmem:[%s580_s1 + $0x90] sm:$0xff] }
   0x2   :  { %v63_v2 = vld [vmem:[%s580_s1 + $0x180] sm:$0xff]  ;;  %v294_v3 = vpack.c.bf16 %v32_v1, %v31_v0  ;;  %v64_v4 = vld [vmem:[%s580_s1 + $0x188] sm:$0xff]  ;;  %v34_v13 = vld [vmem:[%s580_s1 + $0x98] sm:$0xff] }
   0x3   :  { %v15_v5 = vld [vmem:[%s580_s1] sm:$0xff]  ;;  %v16_v6 = vld [vmem:[%s580_s1 + $0x8] sm:$0xff]  ;;  %v326_v7 = vpack.c.bf16 %v64_v4, %v63_v2  ;;  %v65_v14 = vld [vmem:[%s580_s1 + $0x190] sm:$0xff]  ;;  %v298_v16 = vpack.c.bf16 %v34_v13, %v33_v11 }
   0x4   :  { %v296_v8 = vpack.c.bf16 %v16_v6, %v15_v5  ;;  %v47_v9 = vld [vmem:[%s580_s1 + $0x100] sm:$0xff]  ;;  %v48_v10 = vld [vmem:[%s580_s1 + $0x108] sm:$0xff]  ;;  %295 = vmatprep.subr.bf16.mxu0 %v294_v3  ;;  %v66_v15 = vld [vmem:[%s580_s1 + $0x198] sm:$0xff] }
   0x5   :  { %v328_v12 = vpack.c.bf16 %v48_v10, %v47_v9  ;;  %327 = vmatprep.subr.bf16.mxu1 %v326_v7  ;;  %v330_v17 = vpack.c.bf16 %v66_v15, %v65_v14  ;;  %v17_v18 = vld [vmem:[%s580_s1 + $0x10] sm:$0xff]  ;;  %v18_v19 = vld [vmem:[%s580_s1 + $0x18] sm:$0xff]  ;;  %v35_v23 = vld [vmem:[%s580_s1 + $0xa0] sm:$0xff] }
   0x6   :  { %297 = vmatpush3.bf16.msra.mxu0 %v296_v8  ;;  %v49_v20 = vld [vmem:[%s580_s1 + $0x110] sm:$0xff]  ;;  %v300_v21 = vpack.c.bf16 %v18_v19, %v17_v18  ;;  %v50_v22 = vld [vmem:[%s580_s1 + $0x118] sm:$0xff]  ;;  %v36_v24 = vld [vmem:[%s580_s1 + $0xa8] sm:$0xff] }
   0x7   :  { %329 = vmatpush3.bf16.msra.mxu1 %v328_v12  ;;  %299 = vmatprep.subr.bf16.mxu0 %v298_v16  ;;  %v332_v25 = vpack.c.bf16 %v50_v22, %v49_v20  ;;  %v302_v26 = vpack.c.bf16 %v36_v24, %v35_v23  ;;  %v67_v27 = vld [vmem:[%s580_s1 + $0x1a0] sm:$0xff]  ;;  %v68_v28 = vld [vmem:[%s580_s1 + $0x1a8] sm:$0xff]  ;;  %v37_v35 = vld [vmem:[%s580_s1 + $0xb0] sm:$0xff] }
   0x8   :  { %331 = vmatprep.subr.bf16.mxu1 %v330_v17  ;;  %v19_v29 = vld [vmem:[%s580_s1 + $0x20] sm:$0xff]  ;;  %v334_v30 = vpack.c.bf16 %v68_v28, %v67_v27  ;;  %v20_v31 = vld [vmem:[%s580_s1 + $0x28] sm:$0xff]  ;;  %v38_v36 = vld [vmem:[%s580_s1 + $0xb8] sm:$0xff] }
   0x9   :  { %v51_v32 = vld [vmem:[%s580_s1 + $0x120] sm:$0xff]  ;;  %v52_v33 = vld [vmem:[%s580_s1 + $0x128] sm:$0xff]  ;;  %v304_v34 = vpack.c.bf16 %v20_v31, %v19_v29  ;;  %v69_v37 = vld [vmem:[%s580_s1 + $0x1b0] sm:$0xff]  ;;  %v306_v39 = vpack.c.bf16 %v38_v36, %v37_v35 }
   0xa   :  { %301 = vmatpush3.bf16.msra.mxu0 %v300_v21  ;;  %v336_v38 = vpack.c.bf16 %v52_v33, %v51_v32  ;;  %v70_v40 = vld [vmem:[%s580_s1 + $0x1b8] sm:$0xff]  ;;  %v21_v41 = vld [vmem:[%s580_s1 + $0x30] sm:$0xff]  ;;  %v39_v46 = vld [vmem:[%s580_s1 + $0xc0] sm:$0xff] }
   0xb   :  { %333 = vmatpush3.bf16.msra.mxu1 %v332_v25  ;;  %303 = vmatprep.subr.bf16.mxu0 %v302_v26  ;;  %v22_v42 = vld [vmem:[%s580_s1 + $0x38] sm:$0xff]  ;;  %v338_v43 = vpack.c.bf16 %v70_v40, %v69_v37  ;;  %v53_v44 = vld [vmem:[%s580_s1 + $0x130] sm:$0xff]  ;;  %v40_v47 = vld [vmem:[%s580_s1 + $0xc8] sm:$0xff] }
   0xc   :  { %335 = vmatprep.subr.bf16.mxu1 %v334_v30  ;;  %v54_v45 = vld [vmem:[%s580_s1 + $0x138] sm:$0xff]  ;;  %v71_v48 = vld [vmem:[%s580_s1 + $0x1c0] sm:$0xff]  ;;  %v72_v49 = vld [vmem:[%s580_s1 + $0x1c8] sm:$0xff]  ;;  %v308_v50 = vpack.c.bf16 %v22_v42, %v21_v41  ;;  %v310_v52 = vpack.c.bf16 %v40_v47, %v39_v46 }
   0xd   :  { %v340_v51 = vpack.c.bf16 %v54_v45, %v53_v44  ;;  %v23_v53 = vld [vmem:[%s580_s1 + $0x40] sm:$0xff]  ;;  %v24_v54 = vld [vmem:[%s580_s1 + $0x48] sm:$0xff]  ;;  %v342_v56 = vpack.c.bf16 %v72_v49, %v71_v48  ;;  %v41_v58 = vld [vmem:[%s580_s1 + $0xd0] sm:$0xff] }
   0xe   :  { %305 = vmatpush3.bf16.msra.mxu0 %v304_v34  ;;  %v55_v55 = vld [vmem:[%s580_s1 + $0x140] sm:$0xff]  ;;  %v56_v57 = vld [vmem:[%s580_s1 + $0x148] sm:$0xff]  ;;  %v42_v59 = vld [vmem:[%s580_s1 + $0xd8] sm:$0xff]  ;;  %v312_v62 = vpack.c.bf16 %v24_v54, %v23_v53 }
   0xf   :  { %337 = vmatpush3.bf16.msra.mxu1 %v336_v38  ;;  %307 = vmatprep.subr.bf16.mxu0 %v306_v39  ;;  %v73_v60 = vld [vmem:[%s580_s1 + $0x1d0] sm:$0xff]  ;;  %v74_v61 = vld [vmem:[%s580_s1 + $0x1d8] sm:$0xff]  ;;  %v344_v63 = vpack.c.bf16 %v56_v57, %v55_v55  ;;  %v314_v0 = vpack.c.bf16 %v42_v59, %v41_v58  ;;  %v43_v6 = vld [vmem:[%s580_s1 + $0xe0] sm:$0xff] }
  0x10   :  { %339 = vmatprep.subr.bf16.mxu1 %v338_v43  ;;  %v25_v1 = vld [vmem:[%s580_s1 + $0x50] sm:$0xff]  ;;  %v26_v2 = vld [vmem:[%s580_s1 + $0x58] sm:$0xff]  ;;  %v346_v4 = vpack.c.bf16 %v74_v61, %v73_v60  ;;  %v44_v7 = vld [vmem:[%s580_s1 + $0xe8] sm:$0xff] }
  0x11   :  { %v57_v3 = vld [vmem:[%s580_s1 + $0x150] sm:$0xff]  ;;  %v58_v5 = vld [vmem:[%s580_s1 + $0x158] sm:$0xff]  ;;  %v75_v8 = vld [vmem:[%s580_s1 + $0x1e0] sm:$0xff]  ;;  %v316_v10 = vpack.c.bf16 %v26_v2, %v25_v1  ;;  %v318_v14 = vpack.c.bf16 %v44_v7, %v43_v6 }
  0x12   :  { %309 = vmatpush3.bf16.msra.mxu0 %v308_v50  ;;  %v76_v9 = vld [vmem:[%s580_s1 + $0x1e8] sm:$0xff]  ;;  %v27_v11 = vld [vmem:[%s580_s1 + $0x60] sm:$0xff]  ;;  %v348_v13 = vpack.c.bf16 %v58_v5, %v57_v3  ;;  %v14_v17 = vld [vmem:[%s581_s0 + $0x18] sm:$0xff] }
  0x13   :  { %341 = vmatpush3.bf16.msra.mxu1 %v340_v51  ;;  %311 = vmatprep.subr.bf16.mxu0 %v310_v52  ;;  %v28_v12 = vld [vmem:[%s580_s1 + $0x68] sm:$0xff]  ;;  %v59_v15 = vld [vmem:[%s580_s1 + $0x160] sm:$0xff]  ;;  %v350_v18 = vpack.c.bf16 %v76_v9, %v75_v8  ;;  %v45_v20 = vld [vmem:[%s580_s1 + $0xf0] sm:$0xff] }
  0x14   :  { %343 = vmatprep.subr.bf16.mxu1 %v342_v56  ;;  %v12_v16 = vld [vmem:[%s581_s0 + $0x8] sm:$0xff]  ;;  %v46_v21 = vld [vmem:[%s580_s1 + $0xf8] sm:$0xff]  ;;  %v77_v22 = vld [vmem:[%s580_s1 + $0x1f0] sm:$0xff]  ;;  %213 = vmatprep.mubr.f32.mxu1 %v14_v17  ;;  %v320_v24 = vpack.c.bf16 %v28_v12, %v27_v11 }
  0x15   :  { %v60_v19 = vld [vmem:[%s580_s1 + $0x168] sm:$0xff]  ;;  %143 = vmatprep.mubr.f32.mxu0 %v12_v16  ;;  %v78_v23 = vld [vmem:[%s580_s1 + $0x1f8] sm:$0xff]  ;;  %v322_v26 = vpack.c.bf16 %v46_v21, %v45_v20  ;;  %v29_v27 = vld [vmem:[%s580_s1 + $0x70] sm:$0xff] }
  0x16   :  { %313 = vmatpush3.bf16.msra.mxu0 %v312_v62  ;;  %v352_v25 = vpack.c.bf16 %v60_v19, %v59_v15  ;;  %v30_v28 = vld [vmem:[%s580_s1 + $0x78] sm:$0xff]  ;;  %v354_v29 = vpack.c.bf16 %v78_v23, %v77_v22  ;;  %v61_v30 = vld [vmem:[%s580_s1 + $0x170] sm:$0xff]  ;;  %v11_v34 = vld [vmem:[%s581_s0] sm:$0xff] }
  0x17   :  { %345 = vmatpush3.bf16.msra.mxu1 %v344_v63  ;;  %315 = vmatprep.subr.bf16.mxu0 %v314_v0  ;;  %v62_v31 = vld [vmem:[%s580_s1 + $0x178] sm:$0xff]  ;;  %v324_v32 = vpack.c.bf16 %v30_v28, %v29_v27  ;;  %v13_v35 = vld [vmem:[%s581_s0 + $0x10] sm:$0xff] }
  0x18   :  { %347 = vmatprep.subr.bf16.mxu1 %v346_v4  ;;  %v356_v33 = vpack.c.bf16 %v62_v31, %v61_v30 }
  0x1a   :  { %317 = vmatpush3.bf16.msra.mxu0 %v316_v10 }
  0x1b   :  { %349 = vmatpush3.bf16.msra.mxu1 %v348_v13  ;;  %319 = vmatprep.subr.bf16.mxu0 %v318_v14 }
  0x1c   :  { %351 = vmatprep.subr.bf16.mxu1 %v350_v18 }
  0x1e   :  { %321 = vmatpush3.bf16.msra.mxu0 %v320_v24 }
  0x1f   :  { %353 = vmatpush3.bf16.msra.mxu1 %v352_v25  ;;  %323 = vmatprep.subr.bf16.mxu0 %v322_v26 }
  0x20   :  { %355 = vmatprep.subr.bf16.mxu1 %v354_v29 }
  0x22   :  { %325 = vmatpush3.bf16.msra.mxu0 %v324_v32 }
  0x23   :  { %357 = vmatpush3.bf16.msra.mxu1 %v356_v33 }
  0x25   :  { %144 = vmatmul.mubr.f32.vlgmr.msra.gmra.mrb[0].mxu0 %v11_v34 }
  0x26   :  { %214 = vmatmul.mubr.f32.vlgmr.msra.gmra.mrb[0].mxu1 %v13_v35 }
  0xf8   :  { %v256_v36 = vpop.f32.mrb[0].mxu0 }
  0xf9   :  { %v291_v37 = vpop.f32.mrb[0].mxu1  ;;  %v257_v38 = vpop.f32.mrb[1].mxu0 }
  0xfa   :  { %v258_v39 = vadd.f32 %v257_v38, %v256_v36  ;;  %v292_v40 = vpop.f32.mrb[1].mxu1 }
  0xfb   :  { %v293_v41 = vadd.f32 %v292_v40, %v291_v37 }
  0xfd   :  { %v216_v42 = vadd.f32 %v293_v41, %v258_v39 }
  0xff   :  { %219 = vst [vmem:[%s582_s2] sm:$0xff] %v216_v42 }

// kernel: run.18
= control target key start
LH: loop header
LB: loop body
LE: loop exit
PB: predicated region body
PF: predicated region fallthrough
CT: control target
= control target key end

     0   :  { %v2562_v0 = vmov 0   ;;  %v2563_v4 = vmov 0.0   ;;  %v2564_v7 = vmov 839922192   ;;  %v69_v9 = vlaneseq  ;;  %s2568_s30 = smov 1   ;;  %s2572_s20 = smov 111   ;;  %s3042_s2 = inlined_call_operand.vmem [shape: f32[4,1], index: 2, kind: input, shape index: {}]   ;;  %s3043_s3 = inlined_call_operand.vmem [shape: f32[4,1], index: 3, kind: input, shape index: {}]   ;;  %s3044_s7 = inlined_call_operand.vmem [shape: f32[4,1], index: 7, kind: input, shape index: {}]   ;;  %s3045_s5 = inlined_call_operand.vmem [shape: f32[4,1], index: 5, kind: input, shape index: {}]   ;;  %s3046_s6 = inlined_call_operand.vmem [shape: f32[4,1], index: 6, kind: input, shape index: {}]   ;;  %s3047_s0 = inlined_call_operand.vmem [shape: f32[4,512], index: 0, kind: input, shape index: {}]   ;;  %s3048_s4 = inlined_call_operand.vmem [shape: f32[4,4], index: 4, kind: input, shape index: {}]   ;;  %s3049_s9 = inlined_call_operand.vmem [shape: f32[4,1], index: 9, kind: input, shape index: {}]   ;;  %s3050_s10 = inlined_call_operand.vmem [shape: f32[4,1], index: 10, kind: input, shape index: {}]   ;;  %s3051_s11 = inlined_call_operand.vmem [shape: f32[4,1], index: 11, kind: input, shape index: {}]   ;;  %s3052_s14 = inlined_call_operand.vmem [shape: f32[4,1], index: 14, kind: input, shape index: {}]   ;;  %s3053_s15 = inlined_call_operand.vmem [shape: f32[4,1], index: 15, kind: input, shape index: {}]   ;;  %s3054_s13 = inlined_call_operand.vmem [shape: f32[8,1], index: 13, kind: input, shape index: {}]   ;;  %s3055_s17 = inlined_call_operand.vmem [shape: f32[8,1], index: 17, kind: input, shape index: {}]   ;;  %s3056_s1 = inlined_call_operand.vmem [shape: f32[9,512], index: 1, kind: input, shape index: {}]   ;;  %s3057_s8 = inlined_call_operand.vmem [shape: f32[9,4,4], index: 8, kind: input, shape index: {}]   ;;  %s3058_s12 = inlined_call_operand.vmem [shape: f32[8,4], index: 12, kind: input, shape index: {}]   ;;  %s3059_s16 = inlined_call_operand.vmem [shape: f32[8,4], index: 16, kind: input, shape index: {}]   ;;  %s3060_s18 = inlined_call_operand.vmem [shape: f32[8,512], index: 18, kind: output, shape index: {}]  }
   0x1   :  { %3061 = sst [smem:[#allocation2_spill]] %s3042_s2  ;;  %2560 = vset.pattern.permute.xlu0 %v2562_v0  ;;  %2561 = vset.pattern.permute.xlu1 %v2562_v0  ;;  %v94_v5 = vld [vmem:[%s3045_s5] sm:$0xf]  ;;  %v67_v8 = vunpack.c.l.s4 %v2564_v7  ;;  %v2700_v16 = vld [vmem:[%s3047_s0 + $0x8] sm:$0xff]  ;;  %vm108_vm0 = vcmask 1043456   ;;  %vm104_vm1 = vcmask 31744  }
   0x2   :  { %3062 = sst [smem:[#allocation3_spill]] %s3043_s3  ;;  %s3064_s29 = sld [smem:[#allocation2_spill]]  ;;  %181 = vmatprep.mubr.f32.mxu0 %v2563_v4  ;;  %252 = vmatprep.mubr.f32.mxu1 %v2563_v4  ;;  %v259_v6 = vld [vmem:[%s3046_s6] sm:$0xf]  ;;  %v2686_v11 = vshrl.u32 %v69_v9, 7  ;;  %v2778_v58 = vand.u32 127, %v69_v9 }
   0x3   :  { %3063 = sst [smem:[#allocation4_spill]] %s3044_s7  ;;  %s3065_s19 = sld [smem:[#allocation3_spill]]  ;;  %97 = vperm.xlu1 %2561, %v94_v5   ;;  %v68_v10 = vunpack.c.0.s8 %v67_v8  ;;  %v2695_v15 = vld [vmem:[%s3047_s0] sm:$0xff]  ;;  %v2784_v60 = vld [vmem:[%s3056_s1 + $0x8] sm:$0xff]  ;;  %v2796_v0 = vld [vmem:[%s3056_s1 + $0x18] sm:$0xff] }
   0x4   :  { %s3066_s21 = sld [smem:[#allocation4_spill]]  ;;  %v93_v27 = vld [vmem:[%s3048_s4] sm:$0xf]  ;;  %s2565_s0 = smov 16   ;;  %v342_v59 = vsub.s32 1, %v2686_v11  ;;  %vm335_vm2 = vcmp.lt.s32.totalorder %v2778_v58, 16 }
   0x5   :  { %v2689_v12 = vsub.s32 %v68_v10, %v2686_v11  ;;  %s2566_s4 = smov 17   ;;  %s2569_s2 = smov 127   ;;  %v2015_v51 = vld [vmem:[%s3049_s9] sm:$0xf]  ;;  %v308_v8 = vsub.s32 0, %v2686_v11  ;;  %vm301_vm3 = vcmp.lt.s32.totalorder %v2778_v58, 17 }
   0x6   :  { %s2571_s3 = smov 112   ;;  %v2025_v52 = vld [vmem:[%s3050_s10] sm:$0xf]  ;;  %v347_v61 = vrot.slane %v2784_v60, %v342_v59  ;;  %v355_v7 = vrot.slane %v2796_v0, %v342_v59  ;;  %vm684_vm4 = vcmp.lt.s32.totalorder %v2778_v58, 15  ;;  %vm880_vm5 = vcmp.lt.s32.totalorder %v2778_v58, 1 }
   0x7   :  { %262 = vperm.xlu1 %2561, %v259_v6   ;;  %v2035_v53 = vld [vmem:[%s3051_s11] sm:$0xf]  ;;  %vm1239_vm6 = vcmp.lt.s32.totalorder %v2778_v58, 127  ;;  %vm1435_vm7 = vcmp.lt.s32.totalorder %v2778_v58, 113  ;;  %vm1631_vm8 = vcmp.lt.s32.totalorder %v2778_v58, 112  ;;  %vm1827_vm9 = vcmp.lt.s32.totalorder %v2778_v58, 111 }
   0x8   :  { %v61_v1 = vld [vmem:[%s3064_s29] sm:$0xf]  ;;  %s2567_s29 = smov 15  }
   0x9   :  { %64 = vperm.xlu0 %2560, %v61_v1   ;;  %v76_v2 = vld [vmem:[%s3065_s19] sm:$0xf]  ;;  %s2570_s19 = smov 113  }
   0xa   :  { %v269_v3 = vld [vmem:[%s3066_s21] sm:$0xf] }
   0xb   :  { %v2213_v54 = vld [vmem:[%s3052_s14] sm:$0xf] }
   0xc   :  { %v2228_v55 = vld [vmem:[%s3053_s15] sm:$0xf] }
   0xd   :  { %79 = vperm.xlu0 %2560, %v76_v2   ;;  %v2050_v56 = vld [vmem:[%s3054_s13] sm:$0xff]  ;;  %v2801_v2 = vld [vmem:[%s3056_s1 + $0x10] sm:$0xff] }
   0xe   :  { %v2246_v57 = vld [vmem:[%s3055_s17] sm:$0xff]  ;;  %v351_v9 = vrot.slane %v2801_v2, %v342_v59 }
   0xf   :  { %v2791_v63 = vld [vmem:[%s3056_s1] sm:$0xff] }
  0x10   :  { %v343_v6 = vrot.slane %v2791_v63, %v342_v59  ;;  %v2486_v58 = vld [vmem:[%s3057_s8 + $0x20] sm:$0xf] }
  0x11   :  { %272 = vperm.xlu0 %2560, %v269_v3  }
  0x82   :  { %v98_v28 = vpop.permute.xlu1 %97 }
  0x86   :  { %v263_v35 = vpop.permute.xlu1 %262 }
  0x88   :  { %v65_v13 = vpop.permute.xlu0 %64 }
  0x89   :  { %v72_v14 = vrot.slane %v65_v13, %v2689_v12 }
  0x8b   :  { %v74_v18 = vmul.f32 %v72_v14, %v2695_v15  ;;  %v75_v19 = vmul.f32 %v72_v14, %v2700_v16 }
  0x8c   :  { %v80_v17 = vpop.permute.xlu0 %79 }
  0x8d   :  { %v87_v20 = vrot.slane %v80_v17, %v2689_v12 }
  0x8f   :  { %v89_v21 = vadd.f32 %v87_v20, %v74_v18  ;;  %v90_v22 = vadd.f32 %v87_v20, %v75_v19 }
  0x90   :  { %v273_v40 = vpop.permute.xlu0 %272 }
  0x91   :  { %v91_v23 = vmax.f32 %v89_v21, 0.0  ;;  %v92_v24 = vmax.f32 %v90_v22, 0.0  ;;  %v313_v21 = vrot.slane %v2784_v60, %v308_v8  ;;  %v2427_v22 = vld [vmem:[%s3057_s8 + $0x4] sm:$0xf] }
  0x93   :  { %v102_v25 = vcombine.high %v91_v23, %v91_v23  ;;  %v103_v26 = vcombine.high %v92_v24, %v92_v24 }
  0x95   :  { %2421 = vmatprep.subr.msk.mxu0 %vm108_vm0, %v102_v25  ;;  %2424 = vmatprep.subr.msk.mxu1 %vm108_vm0, %v103_v26 }
  0x96   :  { %2422 = vmatpush1.msk.msra.mxu0 %vm108_vm0, %v91_v23  ;;  %2425 = vmatpush1.msk.msra.mxu1 %vm108_vm0, %v92_v24 }
  0x97   :  { %2423 = vmatmul.mubr.msk.f32.vlgmr.msra.gmra.mrb[0].mxu0 %vm104_vm1, %v93_v27  ;;  %2426 = vmatmul.mubr.msk.f32.vlgmr.msra.gmra.mrb[0].mxu1 %vm104_vm1, %v93_v27 }
  0x98   :  { %441 = vmatprep.mubr.f32.mxu0 %v2563_v4  ;;  %512 = vmatprep.mubr.f32.mxu1 %v2563_v4 }
 0x16a   :  { %v183_v29 = vpop.f32.mrb[0].mxu0  ;;  %v254_v30 = vpop.f32.mrb[0].mxu1 }
 0x16b   :  { %v184_v31 = vadd.f32 %v183_v29, %v98_v28  ;;  %v255_v32 = vadd.f32 %v254_v30, %v98_v28  ;;  %v185_v33 = vpop.f32.mrb[1].mxu0  ;;  %v256_v34 = vpop.f32.mrb[1].mxu1  ;;  %v321_v29 = vrot.slane %v2796_v0, %v308_v8  ;;  %v691_v30 = vsub.s32 2, %v2686_v11 }
 0x16c   :  { %v186_v36 = vadd.f32 %v185_v33, %v98_v28  ;;  %v257_v37 = vadd.f32 %v256_v34, %v98_v28  ;;  %v309_v28 = vrot.slane %v2791_v63, %v308_v8 }
 0x16d   :  { %v265_v38 = vmul.f32 %v263_v35, %v184_v31  ;;  %v267_v39 = vmul.f32 %v263_v35, %v255_v32  ;;  %v317_v31 = vrot.slane %v2801_v2, %v308_v8 }
 0x16e   :  { %v266_v41 = vmul.f32 %v263_v35, %v186_v36  ;;  %v268_v42 = vmul.f32 %v263_v35, %v257_v37 }
 0x16f   :  { %v275_v43 = vadd.f32 %v273_v40, %v265_v38  ;;  %v277_v46 = vadd.f32 %v273_v40, %v267_v39  ;;  %v696_v39 = vrot.slane %v2784_v60, %v691_v30 }
 0x170   :  { %v276_v44 = vadd.f32 %v273_v40, %v266_v41  ;;  %v278_v48 = vadd.f32 %v273_v40, %v268_v42  ;;  %v326_v40 = vld [vmem:[%s3057_s8] sm:$0xf] }
 0x171   :  { %v2716_v45 = vmax.f32 %v275_v43, 0.0  ;;  %v2722_v49 = vmax.f32 %v277_v46, 0.0 }
 0x172   :  { %v2718_v47 = vmax.f32 %v276_v44, 0.0  ;;  %v2724_v50 = vmax.f32 %v278_v48, 0.0  ;;  %v692_v48 = vrot.slane %v2791_v63, %v691_v30 }
 0x173   :  { %327 = vrot.lane.b32.xlu1 %v2716_v45, %s2565_s0 }
 0x174   :  { %329 = vrot.lane.b32.xlu0 %v2718_v47, %s2565_s0 }
 0x177   :  { %331 = vrot.lane.b32.xlu1 %v2722_v49, %s2565_s0 }
 0x178   :  { %333 = vrot.lane.b32.xlu0 %v2724_v50, %s2565_s0 }
 0x17b   :  { %291 = vrot.lane.b32.xlu1 %v2716_v45, %s2566_s4 }
 0x17c   :  { %293 = vrot.lane.b32.xlu0 %v2718_v47, %s2566_s4 }
 0x17f   :  { %295 = vrot.lane.b32.xlu1 %v2722_v49, %s2566_s4 }
 0x180   :  { %297 = vrot.lane.b32.xlu0 %v2724_v50, %s2566_s4 }
 0x183   :  { %676 = vrot.lane.b32.xlu1 %v2716_v45, %s2567_s29 }
 0x184   :  { %678 = vrot.lane.b32.xlu0 %v2718_v47, %s2567_s29 }
 0x187   :  { %680 = vrot.lane.b32.xlu1 %v2722_v49, %s2567_s29 }
 0x188   :  { %682 = vrot.lane.b32.xlu0 %v2724_v50, %s2567_s29 }
 0x18b   :  { %872 = vrot.lane.b32.xlu1 %v2716_v45, %s2568_s30 }
 0x18c   :  { %874 = vrot.lane.b32.xlu0 %v2718_v47, %s2568_s30 }
 0x18f   :  { %876 = vrot.lane.b32.xlu1 %v2722_v49, %s2568_s30 }
 0x190   :  { %878 = vrot.lane.b32.xlu0 %v2724_v50, %s2568_s30 }
 0x193   :  { %1231 = vrot.lane.b32.xlu1 %v2716_v45, %s2569_s2 }
 0x194   :  { %1233 = vrot.lane.b32.xlu0 %v2718_v47, %s2569_s2 }
 0x197   :  { %1235 = vrot.lane.b32.xlu1 %v2722_v49, %s2569_s2 }
 0x198   :  { %1237 = vrot.lane.b32.xlu0 %v2724_v50, %s2569_s2 }
 0x19b   :  { %1427 = vrot.lane.b32.xlu1 %v2716_v45, %s2570_s19 }
 0x19c   :  { %1429 = vrot.lane.b32.xlu0 %v2718_v47, %s2570_s19 }
 0x19f   :  { %1431 = vrot.lane.b32.xlu1 %v2722_v49, %s2570_s19 }
 0x1a0   :  { %1433 = vrot.lane.b32.xlu0 %v2724_v50, %s2570_s19 }
 0x1a3   :  { %1623 = vrot.lane.b32.xlu1 %v2716_v45, %s2571_s3 }
 0x1a4   :  { %1625 = vrot.lane.b32.xlu0 %v2718_v47, %s2571_s3 }
 0x1a7   :  { %1627 = vrot.lane.b32.xlu1 %v2722_v49, %s2571_s3 }
 0x1a8   :  { %1629 = vrot.lane.b32.xlu0 %v2724_v50, %s2571_s3 }
 0x1ab   :  { %1819 = vrot.lane.b32.xlu1 %v2716_v45, %s2572_s20 }
 0x1ac   :  { %1821 = vrot.lane.b32.xlu0 %v2718_v47, %s2572_s20 }
 0x1af   :  { %1823 = vrot.lane.b32.xlu1 %v2722_v49, %s2572_s20 }
 0x1b0   :  { %1825 = vrot.lane.b32.xlu0 %v2724_v50, %s2572_s20 }
 0x1b3   :  { %2018 = vperm.xlu1 %2561, %v2015_v51   ;;  %v704_v51 = vrot.slane %v2796_v0, %v691_v30 }
 0x1b4   :  { %2028 = vperm.xlu0 %2560, %v2025_v52   ;;  %v887_v52 = vsub.s32 3, %v2686_v11 }
 0x1b7   :  { %2038 = vperm.xlu1 %2561, %v2035_v53   ;;  %v700_v53 = vrot.slane %v2801_v2, %v691_v30 }
 0x1b8   :  { %2216 = vperm.xlu0 %2560, %v2213_v54  }
 0x1bb   :  { %2231 = vperm.xlu1 %2561, %v2228_v55  }
 0x1bc   :  { %2053 = vperm.xlu0 %2560, %v2050_v56  }
 0x1bf   :  { %2249 = vperm.xlu1 %2561, %v2246_v57  }
 0x1e5   :  { %v328_v62 = vpop.permute.xlu1 %327 }
 0x1e6   :  { %v330_v1 = vpop.permute.xlu0 %329 }
 0x1e7   :  { %v338_v3 = vsel %vm335_vm2, %v328_v62, %v330_v1 }
 0x1e8   :  { %v357_v5 = vmul.f32 %v347_v61, %v338_v3  ;;  %v2440_v3 = vld [vmem:[%s3057_s8 + $0x8] sm:$0xf] }
 0x1e9   :  { %v332_v10 = vpop.permute.xlu1 %331 }
 0x1ea   :  { %v337_v13 = vsel %vm335_vm2, %v330_v1, %v332_v10  ;;  %v334_v14 = vpop.permute.xlu0 %333  ;;  %2428 = vmatprep.subr.msk.mxu0 %vm108_vm0, %v357_v5  ;;  %v892_v1 = vrot.slane %v2784_v60, %v887_v52 }
 0x1eb   :  { %v336_v17 = vsel %vm335_vm2, %v332_v10, %v334_v14  ;;  %v339_v18 = vsel %vm335_vm2, %v334_v14, %v328_v62  ;;  %v358_v23 = vmul.f32 %v351_v9, %v337_v13  ;;  %v888_v10 = vrot.slane %v2791_v63, %v887_v52 }
 0x1ec   :  { %v356_v19 = vmul.f32 %v343_v6, %v339_v18  ;;  %v359_v20 = vmul.f32 %v355_v7, %v336_v17  ;;  %v900_v13 = vrot.slane %v2796_v0, %v887_v52  ;;  %v896_v14 = vrot.slane %v2801_v2, %v887_v52 }
 0x1ed   :  { %v292_v24 = vpop.permute.xlu1 %291 }
 0x1ee   :  { %v294_v25 = vpop.permute.xlu0 %293  ;;  %2429 = vmatpush1.msk.msra.mxu0 %vm108_vm0, %v356_v19  ;;  %2431 = vmatprep.subr.msk.mxu1 %vm108_vm0, %v359_v20 }
 0x1ef   :  { %v304_v26 = vsel %vm301_vm3, %v292_v24, %v294_v25  ;;  %2430 = vmatmul.mubr.msk.f32.vlgmr.msra.gmra.mrb[2].mxu0 %vm104_vm1, %v2427_v22  ;;  %2432 = vmatpush1.msk.msra.mxu1 %vm108_vm0, %v358_v23 }
 0x1f0   :  { %v323_v27 = vmul.f32 %v313_v21, %v304_v26  ;;  %2433 = vmatmul.mubr.msk.f32.vlgmr.msra.gmra.mrb[2].mxu1 %vm104_vm1, %v2427_v22  ;;  %598 = vmatprep.mubr.f32.mxu0 %v2563_v4 }
 0x1f1   :  { %v296_v32 = vpop.permute.xlu1 %295  ;;  %669 = vmatprep.mubr.f32.mxu1 %v2563_v4 }
 0x1f2   :  { %v303_v33 = vsel %vm301_vm3, %v294_v25, %v296_v32  ;;  %v298_v34 = vpop.permute.xlu0 %297  ;;  %2434 = vmatprep.subr.msk.mxu0 %vm108_vm0, %v323_v27  ;;  %v1246_v27 = vsub.s32 5, %v2686_v11 }
 0x1f3   :  { %v302_v35 = vsel %vm301_vm3, %v296_v32, %v298_v34  ;;  %v305_v36 = vsel %vm301_vm3, %v298_v34, %v292_v24  ;;  %v324_v41 = vmul.f32 %v317_v31, %v303_v33  ;;  %v2447_v24 = vld [vmem:[%s3057_s8 + $0xc] sm:$0xf] }
 0x1f4   :  { %v322_v37 = vmul.f32 %v309_v28, %v305_v36  ;;  %v325_v38 = vmul.f32 %v321_v29, %v302_v35  ;;  %v1251_v29 = vrot.slane %v2784_v60, %v1246_v27  ;;  %v1259_v30 = vrot.slane %v2796_v0, %v1246_v27 }
 0x1f5   :  { %v677_v42 = vpop.permute.xlu1 %676  ;;  %v1247_v32 = vrot.slane %v2791_v63, %v1246_v27 }
 0x1f6   :  { %v679_v43 = vpop.permute.xlu0 %678  ;;  %2435 = vmatpush1.msk.msra.mxu0 %vm108_vm0, %v322_v37  ;;  %2437 = vmatprep.subr.msk.mxu1 %vm108_vm0, %v325_v38  ;;  %v2454_v37 = vld [vmem:[%s3057_s8 + $0x10] sm:$0xf] }
 0x1f7   :  { %v687_v44 = vsel %vm684_vm4, %v677_v42, %v679_v43  ;;  %2436 = vmatmul.mubr.msk.f32.vlgmr.msra.gmra.mrb[2].mxu0 %vm104_vm1, %v326_v40  ;;  %2438 = vmatpush1.msk.msra.mxu1 %vm108_vm0, %v324_v41 }
 0x1f8   :  { %v706_v46 = vmul.f32 %v696_v39, %v687_v44  ;;  %2439 = vmatmul.mubr.msk.f32.vlgmr.msra.gmra.mrb[2].mxu1 %vm104_vm1, %v326_v40  ;;  %790 = vmatprep.mubr.f32.mxu0 %v2563_v4  ;;  %v1442_v39 = vsub.s32 6, %v2686_v11 }
 0x1f9   :  { %v681_v54 = vpop.permute.xlu1 %680  ;;  %861 = vmatprep.mubr.f32.mxu1 %v2563_v4 }
 0x1fa   :  { %v686_v55 = vsel %vm684_vm4, %v679_v43, %v681_v54  ;;  %v683_v56 = vpop.permute.xlu0 %682  ;;  %2441 = vmatprep.subr.msk.mxu0 %vm108_vm0, %v706_v46  ;;  %v1447_v43 = vrot.slane %v2784_v60, %v1442_v39  ;;  %v1455_v44 = vrot.slane %v2796_v0, %v1442_v39 }
 0x1fb   :  { %v685_v57 = vsel %vm684_vm4, %v681_v54, %v683_v56  ;;  %v688_v59 = vsel %vm684_vm4, %v683_v56, %v677_v42  ;;  %v707_v5 = vmul.f32 %v700_v53, %v686_v55  ;;  %v1451_v55 = vrot.slane %v2801_v2, %v1442_v39 }
 0x1fc   :  { %v705_v61 = vmul.f32 %v692_v48, %v688_v59  ;;  %v708_v62 = vmul.f32 %v704_v51, %v685_v57  ;;  %v1443_v48 = vrot.slane %v2791_v63, %v1442_v39 }
 0x1fd   :  { %v873_v6 = vpop.permute.xlu1 %872 }
 0x1fe   :  { %v875_v7 = vpop.permute.xlu0 %874  ;;  %2442 = vmatpush1.msk.msra.mxu0 %vm108_vm0, %v705_v61  ;;  %2444 = vmatprep.subr.msk.mxu1 %vm108_vm0, %v708_v62  ;;  %v2461_v61 = vld [vmem:[%s3057_s8 + $0x14] sm:$0xf] }
 0x1ff   :  { %v883_v8 = vsel %vm880_vm5, %v873_v6, %v875_v7  ;;  %2443 = vmatmul.mubr.msk.f32.vlgmr.msra.gmra.mrb[2].mxu0 %vm104_vm1, %v2440_v3  ;;  %2445 = vmatpush1.msk.msra.mxu1 %vm108_vm0, %v707_v5 }
 0x200   :  { %v902_v9 = vmul.f32 %v892_v1, %v883_v8  ;;  %2446 = vmatmul.mubr.msk.f32.vlgmr.msra.gmra.mrb[2].mxu1 %vm104_vm1, %v2440_v3  ;;  %986 = vmatprep.mubr.f32.mxu0 %v2563_v4  ;;  %v1638_v1 = vsub.s32 7, %v2686_v11 }
 0x201   :  { %v877_v17 = vpop.permute.xlu1 %876  ;;  %1057 = vmatprep.mubr.f32.mxu1 %v2563_v4 }
 0x202   :  { %v882_v18 = vsel %vm880_vm5, %v875_v7, %v877_v17  ;;  %v879_v19 = vpop.permute.xlu0 %878  ;;  %2448 = vmatprep.subr.msk.mxu0 %vm108_vm0, %v902_v9  ;;  %v1643_v7 = vrot.slane %v2784_v60, %v1638_v1  ;;  %v1651_v8 = vrot.slane %v2796_v0, %v1638_v1  ;;  %v1639_v9 = vrot.slane %v2791_v63, %v1638_v1  ;;  %v2468_v0 = vld [vmem:[%s3057_s8 + $0x18] sm:$0xf] }
 0x203   :  { %v881_v20 = vsel %vm880_vm5, %v877_v17, %v879_v19  ;;  %v884_v21 = vsel %vm880_vm5, %v879_v19, %v873_v6  ;;  %v903_v25 = vmul.f32 %v896_v14, %v882_v18  ;;  %v1647_v17 = vrot.slane %v2801_v2, %v1638_v1 }
 0x204   :  { %v901_v22 = vmul.f32 %v888_v10, %v884_v21  ;;  %v904_v23 = vmul.f32 %v900_v13, %v881_v20 }
 0x205   :  { %v1232_v26 = vpop.permute.xlu1 %1231 }
 0x206   :  { %v1234_v28 = vpop.permute.xlu0 %1233  ;;  %2449 = vmatpush1.msk.msra.mxu0 %vm108_vm0, %v901_v22  ;;  %2451 = vmatprep.subr.msk.mxu1 %vm108_vm0, %v904_v23 }
 0x207   :  { %2450 = vmatmul.mubr.msk.f32.vlgmr.msra.gmra.mrb[2].mxu0 %vm104_vm1, %v2447_v24  ;;  %2452 = vmatpush1.msk.msra.mxu1 %vm108_vm0, %v903_v25  ;;  %v1242_v34 = vsel %vm1239_vm6, %v1232_v26, %v1234_v28  ;;  %v2485_v25 = vld [vmem:[%s3056_s1 + $0x38] ss:$0 sm:$0xff] }
 0x208   :  { %2455 = vmatprep.subr.msk.mxu0 %vm108_vm0, %v2718_v47  ;;  %2453 = vmatmul.mubr.msk.f32.vlgmr.msra.gmra.mrb[2].mxu1 %vm104_vm1, %v2447_v24  ;;  %v1260_v40 = vmul.f32 %v1247_v32, %v1242_v34  ;;  %v2484_v32 = vld [vmem:[%s3056_s1 + $0x30] ss:$0 sm:$0xff]  ;;  %v2475_v34 = vld [vmem:[%s3057_s8 + $0x1c] sm:$0xf] }
 0x209   :  { %2456 = vmatpush1.msk.msra.mxu0 %vm108_vm0, %v2716_v45  ;;  %2458 = vmatprep.subr.msk.mxu1 %vm108_vm0, %v2724_v50  ;;  %v1236_v31 = vpop.permute.xlu1 %1235  ;;  %v1255_v45 = vrot.slane %v2801_v2, %v1246_v27  ;;  %v2483_v2 = vld [vmem:[%s3056_s1 + $0x28] ss:$0 sm:$0xff] }
 0x20a   :  { %2459 = vmatpush1.msk.msra.mxu1 %vm108_vm0, %v2722_v49  ;;  %v1241_v33 = vsel %vm1239_vm6, %v1234_v28, %v1236_v31  ;;  %v1238_v47 = vpop.permute.xlu0 %1237  ;;  %1149 = vmatprep.mubr.f32.mxu0 %v2563_v4  ;;  %v2482_v28 = vld [vmem:[%s3056_s1 + $0x20] ss:$0 sm:$0xff] }
 0x20b   :  { %v1261_v35 = vmul.f32 %v1251_v29, %v1241_v33  ;;  %v1243_v50 = vsel %vm1239_vm6, %v1238_v47, %v1232_v26  ;;  %1220 = vmatprep.mubr.f32.mxu1 %v2563_v4  ;;  %v1240_v49 = vsel %vm1239_vm6, %v1236_v31, %v1238_v47 }
 0x20c   :  { %v1263_v36 = vmul.f32 %v1259_v30, %v1243_v50  ;;  %v1262_v42 = vmul.f32 %v1255_v45, %v1240_v49 }
 0x20d   :  { %2462 = vmatprep.subr.msk.mxu0 %vm108_vm0, %v1261_v35  ;;  %v1428_v38 = vpop.permute.xlu1 %1427 }
 0x20e   :  { %v1430_v41 = vpop.permute.xlu0 %1429  ;;  %2465 = vmatprep.subr.msk.mxu1 %vm108_vm0, %v1263_v36 }
 0x20f   :  { %2457 = vmatmul.mubr.msk.f32.vlgmr.msra.gmra.mrb[2].mxu0 %vm104_vm1, %v2454_v37  ;;  %v1438_v53 = vsel %vm1435_vm7, %v1428_v38, %v1430_v41 }
 0x210   :  { %2463 = vmatpush1.msk.msra.mxu0 %vm108_vm0, %v1260_v40  ;;  %2460 = vmatmul.mubr.msk.f32.vlgmr.msra.gmra.mrb[2].mxu1 %vm104_vm1, %v2454_v37  ;;  %v1456_v3 = vmul.f32 %v1443_v48, %v1438_v53 }
 0x211   :  { %2466 = vmatpush1.msk.msra.mxu1 %vm108_vm0, %v1262_v42  ;;  %v1432_v46 = vpop.permute.xlu1 %1431  ;;  %1345 = vmatprep.mubr.f32.mxu0 %v2563_v4 }
 0x212   :  { %v1437_v51 = vsel %vm1435_vm7, %v1430_v41, %v1432_v46  ;;  %v1434_v52 = vpop.permute.xlu0 %1433  ;;  %1416 = vmatprep.mubr.f32.mxu1 %v2563_v4 }
 0x213   :  { %v1457_v54 = vmul.f32 %v1447_v43, %v1437_v51  ;;  %v1439_v56 = vsel %vm1435_vm7, %v1434_v52, %v1428_v38  ;;  %v1436_v57 = vsel %vm1435_vm7, %v1432_v46, %v1434_v52 }
 0x214   :  { %v1459_v59 = vmul.f32 %v1455_v44, %v1439_v56  ;;  %v1458_v6 = vmul.f32 %v1451_v55, %v1436_v57 }
 0x215   :  { %2469 = vmatprep.subr.msk.mxu0 %vm108_vm0, %v1457_v54  ;;  %v1624_v62 = vpop.permute.xlu1 %1623 }
 0x216   :  { %v1626_v5 = vpop.permute.xlu0 %1625  ;;  %2472 = vmatprep.subr.msk.mxu1 %vm108_vm0, %v1459_v59 }
 0x217   :  { %2464 = vmatmul.mubr.msk.f32.vlgmr.msra.gmra.mrb[2].mxu0 %vm104_vm1, %v2461_v61  ;;  %v1634_v60 = vsel %vm1631_vm8, %v1624_v62, %v1626_v5 }
 0x218   :  { %2470 = vmatpush1.msk.msra.mxu0 %vm108_vm0, %v1456_v3  ;;  %2467 = vmatmul.mubr.msk.f32.vlgmr.msra.gmra.mrb[2].mxu1 %vm104_vm1, %v2461_v61  ;;  %v1652_v22 = vmul.f32 %v1639_v9, %v1634_v60  ;;  %v2245_v60 = vld [vmem:[%s3059_s16] sm:$0xff] }
 0x219   :  { %2473 = vmatpush1.msk.msra.mxu1 %vm108_vm0, %v1458_v6  ;;  %v1628_v11 = vpop.permute.xlu1 %1627  ;;  %1541 = vmatprep.mubr.f32.mxu0 %v2563_v4 }
 0x21a   :  { %v1633_v10 = vsel %vm1631_vm8, %v1626_v5, %v1628_v11  ;;  %v1630_v13 = vpop.permute.xlu0 %1629  ;;  %1612 = vmatprep.mubr.f32.mxu1 %v2563_v4 }
 0x21b   :  { %v1653_v14 = vmul.f32 %v1643_v7, %v1633_v10  ;;  %v1635_v18 = vsel %vm1631_vm8, %v1630_v13, %v1624_v62  ;;  %v1632_v19 = vsel %vm1631_vm8, %v1628_v11, %v1630_v13  ;;  %v2049_v11 = vld [vmem:[%s3058_s12] sm:$0xff] }
 0x21c   :  { %v1655_v20 = vmul.f32 %v1651_v8, %v1635_v18  ;;  %v1654_v23 = vmul.f32 %v1647_v17, %v1632_v19 }
 0x21d   :  { %2476 = vmatprep.subr.msk.mxu0 %vm108_vm0, %v1653_v14  ;;  %v1820_v21 = vpop.permute.xlu1 %1819 }
 0x21e   :  { %v1822_v63 = vpop.permute.xlu0 %1821  ;;  %2479 = vmatprep.subr.msk.mxu1 %vm108_vm0, %v1655_v20 }
 0x21f   :  { %2471 = vmatmul.mubr.msk.f32.vlgmr.msra.gmra.mrb[2].mxu0 %vm104_vm1, %v2468_v0  ;;  %v1830_v29 = vsel %vm1827_vm9, %v1820_v21, %v1822_v63 }
 0x220   :  { %2477 = vmatpush1.msk.msra.mxu0 %vm108_vm0, %v1652_v22  ;;  %2474 = vmatmul.mubr.msk.f32.vlgmr.msra.gmra.mrb[2].mxu1 %vm104_vm1, %v2468_v0  ;;  %v1848_v35 = vmul.f32 %v2482_v28, %v1830_v29 }
 0x221   :  { %2480 = vmatpush1.msk.msra.mxu1 %vm108_vm0, %v1654_v23  ;;  %v1824_v24 = vpop.permute.xlu1 %1823  ;;  %1737 = vmatprep.mubr.f32.mxu0 %v2563_v4 }
 0x222   :  { %v1829_v26 = vsel %vm1827_vm9, %v1822_v63, %v1824_v24  ;;  %v1826_v27 = vpop.permute.xlu0 %1825  ;;  %1808 = vmatprep.mubr.f32.mxu1 %v2563_v4 }
 0x223   :  { %v1849_v30 = vmul.f32 %v2483_v2, %v1829_v26  ;;  %v1831_v31 = vsel %vm1827_vm9, %v1826_v27, %v1820_v21  ;;  %v1828_v33 = vsel %vm1827_vm9, %v1824_v24, %v1826_v27 }
 0x224   :  { %v1851_v47 = vmul.f32 %v2485_v25, %v1831_v31  ;;  %v1850_v45 = vmul.f32 %v2484_v32, %v1828_v33 }
 0x225   :  { %2487 = vmatprep.subr.msk.mxu0 %vm108_vm0, %v1849_v30 }
 0x226   :  { %2490 = vmatprep.subr.msk.mxu1 %vm108_vm0, %v1851_v47 }
 0x227   :  { %2478 = vmatmul.mubr.msk.f32.vlgmr.msra.gmra.mrb[2].mxu0 %vm104_vm1, %v2475_v34 }
 0x228   :  { %2488 = vmatpush1.msk.msra.mxu0 %vm108_vm0, %v1848_v35  ;;  %2481 = vmatmul.mubr.msk.f32.vlgmr.msra.gmra.mrb[2].mxu1 %vm104_vm1, %v2475_v34 }
 0x229   :  { %2491 = vmatpush1.msk.msra.mxu1 %vm108_vm0, %v1850_v45  ;;  %1933 = vmatprep.mubr.f32.mxu0 %v2563_v4 }
 0x22a   :  { %2004 = vmatprep.mubr.f32.mxu1 %v2563_v4 }
 0x22f   :  { %2489 = vmatmul.mubr.msk.f32.vlgmr.msra.gmra.mrb[2].mxu0 %vm104_vm1, %v2486_v58 }
 0x230   :  { %2492 = vmatmul.mubr.msk.f32.vlgmr.msra.gmra.mrb[2].mxu1 %vm104_vm1, %v2486_v58  ;;  %2135 = vmatprep.mubr.f32.mxu0 %v2563_v4 }
 0x231   :  { %2206 = vmatprep.mubr.f32.mxu1 %v2563_v4 }
 0x232   :  { %v2019_v50 = vpop.permute.xlu1 %2018 }
 0x233   :  { %v2029_v49 = vpop.permute.xlu0 %2028 }
 0x236   :  { %v2039_v36 = vpop.permute.xlu1 %2038 }
 0x237   :  { %v2217_v37 = vpop.permute.xlu0 %2216 }
 0x238   :  { %v2224_v38 = vrot.slane %v2217_v37, %v2689_v12 }
 0x23a   :  { %v2232_v39 = vpop.permute.xlu1 %2231  ;;  %v2226_v40 = vmul.f32 %v2224_v38, %v2695_v15  ;;  %v2227_v42 = vmul.f32 %v2224_v38, %v2700_v16 }
 0x23b   :  { %v2239_v41 = vrot.slane %v2232_v39, %v2689_v12  ;;  %v2054_v17 = vpop.permute.xlu0 %2053 }
 0x23d   :  { %v2241_v54 = vadd.f32 %v2239_v41, %v2226_v40  ;;  %v2242_v57 = vadd.f32 %v2239_v41, %v2227_v42 }
 0x23e   :  { %v2250_v14 = vpop.permute.xlu1 %2249 }
 0x23f   :  { %v2243_v12 = vmax.f32 %v2241_v54, 0.0  ;;  %v2244_v16 = vmax.f32 %v2242_v57, 0.0  ;;  %v2505_v18 = vadd.f32 %v2250_v14, %v2054_v17 }
 0x241   :  { %v2254_v10 = vcombine.high %v2243_v12, %v2243_v12  ;;  %v2255_v13 = vcombine.high %v2244_v16, %v2244_v16 }
 0x302   :  { %v1935_v43 = vpop.f32.mrb[2].mxu0 }
 0x303   :  { %v2021_v44 = vadd.f32 %v2019_v50, %v1935_v43  ;;  %v1937_v46 = vpop.f32.mrb[3].mxu0  ;;  %v2006_v48 = vpop.f32.mrb[2].mxu1 }
 0x304   :  { %v2022_v51 = vadd.f32 %v2019_v50, %v1937_v46  ;;  %v2023_v52 = vadd.f32 %v2019_v50, %v2006_v48  ;;  %v2008_v53 = vpop.f32.mrb[3].mxu1 }
 0x305   :  { %v2031_v55 = vmul.f32 %v2029_v49, %v2021_v44  ;;  %v2024_v56 = vadd.f32 %v2019_v50, %v2008_v53 }
 0x306   :  { %v2032_v59 = vmul.f32 %v2029_v49, %v2022_v51  ;;  %v2033_v61 = vmul.f32 %v2029_v49, %v2023_v52 }
 0x307   :  { %v2041_v62 = vadd.f32 %v2039_v36, %v2031_v55  ;;  %v2034_v1 = vmul.f32 %v2029_v49, %v2024_v56 }
 0x308   :  { %v2042_v15 = vadd.f32 %v2039_v36, %v2032_v59  ;;  %v2043_v3 = vadd.f32 %v2039_v36, %v2033_v61 }
 0x309   :  { %v2044_v5 = vadd.f32 %v2039_v36, %v2034_v1  ;;  %v2045_v7 = vmax.f32 %v2041_v62, 0.0 }
 0x30a   :  { %v2046_v6 = vmax.f32 %v2042_v15, 0.0  ;;  %v2047_v9 = vmax.f32 %v2043_v3, 0.0 }
 0x30b   :  { %v2048_v8 = vmax.f32 %v2044_v5, 0.0 }
 0x30c   :  { %2493 = vmatprep.subr.msk.mxu0 %vm108_vm0, %v2046_v6 }
 0x30d   :  { %2494 = vmatpush1.msk.msra.mxu0 %vm108_vm0, %v2045_v7  ;;  %2496 = vmatprep.subr.msk.mxu1 %vm108_vm0, %v2048_v8 }
 0x30e   :  { %2495 = vmatmul.mubr.msk.f32.vlgmr.msra.gmra.mrb[4].mxu0 %vm104_vm1, %v2049_v11  ;;  %2497 = vmatpush1.msk.msra.mxu1 %vm108_vm0, %v2047_v9 }
 0x30f   :  { %2499 = vmatprep.subr.msk.mxu0 %vm108_vm0, %v2254_v10  ;;  %2498 = vmatmul.mubr.msk.f32.vlgmr.msra.gmra.mrb[4].mxu1 %vm104_vm1, %v2049_v11 }
 0x310   :  { %2500 = vmatpush1.msk.msra.mxu0 %vm108_vm0, %v2243_v12  ;;  %2502 = vmatprep.subr.msk.mxu1 %vm108_vm0, %v2255_v13 }
 0x311   :  { %2503 = vmatpush1.msk.msra.mxu1 %vm108_vm0, %v2244_v16  ;;  %2331 = vmatprep.mubr.f32.mxu0 %v2563_v4 }
 0x312   :  { %2402 = vmatprep.mubr.f32.mxu1 %v2563_v4 }
 0x316   :  { %2501 = vmatmul.mubr.msk.f32.vlgmr.msra.gmra.mrb[4].mxu0 %vm104_vm1, %v2245_v60 }
 0x317   :  { %2504 = vmatmul.mubr.msk.f32.vlgmr.msra.gmra.mrb[4].mxu1 %vm104_vm1, %v2245_v60 }
 0x3e9   :  { %v2333_v19 = vpop.f32.mrb[4].mxu0 }
 0x3ea   :  { %v2506_v20 = vadd.f32 %v2505_v18, %v2333_v19  ;;  %v2335_v0 = vpop.f32.mrb[5].mxu0  ;;  %v2404_v21 = vpop.f32.mrb[4].mxu1 }
 0x3eb   :  { %v2508_v22 = vadd.f32 %v2505_v18, %v2335_v0  ;;  %v2510_v63 = vadd.f32 %v2505_v18, %v2404_v21  ;;  %v2406_v23 = vpop.f32.mrb[5].mxu1 }
 0x3ec   :  { %2413 = vst [vmem:[%s3060_s18] sm:$0xff] %v2506_v20  ;;  %v2512_v4 = vadd.f32 %v2505_v18, %v2406_v23 }
 0x3ed   :  { %2414 = vst [vmem:[%s3060_s18 + $0x8] sm:$0xff] %v2508_v22  ;;  %2415 = vst [vmem:[%s3060_s18 + $0x10] sm:$0xff] %v2510_v63 }
 0x3ee   :  { %2416 = vst [vmem:[%s3060_s18 + $0x18] sm:$0xff] %v2512_v4 }

// kernel: run.17
= control target key start
LH: loop header
LB: loop body
LE: loop exit
PB: predicated region body
PF: predicated region fallthrough
CT: control target
= control target key end

     0   :  { %v2352_v0 = vmov 0   ;;  %v2353_v4 = vmov 0.0   ;;  %v2354_v7 = vmov 839922192   ;;  %v57_v9 = vlaneseq  ;;  %s2357_s24 = smov 15   ;;  %s2358_s25 = smov 1   ;;  %s2778_s2 = inlined_call_operand.vmem [shape: f32[4,1], index: 2, kind: input, shape index: {}]   ;;  %s2779_s3 = inlined_call_operand.vmem [shape: f32[4,1], index: 3, kind: input, shape index: {}]   ;;  %s2780_s7 = inlined_call_operand.vmem [shape: f32[2,1], index: 7, kind: input, shape index: {}]   ;;  %s2781_s5 = inlined_call_operand.vmem [shape: f32[2,1], index: 5, kind: input, shape index: {}]   ;;  %s2782_s6 = inlined_call_operand.vmem [shape: f32[2,1], index: 6, kind: input, shape index: {}]   ;;  %s2783_s0 = inlined_call_operand.vmem [shape: f32[4,512], index: 0, kind: input, shape index: {}]   ;;  %s2784_s4 = inlined_call_operand.vmem [shape: f32[2,4], index: 4, kind: input, shape index: {}]   ;;  %s2785_s9 = inlined_call_operand.vmem [shape: f32[2,1], index: 9, kind: input, shape index: {}]   ;;  %s2786_s10 = inlined_call_operand.vmem [shape: f32[2,1], index: 10, kind: input, shape index: {}]   ;;  %s2787_s11 = inlined_call_operand.vmem [shape: f32[2,1], index: 11, kind: input, shape index: {}]   ;;  %s2788_s13 = inlined_call_operand.vmem [shape: f32[4,1], index: 13, kind: input, shape index: {}]   ;;  %s2789_s1 = inlined_call_operand.vmem [shape: f32[9,512], index: 1, kind: input, shape index: {}]   ;;  %s2790_s8 = inlined_call_operand.vmem [shape: f32[9,2,2], index: 8, kind: input, shape index: {}]   ;;  %s2791_s12 = inlined_call_operand.vmem [shape: f32[4,2], index: 12, kind: input, shape index: {}]   ;;  %s2792_s14 = inlined_call_operand.vmem [shape: f32[4,512], index: 14, kind: output, shape index: {}]  }
   0x1   :  { %2348 = vset.pattern.permute.xlu0 %v2352_v0  ;;  %v49_v1 = vld [vmem:[%s2778_s2] sm:$0xf]  ;;  %2349 = vset.pattern.permute.xlu1 %v2352_v0  ;;  %v55_v8 = vunpack.c.l.s4 %v2354_v7  ;;  %v2467_v16 = vld [vmem:[%s2783_s0 + $0x8] sm:$0xff]  ;;  %vm96_vm0 = vcmask 1043456   ;;  %vm92_vm1 = vcmask 31744   ;;  %s2359_s26 = smov 127  }
   0x2   :  { %52 = vperm.xlu0 %2348, %v49_v1   ;;  %v64_v2 = vld [vmem:[%s2779_s3] sm:$0xf]  ;;  %169 = vmatprep.mubr.f32.mxu0 %v2353_v4  ;;  %v2456_v11 = vshrl.u32 %v57_v9, 7  ;;  %s2360_s27 = smov 113   ;;  %s2361_s28 = smov 112   ;;  %v2529_v55 = vand.u32 127, %v57_v9 }
   0x3   :  { %v257_v3 = vld [vmem:[%s2780_s7] sm:$0x3]  ;;  %240 = vmatprep.mubr.f32.mxu1 %v2353_v4  ;;  %v56_v10 = vunpack.c.0.s8 %v55_v8  ;;  %s2362_s29 = smov 111   ;;  %v2535_v57 = vld [vmem:[%s2789_s1 + $0x8] sm:$0xff]  ;;  %v2547_v61 = vld [vmem:[%s2789_s1 + $0x18] sm:$0xff]  ;;  %vm354_vm3 = vcmask 1041408  }
   0x4   :  { %v82_v5 = vld [vmem:[%s2781_s5] sm:$0x3]  ;;  %v330_v56 = vsub.s32 1, %v2456_v11  ;;  %vm323_vm2 = vcmp.lt.s32.totalorder %v2529_v55, 16  ;;  %v2552_v63 = vld [vmem:[%s2789_s1 + $0x10] sm:$0xff]  ;;  %vm289_vm4 = vcmp.lt.s32.totalorder %v2529_v55, 17 }
   0x5   :  { %85 = vperm.xlu1 %2349, %v82_v5   ;;  %v247_v6 = vld [vmem:[%s2782_s6] sm:$0x3]  ;;  %v59_v12 = vsub.s32 %v56_v10, %v2456_v11  ;;  %v296_v5 = vsub.s32 0, %v2456_v11  ;;  %vm350_vm5 = vcmask 15360   ;;  %vm674_vm6 = vcmp.lt.s32.totalorder %v2529_v55, 15 }
   0x6   :  { %67 = vperm.xlu0 %2348, %v64_v2   ;;  %v2462_v15 = vld [vmem:[%s2783_s0] sm:$0xff]  ;;  %s2355_s0 = smov 16   ;;  %v335_v58 = vrot.slane %v2535_v57, %v330_v56  ;;  %vm870_vm7 = vcmp.lt.s32.totalorder %v2529_v55, 1  ;;  %vm1229_vm8 = vcmp.lt.s32.totalorder %v2529_v55, 127  ;;  %vm1425_vm9 = vcmp.lt.s32.totalorder %v2529_v55, 113 }
   0x7   :  { %v81_v27 = vld [vmem:[%s2784_s4] sm:$0x3]  ;;  %s2356_s4 = smov 17   ;;  %vm1621_vm10 = vcmp.lt.s32.totalorder %v2529_v55, 112  ;;  %vm1817_vm11 = vcmp.lt.s32.totalorder %v2529_v55, 111 }
   0x8   :  { %v2005_v51 = vld [vmem:[%s2785_s9] sm:$0x3]  ;;  %v2292_v55 = vld [vmem:[%s2790_s8 + $0x10] sm:$0x3] }
   0x9   :  { %250 = vperm.xlu1 %2349, %v247_v6   ;;  %v2015_v52 = vld [vmem:[%s2786_s10] sm:$0x3]  ;;  %v339_v6 = vrot.slane %v2552_v63, %v330_v56 }
   0xa   :  { %260 = vperm.xlu0 %2348, %v257_v3   ;;  %v2025_v53 = vld [vmem:[%s2787_s11] sm:$0x3]  ;;  %v343_v3 = vrot.slane %v2547_v61, %v330_v56 }
   0xb   :  { %v2040_v54 = vld [vmem:[%s2788_s13] sm:$0xf] }
   0xc   :  { %v2542_v60 = vld [vmem:[%s2789_s1] sm:$0xff] }
   0xd   :  { %v331_v2 = vrot.slane %v2542_v60, %v330_v56 }
  0x81   :  { %v53_v13 = vpop.permute.xlu0 %52 }
  0x82   :  { %v60_v14 = vrot.slane %v53_v13, %v59_v12 }
  0x84   :  { %v62_v18 = vmul.f32 %v60_v14, %v2462_v15  ;;  %v63_v19 = vmul.f32 %v60_v14, %v2467_v16  ;;  %v86_v28 = vpop.permute.xlu1 %85 }
  0x85   :  { %v68_v17 = vpop.permute.xlu0 %67 }
  0x86   :  { %v75_v20 = vrot.slane %v68_v17, %v59_v12  ;;  %v301_v17 = vrot.slane %v2535_v57, %v296_v5 }
  0x88   :  { %v77_v21 = vadd.f32 %v75_v20, %v62_v18  ;;  %v78_v22 = vadd.f32 %v75_v20, %v63_v19  ;;  %v251_v35 = vpop.permute.xlu1 %250  ;;  %v2233_v18 = vld [vmem:[%s2790_s8 + $0x2] sm:$0x3] }
  0x89   :  { %v261_v40 = vpop.permute.xlu0 %260 }
  0x8a   :  { %v79_v23 = vmax.f32 %v77_v21, 0.0  ;;  %v80_v24 = vmax.f32 %v78_v22, 0.0 }
  0x8c   :  { %v90_v25 = vcombine.high %v79_v23, %v79_v23  ;;  %v91_v26 = vcombine.high %v80_v24, %v80_v24 }
  0x8e   :  { %2227 = vmatprep.subr.msk.mxu0 %vm96_vm0, %v90_v25  ;;  %2230 = vmatprep.subr.msk.mxu1 %vm96_vm0, %v91_v26  ;;  %v309_v25 = vrot.slane %v2547_v61, %v296_v5  ;;  %v681_v26 = vsub.s32 2, %v2456_v11 }
  0x8f   :  { %2228 = vmatpush1.msk.msra.mxu0 %vm96_vm0, %v79_v23  ;;  %2231 = vmatpush1.msk.msra.mxu1 %vm96_vm0, %v80_v24  ;;  %v297_v24 = vrot.slane %v2542_v60, %v296_v5 }
  0x90   :  { %2229 = vmatmul.mubr.msk.f32.vlgmr.msra.gmra.mrb[0].mxu0 %vm92_vm1, %v81_v27  ;;  %2232 = vmatmul.mubr.msk.f32.vlgmr.msra.gmra.mrb[0].mxu1 %vm92_vm1, %v81_v27  ;;  %v305_v27 = vrot.slane %v2552_v63, %v296_v5 }
  0x91   :  { %431 = vmatprep.mubr.f32.mxu0 %v2353_v4  ;;  %502 = vmatprep.mubr.f32.mxu1 %v2353_v4 }
 0x163   :  { %v171_v29 = vpop.f32.mrb[0].mxu0  ;;  %v242_v30 = vpop.f32.mrb[0].mxu1 }
 0x164   :  { %v172_v31 = vadd.f32 %v171_v29, %v86_v28  ;;  %v243_v32 = vadd.f32 %v242_v30, %v86_v28  ;;  %v173_v33 = vpop.f32.mrb[1].mxu0  ;;  %v244_v34 = vpop.f32.mrb[1].mxu1 }
 0x165   :  { %v174_v36 = vadd.f32 %v173_v33, %v86_v28  ;;  %v245_v37 = vadd.f32 %v244_v34, %v86_v28 }
 0x166   :  { %v253_v38 = vmul.f32 %v251_v35, %v172_v31  ;;  %v255_v39 = vmul.f32 %v251_v35, %v243_v32 }
 0x167   :  { %v254_v41 = vmul.f32 %v251_v35, %v174_v36  ;;  %v256_v42 = vmul.f32 %v251_v35, %v245_v37  ;;  %v686_v35 = vrot.slane %v2535_v57, %v681_v26  ;;  %v314_v36 = vld [vmem:[%s2790_s8] sm:$0x3] }
 0x168   :  { %v263_v43 = vadd.f32 %v261_v40, %v253_v38  ;;  %v265_v46 = vadd.f32 %v261_v40, %v255_v39 }
 0x169   :  { %v264_v44 = vadd.f32 %v261_v40, %v254_v41  ;;  %v266_v48 = vadd.f32 %v261_v40, %v256_v42  ;;  %v682_v42 = vrot.slane %v2542_v60, %v681_v26 }
 0x16a   :  { %v2476_v45 = vmax.f32 %v263_v43, 0.0  ;;  %v2482_v49 = vmax.f32 %v265_v46, 0.0  ;;  %v694_v43 = vrot.slane %v2547_v61, %v681_v26  ;;  %v690_v46 = vrot.slane %v2552_v63, %v681_v26 }
 0x16b   :  { %v2478_v47 = vmax.f32 %v264_v44, 0.0  ;;  %v2484_v50 = vmax.f32 %v266_v48, 0.0  ;;  %v877_v44 = vsub.s32 3, %v2456_v11 }
 0x16c   :  { %315 = vrot.lane.b32.xlu1 %v2476_v45, %s2355_s0 }
 0x16d   :  { %317 = vrot.lane.b32.xlu0 %v2478_v47, %s2355_s0 }
 0x170   :  { %319 = vrot.lane.b32.xlu1 %v2482_v49, %s2355_s0 }
 0x171   :  { %321 = vrot.lane.b32.xlu0 %v2484_v50, %s2355_s0 }
 0x174   :  { %279 = vrot.lane.b32.xlu1 %v2476_v45, %s2356_s4 }
 0x175   :  { %281 = vrot.lane.b32.xlu0 %v2478_v47, %s2356_s4 }
 0x178   :  { %283 = vrot.lane.b32.xlu1 %v2482_v49, %s2356_s4 }
 0x179   :  { %285 = vrot.lane.b32.xlu0 %v2484_v50, %s2356_s4 }
 0x17c   :  { %666 = vrot.lane.b32.xlu1 %v2476_v45, %s2357_s24 }
 0x17d   :  { %668 = vrot.lane.b32.xlu0 %v2478_v47, %s2357_s24 }
 0x180   :  { %670 = vrot.lane.b32.xlu1 %v2482_v49, %s2357_s24 }
 0x181   :  { %672 = vrot.lane.b32.xlu0 %v2484_v50, %s2357_s24 }
 0x184   :  { %862 = vrot.lane.b32.xlu1 %v2476_v45, %s2358_s25 }
 0x185   :  { %864 = vrot.lane.b32.xlu0 %v2478_v47, %s2358_s25 }
 0x188   :  { %866 = vrot.lane.b32.xlu1 %v2482_v49, %s2358_s25 }
 0x189   :  { %868 = vrot.lane.b32.xlu0 %v2484_v50, %s2358_s25 }
 0x18c   :  { %1221 = vrot.lane.b32.xlu1 %v2476_v45, %s2359_s26 }
 0x18d   :  { %1223 = vrot.lane.b32.xlu0 %v2478_v47, %s2359_s26 }
 0x190   :  { %1225 = vrot.lane.b32.xlu1 %v2482_v49, %s2359_s26 }
 0x191   :  { %1227 = vrot.lane.b32.xlu0 %v2484_v50, %s2359_s26 }
 0x194   :  { %1417 = vrot.lane.b32.xlu1 %v2476_v45, %s2360_s27 }
 0x195   :  { %1419 = vrot.lane.b32.xlu0 %v2478_v47, %s2360_s27 }
 0x198   :  { %1421 = vrot.lane.b32.xlu1 %v2482_v49, %s2360_s27 }
 0x199   :  { %1423 = vrot.lane.b32.xlu0 %v2484_v50, %s2360_s27 }
 0x19c   :  { %1613 = vrot.lane.b32.xlu1 %v2476_v45, %s2361_s28 }
 0x19d   :  { %1615 = vrot.lane.b32.xlu0 %v2478_v47, %s2361_s28 }
 0x1a0   :  { %1617 = vrot.lane.b32.xlu1 %v2482_v49, %s2361_s28 }
 0x1a1   :  { %1619 = vrot.lane.b32.xlu0 %v2484_v50, %s2361_s28 }
 0x1a4   :  { %1809 = vrot.lane.b32.xlu1 %v2476_v45, %s2362_s29 }
 0x1a5   :  { %1811 = vrot.lane.b32.xlu0 %v2478_v47, %s2362_s29 }
 0x1a8   :  { %1813 = vrot.lane.b32.xlu1 %v2482_v49, %s2362_s29 }
 0x1a9   :  { %1815 = vrot.lane.b32.xlu0 %v2484_v50, %s2362_s29 }
 0x1ac   :  { %2008 = vperm.xlu1 %2349, %v2005_v51  }
 0x1ad   :  { %2018 = vperm.xlu0 %2348, %v2015_v52  }
 0x1b0   :  { %2028 = vperm.xlu1 %2349, %v2025_v53  }
 0x1b1   :  { %2043 = vperm.xlu0 %2348, %v2040_v54  }
 0x1de   :  { %v316_v59 = vpop.permute.xlu1 %315 }
 0x1df   :  { %v318_v62 = vpop.permute.xlu0 %317 }
 0x1e0   :  { %v326_v0 = vsel %vm323_vm2, %v316_v59, %v318_v62 }
 0x1e1   :  { %v345_v1 = vmul.f32 %v335_v58, %v326_v0 }
 0x1e2   :  { %v320_v7 = vpop.permute.xlu1 %319 }
 0x1e3   :  { %v325_v8 = vsel %vm323_vm2, %v318_v62, %v320_v7  ;;  %v322_v9 = vpop.permute.xlu0 %321  ;;  %2234 = vmatprep.subr.msk.mxu0 %vm354_vm3, %v345_v1  ;;  %v2246_v62 = vld [vmem:[%s2790_s8 + $0x4] sm:$0x3] }
 0x1e4   :  { %v324_v10 = vsel %vm323_vm2, %v320_v7, %v322_v9  ;;  %v327_v12 = vsel %vm323_vm2, %v322_v9, %v316_v59  ;;  %v346_v19 = vmul.f32 %v339_v6, %v325_v8  ;;  %v882_v59 = vrot.slane %v2535_v57, %v877_v44 }
 0x1e5   :  { %v344_v13 = vmul.f32 %v331_v2, %v327_v12  ;;  %v347_v14 = vmul.f32 %v343_v3, %v324_v10  ;;  %v878_v6 = vrot.slane %v2542_v60, %v877_v44  ;;  %v890_v7 = vrot.slane %v2547_v61, %v877_v44 }
 0x1e6   :  { %v280_v20 = vpop.permute.xlu1 %279  ;;  %v886_v8 = vrot.slane %v2552_v63, %v877_v44 }
 0x1e7   :  { %v282_v21 = vpop.permute.xlu0 %281  ;;  %2235 = vmatpush1.msk.msra.mxu0 %vm354_vm3, %v344_v13  ;;  %2237 = vmatprep.subr.msk.mxu1 %vm354_vm3, %v347_v14 }
 0x1e8   :  { %v292_v22 = vsel %vm289_vm4, %v280_v20, %v282_v21  ;;  %2236 = vmatmul.mubr.msk.f32.vlgmr.msra.gmra.mrb[2].mxu0 %vm350_vm5, %v2233_v18  ;;  %2238 = vmatpush1.msk.msra.mxu1 %vm354_vm3, %v346_v19  ;;  %v2253_v19 = vld [vmem:[%s2790_s8 + $0x6] sm:$0x3] }
 0x1e9   :  { %v311_v23 = vmul.f32 %v301_v17, %v292_v22  ;;  %2239 = vmatmul.mubr.msk.f32.vlgmr.msra.gmra.mrb[2].mxu1 %vm350_vm5, %v2233_v18  ;;  %588 = vmatprep.mubr.f32.mxu0 %v2353_v4  ;;  %v1236_v22 = vsub.s32 5, %v2456_v11 }
 0x1ea   :  { %v284_v28 = vpop.permute.xlu1 %283  ;;  %659 = vmatprep.mubr.f32.mxu1 %v2353_v4 }
 0x1eb   :  { %v291_v29 = vsel %vm289_vm4, %v282_v21, %v284_v28  ;;  %v286_v30 = vpop.permute.xlu0 %285  ;;  %2240 = vmatprep.subr.msk.mxu0 %vm354_vm3, %v311_v23 }
 0x1ec   :  { %v290_v31 = vsel %vm289_vm4, %v284_v28, %v286_v30  ;;  %v293_v32 = vsel %vm289_vm4, %v286_v30, %v280_v20  ;;  %v312_v37 = vmul.f32 %v305_v27, %v291_v29  ;;  %v1237_v27 = vrot.slane %v2542_v60, %v1236_v22 }
 0x1ed   :  { %v310_v33 = vmul.f32 %v297_v24, %v293_v32  ;;  %v313_v34 = vmul.f32 %v309_v25, %v290_v31  ;;  %v1241_v24 = vrot.slane %v2535_v57, %v1236_v22  ;;  %v1249_v25 = vrot.slane %v2547_v61, %v1236_v22  ;;  %v2260_v32 = vld [vmem:[%s2790_s8 + $0x8] sm:$0x3] }
 0x1ee   :  { %v667_v38 = vpop.permute.xlu1 %666 }
 0x1ef   :  { %v669_v39 = vpop.permute.xlu0 %668  ;;  %2241 = vmatpush1.msk.msra.mxu0 %vm354_vm3, %v310_v33  ;;  %2243 = vmatprep.subr.msk.mxu1 %vm354_vm3, %v313_v34  ;;  %v1432_v34 = vsub.s32 6, %v2456_v11 }
 0x1f0   :  { %v677_v40 = vsel %vm674_vm6, %v667_v38, %v669_v39  ;;  %2242 = vmatmul.mubr.msk.f32.vlgmr.msra.gmra.mrb[2].mxu0 %vm350_vm5, %v314_v36  ;;  %2244 = vmatpush1.msk.msra.mxu1 %vm354_vm3, %v312_v37 }
 0x1f1   :  { %v696_v41 = vmul.f32 %v686_v35, %v677_v40  ;;  %2245 = vmatmul.mubr.msk.f32.vlgmr.msra.gmra.mrb[2].mxu1 %vm350_vm5, %v314_v36  ;;  %780 = vmatprep.mubr.f32.mxu0 %v2353_v4 }
 0x1f2   :  { %v671_v48 = vpop.permute.xlu1 %670  ;;  %851 = vmatprep.mubr.f32.mxu1 %v2353_v4 }
 0x1f3   :  { %v676_v51 = vsel %vm674_vm6, %v669_v39, %v671_v48  ;;  %v673_v52 = vpop.permute.xlu0 %672  ;;  %2247 = vmatprep.subr.msk.mxu0 %vm354_vm3, %v696_v41  ;;  %v1445_v39 = vrot.slane %v2547_v61, %v1432_v34  ;;  %v1433_v41 = vrot.slane %v2542_v60, %v1432_v34 }
 0x1f4   :  { %v675_v53 = vsel %vm674_vm6, %v671_v48, %v673_v52  ;;  %v678_v54 = vsel %vm674_vm6, %v673_v52, %v667_v38  ;;  %v697_v0 = vmul.f32 %v690_v46, %v676_v51  ;;  %v1437_v38 = vrot.slane %v2535_v57, %v1432_v34 }
 0x1f5   :  { %v695_v56 = vmul.f32 %v682_v42, %v678_v54  ;;  %v698_v58 = vmul.f32 %v694_v43, %v675_v53  ;;  %v1441_v48 = vrot.slane %v2552_v63, %v1432_v34  ;;  %v2267_v54 = vld [vmem:[%s2790_s8 + $0xa] sm:$0x3] }
 0x1f6   :  { %v863_v1 = vpop.permute.xlu1 %862 }
 0x1f7   :  { %v865_v2 = vpop.permute.xlu0 %864  ;;  %2248 = vmatpush1.msk.msra.mxu0 %vm354_vm3, %v695_v56  ;;  %2250 = vmatprep.subr.msk.mxu1 %vm354_vm3, %v698_v58  ;;  %v1628_v58 = vsub.s32 7, %v2456_v11 }
 0x1f8   :  { %v873_v3 = vsel %vm870_vm7, %v863_v1, %v865_v2  ;;  %2249 = vmatmul.mubr.msk.f32.vlgmr.msra.gmra.mrb[2].mxu0 %vm350_vm5, %v2246_v62  ;;  %2251 = vmatpush1.msk.msra.mxu1 %vm354_vm3, %v697_v0 }
 0x1f9   :  { %v892_v5 = vmul.f32 %v882_v59, %v873_v3  ;;  %2252 = vmatmul.mubr.msk.f32.vlgmr.msra.gmra.mrb[2].mxu1 %vm350_vm5, %v2246_v62  ;;  %976 = vmatprep.mubr.f32.mxu0 %v2353_v4  ;;  %v1629_v3 = vrot.slane %v2542_v60, %v1628_v58 }
 0x1fa   :  { %v867_v9 = vpop.permute.xlu1 %866  ;;  %1047 = vmatprep.mubr.f32.mxu1 %v2353_v4 }
 0x1fb   :  { %v872_v10 = vsel %vm870_vm7, %v865_v2, %v867_v9  ;;  %v869_v12 = vpop.permute.xlu0 %868  ;;  %2254 = vmatprep.subr.msk.mxu0 %vm354_vm3, %v892_v5  ;;  %v1641_v2 = vrot.slane %v2547_v61, %v1628_v58  ;;  %v2274_v61 = vld [vmem:[%s2790_s8 + $0xc] sm:$0x3] }
 0x1fc   :  { %v871_v13 = vsel %vm870_vm7, %v867_v9, %v869_v12  ;;  %v874_v14 = vsel %vm870_vm7, %v869_v12, %v863_v1  ;;  %v893_v20 = vmul.f32 %v886_v8, %v872_v10  ;;  %v1633_v1 = vrot.slane %v2535_v57, %v1628_v58 }
 0x1fd   :  { %v891_v17 = vmul.f32 %v878_v6, %v874_v14  ;;  %v894_v18 = vmul.f32 %v890_v7, %v871_v13  ;;  %v1637_v8 = vrot.slane %v2552_v63, %v1628_v58 }
 0x1fe   :  { %v1222_v21 = vpop.permute.xlu1 %1221 }
 0x1ff   :  { %v1224_v23 = vpop.permute.xlu0 %1223  ;;  %2255 = vmatpush1.msk.msra.mxu0 %vm354_vm3, %v891_v17  ;;  %2257 = vmatprep.subr.msk.mxu1 %vm354_vm3, %v894_v18 }
 0x200   :  { %2256 = vmatmul.mubr.msk.f32.vlgmr.msra.gmra.mrb[2].mxu0 %vm350_vm5, %v2253_v19  ;;  %2258 = vmatpush1.msk.msra.mxu1 %vm354_vm3, %v893_v20  ;;  %v1232_v29 = vsel %vm1229_vm8, %v1222_v21, %v1224_v23 }
 0x201   :  { %2261 = vmatprep.subr.msk.mxu0 %vm354_vm3, %v2478_v47  ;;  %2259 = vmatmul.mubr.msk.f32.vlgmr.msra.gmra.mrb[2].mxu1 %vm350_vm5, %v2253_v19  ;;  %v1250_v35 = vmul.f32 %v1237_v27, %v1232_v29  ;;  %v2291_v19 = vld [vmem:[%s2789_s1 + $0x38] ss:$0 sm:$0xff] }
 0x202   :  { %2262 = vmatpush1.msk.msra.mxu0 %vm354_vm3, %v2476_v45  ;;  %2264 = vmatprep.subr.msk.mxu1 %vm354_vm3, %v2484_v50  ;;  %v1226_v26 = vpop.permute.xlu1 %1225  ;;  %v1245_v45 = vrot.slane %v2552_v63, %v1236_v22  ;;  %v2289_v63 = vld [vmem:[%s2789_s1 + $0x28] ss:$0 sm:$0xff]  ;;  %v2288_v22 = vld [vmem:[%s2789_s1 + $0x20] ss:$0 sm:$0xff] }
 0x203   :  { %2265 = vmatpush1.msk.msra.mxu1 %vm354_vm3, %v2482_v49  ;;  %v1231_v28 = vsel %vm1229_vm8, %v1224_v23, %v1226_v26  ;;  %v1228_v47 = vpop.permute.xlu0 %1227  ;;  %1139 = vmatprep.mubr.f32.mxu0 %v2353_v4 }
 0x204   :  { %v1251_v30 = vmul.f32 %v1241_v24, %v1231_v28  ;;  %v1233_v50 = vsel %vm1229_vm8, %v1228_v47, %v1222_v21  ;;  %1210 = vmatprep.mubr.f32.mxu1 %v2353_v4  ;;  %v1230_v49 = vsel %vm1229_vm8, %v1226_v26, %v1228_v47  ;;  %v2290_v26 = vld [vmem:[%s2789_s1 + $0x30] ss:$0 sm:$0xff]  ;;  %v2281_v47 = vld [vmem:[%s2790_s8 + $0xe] sm:$0x3] }
 0x205   :  { %v1253_v31 = vmul.f32 %v1249_v25, %v1233_v50  ;;  %v1252_v37 = vmul.f32 %v1245_v45, %v1230_v49 }
 0x206   :  { %2268 = vmatprep.subr.msk.mxu0 %vm354_vm3, %v1251_v30  ;;  %v1418_v33 = vpop.permute.xlu1 %1417 }
 0x207   :  { %v1420_v36 = vpop.permute.xlu0 %1419  ;;  %2271 = vmatprep.subr.msk.mxu1 %vm354_vm3, %v1253_v31 }
 0x208   :  { %2263 = vmatmul.mubr.msk.f32.vlgmr.msra.gmra.mrb[2].mxu0 %vm350_vm5, %v2260_v32  ;;  %v1428_v44 = vsel %vm1425_vm9, %v1418_v33, %v1420_v36 }
 0x209   :  { %2269 = vmatpush1.msk.msra.mxu0 %vm354_vm3, %v1250_v35  ;;  %2266 = vmatmul.mubr.msk.f32.vlgmr.msra.gmra.mrb[2].mxu1 %vm350_vm5, %v2260_v32  ;;  %v1446_v59 = vmul.f32 %v1433_v41, %v1428_v44 }
 0x20a   :  { %2272 = vmatpush1.msk.msra.mxu1 %vm354_vm3, %v1252_v37  ;;  %v1422_v40 = vpop.permute.xlu1 %1421  ;;  %1335 = vmatprep.mubr.f32.mxu0 %v2353_v4 }
 0x20b   :  { %v1427_v42 = vsel %vm1425_vm9, %v1420_v36, %v1422_v40  ;;  %v1424_v43 = vpop.permute.xlu0 %1423  ;;  %1406 = vmatprep.mubr.f32.mxu1 %v2353_v4 }
 0x20c   :  { %v1447_v46 = vmul.f32 %v1437_v38, %v1427_v42  ;;  %v1429_v51 = vsel %vm1425_vm9, %v1424_v43, %v1418_v33  ;;  %v1426_v52 = vsel %vm1425_vm9, %v1422_v40, %v1424_v43 }
 0x20d   :  { %v1449_v53 = vmul.f32 %v1445_v39, %v1429_v51  ;;  %v1448_v0 = vmul.f32 %v1441_v48, %v1426_v52 }
 0x20e   :  { %2275 = vmatprep.subr.msk.mxu0 %vm354_vm3, %v1447_v46  ;;  %v1614_v56 = vpop.permute.xlu1 %1613 }
 0x20f   :  { %v1616_v62 = vpop.permute.xlu0 %1615  ;;  %2278 = vmatprep.subr.msk.mxu1 %vm354_vm3, %v1449_v53  ;;  %v2039_v53 = vld [vmem:[%s2791_s12] sm:$0xf] }
 0x210   :  { %2270 = vmatmul.mubr.msk.f32.vlgmr.msra.gmra.mrb[2].mxu0 %vm350_vm5, %v2267_v54  ;;  %v1624_v57 = vsel %vm1621_vm10, %v1614_v56, %v1616_v62 }
 0x211   :  { %2276 = vmatpush1.msk.msra.mxu0 %vm354_vm3, %v1446_v59  ;;  %2273 = vmatmul.mubr.msk.f32.vlgmr.msra.gmra.mrb[2].mxu1 %vm350_vm5, %v2267_v54  ;;  %v1642_v14 = vmul.f32 %v1629_v3, %v1624_v57  ;;  %v2205_v59 = vcombine.high %v2462_v15, %v2462_v15 }
 0x212   :  { %2279 = vmatpush1.msk.msra.mxu1 %vm354_vm3, %v1448_v0  ;;  %v1618_v11 = vpop.permute.xlu1 %1617  ;;  %1531 = vmatprep.mubr.f32.mxu0 %v2353_v4 }
 0x213   :  { %v1623_v5 = vsel %vm1621_vm10, %v1616_v62, %v1618_v11  ;;  %v1620_v6 = vpop.permute.xlu0 %1619  ;;  %1602 = vmatprep.mubr.f32.mxu1 %v2353_v4 }
 0x214   :  { %v1643_v7 = vmul.f32 %v1633_v1, %v1623_v5  ;;  %v1625_v9 = vsel %vm1621_vm10, %v1620_v6, %v1614_v56  ;;  %v1622_v10 = vsel %vm1621_vm10, %v1618_v11, %v1620_v6 }
 0x215   :  { %v1645_v12 = vmul.f32 %v1641_v2, %v1625_v9  ;;  %v1644_v17 = vmul.f32 %v1637_v8, %v1622_v10  ;;  %v2206_v2 = vcombine.high %v2467_v16, %v2467_v16 }
 0x216   :  { %2282 = vmatprep.subr.msk.mxu0 %vm354_vm3, %v1643_v7  ;;  %v1810_v13 = vpop.permute.xlu1 %1809 }
 0x217   :  { %v1812_v60 = vpop.permute.xlu0 %1811  ;;  %2285 = vmatprep.subr.msk.mxu1 %vm354_vm3, %v1645_v12 }
 0x218   :  { %2277 = vmatmul.mubr.msk.f32.vlgmr.msra.gmra.mrb[2].mxu0 %vm350_vm5, %v2274_v61  ;;  %v1820_v23 = vsel %vm1817_vm11, %v1810_v13, %v1812_v60 }
 0x219   :  { %2283 = vmatpush1.msk.msra.mxu0 %vm354_vm3, %v1642_v14  ;;  %2280 = vmatmul.mubr.msk.f32.vlgmr.msra.gmra.mrb[2].mxu1 %vm350_vm5, %v2274_v61  ;;  %v1838_v29 = vmul.f32 %v2288_v22, %v1820_v23 }
 0x21a   :  { %2286 = vmatpush1.msk.msra.mxu1 %vm354_vm3, %v1644_v17  ;;  %v1814_v18 = vpop.permute.xlu1 %1813  ;;  %1727 = vmatprep.mubr.f32.mxu0 %v2353_v4 }
 0x21b   :  { %v1819_v20 = vsel %vm1817_vm11, %v1812_v60, %v1814_v18  ;;  %v1816_v21 = vpop.permute.xlu0 %1815  ;;  %1798 = vmatprep.mubr.f32.mxu1 %v2353_v4 }
 0x21c   :  { %v1839_v24 = vmul.f32 %v2289_v63, %v1819_v20  ;;  %v1821_v25 = vsel %vm1817_vm11, %v1816_v21, %v1810_v13  ;;  %v1818_v27 = vsel %vm1817_vm11, %v1814_v18, %v1816_v21 }
 0x21d   :  { %v1841_v28 = vmul.f32 %v2291_v19, %v1821_v25  ;;  %v1840_v30 = vmul.f32 %v2290_v26, %v1818_v27 }
 0x21e   :  { %2293 = vmatprep.subr.msk.mxu0 %vm354_vm3, %v1839_v24 }
 0x21f   :  { %2296 = vmatprep.subr.msk.mxu1 %vm354_vm3, %v1841_v28 }
 0x220   :  { %2284 = vmatmul.mubr.msk.f32.vlgmr.msra.gmra.mrb[2].mxu0 %vm350_vm5, %v2281_v47 }
 0x221   :  { %2294 = vmatpush1.msk.msra.mxu0 %vm354_vm3, %v1838_v29  ;;  %2287 = vmatmul.mubr.msk.f32.vlgmr.msra.gmra.mrb[2].mxu1 %vm350_vm5, %v2281_v47 }
 0x222   :  { %2297 = vmatpush1.msk.msra.mxu1 %vm354_vm3, %v1840_v30  ;;  %1923 = vmatprep.mubr.f32.mxu0 %v2353_v4 }
 0x223   :  { %1994 = vmatprep.mubr.f32.mxu1 %v2353_v4 }
 0x228   :  { %2295 = vmatmul.mubr.msk.f32.vlgmr.msra.gmra.mrb[2].mxu0 %vm350_vm5, %v2292_v55 }
 0x229   :  { %2298 = vmatmul.mubr.msk.f32.vlgmr.msra.gmra.mrb[2].mxu1 %vm350_vm5, %v2292_v55  ;;  %2125 = vmatprep.mubr.f32.mxu0 %v2353_v4 }
 0x22a   :  { %2196 = vmatprep.mubr.f32.mxu1 %v2353_v4 }
 0x22b   :  { %v2009_v45 = vpop.permute.xlu1 %2008 }
 0x22c   :  { %v2019_v33 = vpop.permute.xlu0 %2018 }
 0x22f   :  { %v2029_v39 = vpop.permute.xlu1 %2028 }
 0x230   :  { %v2044_v56 = vpop.permute.xlu0 %2043 }
 0x2fb   :  { %v1925_v50 = vpop.f32.mrb[2].mxu0 }
 0x2fc   :  { %v2011_v49 = vadd.f32 %v2009_v45, %v1925_v50  ;;  %v1927_v31 = vpop.f32.mrb[3].mxu0  ;;  %v1996_v32 = vpop.f32.mrb[2].mxu1 }
 0x2fd   :  { %v2012_v34 = vadd.f32 %v2009_v45, %v1927_v31  ;;  %v2013_v35 = vadd.f32 %v2009_v45, %v1996_v32  ;;  %v1998_v36 = vpop.f32.mrb[3].mxu1 }
 0x2fe   :  { %v2021_v37 = vmul.f32 %v2019_v33, %v2011_v49  ;;  %v2014_v38 = vadd.f32 %v2009_v45, %v1998_v36 }
 0x2ff   :  { %v2022_v40 = vmul.f32 %v2019_v33, %v2012_v34  ;;  %v2023_v41 = vmul.f32 %v2019_v33, %v2013_v35 }
 0x300   :  { %v2031_v42 = vadd.f32 %v2029_v39, %v2021_v37  ;;  %v2024_v43 = vmul.f32 %v2019_v33, %v2014_v38 }
 0x301   :  { %v2032_v44 = vadd.f32 %v2029_v39, %v2022_v40  ;;  %v2033_v46 = vadd.f32 %v2029_v39, %v2023_v41 }
 0x302   :  { %v2034_v48 = vadd.f32 %v2029_v39, %v2024_v43  ;;  %v2035_v51 = vmax.f32 %v2031_v42, 0.0 }
 0x303   :  { %v2036_v4 = vmax.f32 %v2032_v44, 0.0  ;;  %v2037_v54 = vmax.f32 %v2033_v46, 0.0 }
 0x304   :  { %v2038_v52 = vmax.f32 %v2034_v48, 0.0 }
 0x305   :  { %2299 = vmatprep.subr.msk.mxu0 %vm354_vm3, %v2036_v4 }
 0x306   :  { %2300 = vmatpush1.msk.msra.mxu0 %vm354_vm3, %v2035_v51  ;;  %2302 = vmatprep.subr.msk.mxu1 %vm354_vm3, %v2038_v52 }
 0x307   :  { %2301 = vmatmul.mubr.msk.f32.vlgmr.msra.gmra.mrb[4].mxu0 %vm350_vm5, %v2039_v53  ;;  %2303 = vmatpush1.msk.msra.mxu1 %vm354_vm3, %v2037_v54 }
 0x308   :  { %2304 = vmatmul.mubr.msk.f32.vlgmr.msra.gmra.mrb[4].mxu1 %vm350_vm5, %v2039_v53 }
 0x3da   :  { %v2127_v58 = vpop.f32.mrb[4].mxu0 }
 0x3db   :  { %v2128_v62 = vadd.f32 %v2127_v58, %v2044_v56  ;;  %v2129_v0 = vpop.f32.mrb[5].mxu0  ;;  %v2198_v1 = vpop.f32.mrb[4].mxu1 }
 0x3dc   :  { %v2130_v11 = vadd.f32 %v2129_v0, %v2044_v56  ;;  %v2199_v3 = vadd.f32 %v2198_v1, %v2044_v56  ;;  %v2200_v5 = vpop.f32.mrb[5].mxu1 }
 0x3dd   :  { %v2209_v6 = vadd.f32 %v2128_v62, %v2462_v15  ;;  %v2201_v57 = vadd.f32 %v2200_v5, %v2044_v56 }
 0x3de   :  { %v2210_v7 = vadd.f32 %v2205_v59, %v2130_v11  ;;  %v2211_v8 = vadd.f32 %v2199_v3, %v2467_v16 }
 0x3df   :  { %v2212_v9 = vadd.f32 %v2206_v2, %v2201_v57 }
 0x3e0   :  { %v2217_v10 = vcombine.low %v2209_v6, %v2210_v7 }
 0x3e1   :  { %v2218_v12 = vcombine.low %v2211_v8, %v2212_v9 }
 0x3e2   :  { %2221 = vst [vmem:[%s2792_s14] sm:$0xff] %v2217_v10 }
 0x3e3   :  { %2222 = vst [vmem:[%s2792_s14 + $0x8] sm:$0xff] %v2218_v12 }

// kernel: run.20
= control target key start
LH: loop header
LB: loop body
LE: loop exit
PB: predicated region body
PF: predicated region fallthrough
CT: control target
= control target key end

     0   :  { %19 = vsyncpa [#allocation3], 0  ;;  %s1708_s0 = inlined_call_operand.vmem [shape: f32[8,128], index: 0, kind: input, shape index: {}]   ;;  %s1709_s1 = inlined_call_operand.vmem [shape: f32[9,128], index: 1, kind: input, shape index: {}]   ;;  %s1710_s2 = inlined_call_operand.vmem [shape: f32[8,1], index: 2, kind: input, shape index: {}]   ;;  %s1711_s3 = inlined_call_operand.vmem [shape: f32[8,1], index: 3, kind: input, shape index: {}]   ;;  %s1712_s4 = inlined_call_operand.hbm [shape: f32[4,8], index: 4, kind: input, shape index: {}]   ;;  %s1713_s5 = inlined_call_operand.hbm [shape: f32[4,1], index: 5, kind: input, shape index: {}]   ;;  %s1714_s6 = inlined_call_operand.hbm [shape: f32[4,1], index: 6, kind: input, shape index: {}]   ;;  %s1715_s7 = inlined_call_operand.hbm [shape: f32[4,1], index: 7, kind: input, shape index: {}]   ;;  %s1716_s8 = inlined_call_operand.vmem [shape: f32[9,4,4], index: 8, kind: input, shape index: {}]   ;;  %s1717_s9 = inlined_call_operand.hbm [shape: f32[4,1], index: 9, kind: input, shape index: {}]   ;;  %s1718_s10 = inlined_call_operand.hbm [shape: f32[4,1], index: 10, kind: input, shape index: {}]   ;;  %s1719_s11 = inlined_call_operand.hbm [shape: f32[4,1], index: 11, kind: input, shape index: {}]   ;;  %s1720_s12 = inlined_call_operand.vmem [shape: f32[8,4], index: 12, kind: input, shape index: {}]   ;;  %s1721_s13 = inlined_call_operand.vmem [shape: f32[8,1], index: 13, kind: input, shape index: {}]   ;;  %s1722_s14 = inlined_call_operand.vmem [shape: f32[8,128], index: 14, kind: output, shape index: {}]  }
   0x1   :  { %20 = vsyncpa [#allocation5], 0 }
   0x2   :  { %21 = vsyncpa [#allocation8], 0 }
   0x3   :  { %22 = vsyncpa [#allocation11], 0  ;;  %s1412_s29 = smov [#allocation4]   ;;  %s1413_s15 = smov [#allocation7]  }
   0x4   :  { %s47_s30 = sshll.u32 %s1412_s29, 4  ;;  %s67_s16 = sshll.u32 %s1413_s15, 4  ;;  %s48_s30 = int_to_ptr.vmem [resolvable:$true] %s47_s30  ;;  %s68_s16 = int_to_ptr.vmem [resolvable:$true] %s67_s16 }
   0x5   :  { %s1250_s19 = scalar_lea.hbm %s1713_s5, 64 }
   0x6   :  { %p1251_p0 = scmp.ne.s32.totalorder %s1713_s5, %s1250_s19  ;;  %p1254_p1 = scmp.lt.u32.totalorder %s1250_s19, %s1713_s5 }
   0x8   :  { %p1256_p2 = pnand %p1254_p1, %p1251_p0 }
   0xa   :  { %1259 = shalt.err (!%p1256_p2)
}
   0xb   :  { %s1260_s24 = scalar_lea.vmem %s48_s30, 64  ;;  %p1265_p4 = scmp.lt.s32.totalorder %s48_s30, %s48_s30 }
   0xc   :  { %p1261_p3 = scmp.ne.s32.totalorder %s48_s30, %s1260_s24  ;;  %p1266_p5 = scmp.lt.s32.totalorder %s1260_s24, %s1260_s24 }
   0xe   :  { %p1267_p6 = por %p1266_p5, %p1265_p4 }
  0x10   :  { %p1268_p7 = pnand %p1267_p6, %p1261_p3 }
  0x12   :  { %1271 = shalt.err (!%p1268_p7)
}
  0x13   :  { %50 = dma.hbm_to_vmem [thread:$0]  %s1713_s5, 64, %s48_s30, [#allocation5]  }
  0x14   :  { %s1272_s29 = scalar_lea.hbm %s1715_s7, 64 }
  0x15   :  { %p1273_p8 = scmp.ne.s32.totalorder %s1715_s7, %s1272_s29  ;;  %p1276_p9 = scmp.lt.u32.totalorder %s1272_s29, %s1715_s7 }
  0x17   :  { %p1278_p10 = pnand %p1276_p9, %p1273_p8 }
  0x19   :  { %1281 = shalt.err (!%p1278_p10)
}
  0x1a   :  { %s1282_s20 = scalar_lea.vmem %s68_s16, 64  ;;  %p1287_p12 = scmp.lt.s32.totalorder %s68_s16, %s68_s16 }
  0x1b   :  { %p1283_p11 = scmp.ne.s32.totalorder %s68_s16, %s1282_s20  ;;  %p1288_p13 = scmp.lt.s32.totalorder %s1282_s20, %s1282_s20 }
  0x1d   :  { %p1289_p0 = por %p1288_p13, %p1287_p12 }
  0x1f   :  { %p1290_p1 = pnand %p1289_p0, %p1283_p11 }
  0x21   :  { %1293 = shalt.err (!%p1290_p1)
}
  0x22   :  { %70 = dma.hbm_to_vmem [thread:$0]  %s1715_s7, 64, %s68_s16, [#allocation8]  }
  0x23   :  { %s1414_s21 = smov [#allocation10]   ;;  %s1415_s23 = smov [#allocation2]  }
  0x24   :  { %s89_s22 = sshll.u32 %s1414_s21, 4  ;;  %s37_s24 = sshll.u32 %s1415_s23, 4  ;;  %s90_s22 = int_to_ptr.vmem [resolvable:$true] %s89_s22  ;;  %s38_s24 = int_to_ptr.vmem [resolvable:$true] %s37_s24 }
  0x25   :  { %s1294_s27 = scalar_lea.hbm %s1718_s10, 64 }
  0x26   :  { %p1295_p2 = scmp.ne.s32.totalorder %s1718_s10, %s1294_s27  ;;  %p1298_p3 = scmp.lt.u32.totalorder %s1294_s27, %s1718_s10 }
  0x28   :  { %p1300_p4 = pnand %p1298_p3, %p1295_p2 }
  0x2a   :  { %1303 = shalt.err (!%p1300_p4)
}
  0x2b   :  { %s1304_s7 = scalar_lea.vmem %s90_s22, 64  ;;  %p1309_p6 = scmp.lt.s32.totalorder %s90_s22, %s90_s22 }
  0x2c   :  { %p1305_p5 = scmp.ne.s32.totalorder %s90_s22, %s1304_s7  ;;  %p1310_p7 = scmp.lt.s32.totalorder %s1304_s7, %s1304_s7 }
  0x2e   :  { %p1311_p8 = por %p1310_p7, %p1309_p6 }
  0x30   :  { %p1312_p9 = pnand %p1311_p8, %p1305_p5 }
  0x32   :  { %1315 = shalt.err (!%p1312_p9)
}
  0x33   :  { %92 = dma.hbm_to_vmem [thread:$0]  %s1718_s10, 64, %s90_s22, [#allocation11]  }
  0x34   :  { %s1316_s5 = scalar_lea.hbm %s1712_s4, 64 }
  0x35   :  { %p1317_p10 = scmp.ne.s32.totalorder %s1712_s4, %s1316_s5  ;;  %p1320_p11 = scmp.lt.u32.totalorder %s1316_s5, %s1712_s4 }
  0x37   :  { %p1322_p12 = pnand %p1320_p11, %p1317_p10 }
  0x39   :  { %1325 = shalt.err (!%p1322_p12)
}
  0x3a   :  { %s1326_s26 = scalar_lea.vmem %s38_s24, 64  ;;  %p1331_p0 = scmp.lt.s32.totalorder %s38_s24, %s38_s24 }
  0x3b   :  { %p1327_p13 = scmp.ne.s32.totalorder %s38_s24, %s1326_s26  ;;  %p1332_p1 = scmp.lt.s32.totalorder %s1326_s26, %s1326_s26 }
  0x3d   :  { %p1333_p2 = por %p1332_p1, %p1331_p0 }
  0x3f   :  { %p1334_p3 = pnand %p1333_p2, %p1327_p13 }
  0x41   :  { %1337 = shalt.err (!%p1334_p3)
}
  0x42   :  { %40 = dma.hbm_to_vmem [thread:$0]  %s1712_s4, 64, %s38_s24, [#allocation3]  }
  0x43   :  { %s1416_s27 = smov [#allocation6]   ;;  %s1417_s29 = smov [#allocation9]  }
  0x44   :  { %s57_s28 = sshll.u32 %s1416_s27, 4  ;;  %s79_s15 = sshll.u32 %s1417_s29, 4  ;;  %s58_s28 = int_to_ptr.vmem [resolvable:$true] %s57_s28  ;;  %s80_s15 = int_to_ptr.vmem [resolvable:$true] %s79_s15 }
  0x45   :  { %s1338_s16 = scalar_lea.hbm %s1714_s6, 64 }
  0x46   :  { %p1339_p4 = scmp.ne.s32.totalorder %s1714_s6, %s1338_s16  ;;  %p1342_p5 = scmp.lt.u32.totalorder %s1338_s16, %s1714_s6 }
  0x48   :  { %p1344_p6 = pnand %p1342_p5, %p1339_p4 }
  0x4a   :  { %1347 = shalt.err (!%p1344_p6)
}
  0x4b   :  { %s1348_s4 = scalar_lea.vmem %s58_s28, 64  ;;  %p1353_p8 = scmp.lt.s32.totalorder %s58_s28, %s58_s28 }
  0x4c   :  { %p1349_p7 = scmp.ne.s32.totalorder %s58_s28, %s1348_s4  ;;  %p1354_p9 = scmp.lt.s32.totalorder %s1348_s4, %s1348_s4 }
  0x4e   :  { %p1355_p10 = por %p1354_p9, %p1353_p8 }
  0x50   :  { %p1356_p11 = pnand %p1355_p10, %p1349_p7 }
  0x52   :  { %1359 = shalt.err (!%p1356_p11)
}
  0x53   :  { %60 = dma.hbm_to_vmem [thread:$0]  %s1714_s6, 64, %s58_s28, [#allocation5]  }
  0x54   :  { %s1360_s25 = scalar_lea.hbm %s1717_s9, 64 }
  0x55   :  { %p1361_p12 = scmp.ne.s32.totalorder %s1717_s9, %s1360_s25  ;;  %p1364_p13 = scmp.lt.u32.totalorder %s1360_s25, %s1717_s9 }
  0x57   :  { %p1366_p0 = pnand %p1364_p13, %p1361_p12 }
  0x59   :  { %1369 = shalt.err (!%p1366_p0)
}
  0x5a   :  { %s1370_s29 = scalar_lea.vmem %s80_s15, 64  ;;  %p1375_p2 = scmp.lt.s32.totalorder %s80_s15, %s80_s15 }
  0x5b   :  { %p1371_p1 = scmp.ne.s32.totalorder %s80_s15, %s1370_s29  ;;  %p1376_p3 = scmp.lt.s32.totalorder %s1370_s29, %s1370_s29 }
  0x5d   :  { %p1377_p4 = por %p1376_p3, %p1375_p2 }
  0x5f   :  { %p1378_p5 = pnand %p1377_p4, %p1371_p1 }
  0x61   :  { %1381 = shalt.err (!%p1378_p5)
}
  0x62   :  { %82 = dma.hbm_to_vmem [thread:$0]  %s1717_s9, 64, %s80_s15, [#allocation8]  }
  0x63   :  { %s1418_s17 = smov [#allocation12]   ;;  %s1382_s19 = scalar_lea.hbm %s1719_s11, 64 }
  0x64   :  { %s99_s7 = sshll.u32 %s1418_s17, 4  ;;  %p1383_p6 = scmp.ne.s32.totalorder %s1719_s11, %s1382_s19  ;;  %s100_s7 = int_to_ptr.vmem [resolvable:$true] %s99_s7 }
  0x65   :  { %p1386_p7 = scmp.lt.u32.totalorder %s1382_s19, %s1719_s11 }
  0x67   :  { %p1388_p8 = pnand %p1386_p7, %p1383_p6 }
  0x69   :  { %1391 = shalt.err (!%p1388_p8)
}
  0x6a   :  { %s1392_s30 = scalar_lea.vmem %s100_s7, 64  ;;  %p1397_p10 = scmp.lt.s32.totalorder %s100_s7, %s100_s7 }
  0x6b   :  { %p1393_p9 = scmp.ne.s32.totalorder %s100_s7, %s1392_s30  ;;  %p1398_p11 = scmp.lt.s32.totalorder %s1392_s30, %s1392_s30 }
  0x6d   :  { %p1399_p12 = por %p1398_p11, %p1397_p10 }
  0x6f   :  { %p1400_p13 = pnand %p1399_p12, %p1393_p9 }
  0x71   :  { %1403 = shalt.err (!%p1400_p13)
}
  0x72   :  { %102 = dma.hbm_to_vmem [thread:$0]  %s1719_s11, 64, %s100_s7, [#allocation11]  }
  0x73   :  { %1404 = dma.done.wait [#allocation3], 64  }
  0x74   :  { %1405 = vsyncadd [#allocation3], 4294967232 }
  0x75   :  { %1406 = dma.done.wait [#allocation5], 128  }
  0x76   :  { %1407 = vsyncadd [#allocation5], 4294967168 }
  0x77   :  { %1408 = dma.done.wait [#allocation8], 128  }
  0x78   :  { %1409 = vsyncadd [#allocation8], 4294967168 }
  0x79   :  { %1410 = dma.done.wait [#allocation11], 128  }
  0x7a   :  { %1411 = vsyncadd [#allocation11], 4294967168  ;;  %v1419_v0 = vmov 0   ;;  %v129_v1 = vld [vmem:[%s1710_s2] sm:$0xff]  ;;  %v232_v3 = vld [vmem:[#allocation7] sm:$0xf]  ;;  %v244_v27 = vlaneseq }
  0x7b   :  { %1248 = vset.pattern.permute.xlu0 %v1419_v0  ;;  %1249 = vset.pattern.permute.xlu1 %v1419_v0  ;;  %v136_v2 = vld [vmem:[%s1711_s3] sm:$0xff]  ;;  %v1420_v4 = vmov 0.0   ;;  %vm1421_vm0 = vmmov 0   ;;  %v225_v6 = vld [vmem:[#allocation6] sm:$0xf]  ;;  %vm151_vm1 = vcmask 64512  }
  0x7c   :  { %132 = vperm.xlu0 %1248, %v129_v1   ;;  %1175 = vmatprep.subr.mxu0 %v1420_v4  ;;  %v145_v5 = vld [vmem:[#allocation4] sm:$0xf]  ;;  %v144_v13 = vld [vmem:[#allocation2] sm:$0xf]  ;;  %s1423_s11 = smov 8   ;;  %s1424_s10 = smov 1  }
  0x7d   :  { %1180 = vmatprep.subr.mxu1 %v1420_v4  ;;  %1177 = vmatprep.mubr.msk.f32.mxu0 %vm1421_vm0, %v1420_v4  ;;  %v1604_v8 = vld [vmem:[%s1708_s0] sm:$0xff]  ;;  %s1422_s0 = smov 9   ;;  %s1425_s22 = smov 7   ;;  %v1015_v23 = vld [vmem:[#allocation10] sm:$0xf]  ;;  %v245_v28 = vshrl.u32 %v244_v27, 7 }
  0x7e   :  { %1182 = vmatprep.mubr.msk.f32.mxu1 %vm1421_vm0, %v1420_v4  ;;  %148 = vperm.xlu1 %1249, %v145_v5   ;;  %s1426_s27 = smov 121   ;;  %s1427_s29 = smov 127   ;;  %v1008_v24 = vld [vmem:[#allocation9] sm:$0xf]  ;;  %v1031_v25 = vld [vmem:[%s1721_s13] sm:$0xff]  ;;  %vm263_vm2 = vcmask 1043456  }
  0x7f   :  { %s1428_s6 = smov 119   ;;  %s1429_s28 = smov 120   ;;  %v1022_v26 = vld [vmem:[#allocation12] sm:$0xf]  ;;  %v246_v29 = vsub.s32 0, %v245_v28  ;;  %v254_v30 = vsub.s32 1, %v245_v28 }
  0x80   :  { %139 = vperm.xlu0 %1248, %v136_v2   ;;  %v240_v31 = vld [vmem:[%s1709_s1] sm:$0xff]  ;;  %v503_v32 = vsub.s32 3, %v245_v28  ;;  %v417_v35 = vsub.s32 2, %v245_v28  ;;  %vm259_vm3 = vcmask 31744   ;;  %v754_v39 = vsub.s32 6, %v245_v28 }
  0x81   :  { %v247_v33 = vrot.slane %v240_v31, %v246_v29  ;;  %v255_v34 = vrot.slane %v240_v31, %v254_v30  ;;  %v249_v42 = vld [vmem:[%s1716_s8] sm:$0xf]  ;;  %v1124_v43 = vld [vmem:[%s1716_s8 + $0x4] sm:$0xf]  ;;  %v668_v45 = vsub.s32 5, %v245_v28  ;;  %v840_v53 = vsub.s32 7, %v245_v28 }
  0x82   :  { %228 = vperm.xlu1 %1249, %v225_v6   ;;  %v504_v38 = vrot.slane %v240_v31, %v503_v32  ;;  %v418_v44 = vrot.slane %v240_v31, %v417_v35  ;;  %v755_v48 = vrot.slane %v240_v31, %v754_v39  ;;  %v1129_v51 = vld [vmem:[%s1716_s8 + $0x8] sm:$0xf]  ;;  %v1132_v54 = vld [vmem:[%s1716_s8 + $0xc] sm:$0xf]  ;;  %v1135_v59 = vld [vmem:[%s1716_s8 + $0x10] sm:$0xf] }
  0x83   :  { %v669_v52 = vrot.slane %v240_v31, %v668_v45  ;;  %v841_v60 = vrot.slane %v240_v31, %v840_v53  ;;  %v1147_v61 = vld [vmem:[%s1709_s1 + $0x8] ss:$0 sm:$0xff]  ;;  %v1138_v62 = vld [vmem:[%s1716_s8 + $0x14] sm:$0xf]  ;;  %v1144_v5 = vld [vmem:[%s1716_s8 + $0x1c] sm:$0xf] }
  0x84   :  { %235 = vperm.xlu0 %1248, %v232_v3   ;;  %v1141_v3 = vld [vmem:[%s1716_s8 + $0x18] sm:$0xf]  ;;  %v1148_v6 = vld [vmem:[%s1716_s8 + $0x20] sm:$0xf] }
  0xfb   :  { %v133_v7 = vpop.permute.xlu0 %132 }
  0xfc   :  { %v135_v9 = vmul.f32 %v133_v7, %v1604_v8 }
  0xfd   :  { %v149_v14 = vpop.permute.xlu1 %148 }
  0xff   :  { %v140_v10 = vpop.permute.xlu0 %139 }
 0x100   :  { %v142_v11 = vadd.f32 %v140_v10, %v135_v9 }
 0x101   :  { %v229_v18 = vpop.permute.xlu1 %228 }
 0x102   :  { %v143_v12 = vmax.f32 %v142_v11, 0.0 }
 0x103   :  { %v236_v20 = vpop.permute.xlu0 %235 }
 0x104   :  { %1176 = vmatpush3.msra.mxu0 %v143_v12 }
 0x105   :  { %1178 = vmatmul.mubr.msk.f32.vlgmr.msra.gmra.mrb[0].mxu0 %vm151_vm1, %v144_v13  ;;  %1185 = vmatprep.subr.mxu0 %v1420_v4 }
 0x106   :  { %1187 = vmatprep.mubr.msk.f32.mxu0 %vm1421_vm0, %v1420_v4 }
 0x1d8   :  { %v221_v15 = vpop.f32.mrb[0].mxu0 }
 0x1d9   :  { %v222_v16 = vadd.f32 %v221_v15, %v149_v14  ;;  %v1179_v17 = vpop.f32.mrb[1].mxu0 }
 0x1db   :  { %v231_v19 = vmul.f32 %v229_v18, %v222_v16 }
 0x1dd   :  { %v238_v21 = vadd.f32 %v236_v20, %v231_v19 }
 0x1df   :  { %v1610_v22 = vmax.f32 %v238_v21, 0.0 }
 0x1e1   :  { %242 = vrot.lane.b32.xlu0 %v1610_v22, %s1422_s0  ;;  %250 = vrot.lane.b32.xlu1 %v1610_v22, %s1423_s11 }
 0x1e5   :  { %499 = vrot.lane.b32.xlu0 %v1610_v22, %s1424_s10  ;;  %413 = vrot.lane.b32.xlu1 %v1610_v22, %s1425_s22 }
 0x1e9   :  { %750 = vrot.lane.b32.xlu0 %v1610_v22, %s1426_s27  ;;  %664 = vrot.lane.b32.xlu1 %v1610_v22, %s1427_s29 }
 0x1ed   :  { %922 = vrot.lane.b32.xlu0 %v1610_v22, %s1428_s6  ;;  %836 = vrot.lane.b32.xlu1 %v1610_v22, %s1429_s28 }
 0x1f1   :  { %1018 = vperm.xlu0 %1248, %v1015_v23   ;;  %1011 = vperm.xlu1 %1249, %v1008_v24  }
 0x1f5   :  { %1034 = vperm.xlu0 %1248, %v1031_v25   ;;  %1025 = vperm.xlu1 %1249, %v1022_v26  }
 0x253   :  { %v243_v36 = vpop.permute.xlu0 %242  ;;  %v251_v37 = vpop.permute.xlu1 %250 }
 0x254   :  { %v248_v40 = vmul.f32 %v247_v33, %v243_v36  ;;  %v256_v41 = vmul.f32 %v255_v34, %v251_v37 }
 0x256   :  { %1181 = vmatpush3.msk.msra.mxu1 %vm263_vm2, %v256_v41  ;;  %1186 = vmatpush3.msk.msra.mxu0 %vm263_vm2, %v248_v40  ;;  %v1030_v40 = vld [vmem:[%s1720_s12] sm:$0xff] }
 0x257   :  { %1188 = vmatmul.mubr.msk.f32.vlgmr.msra.gmra.mrb[2].mxu0 %vm259_vm3, %v249_v42  ;;  %v500_v46 = vpop.permute.xlu0 %499  ;;  %1183 = vmatmul.mubr.msk.f32.vlgmr.msra.gmra.mrb[0].mxu1 %vm259_vm3, %v1124_v43  ;;  %v414_v47 = vpop.permute.xlu1 %413 }
 0x258   :  { %v505_v49 = vmul.f32 %v504_v38, %v500_v46  ;;  %v419_v50 = vmul.f32 %v418_v44, %v414_v47  ;;  %1190 = vmatprep.subr.mxu1 %v1420_v4  ;;  %1195 = vmatprep.subr.mxu0 %v1420_v4 }
 0x259   :  { %1192 = vmatprep.mubr.msk.f32.mxu1 %vm1421_vm0, %v1420_v4  ;;  %1197 = vmatprep.mubr.msk.f32.mxu0 %vm1421_vm0, %v1420_v4 }
 0x25a   :  { %1191 = vmatpush3.msk.msra.mxu1 %vm263_vm2, %v419_v50  ;;  %1196 = vmatpush3.msk.msra.mxu0 %vm263_vm2, %v505_v49 }
 0x25b   :  { %v751_v55 = vpop.permute.xlu0 %750  ;;  %1193 = vmatmul.mubr.msk.f32.vlgmr.msra.gmra.mrb[2].mxu1 %vm259_vm3, %v1129_v51  ;;  %1200 = vmatprep.subr.mxu1 %v1420_v4  ;;  %v665_v56 = vpop.permute.xlu1 %664 }
 0x25c   :  { %v756_v57 = vmul.f32 %v755_v48, %v751_v55  ;;  %v670_v58 = vmul.f32 %v669_v52, %v665_v56  ;;  %1198 = vmatmul.mubr.msk.f32.vlgmr.msra.gmra.mrb[4].mxu0 %vm259_vm3, %v1132_v54  ;;  %1201 = vmatpush3.msk.msra.mxu1 %vm263_vm2, %v1610_v22 }
 0x25d   :  { %1205 = vmatprep.subr.mxu0 %v1420_v4  ;;  %1202 = vmatprep.mubr.msk.f32.mxu1 %vm1421_vm0, %v1420_v4 }
 0x25e   :  { %1206 = vmatpush3.msk.msra.mxu0 %vm263_vm2, %v670_v58  ;;  %1210 = vmatprep.subr.mxu1 %v1420_v4 }
 0x25f   :  { %1207 = vmatprep.mubr.msk.f32.mxu0 %vm1421_vm0, %v1420_v4  ;;  %v923_v63 = vpop.permute.xlu0 %922  ;;  %1203 = vmatmul.mubr.msk.f32.vlgmr.msra.gmra.mrb[4].mxu1 %vm259_vm3, %v1135_v59  ;;  %v837_v0 = vpop.permute.xlu1 %836 }
 0x260   :  { %v928_v1 = vmul.f32 %v1147_v61, %v923_v63  ;;  %1211 = vmatpush3.msk.msra.mxu1 %vm263_vm2, %v756_v57  ;;  %v842_v2 = vmul.f32 %v841_v60, %v837_v0  ;;  %1208 = vmatmul.mubr.msk.f32.vlgmr.msra.gmra.mrb[6].mxu0 %vm259_vm3, %v1138_v62 }
 0x261   :  { %1215 = vmatprep.subr.mxu0 %v1420_v4  ;;  %1212 = vmatprep.mubr.msk.f32.mxu1 %vm1421_vm0, %v1420_v4 }
 0x262   :  { %1216 = vmatpush3.msk.msra.mxu0 %vm263_vm2, %v842_v2  ;;  %1220 = vmatprep.subr.mxu1 %v1420_v4 }
 0x263   :  { %1213 = vmatmul.mubr.msk.f32.vlgmr.msra.gmra.mrb[6].mxu1 %vm259_vm3, %v1141_v3  ;;  %1217 = vmatprep.mubr.msk.f32.mxu0 %vm1421_vm0, %v1420_v4 }
 0x264   :  { %1221 = vmatpush3.msk.msra.mxu1 %vm263_vm2, %v928_v1  ;;  %1218 = vmatmul.mubr.msk.f32.vlgmr.msra.gmra.mrb[8].mxu0 %vm259_vm3, %v1144_v5 }
 0x265   :  { %1222 = vmatprep.mubr.msk.f32.mxu1 %vm1421_vm0, %v1420_v4  ;;  %1225 = vmatprep.subr.mxu0 %v1420_v4 }
 0x266   :  { %1227 = vmatprep.mubr.msk.f32.mxu0 %vm1421_vm0, %v1420_v4 }
 0x267   :  { %1223 = vmatmul.mubr.msk.f32.vlgmr.msra.gmra.mrb[8].mxu1 %vm259_vm3, %v1148_v6 }
 0x270   :  { %v1012_v30 = vpop.permute.xlu1 %1011  ;;  %v1019_v35 = vpop.permute.xlu0 %1018 }
 0x274   :  { %v1026_v37 = vpop.permute.xlu1 %1025  ;;  %v1035_v41 = vpop.permute.xlu0 %1034 }
 0x32a   :  { %v333_v7 = vpop.f32.mrb[0].mxu1  ;;  %v409_v9 = vpop.f32.mrb[2].mxu0 }
 0x32b   :  { %v410_v10 = vadd.f32 %v409_v9, %v333_v7  ;;  %v1184_v11 = vpop.f32.mrb[1].mxu1  ;;  %v1189_v12 = vpop.f32.mrb[3].mxu0 }
 0x32e   :  { %v494_v13 = vpop.f32.mrb[2].mxu1 }
 0x32f   :  { %v498_v14 = vadd.f32 %v494_v13, %v410_v10  ;;  %v1194_v15 = vpop.f32.mrb[3].mxu1  ;;  %v580_v16 = vpop.f32.mrb[4].mxu0 }
 0x330   :  { %v1199_v17 = vpop.f32.mrb[5].mxu0 }
 0x331   :  { %v584_v18 = vadd.f32 %v580_v16, %v498_v14 }
 0x332   :  { %v659_v19 = vpop.f32.mrb[4].mxu1 }
 0x333   :  { %v663_v20 = vadd.f32 %v659_v19, %v584_v18  ;;  %v1204_v21 = vpop.f32.mrb[5].mxu1  ;;  %v745_v22 = vpop.f32.mrb[6].mxu0 }
 0x334   :  { %v1209_v23 = vpop.f32.mrb[7].mxu0 }
 0x335   :  { %v749_v24 = vadd.f32 %v745_v22, %v663_v20 }
 0x336   :  { %v831_v4 = vpop.f32.mrb[6].mxu1 }
 0x337   :  { %v835_v25 = vadd.f32 %v831_v4, %v749_v24  ;;  %v1214_v26 = vpop.f32.mrb[7].mxu1  ;;  %v917_v27 = vpop.f32.mrb[8].mxu0 }
 0x338   :  { %v1219_v28 = vpop.f32.mrb[9].mxu0 }
 0x339   :  { %v921_v29 = vadd.f32 %v917_v27, %v835_v25 }
 0x33a   :  { %v1003_v31 = vpop.f32.mrb[8].mxu1 }
 0x33b   :  { %v1007_v32 = vadd.f32 %v1003_v31, %v921_v29  ;;  %v1224_v33 = vpop.f32.mrb[9].mxu1 }
 0x33d   :  { %v1014_v34 = vadd.f32 %v1012_v30, %v1007_v32 }
 0x33f   :  { %v1021_v36 = vmul.f32 %v1019_v35, %v1014_v34 }
 0x341   :  { %v1028_v38 = vadd.f32 %v1026_v37, %v1021_v36 }
 0x343   :  { %v1029_v39 = vmax.f32 %v1028_v38, 0.0 }
 0x345   :  { %1226 = vmatpush3.msk.msra.mxu0 %vm263_vm2, %v1029_v39 }
 0x346   :  { %1228 = vmatmul.mubr.msk.f32.vlgmr.msra.gmra.mrb[10].mxu0 %vm259_vm3, %v1030_v40 }
 0x419   :  { %v1109_v42 = vpop.f32.mrb[10].mxu0 }
 0x41a   :  { %v1110_v43 = vadd.f32 %v1109_v42, %v1035_v41  ;;  %v1229_v44 = vpop.f32.mrb[11].mxu0 }
 0x41c   :  { %v1113_v45 = vadd.f32 %v1110_v43, %v1604_v8 }
 0x41e   :  { %1114 = vst [vmem:[%s1722_s14] sm:$0xff] %v1113_v45 }
 0x41f   :  { %1119 = vsyncpa [#allocation3], 1 }
 0x420   :  { %1120 = vsyncpa [#allocation5], 1 }
 0x421   :  { %1121 = vsyncpa [#allocation8], 1 }
 0x422   :  { %1122 = vsyncpa [#allocation11], 1 }

// kernel: run.21
= control target key start
LH: loop header
LB: loop body
LE: loop exit
PB: predicated region body
PF: predicated region fallthrough
CT: control target
= control target key end

     0   :  { %19 = vsyncpa [#allocation3], 0  ;;  %s1572_s0 = inlined_call_operand.vmem [shape: f32[8,128], index: 0, kind: input, shape index: {}]   ;;  %s1573_s1 = inlined_call_operand.vmem [shape: f32[9,128], index: 1, kind: input, shape index: {}]   ;;  %s1574_s2 = inlined_call_operand.vmem [shape: f32[8,1], index: 2, kind: input, shape index: {}]   ;;  %s1575_s3 = inlined_call_operand.vmem [shape: f32[8,1], index: 3, kind: input, shape index: {}]   ;;  %s1576_s4 = inlined_call_operand.vmem [shape: f32[4,8], index: 4, kind: input, shape index: {}]   ;;  %s1577_s5 = inlined_call_operand.vmem [shape: f32[4,1], index: 5, kind: input, shape index: {}]   ;;  %s1578_s6 = inlined_call_operand.vmem [shape: f32[4,1], index: 6, kind: input, shape index: {}]   ;;  %s1579_s7 = inlined_call_operand.hbm [shape: f32[4,1], index: 7, kind: input, shape index: {}]   ;;  %s1580_s8 = inlined_call_operand.vmem [shape: f32[9,4,4], index: 8, kind: input, shape index: {}]   ;;  %s1581_s9 = inlined_call_operand.hbm [shape: f32[4,1], index: 9, kind: input, shape index: {}]   ;;  %s1582_s10 = inlined_call_operand.hbm [shape: f32[4,1], index: 10, kind: input, shape index: {}]   ;;  %s1583_s11 = inlined_call_operand.hbm [shape: f32[4,1], index: 11, kind: input, shape index: {}]   ;;  %s1584_s12 = inlined_call_operand.vmem [shape: f32[8,4], index: 12, kind: input, shape index: {}]   ;;  %s1585_s13 = inlined_call_operand.vmem [shape: f32[8,1], index: 13, kind: input, shape index: {}]   ;;  %s1586_s14 = inlined_call_operand.vmem [shape: f32[8,128], index: 14, kind: output, shape index: {}]  }
   0x1   :  { %20 = vsyncpa [#allocation5], 0 }
   0x2   :  { %21 = vsyncpa [#allocation8], 0  ;;  %s1306_s29 = smov [#allocation4]   ;;  %s1307_s15 = smov [#allocation2]  }
   0x3   :  { %s54_s30 = sshll.u32 %s1306_s29, 4  ;;  %s42_s16 = sshll.u32 %s1307_s15, 4  ;;  %s55_s30 = int_to_ptr.vmem [resolvable:$true] %s54_s30  ;;  %s43_s16 = int_to_ptr.vmem [resolvable:$true] %s42_s16 }
   0x4   :  { %s1212_s19 = scalar_lea.hbm %s1581_s9, 64 }
   0x5   :  { %p1213_p0 = scmp.ne.s32.totalorder %s1581_s9, %s1212_s19  ;;  %p1216_p1 = scmp.lt.u32.totalorder %s1212_s19, %s1581_s9 }
   0x7   :  { %p1218_p2 = pnand %p1216_p1, %p1213_p0 }
   0x9   :  { %1221 = shalt.err (!%p1218_p2)
}
   0xa   :  { %s1222_s24 = scalar_lea.vmem %s55_s30, 64  ;;  %p1227_p4 = scmp.lt.s32.totalorder %s55_s30, %s55_s30 }
   0xb   :  { %p1223_p3 = scmp.ne.s32.totalorder %s55_s30, %s1222_s24  ;;  %p1228_p5 = scmp.lt.s32.totalorder %s1222_s24, %s1222_s24 }
   0xd   :  { %p1229_p6 = por %p1228_p5, %p1227_p4 }
   0xf   :  { %p1230_p7 = pnand %p1229_p6, %p1223_p3 }
  0x11   :  { %1233 = shalt.err (!%p1230_p7)
}
  0x12   :  { %57 = dma.hbm_to_vmem [thread:$0]  %s1581_s9, 64, %s55_s30, [#allocation5]  }
  0x13   :  { %s1234_s29 = scalar_lea.hbm %s1579_s7, 64 }
  0x14   :  { %p1235_p8 = scmp.ne.s32.totalorder %s1579_s7, %s1234_s29  ;;  %p1238_p9 = scmp.lt.u32.totalorder %s1234_s29, %s1579_s7 }
  0x16   :  { %p1240_p10 = pnand %p1238_p9, %p1235_p8 }
  0x18   :  { %1243 = shalt.err (!%p1240_p10)
}
  0x19   :  { %s1244_s20 = scalar_lea.vmem %s43_s16, 64  ;;  %p1249_p12 = scmp.lt.s32.totalorder %s43_s16, %s43_s16 }
  0x1a   :  { %p1245_p11 = scmp.ne.s32.totalorder %s43_s16, %s1244_s20  ;;  %p1250_p13 = scmp.lt.s32.totalorder %s1244_s20, %s1244_s20 }
  0x1c   :  { %p1251_p0 = por %p1250_p13, %p1249_p12 }
  0x1e   :  { %p1252_p1 = pnand %p1251_p0, %p1245_p11 }
  0x20   :  { %1255 = shalt.err (!%p1252_p1)
}
  0x21   :  { %45 = dma.hbm_to_vmem [thread:$0]  %s1579_s7, 64, %s43_s16, [#allocation3]  }
  0x22   :  { %s1308_s21 = smov [#allocation6]   ;;  %s1309_s23 = smov [#allocation7]  }
  0x23   :  { %s64_s22 = sshll.u32 %s1308_s21, 4  ;;  %s74_s24 = sshll.u32 %s1309_s23, 4  ;;  %s65_s22 = int_to_ptr.vmem [resolvable:$true] %s64_s22  ;;  %s75_s24 = int_to_ptr.vmem [resolvable:$true] %s74_s24 }
  0x24   :  { %s1256_s27 = scalar_lea.hbm %s1582_s10, 64 }
  0x25   :  { %p1257_p2 = scmp.ne.s32.totalorder %s1582_s10, %s1256_s27  ;;  %p1260_p3 = scmp.lt.u32.totalorder %s1256_s27, %s1582_s10 }
  0x27   :  { %p1262_p4 = pnand %p1260_p3, %p1257_p2 }
  0x29   :  { %1265 = shalt.err (!%p1262_p4)
}
  0x2a   :  { %s1266_s7 = scalar_lea.vmem %s65_s22, 64  ;;  %p1271_p6 = scmp.lt.s32.totalorder %s65_s22, %s65_s22 }
  0x2b   :  { %p1267_p5 = scmp.ne.s32.totalorder %s65_s22, %s1266_s7  ;;  %p1272_p7 = scmp.lt.s32.totalorder %s1266_s7, %s1266_s7 }
  0x2d   :  { %p1273_p8 = por %p1272_p7, %p1271_p6 }
  0x2f   :  { %p1274_p9 = pnand %p1273_p8, %p1267_p5 }
  0x31   :  { %1277 = shalt.err (!%p1274_p9)
}
  0x32   :  { %67 = dma.hbm_to_vmem [thread:$0]  %s1582_s10, 64, %s65_s22, [#allocation5]  }
  0x33   :  { %s1278_s9 = scalar_lea.hbm %s1583_s11, 64 }
  0x34   :  { %p1279_p10 = scmp.ne.s32.totalorder %s1583_s11, %s1278_s9  ;;  %p1282_p11 = scmp.lt.u32.totalorder %s1278_s9, %s1583_s11 }
  0x36   :  { %p1284_p12 = pnand %p1282_p11, %p1279_p10 }
  0x38   :  { %1287 = shalt.err (!%p1284_p12)
}
  0x39   :  { %s1288_s26 = scalar_lea.vmem %s75_s24, 64  ;;  %p1293_p0 = scmp.lt.s32.totalorder %s75_s24, %s75_s24 }
  0x3a   :  { %p1289_p13 = scmp.ne.s32.totalorder %s75_s24, %s1288_s26  ;;  %p1294_p1 = scmp.lt.s32.totalorder %s1288_s26, %s1288_s26 }
  0x3c   :  { %p1295_p2 = por %p1294_p1, %p1293_p0 }
  0x3e   :  { %p1296_p3 = pnand %p1295_p2, %p1289_p13 }
  0x40   :  { %1299 = shalt.err (!%p1296_p3)
}
  0x41   :  { %77 = dma.hbm_to_vmem [thread:$0]  %s1583_s11, 64, %s75_s24, [#allocation8]  }
  0x42   :  { %1300 = dma.done.wait [#allocation3], 64  }
  0x43   :  { %1301 = vsyncadd [#allocation3], 4294967232 }
  0x44   :  { %1302 = dma.done.wait [#allocation5], 128  }
  0x45   :  { %1303 = vsyncadd [#allocation5], 4294967168 }
  0x46   :  { %1304 = dma.done.wait [#allocation8], 64  }
  0x47   :  { %1305 = vsyncadd [#allocation8], 4294967232  ;;  %v1310_v0 = vmov 0   ;;  %v95_v1 = vld [vmem:[%s1574_s2] sm:$0xff]  ;;  %v1311_v4 = vmov 0.0   ;;  %vm1312_vm0 = vmmov 0   ;;  %v210_v27 = vlaneseq }
  0x48   :  { %1210 = vset.pattern.permute.xlu0 %v1310_v0  ;;  %1211 = vset.pattern.permute.xlu1 %v1310_v0  ;;  %v102_v2 = vld [vmem:[%s1575_s3] sm:$0xff]  ;;  %vm117_vm1 = vcmask 64512   ;;  %s1316_s18 = smov 7   ;;  %s1317_s19 = smov 121   ;;  %v981_v23 = vld [vmem:[#allocation6] sm:$0xf] }
  0x49   :  { %98 = vperm.xlu0 %1210, %v95_v1   ;;  %v198_v3 = vld [vmem:[#allocation2] sm:$0xf]  ;;  %1140 = vmatprep.subr.mxu0 %v1311_v4  ;;  %s1318_s20 = smov 127   ;;  %s1319_s9 = smov 119   ;;  %v974_v24 = vld [vmem:[#allocation4] sm:$0xf] }
  0x4a   :  { %1145 = vmatprep.subr.mxu1 %v1311_v4  ;;  %1142 = vmatprep.mubr.msk.f32.mxu0 %vm1312_vm0, %v1311_v4  ;;  %v111_v5 = vld [vmem:[%s1577_s5] sm:$0xf]  ;;  %s1320_s30 = smov 120   ;;  %v988_v26 = vld [vmem:[#allocation7] sm:$0xf]  ;;  %v211_v28 = vshrl.u32 %v210_v27, 7 }
  0x4b   :  { %1147 = vmatprep.mubr.msk.f32.mxu1 %vm1312_vm0, %v1311_v4  ;;  %114 = vperm.xlu1 %1211, %v111_v5   ;;  %v191_v6 = vld [vmem:[%s1578_s6] sm:$0xf]  ;;  %s1315_s6 = smov 1   ;;  %vm229_vm2 = vcmask 1043456   ;;  %vm225_vm3 = vcmask 31744  }
  0x4c   :  { %v1465_v8 = vld [vmem:[%s1572_s0] sm:$0xff]  ;;  %s1313_s0 = smov 9   ;;  %v212_v29 = vsub.s32 0, %v211_v28  ;;  %v220_v30 = vsub.s32 1, %v211_v28  ;;  %v469_v32 = vsub.s32 3, %v211_v28  ;;  %v383_v35 = vsub.s32 2, %v211_v28 }
  0x4d   :  { %105 = vperm.xlu0 %1210, %v102_v2   ;;  %v110_v13 = vld [vmem:[%s1576_s4] sm:$0xf]  ;;  %s1314_s4 = smov 8   ;;  %v720_v39 = vsub.s32 6, %v211_v28  ;;  %v1089_v43 = vld [vmem:[%s1580_s8 + $0x4] sm:$0xf] }
  0x4e   :  { %v997_v25 = vld [vmem:[%s1585_s13] sm:$0xff]  ;;  %v634_v45 = vsub.s32 5, %v211_v28  ;;  %v1094_v51 = vld [vmem:[%s1580_s8 + $0x8] sm:$0xf]  ;;  %v806_v53 = vsub.s32 7, %v211_v28 }
  0x4f   :  { %194 = vperm.xlu1 %1211, %v191_v6   ;;  %v206_v31 = vld [vmem:[%s1573_s1] sm:$0xff]  ;;  %v1097_v54 = vld [vmem:[%s1580_s8 + $0xc] sm:$0xf]  ;;  %v1100_v59 = vld [vmem:[%s1580_s8 + $0x10] sm:$0xf] }
  0x50   :  { %v213_v33 = vrot.slane %v206_v31, %v212_v29  ;;  %v221_v34 = vrot.slane %v206_v31, %v220_v30  ;;  %v470_v38 = vrot.slane %v206_v31, %v469_v32  ;;  %v215_v42 = vld [vmem:[%s1580_s8] sm:$0xf]  ;;  %v384_v44 = vrot.slane %v206_v31, %v383_v35  ;;  %v1112_v61 = vld [vmem:[%s1573_s1 + $0x8] ss:$0 sm:$0xff]  ;;  %v1103_v62 = vld [vmem:[%s1580_s8 + $0x14] sm:$0xf] }
  0x51   :  { %201 = vperm.xlu0 %1210, %v198_v3   ;;  %v721_v48 = vrot.slane %v206_v31, %v720_v39  ;;  %v635_v52 = vrot.slane %v206_v31, %v634_v45  ;;  %v807_v60 = vrot.slane %v206_v31, %v806_v53  ;;  %v1106_v3 = vld [vmem:[%s1580_s8 + $0x18] sm:$0xf]  ;;  %v1109_v5 = vld [vmem:[%s1580_s8 + $0x1c] sm:$0xf]  ;;  %v1113_v6 = vld [vmem:[%s1580_s8 + $0x20] sm:$0xf] }
  0xc8   :  { %v99_v7 = vpop.permute.xlu0 %98 }
  0xc9   :  { %v101_v9 = vmul.f32 %v99_v7, %v1465_v8 }
  0xca   :  { %v115_v14 = vpop.permute.xlu1 %114 }
  0xcc   :  { %v106_v10 = vpop.permute.xlu0 %105 }
  0xcd   :  { %v108_v11 = vadd.f32 %v106_v10, %v101_v9 }
  0xce   :  { %v195_v18 = vpop.permute.xlu1 %194 }
  0xcf   :  { %v109_v12 = vmax.f32 %v108_v11, 0.0 }
  0xd0   :  { %v202_v20 = vpop.permute.xlu0 %201 }
  0xd1   :  { %1141 = vmatpush3.msra.mxu0 %v109_v12 }
  0xd2   :  { %1143 = vmatmul.mubr.msk.f32.vlgmr.msra.gmra.mrb[0].mxu0 %vm117_vm1, %v110_v13  ;;  %1150 = vmatprep.subr.mxu0 %v1311_v4 }
  0xd3   :  { %1152 = vmatprep.mubr.msk.f32.mxu0 %vm1312_vm0, %v1311_v4 }
 0x1a5   :  { %v187_v15 = vpop.f32.mrb[0].mxu0 }
 0x1a6   :  { %v188_v16 = vadd.f32 %v187_v15, %v115_v14  ;;  %v1144_v17 = vpop.f32.mrb[1].mxu0 }
 0x1a8   :  { %v197_v19 = vmul.f32 %v195_v18, %v188_v16 }
 0x1aa   :  { %v204_v21 = vadd.f32 %v202_v20, %v197_v19 }
 0x1ac   :  { %v1474_v22 = vmax.f32 %v204_v21, 0.0 }
 0x1ae   :  { %208 = vrot.lane.b32.xlu0 %v1474_v22, %s1313_s0  ;;  %216 = vrot.lane.b32.xlu1 %v1474_v22, %s1314_s4 }
 0x1b2   :  { %465 = vrot.lane.b32.xlu0 %v1474_v22, %s1315_s6  ;;  %379 = vrot.lane.b32.xlu1 %v1474_v22, %s1316_s18 }
 0x1b6   :  { %716 = vrot.lane.b32.xlu0 %v1474_v22, %s1317_s19  ;;  %630 = vrot.lane.b32.xlu1 %v1474_v22, %s1318_s20 }
 0x1ba   :  { %888 = vrot.lane.b32.xlu0 %v1474_v22, %s1319_s9  ;;  %802 = vrot.lane.b32.xlu1 %v1474_v22, %s1320_s30 }
 0x1be   :  { %984 = vperm.xlu0 %1210, %v981_v23   ;;  %977 = vperm.xlu1 %1211, %v974_v24  }
 0x1c2   :  { %1000 = vperm.xlu0 %1210, %v997_v25   ;;  %991 = vperm.xlu1 %1211, %v988_v26  }
 0x220   :  { %v209_v36 = vpop.permute.xlu0 %208  ;;  %v217_v37 = vpop.permute.xlu1 %216 }
 0x221   :  { %v214_v40 = vmul.f32 %v213_v33, %v209_v36  ;;  %v222_v41 = vmul.f32 %v221_v34, %v217_v37 }
 0x223   :  { %1146 = vmatpush3.msk.msra.mxu1 %vm229_vm2, %v222_v41  ;;  %1151 = vmatpush3.msk.msra.mxu0 %vm229_vm2, %v214_v40  ;;  %v996_v40 = vld [vmem:[%s1584_s12] sm:$0xff] }
 0x224   :  { %1153 = vmatmul.mubr.msk.f32.vlgmr.msra.gmra.mrb[2].mxu0 %vm225_vm3, %v215_v42  ;;  %v466_v46 = vpop.permute.xlu0 %465  ;;  %1148 = vmatmul.mubr.msk.f32.vlgmr.msra.gmra.mrb[0].mxu1 %vm225_vm3, %v1089_v43  ;;  %v380_v47 = vpop.permute.xlu1 %379 }
 0x225   :  { %v471_v49 = vmul.f32 %v470_v38, %v466_v46  ;;  %v385_v50 = vmul.f32 %v384_v44, %v380_v47  ;;  %1155 = vmatprep.subr.mxu1 %v1311_v4  ;;  %1160 = vmatprep.subr.mxu0 %v1311_v4 }
 0x226   :  { %1157 = vmatprep.mubr.msk.f32.mxu1 %vm1312_vm0, %v1311_v4  ;;  %1162 = vmatprep.mubr.msk.f32.mxu0 %vm1312_vm0, %v1311_v4 }
 0x227   :  { %1156 = vmatpush3.msk.msra.mxu1 %vm229_vm2, %v385_v50  ;;  %1161 = vmatpush3.msk.msra.mxu0 %vm229_vm2, %v471_v49 }
 0x228   :  { %v717_v55 = vpop.permute.xlu0 %716  ;;  %1158 = vmatmul.mubr.msk.f32.vlgmr.msra.gmra.mrb[2].mxu1 %vm225_vm3, %v1094_v51  ;;  %1165 = vmatprep.subr.mxu1 %v1311_v4  ;;  %v631_v56 = vpop.permute.xlu1 %630 }
 0x229   :  { %v722_v57 = vmul.f32 %v721_v48, %v717_v55  ;;  %v636_v58 = vmul.f32 %v635_v52, %v631_v56  ;;  %1163 = vmatmul.mubr.msk.f32.vlgmr.msra.gmra.mrb[4].mxu0 %vm225_vm3, %v1097_v54  ;;  %1166 = vmatpush3.msk.msra.mxu1 %vm229_vm2, %v1474_v22 }
 0x22a   :  { %1170 = vmatprep.subr.mxu0 %v1311_v4  ;;  %1167 = vmatprep.mubr.msk.f32.mxu1 %vm1312_vm0, %v1311_v4 }
 0x22b   :  { %1171 = vmatpush3.msk.msra.mxu0 %vm229_vm2, %v636_v58  ;;  %1175 = vmatprep.subr.mxu1 %v1311_v4 }
 0x22c   :  { %1172 = vmatprep.mubr.msk.f32.mxu0 %vm1312_vm0, %v1311_v4  ;;  %v889_v63 = vpop.permute.xlu0 %888  ;;  %1168 = vmatmul.mubr.msk.f32.vlgmr.msra.gmra.mrb[4].mxu1 %vm225_vm3, %v1100_v59  ;;  %v803_v0 = vpop.permute.xlu1 %802 }
 0x22d   :  { %v894_v1 = vmul.f32 %v1112_v61, %v889_v63  ;;  %1176 = vmatpush3.msk.msra.mxu1 %vm229_vm2, %v722_v57  ;;  %v808_v2 = vmul.f32 %v807_v60, %v803_v0  ;;  %1173 = vmatmul.mubr.msk.f32.vlgmr.msra.gmra.mrb[6].mxu0 %vm225_vm3, %v1103_v62 }
 0x22e   :  { %1180 = vmatprep.subr.mxu0 %v1311_v4  ;;  %1177 = vmatprep.mubr.msk.f32.mxu1 %vm1312_vm0, %v1311_v4 }
 0x22f   :  { %1181 = vmatpush3.msk.msra.mxu0 %vm229_vm2, %v808_v2  ;;  %1185 = vmatprep.subr.mxu1 %v1311_v4 }
 0x230   :  { %1178 = vmatmul.mubr.msk.f32.vlgmr.msra.gmra.mrb[6].mxu1 %vm225_vm3, %v1106_v3  ;;  %1182 = vmatprep.mubr.msk.f32.mxu0 %vm1312_vm0, %v1311_v4 }
 0x231   :  { %1186 = vmatpush3.msk.msra.mxu1 %vm229_vm2, %v894_v1  ;;  %1183 = vmatmul.mubr.msk.f32.vlgmr.msra.gmra.mrb[8].mxu0 %vm225_vm3, %v1109_v5 }
 0x232   :  { %1187 = vmatprep.mubr.msk.f32.mxu1 %vm1312_vm0, %v1311_v4  ;;  %1190 = vmatprep.subr.mxu0 %v1311_v4 }
 0x233   :  { %1192 = vmatprep.mubr.msk.f32.mxu0 %vm1312_vm0, %v1311_v4 }
 0x234   :  { %1188 = vmatmul.mubr.msk.f32.vlgmr.msra.gmra.mrb[8].mxu1 %vm225_vm3, %v1113_v6 }
 0x23d   :  { %v978_v30 = vpop.permute.xlu1 %977  ;;  %v985_v35 = vpop.permute.xlu0 %984 }
 0x241   :  { %v992_v37 = vpop.permute.xlu1 %991  ;;  %v1001_v41 = vpop.permute.xlu0 %1000 }
 0x2f7   :  { %v299_v7 = vpop.f32.mrb[0].mxu1  ;;  %v375_v9 = vpop.f32.mrb[2].mxu0 }
 0x2f8   :  { %v376_v10 = vadd.f32 %v375_v9, %v299_v7  ;;  %v1149_v11 = vpop.f32.mrb[1].mxu1  ;;  %v1154_v12 = vpop.f32.mrb[3].mxu0 }
 0x2fb   :  { %v460_v13 = vpop.f32.mrb[2].mxu1 }
 0x2fc   :  { %v464_v14 = vadd.f32 %v460_v13, %v376_v10  ;;  %v1159_v15 = vpop.f32.mrb[3].mxu1  ;;  %v546_v16 = vpop.f32.mrb[4].mxu0 }
 0x2fd   :  { %v1164_v17 = vpop.f32.mrb[5].mxu0 }
 0x2fe   :  { %v550_v18 = vadd.f32 %v546_v16, %v464_v14 }
 0x2ff   :  { %v625_v19 = vpop.f32.mrb[4].mxu1 }
 0x300   :  { %v629_v20 = vadd.f32 %v625_v19, %v550_v18  ;;  %v1169_v21 = vpop.f32.mrb[5].mxu1  ;;  %v711_v22 = vpop.f32.mrb[6].mxu0 }
 0x301   :  { %v1174_v23 = vpop.f32.mrb[7].mxu0 }
 0x302   :  { %v715_v24 = vadd.f32 %v711_v22, %v629_v20 }
 0x303   :  { %v797_v4 = vpop.f32.mrb[6].mxu1 }
 0x304   :  { %v801_v25 = vadd.f32 %v797_v4, %v715_v24  ;;  %v1179_v26 = vpop.f32.mrb[7].mxu1  ;;  %v883_v27 = vpop.f32.mrb[8].mxu0 }
 0x305   :  { %v1184_v28 = vpop.f32.mrb[9].mxu0 }
 0x306   :  { %v887_v29 = vadd.f32 %v883_v27, %v801_v25 }
 0x307   :  { %v969_v31 = vpop.f32.mrb[8].mxu1 }
 0x308   :  { %v973_v32 = vadd.f32 %v969_v31, %v887_v29  ;;  %v1189_v33 = vpop.f32.mrb[9].mxu1 }
 0x30a   :  { %v980_v34 = vadd.f32 %v978_v30, %v973_v32 }
 0x30c   :  { %v987_v36 = vmul.f32 %v985_v35, %v980_v34 }
 0x30e   :  { %v994_v38 = vadd.f32 %v992_v37, %v987_v36 }
 0x310   :  { %v995_v39 = vmax.f32 %v994_v38, 0.0 }
 0x312   :  { %1191 = vmatpush3.msk.msra.mxu0 %vm229_vm2, %v995_v39 }
 0x313   :  { %1193 = vmatmul.mubr.msk.f32.vlgmr.msra.gmra.mrb[10].mxu0 %vm225_vm3, %v996_v40 }
 0x3e6   :  { %v1075_v42 = vpop.f32.mrb[10].mxu0 }
 0x3e7   :  { %v1076_v43 = vadd.f32 %v1075_v42, %v1001_v41  ;;  %v1194_v44 = vpop.f32.mrb[11].mxu0 }
 0x3e9   :  { %v1079_v45 = vadd.f32 %v1076_v43, %v1465_v8 }
 0x3eb   :  { %1080 = vst [vmem:[%s1586_s14] sm:$0xff] %v1079_v45 }
 0x3ec   :  { %1085 = vsyncpa [#allocation3], 1 }
 0x3ed   :  { %1086 = vsyncpa [#allocation5], 1 }
 0x3ee   :  { %1087 = vsyncpa [#allocation8], 1 }

// kernel: run.22
= control target key start
LH: loop header
LB: loop body
LE: loop exit
PB: predicated region body
PF: predicated region fallthrough
CT: control target
= control target key end

     0   :  { %v183_v0 = vmov 0.0|0.0   ;;  %vm184_vm0 = vmmov 0   ;;  %v185_v4 = vmov 0.0   ;;  %vm98_vm1 = vcmask 261120   ;;  %s255_s1 = inlined_call_operand.vmem [shape: f32[128,32], index: 1, kind: input, shape index: {}]   ;;  %s256_s0 = inlined_call_operand.vmem [shape: f32[8,128], index: 0, kind: input, shape index: {}]   ;;  %s257_s2 = inlined_call_operand.vmem [shape: f32[8,32], index: 2, kind: output, shape index: {}]  }
   0x1   :  { %156 = vmatprep.subr.bf16.mxu0 %v183_v0  ;;  %v12_v1 = vld [vmem:[%s255_s1] sm:$0xff]  ;;  %v13_v2 = vld [vmem:[%s255_s1 + $0x8] sm:$0xff]  ;;  %v14_v3 = vld [vmem:[%s255_s1 + $0x10] sm:$0xff]  ;;  %153 = vmatprep.mubr.msk.f32.mxu0 %vm184_vm0, %v185_v4 }
   0x2   :  { %v157_v5 = vpack.c.bf16 %v13_v2, %v12_v1  ;;  %v15_v6 = vld [vmem:[%s255_s1 + $0x18] sm:$0xff]  ;;  %v16_v8 = vld [vmem:[%s255_s1 + $0x20] sm:$0xff]  ;;  %v17_v9 = vld [vmem:[%s255_s1 + $0x28] sm:$0xff] }
   0x3   :  { %v160_v7 = vpack.c.bf16 %v15_v6, %v14_v3  ;;  %v163_v10 = vpack.c.bf16 %v17_v9, %v16_v8  ;;  %v18_v11 = vld [vmem:[%s255_s1 + $0x30] sm:$0xff]  ;;  %v19_v12 = vld [vmem:[%s255_s1 + $0x38] sm:$0xff]  ;;  %v20_v14 = vld [vmem:[%s255_s1 + $0x40] sm:$0xff] }
   0x4   :  { %158 = vmatpush3.bf16.msra.mxu0 %v157_v5  ;;  %v166_v13 = vpack.c.bf16 %v19_v12, %v18_v11  ;;  %v21_v15 = vld [vmem:[%s255_s1 + $0x48] sm:$0xff]  ;;  %v22_v17 = vld [vmem:[%s255_s1 + $0x50] sm:$0xff]  ;;  %v23_v18 = vld [vmem:[%s255_s1 + $0x58] sm:$0xff] }
   0x5   :  { %159 = vmatprep.subr.bf16.mxu0 %v183_v0  ;;  %v169_v16 = vpack.c.bf16 %v21_v15, %v20_v14  ;;  %v172_v19 = vpack.c.bf16 %v23_v18, %v22_v17  ;;  %v24_v20 = vld [vmem:[%s255_s1 + $0x60] sm:$0xff]  ;;  %v25_v21 = vld [vmem:[%s255_s1 + $0x68] sm:$0xff]  ;;  %v26_v23 = vld [vmem:[%s255_s1 + $0x70] sm:$0xff] }
   0x6   :  { %v175_v22 = vpack.c.bf16 %v25_v21, %v24_v20  ;;  %v27_v24 = vld [vmem:[%s255_s1 + $0x78] sm:$0xff]  ;;  %v11_v26 = vld [vmem:[%s256_s0] sm:$0xff] }
   0x7   :  { %v178_v25 = vpack.c.bf16 %v27_v24, %v26_v23 }
   0x8   :  { %161 = vmatpush3.bf16.msra.mxu0 %v160_v7 }
   0x9   :  { %162 = vmatprep.subr.bf16.mxu0 %v183_v0 }
   0xc   :  { %164 = vmatpush3.bf16.msra.mxu0 %v163_v10 }
   0xd   :  { %165 = vmatprep.subr.bf16.mxu0 %v183_v0 }
  0x10   :  { %167 = vmatpush3.bf16.msra.mxu0 %v166_v13 }
  0x11   :  { %168 = vmatprep.subr.bf16.mxu0 %v183_v0 }
  0x14   :  { %170 = vmatpush3.bf16.msra.mxu0 %v169_v16 }
  0x15   :  { %171 = vmatprep.subr.bf16.mxu0 %v183_v0 }
  0x18   :  { %173 = vmatpush3.bf16.msra.mxu0 %v172_v19 }
  0x19   :  { %174 = vmatprep.subr.bf16.mxu0 %v183_v0 }
  0x1c   :  { %176 = vmatpush3.bf16.msra.mxu0 %v175_v22 }
  0x1d   :  { %177 = vmatprep.subr.bf16.mxu0 %v183_v0 }
  0x20   :  { %179 = vmatpush3.bf16.msra.mxu0 %v178_v25 }
  0x23   :  { %154 = vmatmul.mubr.f32.vlgmr.msra.gmra.mrb[0].mxu0 %v11_v26 }
  0xf6   :  { %v94_v27 = vpop.f32.mrb[0].mxu0 }
  0xf7   :  { %99 = vst.msk [vmem:[%s257_s2] sm:$0xff] %vm98_vm1, %v94_v27  ;;  %v155_v28 = vpop.f32.mrb[1].mxu0 }

// kernel: run.26
= control target key start
LH: loop header
LB: loop body
LE: loop exit
PB: predicated region body
PF: predicated region fallthrough
CT: control target
= control target key end

     0   :  { %v140_v0 = vmov 0   ;;  %v141_v3 = vmov 0.0   ;;  %vm142_vm0 = vmmov 0   ;;  %vm46_vm1 = vcmask 64512   ;;  %s199_s2 = inlined_call_operand.vmem [shape: f32[8,1], index: 2, kind: input, shape index: {}]   ;;  %s200_s3 = inlined_call_operand.vmem [shape: f32[8,1], index: 3, kind: input, shape index: {}]   ;;  %s201_s5 = inlined_call_operand.vmem [shape: f32[4,1], index: 5, kind: input, shape index: {}]   ;;  %s202_s0 = inlined_call_operand.vmem [shape: f32[8,128], index: 0, kind: input, shape index: {}]   ;;  %s203_s4 = inlined_call_operand.vmem [shape: f32[4,8], index: 4, kind: input, shape index: {}]   ;;  %s204_s1 = inlined_call_operand.vmem [shape: f32[4,128], index: 1, kind: input, shape index: {}]   ;;  %s205_s6 = inlined_call_operand.vmem [shape: f32[4,128], index: 6, kind: output, shape index: {}]  }
   0x1   :  { %138 = vset.pattern.permute.xlu0 %v140_v0  ;;  %v24_v1 = vld [vmem:[%s199_s2] sm:$0xff]  ;;  %139 = vset.pattern.permute.xlu1 %v140_v0 }
   0x2   :  { %27 = vperm.xlu0 %138, %v24_v1   ;;  %v31_v2 = vld [vmem:[%s200_s3] sm:$0xff]  ;;  %130 = vmatprep.subr.mxu0 %v141_v3 }
   0x3   :  { %132 = vmatprep.mubr.msk.f32.mxu0 %vm142_vm0, %v141_v3  ;;  %v40_v4 = vld [vmem:[%s201_s5] sm:$0xf] }
   0x4   :  { %43 = vperm.xlu1 %139, %v40_v4   ;;  %v23_v6 = vld [vmem:[%s202_s0] sm:$0xff] }
   0x5   :  { %v39_v11 = vld [vmem:[%s203_s4] sm:$0xf] }
   0x6   :  { %34 = vperm.xlu0 %138, %v31_v2   ;;  %v120_v14 = vld [vmem:[%s204_s1] sm:$0xf] }
  0x81   :  { %v28_v5 = vpop.permute.xlu0 %27 }
  0x82   :  { %v30_v7 = vmul.f32 %v28_v5, %v23_v6 }
  0x83   :  { %v44_v12 = vpop.permute.xlu1 %43 }
  0x85   :  { %v35_v8 = vpop.permute.xlu0 %34 }
  0x86   :  { %v37_v9 = vadd.f32 %v35_v8, %v30_v7 }
  0x88   :  { %v38_v10 = vmax.f32 %v37_v9, 0.0 }
  0x8a   :  { %131 = vmatpush3.msra.mxu0 %v38_v10 }
  0x8b   :  { %133 = vmatmul.mubr.msk.f32.vlgmr.msra.gmra.mrb[0].mxu0 %vm46_vm1, %v39_v11 }
 0x15e   :  { %v116_v13 = vpop.f32.mrb[0].mxu0 }
 0x15f   :  { %v117_v15 = vadd.f32 %v116_v13, %v44_v12  ;;  %v134_v16 = vpop.f32.mrb[1].mxu0 }
 0x161   :  { %v121_v17 = vadd.f32 %v120_v14, %v117_v15 }
 0x163   :  { %122 = vst [vmem:[%s205_s6] sm:$0xf] %v121_v17 }

// kernel: run.23
= control target key start
LH: loop header
LB: loop body
LE: loop exit
PB: predicated region body
PF: predicated region fallthrough
CT: control target
= control target key end

     0   :  { %19 = vsyncpa [#allocation3], 0  ;;  %s2007_s29 = smov [#allocation2]   ;;  %s2384_s0 = inlined_call_operand.vmem [shape: f32[8,32], index: 0, kind: input, shape index: {}]   ;;  %s2385_s1 = inlined_call_operand.vmem [shape: f32[9,32,32], index: 1, kind: input, shape index: {}]   ;;  %s2386_s2 = inlined_call_operand.vmem [shape: f32[8,1], index: 2, kind: input, shape index: {}]   ;;  %s2387_s3 = inlined_call_operand.vmem [shape: f32[8,1], index: 3, kind: input, shape index: {}]   ;;  %s2388_s4 = inlined_call_operand.vmem [shape: f32[4,8], index: 4, kind: input, shape index: {}]   ;;  %s2389_s5 = inlined_call_operand.vmem [shape: f32[4,1], index: 5, kind: input, shape index: {}]   ;;  %s2390_s6 = inlined_call_operand.vmem [shape: f32[4,1], index: 6, kind: input, shape index: {}]   ;;  %s2391_s7 = inlined_call_operand.vmem [shape: f32[4,1], index: 7, kind: input, shape index: {}]   ;;  %s2392_s8 = inlined_call_operand.vmem [shape: f32[9,4,4], index: 8, kind: input, shape index: {}]   ;;  %s2393_s9 = inlined_call_operand.vmem [shape: f32[4,1], index: 9, kind: input, shape index: {}]   ;;  %s2394_s10 = inlined_call_operand.vmem [shape: f32[4,1], index: 10, kind: input, shape index: {}]   ;;  %s2395_s11 = inlined_call_operand.hbm [shape: f32[4,1], index: 11, kind: input, shape index: {}]   ;;  %s2396_s12 = inlined_call_operand.vmem [shape: f32[8,4], index: 12, kind: input, shape index: {}]   ;;  %s2397_s13 = inlined_call_operand.vmem [shape: f32[8,1], index: 13, kind: input, shape index: {}]   ;;  %s2398_s14 = inlined_call_operand.vmem [shape: f32[8,32], index: 14, kind: output, shape index: {}]  }
   0x1   :  { %s48_s30 = sshll.u32 %s2007_s29, 4  ;;  %s1983_s17 = scalar_lea.hbm %s2395_s11, 64  ;;  %s49_s30 = int_to_ptr.vmem [resolvable:$true] %s48_s30 }
   0x2   :  { %p1984_p0 = scmp.ne.s32.totalorder %s2395_s11, %s1983_s17  ;;  %p1987_p1 = scmp.lt.u32.totalorder %s1983_s17, %s2395_s11 }
   0x4   :  { %p1989_p2 = pnand %p1987_p1, %p1984_p0 }
   0x6   :  { %1992 = shalt.err (!%p1989_p2)
}
   0x7   :  { %s1993_s22 = scalar_lea.vmem %s49_s30, 64  ;;  %p1998_p4 = scmp.lt.s32.totalorder %s49_s30, %s49_s30 }
   0x8   :  { %p1994_p3 = scmp.ne.s32.totalorder %s49_s30, %s1993_s22  ;;  %p1999_p5 = scmp.lt.s32.totalorder %s1993_s22, %s1993_s22 }
   0xa   :  { %p2000_p6 = por %p1999_p5, %p1998_p4 }
   0xc   :  { %p2001_p7 = pnand %p2000_p6, %p1994_p3 }
   0xe   :  { %2004 = shalt.err (!%p2001_p7)
}
   0xf   :  { %51 = dma.hbm_to_vmem [thread:$0]  %s2395_s11, 64, %s49_s30, [#allocation3]  }
  0x10   :  { %2005 = dma.done.wait [#allocation3], 64  }
  0x11   :  { %2006 = vsyncadd [#allocation3], 4294967232  ;;  %v2008_v0 = vmov 0   ;;  %v60_v1 = vld [vmem:[%s2386_s2] sm:$0xff]  ;;  %v2009_v4 = vmov 0.0   ;;  %vm2010_vm0 = vmmov 0  }
  0x12   :  { %1981 = vset.pattern.permute.xlu0 %v2008_v0  ;;  %1982 = vset.pattern.permute.xlu1 %v2008_v0  ;;  %v67_v2 = vld [vmem:[%s2387_s3] sm:$0xff]  ;;  %vm82_vm1 = vcmask 64512   ;;  %v172_v19 = vld [vmem:[%s2385_s1 + $0x8] sm:$0xff]  ;;  %v2011_v23 = vmov 0.0|0.0   ;;  %v173_v25 = vld [vmem:[%s2385_s1 + $0x10] sm:$0xff]  ;;  %vm207_vm2 = vcmask 261120  }
  0x13   :  { %63 = vperm.xlu0 %1981, %v60_v1   ;;  %v163_v3 = vld [vmem:[%s2391_s7] sm:$0xf]  ;;  %1768 = vmatprep.subr.mxu0 %v2009_v4  ;;  %v176_v22 = vld [vmem:[%s2385_s1 + $0x28] sm:$0xff]  ;;  %v174_v26 = vld [vmem:[%s2385_s1 + $0x18] sm:$0xff]  ;;  %vm358_vm3 = vcmask 1043456   ;;  %vm354_vm4 = vcmask 31744  }
  0x14   :  { %1770 = vmatprep.mubr.msk.f32.mxu0 %vm2010_vm0, %v2009_v4  ;;  %v1558_v5 = vld [vmem:[%s2394_s10] sm:$0xf]  ;;  %1781 = vmatprep.mubr.msk.f32.mxu1 %vm2010_vm0, %v2009_v4  ;;  %v177_v27 = vld [vmem:[%s2385_s1 + $0x30] sm:$0xff]  ;;  %v1926_v28 = vpack.c.bf16 %v174_v26, %v173_v25  ;;  %v178_v29 = vld [vmem:[%s2385_s1 + $0x38] sm:$0xff] }
  0x15   :  { %v1574_v6 = vld [vmem:[%s2397_s13] sm:$0xff]  ;;  %1922 = vmatprep.subr.bf16.mxu1 %v2011_v23  ;;  %v1932_v30 = vpack.c.bf16 %v178_v29, %v177_v27  ;;  %v180_v41 = vld [vmem:[%s2385_s1 + $0x48] sm:$0xff]  ;;  %v181_v47 = vld [vmem:[%s2385_s1 + $0x50] sm:$0xff] }
  0x16   :  { %v76_v7 = vld [vmem:[%s2389_s5] sm:$0xf]  ;;  %v1666_v42 = vld [vmem:[%s2392_s8 + $0x4] sm:$0xf]  ;;  %v182_v48 = vld [vmem:[%s2385_s1 + $0x58] sm:$0xff] }
  0x17   :  { %70 = vperm.xlu0 %1981, %v67_v2   ;;  %79 = vperm.xlu1 %1982, %v76_v7   ;;  %v156_v8 = vld [vmem:[%s2390_s6] sm:$0xf]  ;;  %v1938_v51 = vpack.c.bf16 %v182_v48, %v181_v47  ;;  %v184_v58 = vld [vmem:[%s2385_s1 + $0x68] sm:$0xff]  ;;  %v185_v62 = vld [vmem:[%s2385_s1 + $0x70] sm:$0xff] }
  0x18   :  { %v1551_v9 = vld [vmem:[%s2393_s9] sm:$0xf]  ;;  %v1672_v59 = vld [vmem:[%s2392_s8 + $0x8] sm:$0xf]  ;;  %v186_v63 = vld [vmem:[%s2385_s1 + $0x78] sm:$0xff] }
  0x19   :  { %v1565_v10 = vld [vmem:[#allocation2] sm:$0xf]  ;;  %v1944_v1 = vpack.c.bf16 %v186_v63, %v185_v62  ;;  %v188_v7 = vld [vmem:[%s2385_s1 + $0x88] sm:$0xff]  ;;  %v193_v25 = vld [vmem:[%s2385_s1 + $0xb0] sm:$0xff] }
  0x1a   :  { %v2131_v12 = vld [vmem:[%s2384_s0] sm:$0xff]  ;;  %v194_v26 = vld [vmem:[%s2385_s1 + $0xb8] sm:$0xff]  ;;  %v205_v62 = vld [vmem:[%s2385_s1 + $0x110] sm:$0xff] }
  0x1b   :  { %166 = vperm.xlu0 %1981, %v163_v3   ;;  %159 = vperm.xlu1 %1982, %v156_v8   ;;  %v75_v17 = vld [vmem:[%s2388_s4] sm:$0xf]  ;;  %v1676_v8 = vld [vmem:[%s2392_s8 + $0xc] sm:$0xf]  ;;  %v1688_v47 = vld [vmem:[%s2392_s8 + $0x18] sm:$0xf] }
  0x1c   :  { %v171_v18 = vld [vmem:[%s2385_s1] sm:$0xff]  ;;  %v206_v63 = vld [vmem:[%s2385_s1 + $0x118] sm:$0xff] }
  0x1d   :  { %v175_v20 = vld [vmem:[%s2385_s1 + $0x20] sm:$0xff]  ;;  %v1923_v21 = vpack.c.bf16 %v172_v19, %v171_v18 }
  0x1e   :  { %v1929_v24 = vpack.c.bf16 %v176_v22, %v175_v20  ;;  %v179_v40 = vld [vmem:[%s2385_s1 + $0x40] sm:$0xff]  ;;  %v192_v20 = vld [vmem:[%s2385_s1 + $0xa8] sm:$0xff] }
  0x1f   :  { %1561 = vperm.xlu0 %1981, %v1558_v5   ;;  %1554 = vperm.xlu1 %1982, %v1551_v9   ;;  %v1935_v43 = vpack.c.bf16 %v180_v41, %v179_v40  ;;  %v281_v46 = vld [vmem:[%s2392_s8] sm:$0xf] }
  0x20   :  { %1924 = vmatpush3.bf16.msra.mxu1 %v1923_v21  ;;  %v183_v57 = vld [vmem:[%s2385_s1 + $0x60] sm:$0xff]  ;;  %v1680_v21 = vld [vmem:[%s2392_s8 + $0x10] sm:$0xf] }
  0x21   :  { %1925 = vmatprep.subr.bf16.mxu1 %v2011_v23  ;;  %v1941_v60 = vpack.c.bf16 %v184_v58, %v183_v57  ;;  %v191_v19 = vld [vmem:[%s2385_s1 + $0xa0] sm:$0xff]  ;;  %v204_v58 = vld [vmem:[%s2385_s1 + $0x108] sm:$0xff] }
  0x22   :  { %v1953_v22 = vpack.c.bf16 %v192_v20, %v191_v19  ;;  %v203_v57 = vld [vmem:[%s2385_s1 + $0x100] sm:$0xff] }
  0x23   :  { %1577 = vperm.xlu0 %1981, %v1574_v6   ;;  %1568 = vperm.xlu1 %1982, %v1565_v10   ;;  %v187_v6 = vld [vmem:[%s2385_s1 + $0x80] sm:$0xff] }
  0x24   :  { %1927 = vmatpush3.bf16.msra.mxu1 %v1926_v28  ;;  %v1947_v9 = vpack.c.bf16 %v188_v7, %v187_v6  ;;  %v1956_v28 = vpack.c.bf16 %v194_v26, %v193_v25  ;;  %v1696_v6 = vld [vmem:[%s2392_s8 + $0x20] sm:$0xf] }
  0x25   :  { %1795 = vmatprep.subr.mxu1 %v2009_v4 }
  0x92   :  { %v64_v11 = vpop.permute.xlu0 %63 }
  0x93   :  { %v66_v13 = vmul.f32 %v64_v11, %v2131_v12  ;;  %v189_v11 = vld [vmem:[%s2385_s1 + $0x90] sm:$0xff] }
  0x96   :  { %v71_v14 = vpop.permute.xlu0 %70  ;;  %v80_v31 = vpop.permute.xlu1 %79 }
  0x97   :  { %v73_v15 = vadd.f32 %v71_v14, %v66_v13  ;;  %v190_v13 = vld [vmem:[%s2385_s1 + $0x98] sm:$0xff] }
  0x99   :  { %v74_v16 = vmax.f32 %v73_v15, 0.0  ;;  %v1950_v15 = vpack.c.bf16 %v190_v13, %v189_v11 }
  0x9a   :  { %v160_v35 = vpop.permute.xlu1 %159  ;;  %v167_v37 = vpop.permute.xlu0 %166 }
  0x9b   :  { %1769 = vmatpush3.msra.mxu0 %v74_v16 }
  0x9c   :  { %1771 = vmatmul.mubr.msk.f32.vlgmr.msra.gmra.mrb[0].mxu0 %vm82_vm1, %v75_v17  ;;  %1928 = vmatprep.subr.bf16.mxu0 %v2011_v23 }
  0x9d   :  { %1792 = vmatprep.mubr.msk.f32.mxu0 %vm2010_vm0, %v2009_v4  ;;  %1930 = vmatpush3.bf16.msra.mxu0 %v1929_v24 }
  0x9e   :  { %1931 = vmatprep.subr.bf16.mxu0 %v2011_v23  ;;  %v1562_v13 = vpop.permute.xlu0 %1561 }
  0xa1   :  { %1933 = vmatpush3.bf16.msra.mxu0 %v1932_v30 }
  0xa2   :  { %1800 = vmatprep.subr.mxu0 %v2009_v4  ;;  %v1578_v19 = vpop.permute.xlu0 %1577 }
 0x16f   :  { %v152_v32 = vpop.f32.mrb[0].mxu0 }
 0x170   :  { %v153_v33 = vadd.f32 %v152_v32, %v80_v31  ;;  %v1772_v34 = vpop.f32.mrb[1].mxu0  ;;  %v195_v32 = vld [vmem:[%s2385_s1 + $0xc0] sm:$0xff] }
 0x171   :  { %v1684_v34 = vld [vmem:[%s2392_s8 + $0x14] sm:$0xf] }
 0x172   :  { %v162_v36 = vmul.f32 %v160_v35, %v153_v33  ;;  %v196_v33 = vld [vmem:[%s2385_s1 + $0xc8] sm:$0xff] }
 0x173   :  { %v1959_v35 = vpack.c.bf16 %v196_v33, %v195_v32 }
 0x174   :  { %v169_v38 = vadd.f32 %v167_v37, %v162_v36  ;;  %v197_v37 = vld [vmem:[%s2385_s1 + $0xd0] sm:$0xff] }
 0x176   :  { %v2169_v39 = vmax.f32 %v169_v38, 0.0  ;;  %v198_v38 = vld [vmem:[%s2385_s1 + $0xd8] sm:$0xff] }
 0x177   :  { %v1962_v41 = vpack.c.bf16 %v198_v38, %v197_v37 }
 0x178   :  { %1782 = vmatmul.mubr.msk.f32.vlgmr.msra.gmra.mrb[0].mxu1 %vm207_vm2, %v2169_v39  ;;  %1793 = vmatmul.mubr.msk.f32.vlgmr.msra.gmra.mrb[2].mxu0 %vm207_vm2, %v2169_v39 }
 0x179   :  { %1797 = vmatprep.mubr.msk.f32.mxu1 %vm2010_vm0, %v2009_v4  ;;  %1802 = vmatprep.mubr.msk.f32.mxu0 %vm2010_vm0, %v2009_v4 }
 0x24b   :  { %v277_v44 = vpop.f32.mrb[0].mxu1  ;;  %v348_v45 = vpop.f32.mrb[2].mxu0 }
 0x24c   :  { %v1783_v49 = vpop.f32.mrb[1].mxu1  ;;  %v1794_v50 = vpop.f32.mrb[3].mxu0  ;;  %1796 = vmatpush3.msk.msra.mxu1 %vm358_vm3, %v348_v45  ;;  %1801 = vmatpush3.msk.msra.mxu0 %vm358_vm3, %v277_v44  ;;  %v199_v45 = vld [vmem:[%s2385_s1 + $0xe0] sm:$0xff] }
 0x24d   :  { %1798 = vmatmul.mubr.msk.f32.vlgmr.msra.gmra.mrb[2].mxu1 %vm354_vm4, %v1666_v42  ;;  %1934 = vmatprep.subr.bf16.mxu1 %v2011_v23  ;;  %v201_v50 = vld [vmem:[%s2385_s1 + $0xf0] sm:$0xff] }
 0x24e   :  { %1803 = vmatmul.mubr.msk.f32.vlgmr.msra.gmra.mrb[4].mxu0 %vm354_vm4, %v281_v46  ;;  %1936 = vmatpush3.bf16.msra.mxu1 %v1935_v43  ;;  %v200_v46 = vld [vmem:[%s2385_s1 + $0xe8] sm:$0xff] }
 0x24f   :  { %1937 = vmatprep.subr.bf16.mxu1 %v2011_v23  ;;  %1813 = vmatprep.mubr.msk.f32.mxu1 %vm2010_vm0, %v2009_v4  ;;  %v1965_v48 = vpack.c.bf16 %v200_v46, %v199_v45 }
 0x250   :  { %1816 = vmatprep.subr.mxu0 %v2009_v4  ;;  %1818 = vmatprep.mubr.msk.f32.mxu0 %vm2010_vm0, %v2009_v4 }
 0x252   :  { %1939 = vmatpush3.bf16.msra.mxu1 %v1938_v51  ;;  %v202_v51 = vld [vmem:[%s2385_s1 + $0xf8] sm:$0xff] }
 0x253   :  { %1832 = vmatprep.subr.mxu1 %v2009_v4 }
 0x255   :  { %1814 = vmatmul.mubr.msk.f32.vlgmr.msra.gmra.mrb[4].mxu1 %vm207_vm2, %v2169_v39 }
 0x256   :  { %1834 = vmatprep.mubr.msk.f32.mxu1 %vm2010_vm0, %v2009_v4 }
 0x320   :  { %v428_v52 = vpop.f32.mrb[2].mxu1 }
 0x321   :  { %v1799_v53 = vpop.f32.mrb[3].mxu1  ;;  %v504_v54 = vpop.f32.mrb[4].mxu0 }
 0x322   :  { %v505_v55 = vadd.f32 %v504_v54, %v428_v52  ;;  %v1804_v56 = vpop.f32.mrb[5].mxu0  ;;  %v1968_v53 = vpack.c.bf16 %v202_v51, %v201_v50 }
 0x328   :  { %v574_v61 = vpop.f32.mrb[4].mxu1 }
 0x329   :  { %v1815_v0 = vpop.f32.mrb[5].mxu1  ;;  %1817 = vmatpush3.msk.msra.mxu0 %vm358_vm3, %v574_v61 }
 0x32a   :  { %1819 = vmatmul.mubr.msk.f32.vlgmr.msra.gmra.mrb[6].mxu0 %vm354_vm4, %v1672_v59  ;;  %1940 = vmatprep.subr.bf16.mxu0 %v2011_v23  ;;  %v1692_v59 = vld [vmem:[%s2392_s8 + $0x1c] sm:$0xf] }
 0x32b   :  { %1942 = vmatpush3.bf16.msra.mxu0 %v1941_v60  ;;  %1829 = vmatprep.mubr.msk.f32.mxu0 %vm2010_vm0, %v2009_v4  ;;  %v1971_v60 = vpack.c.bf16 %v204_v58, %v203_v57 }
 0x32c   :  { %1943 = vmatprep.subr.bf16.mxu0 %v2011_v23 }
 0x32f   :  { %1945 = vmatpush3.bf16.msra.mxu0 %v1944_v1  ;;  %v1974_v1 = vpack.c.bf16 %v206_v63, %v205_v62 }
 0x330   :  { %1848 = vmatprep.subr.mxu0 %v2009_v4 }
 0x332   :  { %1830 = vmatmul.mubr.msk.f32.vlgmr.msra.gmra.mrb[8].mxu0 %vm207_vm2, %v2169_v39 }
 0x333   :  { %1850 = vmatprep.mubr.msk.f32.mxu0 %vm2010_vm0, %v2009_v4 }
 0x3fd   :  { %v652_v2 = vpop.f32.mrb[6].mxu0 }
 0x3fe   :  { %v656_v3 = vadd.f32 %v652_v2, %v505_v55  ;;  %v1820_v5 = vpop.f32.mrb[7].mxu0 }
 0x405   :  { %v723_v10 = vpop.f32.mrb[8].mxu0 }
 0x406   :  { %v1831_v14 = vpop.f32.mrb[9].mxu0  ;;  %1833 = vmatpush3.msk.msra.mxu1 %vm358_vm3, %v723_v10 }
 0x407   :  { %1835 = vmatmul.mubr.msk.f32.vlgmr.msra.gmra.mrb[6].mxu1 %vm354_vm4, %v1676_v8  ;;  %1946 = vmatprep.subr.bf16.mxu1 %v2011_v23 }
 0x408   :  { %1948 = vmatpush3.bf16.msra.mxu1 %v1947_v9  ;;  %1845 = vmatprep.mubr.msk.f32.mxu1 %vm2010_vm0, %v2009_v4 }
 0x409   :  { %1949 = vmatprep.subr.bf16.mxu1 %v2011_v23 }
 0x40c   :  { %1951 = vmatpush3.bf16.msra.mxu1 %v1950_v15 }
 0x40d   :  { %1864 = vmatprep.subr.mxu1 %v2009_v4 }
 0x40f   :  { %1846 = vmatmul.mubr.msk.f32.vlgmr.msra.gmra.mrb[8].mxu1 %vm207_vm2, %v2169_v39 }
 0x410   :  { %1866 = vmatprep.mubr.msk.f32.mxu1 %vm2010_vm0, %v2009_v4 }
 0x4da   :  { %v801_v16 = vpop.f32.mrb[6].mxu1 }
 0x4db   :  { %v805_v17 = vadd.f32 %v801_v16, %v656_v3  ;;  %v1836_v18 = vpop.f32.mrb[7].mxu1 }
 0x4dc   :  { %v1573_v18 = vld [vmem:[%s2396_s12] sm:$0xff] }
 0x4e2   :  { %v872_v24 = vpop.f32.mrb[8].mxu1 }
 0x4e3   :  { %v1847_v27 = vpop.f32.mrb[9].mxu1  ;;  %1849 = vmatpush3.msk.msra.mxu0 %vm358_vm3, %v872_v24 }
 0x4e4   :  { %1851 = vmatmul.mubr.msk.f32.vlgmr.msra.gmra.mrb[10].mxu0 %vm354_vm4, %v1680_v21  ;;  %1952 = vmatprep.subr.bf16.mxu0 %v2011_v23 }
 0x4e5   :  { %1954 = vmatpush3.bf16.msra.mxu0 %v1953_v22  ;;  %1861 = vmatprep.mubr.msk.f32.mxu0 %vm2010_vm0, %v2009_v4 }
 0x4e6   :  { %1955 = vmatprep.subr.bf16.mxu0 %v2011_v23 }
 0x4e9   :  { %1957 = vmatpush3.bf16.msra.mxu0 %v1956_v28 }
 0x4ea   :  { %1880 = vmatprep.subr.mxu0 %v2009_v4 }
 0x4ec   :  { %1862 = vmatmul.mubr.msk.f32.vlgmr.msra.gmra.mrb[12].mxu0 %vm207_vm2, %v2169_v39 }
 0x4ed   :  { %1882 = vmatprep.mubr.msk.f32.mxu0 %vm2010_vm0, %v2009_v4 }
 0x5b7   :  { %v950_v29 = vpop.f32.mrb[10].mxu0 }
 0x5b8   :  { %v954_v30 = vadd.f32 %v950_v29, %v805_v17  ;;  %v1852_v31 = vpop.f32.mrb[11].mxu0 }
 0x5bf   :  { %v1021_v36 = vpop.f32.mrb[12].mxu0 }
 0x5c0   :  { %v1863_v40 = vpop.f32.mrb[13].mxu0  ;;  %1865 = vmatpush3.msk.msra.mxu1 %vm358_vm3, %v1021_v36 }
 0x5c1   :  { %1867 = vmatmul.mubr.msk.f32.vlgmr.msra.gmra.mrb[10].mxu1 %vm354_vm4, %v1684_v34  ;;  %1958 = vmatprep.subr.bf16.mxu1 %v2011_v23 }
 0x5c2   :  { %1960 = vmatpush3.bf16.msra.mxu1 %v1959_v35  ;;  %1877 = vmatprep.mubr.msk.f32.mxu1 %vm2010_vm0, %v2009_v4 }
 0x5c3   :  { %1961 = vmatprep.subr.bf16.mxu1 %v2011_v23 }
 0x5c6   :  { %1963 = vmatpush3.bf16.msra.mxu1 %v1962_v41 }
 0x5c7   :  { %1896 = vmatprep.subr.mxu1 %v2009_v4 }
 0x5c9   :  { %1878 = vmatmul.mubr.msk.f32.vlgmr.msra.gmra.mrb[12].mxu1 %vm207_vm2, %v2169_v39 }
 0x5ca   :  { %1898 = vmatprep.mubr.msk.f32.mxu1 %vm2010_vm0, %v2009_v4 }
 0x694   :  { %v1099_v42 = vpop.f32.mrb[10].mxu1 }
 0x695   :  { %v1103_v43 = vadd.f32 %v1099_v42, %v954_v30  ;;  %v1868_v44 = vpop.f32.mrb[11].mxu1 }
 0x69c   :  { %v1170_v49 = vpop.f32.mrb[12].mxu1 }
 0x69d   :  { %v1879_v52 = vpop.f32.mrb[13].mxu1  ;;  %1881 = vmatpush3.msk.msra.mxu0 %vm358_vm3, %v1170_v49 }
 0x69e   :  { %1883 = vmatmul.mubr.msk.f32.vlgmr.msra.gmra.mrb[14].mxu0 %vm354_vm4, %v1688_v47  ;;  %1964 = vmatprep.subr.bf16.mxu0 %v2011_v23 }
 0x69f   :  { %1966 = vmatpush3.bf16.msra.mxu0 %v1965_v48  ;;  %1893 = vmatprep.mubr.msk.f32.mxu0 %vm2010_vm0, %v2009_v4 }
 0x6a0   :  { %1967 = vmatprep.subr.bf16.mxu0 %v2011_v23 }
 0x6a3   :  { %1969 = vmatpush3.bf16.msra.mxu0 %v1968_v53 }
 0x6a4   :  { %1912 = vmatprep.subr.mxu0 %v2009_v4 }
 0x6a6   :  { %1894 = vmatmul.mubr.msk.f32.vlgmr.msra.gmra.mrb[16].mxu0 %vm207_vm2, %v2169_v39 }
 0x6a7   :  { %1914 = vmatprep.mubr.msk.f32.mxu0 %vm2010_vm0, %v2009_v4 }
 0x771   :  { %v1248_v54 = vpop.f32.mrb[14].mxu0 }
 0x772   :  { %v1252_v55 = vadd.f32 %v1248_v54, %v1103_v43  ;;  %v1884_v56 = vpop.f32.mrb[15].mxu0 }
 0x779   :  { %v1319_v61 = vpop.f32.mrb[16].mxu0 }
 0x77a   :  { %v1895_v0 = vpop.f32.mrb[17].mxu0  ;;  %1897 = vmatpush3.msk.msra.mxu1 %vm358_vm3, %v1319_v61 }
 0x77b   :  { %1899 = vmatmul.mubr.msk.f32.vlgmr.msra.gmra.mrb[14].mxu1 %vm354_vm4, %v1692_v59  ;;  %1970 = vmatprep.subr.bf16.mxu1 %v2011_v23 }
 0x77c   :  { %1972 = vmatpush3.bf16.msra.mxu1 %v1971_v60  ;;  %1909 = vmatprep.mubr.msk.f32.mxu1 %vm2010_vm0, %v2009_v4 }
 0x77d   :  { %1973 = vmatprep.subr.bf16.mxu1 %v2011_v23  ;;  %v1555_v23 = vpop.permute.xlu1 %1554 }
 0x780   :  { %1975 = vmatpush3.bf16.msra.mxu1 %v1974_v1 }
 0x781   :  { %v1569_v15 = vpop.permute.xlu1 %1568 }
 0x783   :  { %1910 = vmatmul.mubr.msk.f32.vlgmr.msra.gmra.mrb[16].mxu1 %vm207_vm2, %v2169_v39 }
 0x84e   :  { %v1397_v2 = vpop.f32.mrb[14].mxu1 }
 0x84f   :  { %v1401_v3 = vadd.f32 %v1397_v2, %v1252_v55  ;;  %v1900_v5 = vpop.f32.mrb[15].mxu1 }
 0x856   :  { %v1468_v7 = vpop.f32.mrb[16].mxu1 }
 0x857   :  { %v1911_v8 = vpop.f32.mrb[17].mxu1  ;;  %1913 = vmatpush3.msk.msra.mxu0 %vm358_vm3, %v1468_v7 }
 0x858   :  { %1915 = vmatmul.mubr.msk.f32.vlgmr.msra.gmra.mrb[18].mxu0 %vm354_vm4, %v1696_v6  ;;  %1917 = vmatprep.subr.mxu0 %v2009_v4 }
 0x859   :  { %1919 = vmatprep.mubr.msk.f32.mxu0 %vm2010_vm0, %v2009_v4 }
 0x92b   :  { %v1546_v39 = vpop.f32.mrb[18].mxu0 }
 0x92c   :  { %v1550_v9 = vadd.f32 %v1546_v39, %v1401_v3  ;;  %v1916_v10 = vpop.f32.mrb[19].mxu0 }
 0x92e   :  { %v1557_v11 = vadd.f32 %v1555_v23, %v1550_v9 }
 0x930   :  { %v1564_v14 = vmul.f32 %v1562_v13, %v1557_v11 }
 0x932   :  { %v1571_v16 = vadd.f32 %v1569_v15, %v1564_v14 }
 0x934   :  { %v1572_v17 = vmax.f32 %v1571_v16, 0.0 }
 0x936   :  { %1918 = vmatpush3.msk.msra.mxu0 %vm358_vm3, %v1572_v17 }
 0x937   :  { %1920 = vmatmul.mubr.msk.f32.vlgmr.msra.gmra.mrb[20].mxu0 %vm354_vm4, %v1573_v18 }
 0xa0a   :  { %v1652_v4 = vpop.f32.mrb[20].mxu0 }
 0xa0b   :  { %v1653_v20 = vadd.f32 %v1652_v4, %v1578_v19  ;;  %v1921_v21 = vpop.f32.mrb[21].mxu0 }
 0xa0d   :  { %v1656_v22 = vadd.f32 %v1653_v20, %v2131_v12 }
 0xa0f   :  { %1657 = vst.msk [vmem:[%s2398_s14] sm:$0xff] %vm207_vm2, %v1656_v22 }
 0xa10   :  { %1662 = vsyncpa [#allocation3], 1 }

// kernel: run.25
= control target key start
LH: loop header
LB: loop body
LE: loop exit
PB: predicated region body
PF: predicated region fallthrough
CT: control target
= control target key end

     0   :  { %v121_v0 = vmov 0.0|0.0   ;;  %vm122_vm0 = vmmov 0   ;;  %v123_v4 = vmov 0.0   ;;  %vm16_vm1 = vcmask 261120   ;;  %s157_s1 = inlined_call_operand.vmem [shape: f32[32,128], index: 1, kind: input, shape index: {}]   ;;  %s158_s0 = inlined_call_operand.vmem [shape: f32[4,32], index: 0, kind: input, shape index: {}]   ;;  %s159_s2 = inlined_call_operand.vmem [shape: f32[4,128], index: 2, kind: output, shape index: {}]  }
   0x1   :  { %112 = vmatprep.subr.bf16.mxu0 %v121_v0  ;;  %v12_v1 = vld [vmem:[%s157_s1] sm:$0xff]  ;;  %v13_v2 = vld [vmem:[%s157_s1 + $0x8] sm:$0xff]  ;;  %v14_v3 = vld [vmem:[%s157_s1 + $0x10] sm:$0xff]  ;;  %109 = vmatprep.mubr.msk.f32.mxu0 %vm122_vm0, %v123_v4 }
   0x2   :  { %v113_v5 = vpack.c.bf16 %v13_v2, %v12_v1  ;;  %v15_v6 = vld [vmem:[%s157_s1 + $0x18] sm:$0xff]  ;;  %v11_v8 = vld [vmem:[%s158_s0] sm:$0xf] }
   0x3   :  { %v116_v7 = vpack.c.bf16 %v15_v6, %v14_v3 }
   0x4   :  { %114 = vmatpush3.bf16.msra.mxu0 %v113_v5 }
   0x5   :  { %115 = vmatprep.subr.bf16.mxu0 %v121_v0 }
   0x8   :  { %117 = vmatpush3.bf16.msra.mxu0 %v116_v7 }
   0xb   :  { %110 = vmatmul.mubr.msk.f32.vlgmr.msra.gmra.mrb[0].mxu0 %vm16_vm1, %v11_v8 }
  0xde   :  { %v86_v9 = vpop.f32.mrb[0].mxu0 }
  0xdf   :  { %90 = vst [vmem:[%s159_s2] sm:$0xf] %v86_v9  ;;  %v111_v10 = vpop.f32.mrb[1].mxu0 }

// kernel: run.24
= control target key start
LH: loop header
LB: loop body
LE: loop exit
PB: predicated region body
PF: predicated region fallthrough
CT: control target
= control target key end

     0   :  { %v2089_v0 = vmov 0   ;;  %v2090_v7 = vmov 0.0   ;;  %vm2091_vm0 = vmmov 0   ;;  %vm82_vm1 = vcmask 64512   ;;  %s2492_s5 = inlined_call_operand.vmem [shape: f32[2,1], index: 5, kind: input, shape index: {}]   ;;  %s2493_s2 = inlined_call_operand.vmem [shape: f32[8,1], index: 2, kind: input, shape index: {}]   ;;  %s2494_s6 = inlined_call_operand.vmem [shape: f32[2,1], index: 6, kind: input, shape index: {}]   ;;  %s2495_s3 = inlined_call_operand.vmem [shape: f32[8,1], index: 3, kind: input, shape index: {}]   ;;  %s2496_s9 = inlined_call_operand.vmem [shape: f32[2,1], index: 9, kind: input, shape index: {}]   ;;  %s2497_s7 = inlined_call_operand.vmem [shape: f32[2,1], index: 7, kind: input, shape index: {}]   ;;  %s2498_s11 = inlined_call_operand.vmem [shape: f32[2,1], index: 11, kind: input, shape index: {}]   ;;  %s2499_s10 = inlined_call_operand.vmem [shape: f32[2,1], index: 10, kind: input, shape index: {}]   ;;  %s2500_s15 = inlined_call_operand.vmem [shape: f32[8,1], index: 15, kind: input, shape index: {}]   ;;  %s2501_s14 = inlined_call_operand.vmem [shape: f32[8,1], index: 14, kind: input, shape index: {}]   ;;  %s2502_s17 = inlined_call_operand.vmem [shape: f32[4,1], index: 17, kind: input, shape index: {}]   ;;  %s2503_s13 = inlined_call_operand.vmem [shape: f32[4,1], index: 13, kind: input, shape index: {}]   ;;  %s2504_s0 = inlined_call_operand.vmem [shape: f32[8,32], index: 0, kind: input, shape index: {}]   ;;  %s2505_s4 = inlined_call_operand.vmem [shape: f32[2,8], index: 4, kind: input, shape index: {}]   ;;  %s2506_s1 = inlined_call_operand.vmem [shape: f32[9,32,32], index: 1, kind: input, shape index: {}]   ;;  %s2507_s8 = inlined_call_operand.vmem [shape: f32[9,2,2], index: 8, kind: input, shape index: {}]   ;;  %s2508_s12 = inlined_call_operand.vmem [shape: f32[4,2], index: 12, kind: input, shape index: {}]   ;;  %s2509_s16 = inlined_call_operand.vmem [shape: f32[4,8], index: 16, kind: input, shape index: {}]   ;;  %s2510_s18 = inlined_call_operand.vmem [shape: f32[4,32], index: 18, kind: output, shape index: {}]  }
   0x1   :  { %2511 = sst [smem:[#allocation2_spill]] %s2492_s5  ;;  %2088 = vset.pattern.permute.xlu1 %v2089_v0  ;;  %2087 = vset.pattern.permute.xlu0 %v2089_v0  ;;  %v67_v4 = vld [vmem:[%s2495_s3] sm:$0xff]  ;;  %v172_v22 = vld [vmem:[%s2506_s1 + $0x8] sm:$0xff]  ;;  %v2092_v26 = vmov 0.0|0.0   ;;  %v173_v28 = vld [vmem:[%s2506_s1 + $0x10] sm:$0xff]  ;;  %vm207_vm2 = vcmask 261120  }
   0x2   :  { %2512 = sst [smem:[#allocation3_spill]] %s2493_s2  ;;  %s2514_s29 = sld [smem:[#allocation2_spill]]  ;;  %v1551_v5 = vld [vmem:[%s2496_s9] sm:$0x3]  ;;  %1866 = vmatprep.subr.mxu1 %v2090_v7  ;;  %1868 = vmatprep.mubr.msk.f32.mxu1 %vm2091_vm0, %v2090_v7  ;;  %v176_v25 = vld [vmem:[%s2506_s1 + $0x28] sm:$0xff]  ;;  %v174_v29 = vld [vmem:[%s2506_s1 + $0x18] sm:$0xff] }
   0x3   :  { %2513 = sst [smem:[#allocation4_spill]] %s2494_s6  ;;  %s2515_s19 = sld [smem:[#allocation3_spill]]  ;;  %v163_v6 = vld [vmem:[%s2497_s7] sm:$0x3]  ;;  %1890 = vmatprep.mubr.msk.f32.mxu0 %vm2091_vm0, %v2090_v7  ;;  %2031 = vmatprep.subr.bf16.mxu0 %v2092_v26  ;;  %v177_v30 = vld [vmem:[%s2506_s1 + $0x30] sm:$0xff]  ;;  %v2029_v31 = vpack.c.bf16 %v174_v29, %v173_v28  ;;  %v178_v32 = vld [vmem:[%s2506_s1 + $0x38] sm:$0xff] }
   0x4   :  { %s2516_s21 = sld [smem:[#allocation4_spill]]  ;;  %v1565_v8 = vld [vmem:[%s2498_s11] sm:$0x3]  ;;  %v2035_v33 = vpack.c.bf16 %v178_v32, %v177_v30  ;;  %v180_v44 = vld [vmem:[%s2506_s1 + $0x48] sm:$0xff]  ;;  %vm358_vm3 = vcmask 1041408   ;;  %vm354_vm4 = vcmask 15360  }
   0x5   :  { %v1558_v9 = vld [vmem:[%s2499_s10] sm:$0x3]  ;;  %v1761_v45 = vld [vmem:[%s2507_s8 + $0x2] sm:$0x3]  ;;  %v181_v50 = vld [vmem:[%s2506_s1 + $0x50] sm:$0xff]  ;;  %vm1752_vm5 = vcmask 257024  }
   0x6   :  { %v1663_v10 = vld [vmem:[%s2500_s15] sm:$0xff]  ;;  %v182_v51 = vld [vmem:[%s2506_s1 + $0x58] sm:$0xff]  ;;  %v184_v61 = vld [vmem:[%s2506_s1 + $0x68] sm:$0xff] }
   0x7   :  { %v1656_v11 = vld [vmem:[%s2501_s14] sm:$0xff]  ;;  %v2041_v54 = vpack.c.bf16 %v182_v51, %v181_v50  ;;  %v193_v28 = vld [vmem:[%s2506_s1 + $0xb0] sm:$0xff]  ;;  %v194_v29 = vld [vmem:[%s2506_s1 + $0xb8] sm:$0xff] }
   0x8   :  { %v76_v1 = vld [vmem:[%s2514_s29] sm:$0x3]  ;;  %v1767_v62 = vld [vmem:[%s2507_s8 + $0x4] sm:$0x3]  ;;  %v1783_v50 = vld [vmem:[%s2507_s8 + $0xc] sm:$0x3] }
   0x9   :  { %v60_v2 = vld [vmem:[%s2515_s19] sm:$0xff]  ;;  %79 = vperm.xlu1 %2088, %v76_v1   ;;  %v185_v1 = vld [vmem:[%s2506_s1 + $0x70] sm:$0xff] }
   0xa   :  { %63 = vperm.xlu0 %2087, %v60_v2   ;;  %v156_v3 = vld [vmem:[%s2516_s21] sm:$0x3]  ;;  %v186_v2 = vld [vmem:[%s2506_s1 + $0x78] sm:$0xff] }
   0xb   :  { %v1672_v12 = vld [vmem:[%s2502_s17] sm:$0xf] }
   0xc   :  { %v1574_v13 = vld [vmem:[%s2503_s13] sm:$0xf] }
   0xd   :  { %159 = vperm.xlu1 %2088, %v156_v3   ;;  %v2232_v15 = vld [vmem:[%s2504_s0] sm:$0xff] }
   0xe   :  { %70 = vperm.xlu0 %2087, %v67_v4   ;;  %v75_v20 = vld [vmem:[%s2505_s4] sm:$0x3]  ;;  %v2047_v4 = vpack.c.bf16 %v186_v2, %v185_v1  ;;  %v205_v1 = vld [vmem:[%s2506_s1 + $0x110] sm:$0xff]  ;;  %v206_v2 = vld [vmem:[%s2506_s1 + $0x118] sm:$0xff] }
   0xf   :  { %v171_v21 = vld [vmem:[%s2506_s1] sm:$0xff] }
  0x10   :  { %v175_v23 = vld [vmem:[%s2506_s1 + $0x20] sm:$0xff]  ;;  %v2026_v24 = vpack.c.bf16 %v172_v22, %v171_v21 }
  0x11   :  { %1554 = vperm.xlu1 %2088, %v1551_v5   ;;  %v2032_v27 = vpack.c.bf16 %v176_v25, %v175_v23  ;;  %v179_v43 = vld [vmem:[%s2506_s1 + $0x40] sm:$0xff]  ;;  %v192_v23 = vld [vmem:[%s2506_s1 + $0xa8] sm:$0xff] }
  0x12   :  { %166 = vperm.xlu0 %2087, %v163_v6   ;;  %v2038_v46 = vpack.c.bf16 %v180_v44, %v179_v43  ;;  %v281_v49 = vld [vmem:[%s2507_s8] sm:$0x3] }
  0x13   :  { %2033 = vmatpush3.bf16.msra.mxu0 %v2032_v27  ;;  %v183_v60 = vld [vmem:[%s2506_s1 + $0x60] sm:$0xff] }
  0x14   :  { %2034 = vmatprep.subr.bf16.mxu0 %v2092_v26  ;;  %v2044_v63 = vpack.c.bf16 %v184_v61, %v183_v60  ;;  %v191_v22 = vld [vmem:[%s2506_s1 + $0xa0] sm:$0xff]  ;;  %v204_v61 = vld [vmem:[%s2506_s1 + $0x108] sm:$0xff] }
  0x15   :  { %1568 = vperm.xlu1 %2088, %v1565_v8   ;;  %v2056_v25 = vpack.c.bf16 %v192_v23, %v191_v22  ;;  %v203_v60 = vld [vmem:[%s2506_s1 + $0x100] sm:$0xff] }
  0x16   :  { %1561 = vperm.xlu0 %2087, %v1558_v9   ;;  %v187_v9 = vld [vmem:[%s2506_s1 + $0x80] sm:$0xff] }
  0x17   :  { %2036 = vmatpush3.bf16.msra.mxu0 %v2035_v33 }
  0x18   :  { %1898 = vmatprep.subr.mxu0 %v2090_v7 }
  0x19   :  { %1666 = vperm.xlu1 %2088, %v1663_v10   ;;  %v188_v10 = vld [vmem:[%s2506_s1 + $0x88] sm:$0xff] }
  0x1a   :  { %1659 = vperm.xlu0 %2087, %v1656_v11   ;;  %v1771_v11 = vld [vmem:[%s2507_s8 + $0x6] sm:$0x3] }
  0x1d   :  { %1675 = vperm.xlu1 %2088, %v1672_v12   ;;  %v2050_v12 = vpack.c.bf16 %v188_v10, %v187_v9  ;;  %v1791_v9 = vld [vmem:[%s2507_s8 + $0x10] sm:$0x3] }
  0x1e   :  { %1577 = vperm.xlu0 %2087, %v1574_v13  }
  0x88   :  { %v80_v34 = vpop.permute.xlu1 %79 }
  0x89   :  { %v64_v14 = vpop.permute.xlu0 %63 }
  0x8a   :  { %v66_v16 = vmul.f32 %v64_v14, %v2232_v15  ;;  %v189_v14 = vld [vmem:[%s2506_s1 + $0x90] sm:$0xff] }
  0x8c   :  { %v160_v38 = vpop.permute.xlu1 %159 }
  0x8d   :  { %v71_v17 = vpop.permute.xlu0 %70 }
  0x8e   :  { %v73_v18 = vadd.f32 %v71_v17, %v66_v16  ;;  %v190_v16 = vld [vmem:[%s2506_s1 + $0x98] sm:$0xff] }
  0x90   :  { %v74_v19 = vmax.f32 %v73_v18, 0.0  ;;  %v2053_v18 = vpack.c.bf16 %v190_v16, %v189_v14 }
  0x91   :  { %v167_v40 = vpop.permute.xlu0 %166 }
  0x92   :  { %1867 = vmatpush3.msra.mxu1 %v74_v19 }
  0x93   :  { %1869 = vmatmul.mubr.msk.f32.vlgmr.msra.gmra.mrb[0].mxu1 %vm82_vm1, %v75_v20  ;;  %2025 = vmatprep.subr.bf16.mxu1 %v2092_v26 }
  0x94   :  { %1879 = vmatprep.mubr.msk.f32.mxu1 %vm2091_vm0, %v2090_v7  ;;  %2027 = vmatpush3.bf16.msra.mxu1 %v2026_v24  ;;  %v1775_v24 = vld [vmem:[%s2507_s8 + $0x8] sm:$0x3] }
  0x95   :  { %2028 = vmatprep.subr.bf16.mxu1 %v2092_v26 }
  0x98   :  { %2030 = vmatpush3.bf16.msra.mxu1 %v2029_v31  ;;  %v2059_v31 = vpack.c.bf16 %v194_v29, %v193_v28 }
  0x99   :  { %1893 = vmatprep.subr.mxu1 %v2090_v7 }
 0x166   :  { %v152_v35 = vpop.f32.mrb[0].mxu1 }
 0x167   :  { %v153_v36 = vadd.f32 %v152_v35, %v80_v34  ;;  %v1870_v37 = vpop.f32.mrb[1].mxu1  ;;  %v195_v35 = vld [vmem:[%s2506_s1 + $0xc0] sm:$0xff] }
 0x168   :  { %v1779_v37 = vld [vmem:[%s2507_s8 + $0xa] sm:$0x3] }
 0x169   :  { %v162_v39 = vmul.f32 %v160_v38, %v153_v36  ;;  %v196_v36 = vld [vmem:[%s2506_s1 + $0xc8] sm:$0xff] }
 0x16a   :  { %v2062_v38 = vpack.c.bf16 %v196_v36, %v195_v35 }
 0x16b   :  { %v169_v41 = vadd.f32 %v167_v40, %v162_v39  ;;  %v197_v40 = vld [vmem:[%s2506_s1 + $0xd0] sm:$0xff] }
 0x16d   :  { %v2271_v42 = vmax.f32 %v169_v41, 0.0  ;;  %v198_v41 = vld [vmem:[%s2506_s1 + $0xd8] sm:$0xff] }
 0x16e   :  { %v2065_v44 = vpack.c.bf16 %v198_v41, %v197_v40 }
 0x16f   :  { %1880 = vmatmul.mubr.msk.f32.vlgmr.msra.gmra.mrb[2].mxu1 %vm207_vm2, %v2271_v42  ;;  %1891 = vmatmul.mubr.msk.f32.vlgmr.msra.gmra.mrb[0].mxu0 %vm207_vm2, %v2271_v42 }
 0x170   :  { %1895 = vmatprep.mubr.msk.f32.mxu1 %vm2091_vm0, %v2090_v7  ;;  %1900 = vmatprep.mubr.msk.f32.mxu0 %vm2091_vm0, %v2090_v7 }
 0x242   :  { %v277_v47 = vpop.f32.mrb[2].mxu1  ;;  %v348_v48 = vpop.f32.mrb[0].mxu0 }
 0x243   :  { %v1881_v52 = vpop.f32.mrb[3].mxu1  ;;  %v1892_v53 = vpop.f32.mrb[1].mxu0  ;;  %1894 = vmatpush3.msk.msra.mxu1 %vm358_vm3, %v348_v48  ;;  %1899 = vmatpush3.msk.msra.mxu0 %vm358_vm3, %v277_v47  ;;  %v199_v48 = vld [vmem:[%s2506_s1 + $0xe0] sm:$0xff] }
 0x244   :  { %1896 = vmatmul.mubr.msk.f32.vlgmr.msra.gmra.mrb[4].mxu1 %vm354_vm4, %v1761_v45  ;;  %2037 = vmatprep.subr.bf16.mxu1 %v2092_v26  ;;  %v201_v53 = vld [vmem:[%s2506_s1 + $0xf0] sm:$0xff] }
 0x245   :  { %1901 = vmatmul.mubr.msk.f32.vlgmr.msra.gmra.mrb[2].mxu0 %vm354_vm4, %v281_v49  ;;  %2039 = vmatpush3.bf16.msra.mxu1 %v2038_v46  ;;  %v200_v49 = vld [vmem:[%s2506_s1 + $0xe8] sm:$0xff] }
 0x246   :  { %2040 = vmatprep.subr.bf16.mxu1 %v2092_v26  ;;  %1911 = vmatprep.mubr.msk.f32.mxu1 %vm2091_vm0, %v2090_v7  ;;  %v2068_v51 = vpack.c.bf16 %v200_v49, %v199_v48 }
 0x247   :  { %1914 = vmatprep.subr.mxu0 %v2090_v7  ;;  %1916 = vmatprep.mubr.msk.f32.mxu0 %vm2091_vm0, %v2090_v7 }
 0x249   :  { %2042 = vmatpush3.bf16.msra.mxu1 %v2041_v54  ;;  %v202_v54 = vld [vmem:[%s2506_s1 + $0xf8] sm:$0xff] }
 0x24a   :  { %1930 = vmatprep.subr.mxu1 %v2090_v7 }
 0x24c   :  { %1912 = vmatmul.mubr.msk.f32.vlgmr.msra.gmra.mrb[6].mxu1 %vm207_vm2, %v2271_v42 }
 0x24d   :  { %1932 = vmatprep.mubr.msk.f32.mxu1 %vm2091_vm0, %v2090_v7 }
 0x317   :  { %v428_v55 = vpop.f32.mrb[4].mxu1 }
 0x318   :  { %v1897_v56 = vpop.f32.mrb[5].mxu1  ;;  %v504_v57 = vpop.f32.mrb[2].mxu0 }
 0x319   :  { %v505_v58 = vadd.f32 %v504_v57, %v428_v55  ;;  %v1902_v59 = vpop.f32.mrb[3].mxu0  ;;  %v2071_v56 = vpack.c.bf16 %v202_v54, %v201_v53 }
 0x31f   :  { %v574_v0 = vpop.f32.mrb[6].mxu1 }
 0x320   :  { %v1913_v3 = vpop.f32.mrb[7].mxu1  ;;  %1915 = vmatpush3.msk.msra.mxu0 %vm358_vm3, %v574_v0 }
 0x321   :  { %1917 = vmatmul.mubr.msk.f32.vlgmr.msra.gmra.mrb[4].mxu0 %vm354_vm4, %v1767_v62  ;;  %2043 = vmatprep.subr.bf16.mxu0 %v2092_v26  ;;  %v1787_v62 = vld [vmem:[%s2507_s8 + $0xe] sm:$0x3] }
 0x322   :  { %2045 = vmatpush3.bf16.msra.mxu0 %v2044_v63  ;;  %1927 = vmatprep.mubr.msk.f32.mxu0 %vm2091_vm0, %v2090_v7  ;;  %v2074_v63 = vpack.c.bf16 %v204_v61, %v203_v60 }
 0x323   :  { %2046 = vmatprep.subr.bf16.mxu0 %v2092_v26 }
 0x326   :  { %2048 = vmatpush3.bf16.msra.mxu0 %v2047_v4  ;;  %v2077_v4 = vpack.c.bf16 %v206_v2, %v205_v1 }
 0x327   :  { %1946 = vmatprep.subr.mxu0 %v2090_v7 }
 0x329   :  { %1928 = vmatmul.mubr.msk.f32.vlgmr.msra.gmra.mrb[6].mxu0 %vm207_vm2, %v2271_v42 }
 0x32a   :  { %1948 = vmatprep.mubr.msk.f32.mxu0 %vm2091_vm0, %v2090_v7 }
 0x3f4   :  { %v652_v5 = vpop.f32.mrb[4].mxu0 }
 0x3f5   :  { %v656_v6 = vadd.f32 %v652_v5, %v505_v58  ;;  %v1918_v8 = vpop.f32.mrb[5].mxu0 }
 0x3fc   :  { %v723_v13 = vpop.f32.mrb[6].mxu0 }
 0x3fd   :  { %v1929_v17 = vpop.f32.mrb[7].mxu0  ;;  %1931 = vmatpush3.msk.msra.mxu1 %vm358_vm3, %v723_v13 }
 0x3fe   :  { %1933 = vmatmul.mubr.msk.f32.vlgmr.msra.gmra.mrb[8].mxu1 %vm354_vm4, %v1771_v11  ;;  %2049 = vmatprep.subr.bf16.mxu1 %v2092_v26 }
 0x3ff   :  { %2051 = vmatpush3.bf16.msra.mxu1 %v2050_v12  ;;  %1943 = vmatprep.mubr.msk.f32.mxu1 %vm2091_vm0, %v2090_v7 }
 0x400   :  { %2052 = vmatprep.subr.bf16.mxu1 %v2092_v26 }
 0x403   :  { %2054 = vmatpush3.bf16.msra.mxu1 %v2053_v18 }
 0x404   :  { %1962 = vmatprep.subr.mxu1 %v2090_v7 }
 0x406   :  { %1944 = vmatmul.mubr.msk.f32.vlgmr.msra.gmra.mrb[10].mxu1 %vm207_vm2, %v2271_v42 }
 0x407   :  { %1964 = vmatprep.mubr.msk.f32.mxu1 %vm2091_vm0, %v2090_v7 }
 0x4d1   :  { %v801_v19 = vpop.f32.mrb[8].mxu1 }
 0x4d2   :  { %v805_v20 = vadd.f32 %v801_v19, %v656_v6  ;;  %v1934_v21 = vpop.f32.mrb[9].mxu1 }
 0x4d9   :  { %v872_v27 = vpop.f32.mrb[10].mxu1 }
 0x4da   :  { %v1945_v30 = vpop.f32.mrb[11].mxu1  ;;  %1947 = vmatpush3.msk.msra.mxu0 %vm358_vm3, %v872_v27 }
 0x4db   :  { %1949 = vmatmul.mubr.msk.f32.vlgmr.msra.gmra.mrb[8].mxu0 %vm354_vm4, %v1775_v24  ;;  %2055 = vmatprep.subr.bf16.mxu0 %v2092_v26 }
 0x4dc   :  { %2057 = vmatpush3.bf16.msra.mxu0 %v2056_v25  ;;  %1959 = vmatprep.mubr.msk.f32.mxu0 %vm2091_vm0, %v2090_v7  ;;  %v1573_v25 = vld [vmem:[%s2508_s12] sm:$0xf] }
 0x4dd   :  { %2058 = vmatprep.subr.bf16.mxu0 %v2092_v26 }
 0x4e0   :  { %2060 = vmatpush3.bf16.msra.mxu0 %v2059_v31 }
 0x4e1   :  { %1978 = vmatprep.subr.mxu0 %v2090_v7 }
 0x4e3   :  { %1960 = vmatmul.mubr.msk.f32.vlgmr.msra.gmra.mrb[10].mxu0 %vm207_vm2, %v2271_v42 }
 0x4e4   :  { %1980 = vmatprep.mubr.msk.f32.mxu0 %vm2091_vm0, %v2090_v7 }
 0x5ae   :  { %v950_v32 = vpop.f32.mrb[8].mxu0 }
 0x5af   :  { %v954_v33 = vadd.f32 %v950_v32, %v805_v20  ;;  %v1950_v34 = vpop.f32.mrb[9].mxu0 }
 0x5b6   :  { %v1021_v39 = vpop.f32.mrb[10].mxu0 }
 0x5b7   :  { %v1961_v43 = vpop.f32.mrb[11].mxu0  ;;  %1963 = vmatpush3.msk.msra.mxu1 %vm358_vm3, %v1021_v39 }
 0x5b8   :  { %1965 = vmatmul.mubr.msk.f32.vlgmr.msra.gmra.mrb[12].mxu1 %vm354_vm4, %v1779_v37  ;;  %2061 = vmatprep.subr.bf16.mxu1 %v2092_v26 }
 0x5b9   :  { %2063 = vmatpush3.bf16.msra.mxu1 %v2062_v38  ;;  %1975 = vmatprep.mubr.msk.f32.mxu1 %vm2091_vm0, %v2090_v7 }
 0x5ba   :  { %2064 = vmatprep.subr.bf16.mxu1 %v2092_v26 }
 0x5bd   :  { %2066 = vmatpush3.bf16.msra.mxu1 %v2065_v44 }
 0x5be   :  { %1994 = vmatprep.subr.mxu1 %v2090_v7 }
 0x5c0   :  { %1976 = vmatmul.mubr.msk.f32.vlgmr.msra.gmra.mrb[14].mxu1 %vm207_vm2, %v2271_v42 }
 0x5c1   :  { %1996 = vmatprep.mubr.msk.f32.mxu1 %vm2091_vm0, %v2090_v7 }
 0x68b   :  { %v1099_v45 = vpop.f32.mrb[12].mxu1 }
 0x68c   :  { %v1103_v46 = vadd.f32 %v1099_v45, %v954_v33  ;;  %v1966_v47 = vpop.f32.mrb[13].mxu1 }
 0x693   :  { %v1170_v52 = vpop.f32.mrb[14].mxu1 }
 0x694   :  { %v1977_v55 = vpop.f32.mrb[15].mxu1  ;;  %1979 = vmatpush3.msk.msra.mxu0 %vm358_vm3, %v1170_v52 }
 0x695   :  { %1981 = vmatmul.mubr.msk.f32.vlgmr.msra.gmra.mrb[12].mxu0 %vm354_vm4, %v1783_v50  ;;  %2067 = vmatprep.subr.bf16.mxu0 %v2092_v26 }
 0x696   :  { %2069 = vmatpush3.bf16.msra.mxu0 %v2068_v51  ;;  %1991 = vmatprep.mubr.msk.f32.mxu0 %vm2091_vm0, %v2090_v7 }
 0x697   :  { %2070 = vmatprep.subr.bf16.mxu0 %v2092_v26 }
 0x69a   :  { %2072 = vmatpush3.bf16.msra.mxu0 %v2071_v56 }
 0x69b   :  { %2010 = vmatprep.subr.mxu0 %v2090_v7 }
 0x69d   :  { %1992 = vmatmul.mubr.msk.f32.vlgmr.msra.gmra.mrb[14].mxu0 %vm207_vm2, %v2271_v42 }
 0x69e   :  { %2012 = vmatprep.mubr.msk.f32.mxu0 %vm2091_vm0, %v2090_v7 }
 0x768   :  { %v1248_v57 = vpop.f32.mrb[12].mxu0 }
 0x769   :  { %v1252_v58 = vadd.f32 %v1248_v57, %v1103_v46  ;;  %v1982_v59 = vpop.f32.mrb[13].mxu0 }
 0x770   :  { %v1319_v0 = vpop.f32.mrb[14].mxu0 }
 0x771   :  { %v1993_v3 = vpop.f32.mrb[15].mxu0  ;;  %1995 = vmatpush3.msk.msra.mxu1 %vm358_vm3, %v1319_v0 }
 0x772   :  { %1997 = vmatmul.mubr.msk.f32.vlgmr.msra.gmra.mrb[16].mxu1 %vm354_vm4, %v1787_v62  ;;  %2073 = vmatprep.subr.bf16.mxu1 %v2092_v26 }
 0x773   :  { %2075 = vmatpush3.bf16.msra.mxu1 %v2074_v63  ;;  %2007 = vmatprep.mubr.msk.f32.mxu1 %vm2091_vm0, %v2090_v7 }
 0x774   :  { %2076 = vmatprep.subr.bf16.mxu1 %v2092_v26  ;;  %v1555_v26 = vpop.permute.xlu1 %1554 }
 0x777   :  { %2078 = vmatpush3.bf16.msra.mxu1 %v2077_v4 }
 0x778   :  { %v1569_v12 = vpop.permute.xlu1 %1568 }
 0x77a   :  { %2008 = vmatmul.mubr.msk.f32.vlgmr.msra.gmra.mrb[18].mxu1 %vm207_vm2, %v2271_v42  ;;  %v1562_v42 = vpop.permute.xlu0 %1561 }
 0x77c   :  { %v1667_v21 = vpop.permute.xlu1 %1666 }
 0x77e   :  { %v1660_v13 = vpop.permute.xlu0 %1659 }
 0x77f   :  { %v1662_v18 = vmul.f32 %v1660_v13, %v2232_v15  ;;  %v1671_v15 = vld [vmem:[%s2509_s16] sm:$0xf] }
 0x780   :  { %v1676_v28 = vpop.permute.xlu1 %1675 }
 0x781   :  { %v1669_v22 = vadd.f32 %v1667_v21, %v1662_v18 }
 0x782   :  { %v1578_v29 = vpop.permute.xlu0 %1577 }
 0x783   :  { %v1670_v27 = vmax.f32 %v1669_v22, 0.0  ;;  %v2079_v30 = vadd.f32 %v1676_v28, %v1578_v29 }
 0x845   :  { %v1397_v5 = vpop.f32.mrb[16].mxu1 }
 0x846   :  { %v1401_v6 = vadd.f32 %v1397_v5, %v1252_v58  ;;  %v1998_v8 = vpop.f32.mrb[17].mxu1 }
 0x84d   :  { %v1468_v10 = vpop.f32.mrb[18].mxu1 }
 0x84e   :  { %v2009_v11 = vpop.f32.mrb[19].mxu1  ;;  %2011 = vmatpush3.msk.msra.mxu0 %vm358_vm3, %v1468_v10 }
 0x84f   :  { %2013 = vmatmul.mubr.msk.f32.vlgmr.msra.gmra.mrb[16].mxu0 %vm354_vm4, %v1791_v9  ;;  %2015 = vmatprep.subr.mxu0 %v2090_v7 }
 0x850   :  { %2017 = vmatprep.mubr.msk.f32.mxu0 %vm2091_vm0, %v2090_v7 }
 0x922   :  { %v1546_v14 = vpop.f32.mrb[16].mxu0 }
 0x923   :  { %v1550_v16 = vadd.f32 %v1546_v14, %v1401_v6  ;;  %v2014_v17 = vpop.f32.mrb[17].mxu0 }
 0x925   :  { %v1557_v19 = vadd.f32 %v1555_v26, %v1550_v16 }
 0x927   :  { %v1564_v20 = vmul.f32 %v1562_v42, %v1557_v19 }
 0x929   :  { %v1571_v23 = vadd.f32 %v1569_v12, %v1564_v20 }
 0x92b   :  { %v1572_v24 = vmax.f32 %v1571_v23, 0.0 }
 0x92d   :  { %2016 = vmatpush3.msk.msra.mxu0 %vm358_vm3, %v1572_v24 }
 0x92e   :  { %2018 = vmatmul.mubr.msk.f32.vlgmr.msra.gmra.mrb[18].mxu0 %vm354_vm4, %v1573_v25  ;;  %2020 = vmatprep.subr.mxu0 %v2090_v7 }
 0x92f   :  { %2021 = vmatpush3.msra.mxu0 %v1670_v27  ;;  %2022 = vmatprep.mubr.msk.f32.mxu0 %vm2091_vm0, %v2090_v7 }
 0x936   :  { %2023 = vmatmul.mubr.msk.f32.vlgmr.msra.gmra.mrb[18].mxu0 %vm82_vm1, %v1671_v15 }
 0xa09   :  { %v1747_v31 = vpop.f32.mrb[18].mxu0 }
 0xa0a   :  { %v2080_v32 = vadd.f32 %v2079_v30, %v1747_v31  ;;  %v2024_v33 = vpop.f32.mrb[19].mxu0 }
 0xa0c   :  { %1753 = vst.msk [vmem:[%s2510_s18] sm:$0xf] %vm1752_vm5, %v2080_v32 }

// kernel: run.29
= control target key start
LH: loop header
LB: loop body
LE: loop exit
PB: predicated region body
PF: predicated region fallthrough
CT: control target
= control target key end

     0   :  { %v297_v3 = vmov 0.0   ;;  %s514_s1 = inlined_call_operand.vmem [shape: f32[128,512], index: 1, kind: input, shape index: {}]   ;;  %s515_s0 = inlined_call_operand.vmem [shape: f32[4,128], index: 0, kind: input, shape index: {}]   ;;  %s516_s2 = inlined_call_operand.vmem [shape: f32[4,512], index: 2, kind: output, shape index: {}]  }
   0x1   :  { %v13_v0 = vld [vmem:[%s514_s1 + $0x8] sm:$0xff]  ;;  %v15_v2 = vld [vmem:[%s514_s1 + $0x18] sm:$0xff]  ;;  %140 = vmatprep.mubr.f32.mxu0 %v297_v3  ;;  %211 = vmatprep.mubr.f32.mxu1 %v297_v3  ;;  %v12_v6 = vld [vmem:[%s514_s1] sm:$0xff] }
   0x2   :  { %v17_v1 = vld [vmem:[%s514_s1 + $0x28] sm:$0xff]  ;;  %v19_v5 = vld [vmem:[%s514_s1 + $0x38] sm:$0xff]  ;;  %v16_v7 = vld [vmem:[%s514_s1 + $0x20] sm:$0xff] }
   0x3   :  { %v232_v4 = vpack.c.bf16 %v17_v1, %v13_v0  ;;  %v264_v8 = vpack.c.bf16 %v19_v5, %v15_v2  ;;  %v234_v9 = vpack.c.bf16 %v16_v7, %v12_v6  ;;  %v14_v10 = vld [vmem:[%s514_s1 + $0x10] sm:$0xff]  ;;  %v21_v12 = vld [vmem:[%s514_s1 + $0x48] sm:$0xff]  ;;  %v23_v15 = vld [vmem:[%s514_s1 + $0x58] sm:$0xff] }
   0x4   :  { %v18_v11 = vld [vmem:[%s514_s1 + $0x30] sm:$0xff]  ;;  %v25_v14 = vld [vmem:[%s514_s1 + $0x68] sm:$0xff]  ;;  %v27_v16 = vld [vmem:[%s514_s1 + $0x78] sm:$0xff] }
   0x5   :  { %233 = vmatprep.subr.bf16.mxu0 %v232_v4  ;;  %v266_v13 = vpack.c.bf16 %v18_v11, %v14_v10  ;;  %265 = vmatprep.subr.bf16.mxu1 %v264_v8  ;;  %v236_v17 = vpack.c.bf16 %v25_v14, %v21_v12  ;;  %v268_v18 = vpack.c.bf16 %v27_v16, %v23_v15  ;;  %v20_v19 = vld [vmem:[%s514_s1 + $0x40] sm:$0xff]  ;;  %v22_v21 = vld [vmem:[%s514_s1 + $0x50] sm:$0xff]  ;;  %v29_v24 = vld [vmem:[%s514_s1 + $0x88] sm:$0xff] }
   0x6   :  { %235 = vmatpush1.bf16.msra.mxu0 %v234_v9  ;;  %v24_v20 = vld [vmem:[%s514_s1 + $0x60] sm:$0xff]  ;;  %v26_v23 = vld [vmem:[%s514_s1 + $0x70] sm:$0xff]  ;;  %v33_v25 = vld [vmem:[%s514_s1 + $0xa8] sm:$0xff] }
   0x7   :  { %267 = vmatpush1.bf16.msra.mxu1 %v266_v13  ;;  %v238_v22 = vpack.c.bf16 %v24_v20, %v20_v19  ;;  %237 = vmatprep.subr.bf16.mxu0 %v236_v17  ;;  %v270_v26 = vpack.c.bf16 %v26_v23, %v22_v21  ;;  %v240_v27 = vpack.c.bf16 %v33_v25, %v29_v24  ;;  %v31_v28 = vld [vmem:[%s514_s1 + $0x98] sm:$0xff]  ;;  %v28_v30 = vld [vmem:[%s514_s1 + $0x80] sm:$0xff]  ;;  %v30_v33 = vld [vmem:[%s514_s1 + $0x90] sm:$0xff] }
   0x8   :  { %269 = vmatprep.subr.bf16.mxu1 %v268_v18  ;;  %v35_v29 = vld [vmem:[%s514_s1 + $0xb8] sm:$0xff]  ;;  %v32_v32 = vld [vmem:[%s514_s1 + $0xa0] sm:$0xff]  ;;  %v34_v34 = vld [vmem:[%s514_s1 + $0xb0] sm:$0xff] }
   0x9   :  { %v272_v31 = vpack.c.bf16 %v35_v29, %v31_v28  ;;  %v242_v35 = vpack.c.bf16 %v32_v32, %v28_v30  ;;  %v37_v36 = vld [vmem:[%s514_s1 + $0xc8] sm:$0xff]  ;;  %v39_v38 = vld [vmem:[%s514_s1 + $0xd8] sm:$0xff]  ;;  %v274_v39 = vpack.c.bf16 %v34_v34, %v30_v33  ;;  %v36_v42 = vld [vmem:[%s514_s1 + $0xc0] sm:$0xff] }
   0xa   :  { %239 = vmatpush1.bf16.msra.mxu0 %v238_v22  ;;  %v41_v37 = vld [vmem:[%s514_s1 + $0xe8] sm:$0xff]  ;;  %v43_v41 = vld [vmem:[%s514_s1 + $0xf8] sm:$0xff]  ;;  %v40_v43 = vld [vmem:[%s514_s1 + $0xe0] sm:$0xff] }
   0xb   :  { %271 = vmatpush1.bf16.msra.mxu1 %v270_v26  ;;  %241 = vmatprep.subr.bf16.mxu0 %v240_v27  ;;  %v244_v40 = vpack.c.bf16 %v41_v37, %v37_v36  ;;  %v276_v44 = vpack.c.bf16 %v43_v41, %v39_v38  ;;  %v38_v45 = vld [vmem:[%s514_s1 + $0xd0] sm:$0xff]  ;;  %v45_v47 = vld [vmem:[%s514_s1 + $0x108] sm:$0xff]  ;;  %v47_v49 = vld [vmem:[%s514_s1 + $0x118] sm:$0xff]  ;;  %v246_v51 = vpack.c.bf16 %v40_v43, %v36_v42 }
   0xc   :  { %273 = vmatprep.subr.bf16.mxu1 %v272_v31  ;;  %v42_v46 = vld [vmem:[%s514_s1 + $0xf0] sm:$0xff]  ;;  %v49_v48 = vld [vmem:[%s514_s1 + $0x128] sm:$0xff]  ;;  %v51_v50 = vld [vmem:[%s514_s1 + $0x138] sm:$0xff] }
   0xd   :  { %v278_v52 = vpack.c.bf16 %v42_v46, %v38_v45  ;;  %v248_v53 = vpack.c.bf16 %v49_v48, %v45_v47  ;;  %v44_v54 = vld [vmem:[%s514_s1 + $0x100] sm:$0xff]  ;;  %v46_v56 = vld [vmem:[%s514_s1 + $0x110] sm:$0xff]  ;;  %v280_v57 = vpack.c.bf16 %v51_v50, %v47_v49  ;;  %v53_v59 = vld [vmem:[%s514_s1 + $0x148] sm:$0xff] }
   0xe   :  { %243 = vmatpush1.bf16.msra.mxu0 %v242_v35  ;;  %v48_v55 = vld [vmem:[%s514_s1 + $0x120] sm:$0xff]  ;;  %v50_v58 = vld [vmem:[%s514_s1 + $0x130] sm:$0xff]  ;;  %v57_v60 = vld [vmem:[%s514_s1 + $0x168] sm:$0xff] }
   0xf   :  { %275 = vmatpush1.bf16.msra.mxu1 %v274_v39  ;;  %245 = vmatprep.subr.bf16.mxu0 %v244_v40  ;;  %v55_v61 = vld [vmem:[%s514_s1 + $0x158] sm:$0xff]  ;;  %v250_v63 = vpack.c.bf16 %v48_v55, %v44_v54  ;;  %v282_v0 = vpack.c.bf16 %v50_v58, %v46_v56  ;;  %v252_v1 = vpack.c.bf16 %v57_v60, %v53_v59  ;;  %v52_v2 = vld [vmem:[%s514_s1 + $0x140] sm:$0xff]  ;;  %v54_v4 = vld [vmem:[%s514_s1 + $0x150] sm:$0xff] }
  0x10   :  { %277 = vmatprep.subr.bf16.mxu1 %v276_v44  ;;  %v59_v62 = vld [vmem:[%s514_s1 + $0x178] sm:$0xff]  ;;  %v56_v3 = vld [vmem:[%s514_s1 + $0x160] sm:$0xff]  ;;  %v58_v6 = vld [vmem:[%s514_s1 + $0x170] sm:$0xff] }
  0x11   :  { %v284_v5 = vpack.c.bf16 %v59_v62, %v55_v61  ;;  %v61_v7 = vld [vmem:[%s514_s1 + $0x188] sm:$0xff]  ;;  %v63_v9 = vld [vmem:[%s514_s1 + $0x198] sm:$0xff]  ;;  %v254_v11 = vpack.c.bf16 %v56_v3, %v52_v2  ;;  %v286_v12 = vpack.c.bf16 %v58_v6, %v54_v4  ;;  %v60_v14 = vld [vmem:[%s514_s1 + $0x180] sm:$0xff] }
  0x12   :  { %247 = vmatpush1.bf16.msra.mxu0 %v246_v51  ;;  %v65_v8 = vld [vmem:[%s514_s1 + $0x1a8] sm:$0xff]  ;;  %v67_v10 = vld [vmem:[%s514_s1 + $0x1b8] sm:$0xff]  ;;  %v64_v15 = vld [vmem:[%s514_s1 + $0x1a0] sm:$0xff] }
  0x13   :  { %279 = vmatpush1.bf16.msra.mxu1 %v278_v52  ;;  %249 = vmatprep.subr.bf16.mxu0 %v248_v53  ;;  %v256_v13 = vpack.c.bf16 %v65_v8, %v61_v7  ;;  %v62_v16 = vld [vmem:[%s514_s1 + $0x190] sm:$0xff]  ;;  %v288_v17 = vpack.c.bf16 %v67_v10, %v63_v9  ;;  %v69_v19 = vld [vmem:[%s514_s1 + $0x1c8] sm:$0xff]  ;;  %v71_v21 = vld [vmem:[%s514_s1 + $0x1d8] sm:$0xff]  ;;  %v258_v23 = vpack.c.bf16 %v64_v15, %v60_v14 }
  0x14   :  { %281 = vmatprep.subr.bf16.mxu1 %v280_v57  ;;  %v66_v18 = vld [vmem:[%s514_s1 + $0x1b0] sm:$0xff]  ;;  %v73_v20 = vld [vmem:[%s514_s1 + $0x1e8] sm:$0xff]  ;;  %v75_v22 = vld [vmem:[%s514_s1 + $0x1f8] sm:$0xff] }
  0x15   :  { %v290_v24 = vpack.c.bf16 %v66_v18, %v62_v16  ;;  %v260_v25 = vpack.c.bf16 %v73_v20, %v69_v19  ;;  %v68_v26 = vld [vmem:[%s514_s1 + $0x1c0] sm:$0xff]  ;;  %v292_v28 = vpack.c.bf16 %v75_v22, %v71_v21  ;;  %v70_v29 = vld [vmem:[%s514_s1 + $0x1d0] sm:$0xff] }
  0x16   :  { %251 = vmatpush1.bf16.msra.mxu0 %v250_v63  ;;  %v72_v27 = vld [vmem:[%s514_s1 + $0x1e0] sm:$0xff]  ;;  %v74_v30 = vld [vmem:[%s514_s1 + $0x1f0] sm:$0xff] }
  0x17   :  { %283 = vmatpush1.bf16.msra.mxu1 %v282_v0  ;;  %253 = vmatprep.subr.bf16.mxu0 %v252_v1  ;;  %v262_v31 = vpack.c.bf16 %v72_v27, %v68_v26  ;;  %v294_v32 = vpack.c.bf16 %v74_v30, %v70_v29  ;;  %v11_v33 = vld [vmem:[%s515_s0] sm:$0xf] }
  0x18   :  { %285 = vmatprep.subr.bf16.mxu1 %v284_v5 }
  0x1a   :  { %255 = vmatpush1.bf16.msra.mxu0 %v254_v11 }
  0x1b   :  { %287 = vmatpush1.bf16.msra.mxu1 %v286_v12  ;;  %257 = vmatprep.subr.bf16.mxu0 %v256_v13 }
  0x1c   :  { %289 = vmatprep.subr.bf16.mxu1 %v288_v17 }
  0x1e   :  { %259 = vmatpush1.bf16.msra.mxu0 %v258_v23 }
  0x1f   :  { %291 = vmatpush1.bf16.msra.mxu1 %v290_v24  ;;  %261 = vmatprep.subr.bf16.mxu0 %v260_v25 }
  0x20   :  { %293 = vmatprep.subr.bf16.mxu1 %v292_v28 }
  0x22   :  { %263 = vmatpush1.bf16.msra.mxu0 %v262_v31 }
  0x23   :  { %295 = vmatpush1.bf16.msra.mxu1 %v294_v32 }
  0x25   :  { %141 = vmatmul.mubr.f32.vlgmr.msra.gmra.mrb[0].mxu0 %v11_v33 }
  0x26   :  { %212 = vmatmul.mubr.f32.vlgmr.msra.gmra.mrb[0].mxu1 %v11_v33 }
  0xf8   :  { %v142_v34 = vpop.f32.mrb[0].mxu0 }
  0xf9   :  { %v213_v35 = vpop.f32.mrb[0].mxu1  ;;  %v144_v36 = vpop.f32.mrb[1].mxu0 }
  0xfa   :  { %v222_v37 = vcombine.low %v142_v34, %v144_v36  ;;  %v215_v38 = vpop.f32.mrb[1].mxu1 }
  0xfb   :  { %v223_v39 = vcombine.low %v213_v35, %v215_v38 }
  0xfc   :  { %226 = vst [vmem:[%s516_s2] sm:$0xff] %v222_v37 }
  0xfd   :  { %227 = vst [vmem:[%s516_s2 + $0x8] sm:$0xff] %v223_v39 }

// kernel: run.30
= control target key start
LH: loop header
LB: loop body
LE: loop exit
PB: predicated region body
PF: predicated region fallthrough
CT: control target
= control target key end

     0   :  { %v238_v0 = vmov 0   ;;  %v239_v3 = vmov 0.0   ;;  %vm58_vm0 = vcmask 64512   ;;  %s311_s2 = inlined_call_operand.vmem [shape: f32[8,1], index: 2, kind: input, shape index: {}]   ;;  %s312_s3 = inlined_call_operand.vmem [shape: f32[8,1], index: 3, kind: input, shape index: {}]   ;;  %s313_s5 = inlined_call_operand.vmem [shape: f32[4,1], index: 5, kind: input, shape index: {}]   ;;  %s314_s0 = inlined_call_operand.vmem [shape: f32[8,512], index: 0, kind: input, shape index: {}]   ;;  %s315_s4 = inlined_call_operand.vmem [shape: f32[4,8], index: 4, kind: input, shape index: {}]   ;;  %s316_s1 = inlined_call_operand.vmem [shape: f32[4,512], index: 1, kind: input, shape index: {}]   ;;  %s317_s6 = inlined_call_operand.vmem [shape: f32[4,512], index: 6, kind: output, shape index: {}]  }
   0x1   :  { %234 = vset.pattern.permute.xlu0 %v238_v0  ;;  %v27_v1 = vld [vmem:[%s311_s2] sm:$0xff]  ;;  %235 = vset.pattern.permute.xlu1 %v238_v0  ;;  %v24_v5 = vld [vmem:[%s314_s0 + $0x8] sm:$0xff]  ;;  %v26_v7 = vld [vmem:[%s314_s0 + $0x18] sm:$0xff] }
   0x2   :  { %30 = vperm.xlu0 %234, %v27_v1   ;;  %v37_v2 = vld [vmem:[%s312_s3] sm:$0xff]  ;;  %126 = vmatprep.mubr.f32.mxu0 %v239_v3  ;;  %v25_v9 = vld [vmem:[%s314_s0 + $0x10] sm:$0xff]  ;;  %v205_v25 = vld [vmem:[%s316_s1 + $0x8] sm:$0xff] }
   0x3   :  { %197 = vmatprep.mubr.f32.mxu1 %v239_v3  ;;  %v52_v4 = vld [vmem:[%s313_s5] sm:$0xf]  ;;  %v209_v30 = vcombine.high %v205_v25, %v205_v25 }
   0x4   :  { %55 = vperm.xlu1 %235, %v52_v4   ;;  %v23_v8 = vld [vmem:[%s314_s0] sm:$0xff] }
   0x5   :  { %v51_v23 = vld [vmem:[%s315_s4] sm:$0xf] }
   0x6   :  { %40 = vperm.xlu0 %234, %v37_v2   ;;  %v204_v24 = vld [vmem:[%s316_s1] sm:$0xff] }
   0x7   :  { %v208_v29 = vcombine.high %v204_v24, %v204_v24 }
  0x81   :  { %v31_v6 = vpop.permute.xlu0 %30 }
  0x82   :  { %v34_v10 = vmul.f32 %v31_v6, %v24_v5  ;;  %v36_v11 = vmul.f32 %v31_v6, %v26_v7  ;;  %v33_v12 = vmul.f32 %v31_v6, %v23_v8  ;;  %v35_v13 = vmul.f32 %v31_v6, %v25_v9 }
  0x83   :  { %v56_v26 = vpop.permute.xlu1 %55 }
  0x85   :  { %v41_v14 = vpop.permute.xlu0 %40 }
  0x86   :  { %v44_v15 = vadd.f32 %v41_v14, %v34_v10  ;;  %v46_v16 = vadd.f32 %v41_v14, %v36_v11  ;;  %v43_v17 = vadd.f32 %v41_v14, %v33_v12  ;;  %v45_v18 = vadd.f32 %v41_v14, %v35_v13 }
  0x88   :  { %v48_v19 = vmax.f32 %v44_v15, 0.0  ;;  %v50_v20 = vmax.f32 %v46_v16, 0.0  ;;  %v47_v21 = vmax.f32 %v43_v17, 0.0  ;;  %v49_v22 = vmax.f32 %v45_v18, 0.0 }
  0x8a   :  { %62 = vmatprep.subr.mxu0 %v48_v19  ;;  %133 = vmatprep.subr.mxu1 %v50_v20 }
  0x8b   :  { %63 = vmatpush1.msra.mxu0 %v47_v21  ;;  %134 = vmatpush1.msra.mxu1 %v49_v22 }
  0x8c   :  { %230 = vmatmul.mubr.msk.f32.vlgmr.msra.gmra.mrb[0].mxu0 %vm58_vm0, %v51_v23  ;;  %231 = vmatmul.mubr.msk.f32.vlgmr.msra.gmra.mrb[0].mxu1 %vm58_vm0, %v51_v23 }
 0x15f   :  { %v128_v27 = vpop.f32.mrb[0].mxu0  ;;  %v199_v28 = vpop.f32.mrb[0].mxu1 }
 0x160   :  { %v129_v31 = vadd.f32 %v128_v27, %v56_v26  ;;  %v200_v32 = vadd.f32 %v199_v28, %v56_v26  ;;  %v130_v33 = vpop.f32.mrb[1].mxu0  ;;  %v201_v34 = vpop.f32.mrb[1].mxu1 }
 0x161   :  { %v131_v35 = vadd.f32 %v130_v33, %v56_v26  ;;  %v202_v36 = vadd.f32 %v201_v34, %v56_v26 }
 0x162   :  { %v212_v37 = vadd.f32 %v204_v24, %v129_v31  ;;  %v214_v38 = vadd.f32 %v205_v25, %v200_v32 }
 0x163   :  { %v213_v39 = vadd.f32 %v208_v29, %v131_v35  ;;  %v215_v40 = vadd.f32 %v209_v30, %v202_v36 }
 0x165   :  { %v220_v41 = vcombine.low %v212_v37, %v213_v39  ;;  %v221_v42 = vcombine.low %v214_v38, %v215_v40 }
 0x167   :  { %224 = vst [vmem:[%s317_s6] sm:$0xff] %v220_v41  ;;  %225 = vst [vmem:[%s317_s6 + $0x8] sm:$0xff] %v221_v42 }

// kernel: run.27
= control target key start
LH: loop header
LB: loop body
LE: loop exit
PB: predicated region body
PF: predicated region fallthrough
CT: control target
= control target key end

     0   :  { %19 = vsyncpa [#allocation3], 0  ;;  %s1577_s0 = inlined_call_operand.vmem [shape: f32[4,128], index: 0, kind: input, shape index: {}]   ;;  %s1578_s1 = inlined_call_operand.vmem [shape: f32[9,128], index: 1, kind: input, shape index: {}]   ;;  %s1579_s2 = inlined_call_operand.vmem [shape: f32[4,1], index: 2, kind: input, shape index: {}]   ;;  %s1580_s3 = inlined_call_operand.vmem [shape: f32[4,1], index: 3, kind: input, shape index: {}]   ;;  %s1581_s4 = inlined_call_operand.vmem [shape: f32[2,4], index: 4, kind: input, shape index: {}]   ;;  %s1582_s5 = inlined_call_operand.vmem [shape: f32[2,1], index: 5, kind: input, shape index: {}]   ;;  %s1583_s6 = inlined_call_operand.vmem [shape: f32[2,1], index: 6, kind: input, shape index: {}]   ;;  %s1584_s7 = inlined_call_operand.hbm [shape: f32[2,1], index: 7, kind: input, shape index: {}]   ;;  %s1585_s8 = inlined_call_operand.vmem [shape: f32[9,2,2], index: 8, kind: input, shape index: {}]   ;;  %s1586_s9 = inlined_call_operand.hbm [shape: f32[2,1], index: 9, kind: input, shape index: {}]   ;;  %s1587_s10 = inlined_call_operand.hbm [shape: f32[2,1], index: 10, kind: input, shape index: {}]   ;;  %s1588_s11 = inlined_call_operand.hbm [shape: f32[2,1], index: 11, kind: input, shape index: {}]   ;;  %s1589_s12 = inlined_call_operand.vmem [shape: f32[4,2], index: 12, kind: input, shape index: {}]   ;;  %s1590_s13 = inlined_call_operand.vmem [shape: f32[4,1], index: 13, kind: input, shape index: {}]   ;;  %s1591_s14 = inlined_call_operand.vmem [shape: f32[4,128], index: 14, kind: output, shape index: {}]  }
   0x1   :  { %20 = vsyncpa [#allocation5], 0 }
   0x2   :  { %21 = vsyncpa [#allocation8], 0  ;;  %s1311_s29 = smov [#allocation4]   ;;  %s1312_s15 = smov [#allocation2]  }
   0x3   :  { %s54_s30 = sshll.u32 %s1311_s29, 4  ;;  %s42_s16 = sshll.u32 %s1312_s15, 4  ;;  %s55_s30 = int_to_ptr.vmem [resolvable:$true] %s54_s30  ;;  %s43_s16 = int_to_ptr.vmem [resolvable:$true] %s42_s16 }
   0x4   :  { %s1217_s19 = scalar_lea.hbm %s1586_s9, 32 }
   0x5   :  { %p1218_p0 = scmp.ne.s32.totalorder %s1586_s9, %s1217_s19  ;;  %p1221_p1 = scmp.lt.u32.totalorder %s1217_s19, %s1586_s9 }
   0x7   :  { %p1223_p2 = pnand %p1221_p1, %p1218_p0 }
   0x9   :  { %1226 = shalt.err (!%p1223_p2)
}
   0xa   :  { %s1227_s24 = scalar_lea.vmem %s55_s30, 32  ;;  %p1232_p4 = scmp.lt.s32.totalorder %s55_s30, %s55_s30 }
   0xb   :  { %p1228_p3 = scmp.ne.s32.totalorder %s55_s30, %s1227_s24  ;;  %p1233_p5 = scmp.lt.s32.totalorder %s1227_s24, %s1227_s24 }
   0xd   :  { %p1234_p6 = por %p1233_p5, %p1232_p4 }
   0xf   :  { %p1235_p7 = pnand %p1234_p6, %p1228_p3 }
  0x11   :  { %1238 = shalt.err (!%p1235_p7)
}
  0x12   :  { %57 = dma.hbm_to_vmem [thread:$0]  %s1586_s9, 32, %s55_s30, [#allocation5]  }
  0x13   :  { %s1239_s29 = scalar_lea.hbm %s1584_s7, 32 }
  0x14   :  { %p1240_p8 = scmp.ne.s32.totalorder %s1584_s7, %s1239_s29  ;;  %p1243_p9 = scmp.lt.u32.totalorder %s1239_s29, %s1584_s7 }
  0x16   :  { %p1245_p10 = pnand %p1243_p9, %p1240_p8 }
  0x18   :  { %1248 = shalt.err (!%p1245_p10)
}
  0x19   :  { %s1249_s20 = scalar_lea.vmem %s43_s16, 32  ;;  %p1254_p12 = scmp.lt.s32.totalorder %s43_s16, %s43_s16 }
  0x1a   :  { %p1250_p11 = scmp.ne.s32.totalorder %s43_s16, %s1249_s20  ;;  %p1255_p13 = scmp.lt.s32.totalorder %s1249_s20, %s1249_s20 }
  0x1c   :  { %p1256_p0 = por %p1255_p13, %p1254_p12 }
  0x1e   :  { %p1257_p1 = pnand %p1256_p0, %p1250_p11 }
  0x20   :  { %1260 = shalt.err (!%p1257_p1)
}
  0x21   :  { %45 = dma.hbm_to_vmem [thread:$0]  %s1584_s7, 32, %s43_s16, [#allocation3]  }
  0x22   :  { %s1313_s21 = smov [#allocation6]   ;;  %s1314_s23 = smov [#allocation7]  }
  0x23   :  { %s64_s22 = sshll.u32 %s1313_s21, 4  ;;  %s74_s24 = sshll.u32 %s1314_s23, 4  ;;  %s65_s22 = int_to_ptr.vmem [resolvable:$true] %s64_s22  ;;  %s75_s24 = int_to_ptr.vmem [resolvable:$true] %s74_s24 }
  0x24   :  { %s1261_s27 = scalar_lea.hbm %s1587_s10, 32 }
  0x25   :  { %p1262_p2 = scmp.ne.s32.totalorder %s1587_s10, %s1261_s27  ;;  %p1265_p3 = scmp.lt.u32.totalorder %s1261_s27, %s1587_s10 }
  0x27   :  { %p1267_p4 = pnand %p1265_p3, %p1262_p2 }
  0x29   :  { %1270 = shalt.err (!%p1267_p4)
}
  0x2a   :  { %s1271_s7 = scalar_lea.vmem %s65_s22, 32  ;;  %p1276_p6 = scmp.lt.s32.totalorder %s65_s22, %s65_s22 }
  0x2b   :  { %p1272_p5 = scmp.ne.s32.totalorder %s65_s22, %s1271_s7  ;;  %p1277_p7 = scmp.lt.s32.totalorder %s1271_s7, %s1271_s7 }
  0x2d   :  { %p1278_p8 = por %p1277_p7, %p1276_p6 }
  0x2f   :  { %p1279_p9 = pnand %p1278_p8, %p1272_p5 }
  0x31   :  { %1282 = shalt.err (!%p1279_p9)
}
  0x32   :  { %67 = dma.hbm_to_vmem [thread:$0]  %s1587_s10, 32, %s65_s22, [#allocation5]  }
  0x33   :  { %s1283_s9 = scalar_lea.hbm %s1588_s11, 32 }
  0x34   :  { %p1284_p10 = scmp.ne.s32.totalorder %s1588_s11, %s1283_s9  ;;  %p1287_p11 = scmp.lt.u32.totalorder %s1283_s9, %s1588_s11 }
  0x36   :  { %p1289_p12 = pnand %p1287_p11, %p1284_p10 }
  0x38   :  { %1292 = shalt.err (!%p1289_p12)
}
  0x39   :  { %s1293_s26 = scalar_lea.vmem %s75_s24, 32  ;;  %p1298_p0 = scmp.lt.s32.totalorder %s75_s24, %s75_s24 }
  0x3a   :  { %p1294_p13 = scmp.ne.s32.totalorder %s75_s24, %s1293_s26  ;;  %p1299_p1 = scmp.lt.s32.totalorder %s1293_s26, %s1293_s26 }
  0x3c   :  { %p1300_p2 = por %p1299_p1, %p1298_p0 }
  0x3e   :  { %p1301_p3 = pnand %p1300_p2, %p1294_p13 }
  0x40   :  { %1304 = shalt.err (!%p1301_p3)
}
  0x41   :  { %77 = dma.hbm_to_vmem [thread:$0]  %s1588_s11, 32, %s75_s24, [#allocation8]  }
  0x42   :  { %1305 = dma.done.wait [#allocation3], 32  }
  0x43   :  { %1306 = vsyncadd [#allocation3], 4294967264 }
  0x44   :  { %1307 = dma.done.wait [#allocation5], 64  }
  0x45   :  { %1308 = vsyncadd [#allocation5], 4294967232 }
  0x46   :  { %1309 = dma.done.wait [#allocation8], 32  }
  0x47   :  { %1310 = vsyncadd [#allocation8], 4294967264  ;;  %v1315_v0 = vmov 0   ;;  %v95_v1 = vld [vmem:[%s1579_s2] sm:$0xf]  ;;  %v1316_v4 = vmov 0.0   ;;  %v214_v27 = vlaneseq }
  0x48   :  { %1215 = vset.pattern.permute.xlu0 %v1315_v0  ;;  %1216 = vset.pattern.permute.xlu1 %v1315_v0  ;;  %v102_v2 = vld [vmem:[%s1580_s3] sm:$0xf]  ;;  %vm1317_vm0 = vmmov 0   ;;  %vm121_vm1 = vcmask 1043456   ;;  %vm117_vm2 = vcmask 31744   ;;  %s1321_s18 = smov 7  }
  0x49   :  { %98 = vperm.xlu0 %1215, %v95_v1   ;;  %v202_v3 = vld [vmem:[#allocation2] sm:$0x3]  ;;  %1145 = vmatprep.subr.mxu0 %v1316_v4  ;;  %s1322_s19 = smov 121   ;;  %s1323_s20 = smov 127   ;;  %v985_v23 = vld [vmem:[#allocation6] sm:$0x3] }
  0x4a   :  { %1150 = vmatprep.subr.mxu1 %v1316_v4  ;;  %1147 = vmatprep.mubr.msk.f32.mxu0 %vm1317_vm0, %v1316_v4  ;;  %v111_v5 = vld [vmem:[%s1582_s5] sm:$0x3]  ;;  %s1324_s9 = smov 119   ;;  %s1325_s30 = smov 120   ;;  %v978_v24 = vld [vmem:[#allocation4] sm:$0x3] }
  0x4b   :  { %1152 = vmatprep.mubr.msk.f32.mxu1 %vm1317_vm0, %v1316_v4  ;;  %114 = vperm.xlu1 %1216, %v111_v5   ;;  %v195_v6 = vld [vmem:[%s1583_s6] sm:$0x3]  ;;  %s1320_s6 = smov 1   ;;  %v992_v26 = vld [vmem:[#allocation7] sm:$0x3]  ;;  %v215_v28 = vshrl.u32 %v214_v27, 7 }
  0x4c   :  { %v1470_v8 = vld [vmem:[%s1577_s0] sm:$0xf]  ;;  %s1318_s0 = smov 9   ;;  %vm233_vm3 = vcmask 1041408   ;;  %vm229_vm4 = vcmask 15360  }
  0x4d   :  { %105 = vperm.xlu0 %1215, %v102_v2   ;;  %v110_v13 = vld [vmem:[%s1581_s4] sm:$0x3]  ;;  %s1319_s4 = smov 8   ;;  %v216_v29 = vsub.s32 0, %v215_v28  ;;  %v224_v30 = vsub.s32 1, %v215_v28  ;;  %v473_v32 = vsub.s32 3, %v215_v28 }
  0x4e   :  { %v1001_v25 = vld [vmem:[%s1590_s13] sm:$0xf]  ;;  %v387_v35 = vsub.s32 2, %v215_v28  ;;  %v724_v39 = vsub.s32 6, %v215_v28  ;;  %v638_v45 = vsub.s32 5, %v215_v28  ;;  %v810_v53 = vsub.s32 7, %v215_v28 }
  0x4f   :  { %198 = vperm.xlu1 %1216, %v195_v6   ;;  %v210_v31 = vld [vmem:[%s1578_s1] sm:$0xff]  ;;  %v1105_v59 = vld [vmem:[%s1585_s8 + $0x8] sm:$0x3]  ;;  %v1108_v62 = vld [vmem:[%s1585_s8 + $0xa] sm:$0x3] }
  0x50   :  { %v217_v33 = vrot.slane %v210_v31, %v216_v29  ;;  %v225_v34 = vrot.slane %v210_v31, %v224_v30  ;;  %v474_v38 = vrot.slane %v210_v31, %v473_v32  ;;  %v219_v42 = vld [vmem:[%s1585_s8] sm:$0x3]  ;;  %v1094_v43 = vld [vmem:[%s1585_s8 + $0x2] sm:$0x3]  ;;  %v388_v44 = vrot.slane %v210_v31, %v387_v35  ;;  %v1099_v51 = vld [vmem:[%s1585_s8 + $0x4] sm:$0x3] }
  0x51   :  { %205 = vperm.xlu0 %1215, %v202_v3   ;;  %v725_v48 = vrot.slane %v210_v31, %v724_v39  ;;  %v639_v52 = vrot.slane %v210_v31, %v638_v45  ;;  %v1102_v54 = vld [vmem:[%s1585_s8 + $0x6] sm:$0x3]  ;;  %v811_v60 = vrot.slane %v210_v31, %v810_v53  ;;  %v1117_v61 = vld [vmem:[%s1578_s1 + $0x8] ss:$0 sm:$0xff]  ;;  %v1111_v3 = vld [vmem:[%s1585_s8 + $0xc] sm:$0x3] }
  0x52   :  { %v1114_v5 = vld [vmem:[%s1585_s8 + $0xe] sm:$0x3]  ;;  %v1118_v6 = vld [vmem:[%s1585_s8 + $0x10] sm:$0x3] }
  0xc8   :  { %v99_v7 = vpop.permute.xlu0 %98 }
  0xc9   :  { %v101_v9 = vmul.f32 %v99_v7, %v1470_v8 }
  0xca   :  { %v115_v14 = vpop.permute.xlu1 %114 }
  0xcc   :  { %v106_v10 = vpop.permute.xlu0 %105 }
  0xcd   :  { %v108_v11 = vadd.f32 %v106_v10, %v101_v9 }
  0xce   :  { %v199_v18 = vpop.permute.xlu1 %198 }
  0xcf   :  { %v109_v12 = vmax.f32 %v108_v11, 0.0 }
  0xd0   :  { %v206_v20 = vpop.permute.xlu0 %205 }
  0xd1   :  { %1146 = vmatpush3.msk.msra.mxu0 %vm121_vm1, %v109_v12 }
  0xd2   :  { %1148 = vmatmul.mubr.msk.f32.vlgmr.msra.gmra.mrb[0].mxu0 %vm117_vm2, %v110_v13  ;;  %1155 = vmatprep.subr.mxu0 %v1316_v4 }
  0xd3   :  { %1157 = vmatprep.mubr.msk.f32.mxu0 %vm1317_vm0, %v1316_v4 }
 0x1a5   :  { %v191_v15 = vpop.f32.mrb[0].mxu0 }
 0x1a6   :  { %v192_v16 = vadd.f32 %v191_v15, %v115_v14  ;;  %v1149_v17 = vpop.f32.mrb[1].mxu0 }
 0x1a8   :  { %v201_v19 = vmul.f32 %v199_v18, %v192_v16 }
 0x1aa   :  { %v208_v21 = vadd.f32 %v206_v20, %v201_v19 }
 0x1ac   :  { %v1479_v22 = vmax.f32 %v208_v21, 0.0 }
 0x1ae   :  { %212 = vrot.lane.b32.xlu0 %v1479_v22, %s1318_s0  ;;  %220 = vrot.lane.b32.xlu1 %v1479_v22, %s1319_s4 }
 0x1b2   :  { %469 = vrot.lane.b32.xlu0 %v1479_v22, %s1320_s6  ;;  %383 = vrot.lane.b32.xlu1 %v1479_v22, %s1321_s18 }
 0x1b6   :  { %720 = vrot.lane.b32.xlu0 %v1479_v22, %s1322_s19  ;;  %634 = vrot.lane.b32.xlu1 %v1479_v22, %s1323_s20 }
 0x1ba   :  { %892 = vrot.lane.b32.xlu0 %v1479_v22, %s1324_s9  ;;  %806 = vrot.lane.b32.xlu1 %v1479_v22, %s1325_s30 }
 0x1be   :  { %988 = vperm.xlu0 %1215, %v985_v23   ;;  %981 = vperm.xlu1 %1216, %v978_v24  }
 0x1c2   :  { %1004 = vperm.xlu0 %1215, %v1001_v25   ;;  %995 = vperm.xlu1 %1216, %v992_v26  }
 0x220   :  { %v213_v36 = vpop.permute.xlu0 %212  ;;  %v221_v37 = vpop.permute.xlu1 %220 }
 0x221   :  { %v218_v40 = vmul.f32 %v217_v33, %v213_v36  ;;  %v226_v41 = vmul.f32 %v225_v34, %v221_v37 }
 0x223   :  { %1151 = vmatpush3.msk.msra.mxu1 %vm233_vm3, %v226_v41  ;;  %1156 = vmatpush3.msk.msra.mxu0 %vm233_vm3, %v218_v40  ;;  %v1000_v40 = vld [vmem:[%s1589_s12] sm:$0xf] }
 0x224   :  { %1158 = vmatmul.mubr.msk.f32.vlgmr.msra.gmra.mrb[2].mxu0 %vm229_vm4, %v219_v42  ;;  %v470_v46 = vpop.permute.xlu0 %469  ;;  %1153 = vmatmul.mubr.msk.f32.vlgmr.msra.gmra.mrb[0].mxu1 %vm229_vm4, %v1094_v43  ;;  %v384_v47 = vpop.permute.xlu1 %383 }
 0x225   :  { %v475_v49 = vmul.f32 %v474_v38, %v470_v46  ;;  %v389_v50 = vmul.f32 %v388_v44, %v384_v47  ;;  %1160 = vmatprep.subr.mxu1 %v1316_v4  ;;  %1165 = vmatprep.subr.mxu0 %v1316_v4 }
 0x226   :  { %1162 = vmatprep.mubr.msk.f32.mxu1 %vm1317_vm0, %v1316_v4  ;;  %1167 = vmatprep.mubr.msk.f32.mxu0 %vm1317_vm0, %v1316_v4 }
 0x227   :  { %1161 = vmatpush3.msk.msra.mxu1 %vm233_vm3, %v389_v50  ;;  %1166 = vmatpush3.msk.msra.mxu0 %vm233_vm3, %v475_v49 }
 0x228   :  { %v721_v55 = vpop.permute.xlu0 %720  ;;  %1163 = vmatmul.mubr.msk.f32.vlgmr.msra.gmra.mrb[2].mxu1 %vm229_vm4, %v1099_v51  ;;  %1170 = vmatprep.subr.mxu1 %v1316_v4  ;;  %v635_v56 = vpop.permute.xlu1 %634 }
 0x229   :  { %v726_v57 = vmul.f32 %v725_v48, %v721_v55  ;;  %v640_v58 = vmul.f32 %v639_v52, %v635_v56  ;;  %1168 = vmatmul.mubr.msk.f32.vlgmr.msra.gmra.mrb[4].mxu0 %vm229_vm4, %v1102_v54  ;;  %1171 = vmatpush3.msk.msra.mxu1 %vm233_vm3, %v1479_v22 }
 0x22a   :  { %1175 = vmatprep.subr.mxu0 %v1316_v4  ;;  %1172 = vmatprep.mubr.msk.f32.mxu1 %vm1317_vm0, %v1316_v4 }
 0x22b   :  { %1176 = vmatpush3.msk.msra.mxu0 %vm233_vm3, %v640_v58  ;;  %1180 = vmatprep.subr.mxu1 %v1316_v4 }
 0x22c   :  { %1177 = vmatprep.mubr.msk.f32.mxu0 %vm1317_vm0, %v1316_v4  ;;  %v893_v63 = vpop.permute.xlu0 %892  ;;  %1173 = vmatmul.mubr.msk.f32.vlgmr.msra.gmra.mrb[4].mxu1 %vm229_vm4, %v1105_v59  ;;  %v807_v0 = vpop.permute.xlu1 %806 }
 0x22d   :  { %v898_v1 = vmul.f32 %v1117_v61, %v893_v63  ;;  %1181 = vmatpush3.msk.msra.mxu1 %vm233_vm3, %v726_v57  ;;  %v812_v2 = vmul.f32 %v811_v60, %v807_v0  ;;  %1178 = vmatmul.mubr.msk.f32.vlgmr.msra.gmra.mrb[6].mxu0 %vm229_vm4, %v1108_v62 }
 0x22e   :  { %1185 = vmatprep.subr.mxu0 %v1316_v4  ;;  %1182 = vmatprep.mubr.msk.f32.mxu1 %vm1317_vm0, %v1316_v4 }
 0x22f   :  { %1186 = vmatpush3.msk.msra.mxu0 %vm233_vm3, %v812_v2  ;;  %1190 = vmatprep.subr.mxu1 %v1316_v4 }
 0x230   :  { %1183 = vmatmul.mubr.msk.f32.vlgmr.msra.gmra.mrb[6].mxu1 %vm229_vm4, %v1111_v3  ;;  %1187 = vmatprep.mubr.msk.f32.mxu0 %vm1317_vm0, %v1316_v4 }
 0x231   :  { %1191 = vmatpush3.msk.msra.mxu1 %vm233_vm3, %v898_v1  ;;  %1188 = vmatmul.mubr.msk.f32.vlgmr.msra.gmra.mrb[8].mxu0 %vm229_vm4, %v1114_v5 }
 0x232   :  { %1192 = vmatprep.mubr.msk.f32.mxu1 %vm1317_vm0, %v1316_v4  ;;  %1195 = vmatprep.subr.mxu0 %v1316_v4 }
 0x233   :  { %1197 = vmatprep.mubr.msk.f32.mxu0 %vm1317_vm0, %v1316_v4 }
 0x234   :  { %1193 = vmatmul.mubr.msk.f32.vlgmr.msra.gmra.mrb[8].mxu1 %vm229_vm4, %v1118_v6 }
 0x23d   :  { %v982_v30 = vpop.permute.xlu1 %981  ;;  %v989_v35 = vpop.permute.xlu0 %988 }
 0x241   :  { %v996_v37 = vpop.permute.xlu1 %995  ;;  %v1005_v41 = vpop.permute.xlu0 %1004 }
 0x2f7   :  { %v303_v7 = vpop.f32.mrb[0].mxu1  ;;  %v379_v9 = vpop.f32.mrb[2].mxu0 }
 0x2f8   :  { %v380_v10 = vadd.f32 %v379_v9, %v303_v7  ;;  %v1154_v11 = vpop.f32.mrb[1].mxu1  ;;  %v1159_v12 = vpop.f32.mrb[3].mxu0 }
 0x2fb   :  { %v464_v13 = vpop.f32.mrb[2].mxu1 }
 0x2fc   :  { %v468_v14 = vadd.f32 %v464_v13, %v380_v10  ;;  %v1164_v15 = vpop.f32.mrb[3].mxu1  ;;  %v550_v16 = vpop.f32.mrb[4].mxu0 }
 0x2fd   :  { %v1169_v17 = vpop.f32.mrb[5].mxu0 }
 0x2fe   :  { %v554_v18 = vadd.f32 %v550_v16, %v468_v14 }
 0x2ff   :  { %v629_v19 = vpop.f32.mrb[4].mxu1 }
 0x300   :  { %v633_v20 = vadd.f32 %v629_v19, %v554_v18  ;;  %v1174_v21 = vpop.f32.mrb[5].mxu1  ;;  %v715_v22 = vpop.f32.mrb[6].mxu0 }
 0x301   :  { %v1179_v23 = vpop.f32.mrb[7].mxu0 }
 0x302   :  { %v719_v24 = vadd.f32 %v715_v22, %v633_v20 }
 0x303   :  { %v801_v4 = vpop.f32.mrb[6].mxu1 }
 0x304   :  { %v805_v25 = vadd.f32 %v801_v4, %v719_v24  ;;  %v1184_v26 = vpop.f32.mrb[7].mxu1  ;;  %v887_v27 = vpop.f32.mrb[8].mxu0 }
 0x305   :  { %v1189_v28 = vpop.f32.mrb[9].mxu0 }
 0x306   :  { %v891_v29 = vadd.f32 %v887_v27, %v805_v25 }
 0x307   :  { %v973_v31 = vpop.f32.mrb[8].mxu1 }
 0x308   :  { %v977_v32 = vadd.f32 %v973_v31, %v891_v29  ;;  %v1194_v33 = vpop.f32.mrb[9].mxu1 }
 0x30a   :  { %v984_v34 = vadd.f32 %v982_v30, %v977_v32 }
 0x30c   :  { %v991_v36 = vmul.f32 %v989_v35, %v984_v34 }
 0x30e   :  { %v998_v38 = vadd.f32 %v996_v37, %v991_v36 }
 0x310   :  { %v999_v39 = vmax.f32 %v998_v38, 0.0 }
 0x312   :  { %1196 = vmatpush3.msk.msra.mxu0 %vm233_vm3, %v999_v39 }
 0x313   :  { %1198 = vmatmul.mubr.msk.f32.vlgmr.msra.gmra.mrb[10].mxu0 %vm229_vm4, %v1000_v40 }
 0x3e6   :  { %v1079_v42 = vpop.f32.mrb[10].mxu0 }
 0x3e7   :  { %v1080_v43 = vadd.f32 %v1079_v42, %v1005_v41  ;;  %v1199_v44 = vpop.f32.mrb[11].mxu0 }
 0x3e9   :  { %v1083_v45 = vadd.f32 %v1080_v43, %v1470_v8 }
 0x3eb   :  { %1084 = vst [vmem:[%s1591_s14] sm:$0xf] %v1083_v45 }
 0x3ec   :  { %1089 = vsyncpa [#allocation3], 1 }
 0x3ed   :  { %1090 = vsyncpa [#allocation5], 1 }
 0x3ee   :  { %1091 = vsyncpa [#allocation8], 1 }

// kernel: run.28
= control target key start
LH: loop header
LB: loop body
LE: loop exit
PB: predicated region body
PF: predicated region fallthrough
CT: control target
= control target key end

     0   :  { %v1163_v0 = vmov 0   ;;  %v1164_v4 = vmov 0.0   ;;  %vm1165_vm0 = vmmov 0   ;;  %vm74_vm1 = vcmask 1043456   ;;  %s1169_s23 = smov 7   ;;  %s1170_s24 = smov 121   ;;  %s1389_s2 = inlined_call_operand.vmem [shape: f32[4,1], index: 2, kind: input, shape index: {}]   ;;  %s1390_s3 = inlined_call_operand.vmem [shape: f32[4,1], index: 3, kind: input, shape index: {}]   ;;  %s1391_s7 = inlined_call_operand.vmem [shape: f32[2,1], index: 7, kind: input, shape index: {}]   ;;  %s1392_s5 = inlined_call_operand.vmem [shape: f32[2,1], index: 5, kind: input, shape index: {}]   ;;  %s1393_s6 = inlined_call_operand.vmem [shape: f32[2,1], index: 6, kind: input, shape index: {}]   ;;  %s1394_s0 = inlined_call_operand.vmem [shape: f32[4,128], index: 0, kind: input, shape index: {}]   ;;  %s1395_s4 = inlined_call_operand.vmem [shape: f32[2,4], index: 4, kind: input, shape index: {}]   ;;  %s1396_s10 = inlined_call_operand.vmem [shape: f32[2,1], index: 10, kind: input, shape index: {}]   ;;  %s1397_s9 = inlined_call_operand.vmem [shape: f32[2,1], index: 9, kind: input, shape index: {}]   ;;  %s1398_s13 = inlined_call_operand.vmem [shape: f32[4,1], index: 13, kind: input, shape index: {}]   ;;  %s1399_s11 = inlined_call_operand.vmem [shape: f32[2,1], index: 11, kind: input, shape index: {}]   ;;  %s1400_s1 = inlined_call_operand.vmem [shape: f32[9,128], index: 1, kind: input, shape index: {}]   ;;  %s1401_s8 = inlined_call_operand.vmem [shape: f32[9,2,2], index: 8, kind: input, shape index: {}]   ;;  %s1402_s12 = inlined_call_operand.vmem [shape: f32[4,2], index: 12, kind: input, shape index: {}]   ;;  %s1403_s14 = inlined_call_operand.vmem [shape: f32[4,128], index: 14, kind: output, shape index: {}]  }
   0x1   :  { %1161 = vset.pattern.permute.xlu0 %v1163_v0  ;;  %v48_v1 = vld [vmem:[%s1389_s2] sm:$0xf]  ;;  %1162 = vset.pattern.permute.xlu1 %v1163_v0  ;;  %vm70_vm2 = vcmask 31744   ;;  %s1171_s25 = smov 127   ;;  %s1172_s26 = smov 119   ;;  %v167_v27 = vlaneseq  ;;  %vm186_vm3 = vcmask 1041408  }
   0x2   :  { %51 = vperm.xlu0 %1161, %v48_v1   ;;  %v55_v2 = vld [vmem:[%s1390_s3] sm:$0xf]  ;;  %1095 = vmatprep.subr.mxu0 %v1164_v4  ;;  %s1173_s27 = smov 120   ;;  %vm182_vm4 = vcmask 15360   ;;  %v1049_v51 = vld [vmem:[%s1401_s8 + $0x4] sm:$0x3] }
   0x3   :  { %v155_v3 = vld [vmem:[%s1391_s7] sm:$0x3]  ;;  %1100 = vmatprep.subr.mxu1 %v1164_v4  ;;  %1097 = vmatprep.mubr.msk.f32.mxu0 %vm1165_vm0, %v1164_v4  ;;  %v168_v28 = vshrl.u32 %v167_v27, 7  ;;  %v1044_v43 = vld [vmem:[%s1401_s8 + $0x2] sm:$0x3] }
   0x4   :  { %1102 = vmatprep.mubr.msk.f32.mxu1 %vm1165_vm0, %v1164_v4  ;;  %v64_v5 = vld [vmem:[%s1392_s5] sm:$0x3]  ;;  %v1052_v54 = vld [vmem:[%s1401_s8 + $0x6] sm:$0x3]  ;;  %v1055_v59 = vld [vmem:[%s1401_s8 + $0x8] sm:$0x3] }
   0x5   :  { %67 = vperm.xlu1 %1162, %v64_v5   ;;  %v148_v6 = vld [vmem:[%s1393_s6] sm:$0x3]  ;;  %s1168_s6 = smov 1   ;;  %v169_v29 = vsub.s32 0, %v168_v28  ;;  %v177_v30 = vsub.s32 1, %v168_v28  ;;  %v426_v32 = vsub.s32 3, %v168_v28 }
   0x6   :  { %58 = vperm.xlu0 %1161, %v55_v2   ;;  %v1273_v8 = vld [vmem:[%s1394_s0] sm:$0xf]  ;;  %s1166_s0 = smov 9   ;;  %v340_v35 = vsub.s32 2, %v168_v28  ;;  %v677_v39 = vsub.s32 6, %v168_v28  ;;  %v591_v45 = vsub.s32 5, %v168_v28 }
   0x7   :  { %v63_v13 = vld [vmem:[%s1395_s4] sm:$0x3]  ;;  %s1167_s4 = smov 8   ;;  %v763_v53 = vsub.s32 7, %v168_v28  ;;  %v1067_v61 = vld [vmem:[%s1400_s1 + $0x8] ss:$0 sm:$0xff] }
   0x8   :  { %v938_v23 = vld [vmem:[%s1396_s10] sm:$0x3]  ;;  %v1058_v62 = vld [vmem:[%s1401_s8 + $0xa] sm:$0x3]  ;;  %v1064_v5 = vld [vmem:[%s1401_s8 + $0xe] sm:$0x3] }
   0x9   :  { %151 = vperm.xlu1 %1162, %v148_v6   ;;  %v931_v24 = vld [vmem:[%s1397_s9] sm:$0x3]  ;;  %v1068_v6 = vld [vmem:[%s1401_s8 + $0x10] sm:$0x3] }
   0xa   :  { %158 = vperm.xlu0 %1161, %v155_v3   ;;  %v954_v25 = vld [vmem:[%s1398_s13] sm:$0xf]  ;;  %v1061_v3 = vld [vmem:[%s1401_s8 + $0xc] sm:$0x3] }
   0xb   :  { %v945_v26 = vld [vmem:[%s1399_s11] sm:$0x3] }
   0xc   :  { %v163_v31 = vld [vmem:[%s1400_s1] sm:$0xff] }
   0xd   :  { %v170_v33 = vrot.slane %v163_v31, %v169_v29  ;;  %v178_v34 = vrot.slane %v163_v31, %v177_v30  ;;  %v427_v38 = vrot.slane %v163_v31, %v426_v32  ;;  %v172_v42 = vld [vmem:[%s1401_s8] sm:$0x3]  ;;  %v341_v44 = vrot.slane %v163_v31, %v340_v35 }
   0xe   :  { %v678_v48 = vrot.slane %v163_v31, %v677_v39  ;;  %v592_v52 = vrot.slane %v163_v31, %v591_v45  ;;  %v764_v60 = vrot.slane %v163_v31, %v763_v53 }
  0x81   :  { %v52_v7 = vpop.permute.xlu0 %51 }
  0x82   :  { %v54_v9 = vmul.f32 %v52_v7, %v1273_v8 }
  0x84   :  { %v68_v14 = vpop.permute.xlu1 %67 }
  0x85   :  { %v59_v10 = vpop.permute.xlu0 %58 }
  0x86   :  { %v61_v11 = vadd.f32 %v59_v10, %v54_v9 }
  0x88   :  { %v62_v12 = vmax.f32 %v61_v11, 0.0  ;;  %v152_v18 = vpop.permute.xlu1 %151 }
  0x89   :  { %v159_v20 = vpop.permute.xlu0 %158 }
  0x8a   :  { %1096 = vmatpush3.msk.msra.mxu0 %vm74_vm1, %v62_v12 }
  0x8b   :  { %1098 = vmatmul.mubr.msk.f32.vlgmr.msra.gmra.mrb[0].mxu0 %vm70_vm2, %v63_v13  ;;  %1105 = vmatprep.subr.mxu0 %v1164_v4 }
  0x8c   :  { %1107 = vmatprep.mubr.msk.f32.mxu0 %vm1165_vm0, %v1164_v4 }
 0x15e   :  { %v144_v15 = vpop.f32.mrb[0].mxu0 }
 0x15f   :  { %v145_v16 = vadd.f32 %v144_v15, %v68_v14  ;;  %v1099_v17 = vpop.f32.mrb[1].mxu0 }
 0x161   :  { %v154_v19 = vmul.f32 %v152_v18, %v145_v16 }
 0x163   :  { %v161_v21 = vadd.f32 %v159_v20, %v154_v19 }
 0x165   :  { %v1282_v22 = vmax.f32 %v161_v21, 0.0 }
 0x167   :  { %165 = vrot.lane.b32.xlu0 %v1282_v22, %s1166_s0  ;;  %173 = vrot.lane.b32.xlu1 %v1282_v22, %s1167_s4 }
 0x16b   :  { %422 = vrot.lane.b32.xlu0 %v1282_v22, %s1168_s6  ;;  %336 = vrot.lane.b32.xlu1 %v1282_v22, %s1169_s23 }
 0x16f   :  { %673 = vrot.lane.b32.xlu0 %v1282_v22, %s1170_s24  ;;  %587 = vrot.lane.b32.xlu1 %v1282_v22, %s1171_s25 }
 0x173   :  { %845 = vrot.lane.b32.xlu0 %v1282_v22, %s1172_s26  ;;  %759 = vrot.lane.b32.xlu1 %v1282_v22, %s1173_s27 }
 0x177   :  { %941 = vperm.xlu0 %1161, %v938_v23   ;;  %934 = vperm.xlu1 %1162, %v931_v24  }
 0x17b   :  { %957 = vperm.xlu0 %1161, %v954_v25   ;;  %948 = vperm.xlu1 %1162, %v945_v26  }
 0x1d9   :  { %v166_v36 = vpop.permute.xlu0 %165  ;;  %v174_v37 = vpop.permute.xlu1 %173 }
 0x1da   :  { %v171_v40 = vmul.f32 %v170_v33, %v166_v36  ;;  %v179_v41 = vmul.f32 %v178_v34, %v174_v37 }
 0x1dc   :  { %1101 = vmatpush3.msk.msra.mxu1 %vm186_vm3, %v179_v41  ;;  %1106 = vmatpush3.msk.msra.mxu0 %vm186_vm3, %v171_v40  ;;  %v953_v40 = vld [vmem:[%s1402_s12] sm:$0xf] }
 0x1dd   :  { %1108 = vmatmul.mubr.msk.f32.vlgmr.msra.gmra.mrb[2].mxu0 %vm182_vm4, %v172_v42  ;;  %v423_v46 = vpop.permute.xlu0 %422  ;;  %1103 = vmatmul.mubr.msk.f32.vlgmr.msra.gmra.mrb[0].mxu1 %vm182_vm4, %v1044_v43  ;;  %v337_v47 = vpop.permute.xlu1 %336 }
 0x1de   :  { %v428_v49 = vmul.f32 %v427_v38, %v423_v46  ;;  %v342_v50 = vmul.f32 %v341_v44, %v337_v47  ;;  %1110 = vmatprep.subr.mxu1 %v1164_v4  ;;  %1115 = vmatprep.subr.mxu0 %v1164_v4 }
 0x1df   :  { %1112 = vmatprep.mubr.msk.f32.mxu1 %vm1165_vm0, %v1164_v4  ;;  %1117 = vmatprep.mubr.msk.f32.mxu0 %vm1165_vm0, %v1164_v4 }
 0x1e0   :  { %1111 = vmatpush3.msk.msra.mxu1 %vm186_vm3, %v342_v50  ;;  %1116 = vmatpush3.msk.msra.mxu0 %vm186_vm3, %v428_v49 }
 0x1e1   :  { %v674_v55 = vpop.permute.xlu0 %673  ;;  %1113 = vmatmul.mubr.msk.f32.vlgmr.msra.gmra.mrb[2].mxu1 %vm182_vm4, %v1049_v51  ;;  %1120 = vmatprep.subr.mxu1 %v1164_v4  ;;  %v588_v56 = vpop.permute.xlu1 %587 }
 0x1e2   :  { %v679_v57 = vmul.f32 %v678_v48, %v674_v55  ;;  %v593_v58 = vmul.f32 %v592_v52, %v588_v56  ;;  %1118 = vmatmul.mubr.msk.f32.vlgmr.msra.gmra.mrb[4].mxu0 %vm182_vm4, %v1052_v54  ;;  %1121 = vmatpush3.msk.msra.mxu1 %vm186_vm3, %v1282_v22 }
 0x1e3   :  { %1125 = vmatprep.subr.mxu0 %v1164_v4  ;;  %1122 = vmatprep.mubr.msk.f32.mxu1 %vm1165_vm0, %v1164_v4 }
 0x1e4   :  { %1126 = vmatpush3.msk.msra.mxu0 %vm186_vm3, %v593_v58  ;;  %1130 = vmatprep.subr.mxu1 %v1164_v4 }
 0x1e5   :  { %1127 = vmatprep.mubr.msk.f32.mxu0 %vm1165_vm0, %v1164_v4  ;;  %v846_v63 = vpop.permute.xlu0 %845  ;;  %1123 = vmatmul.mubr.msk.f32.vlgmr.msra.gmra.mrb[4].mxu1 %vm182_vm4, %v1055_v59  ;;  %v760_v0 = vpop.permute.xlu1 %759 }
 0x1e6   :  { %v851_v1 = vmul.f32 %v1067_v61, %v846_v63  ;;  %1131 = vmatpush3.msk.msra.mxu1 %vm186_vm3, %v679_v57  ;;  %v765_v2 = vmul.f32 %v764_v60, %v760_v0  ;;  %1128 = vmatmul.mubr.msk.f32.vlgmr.msra.gmra.mrb[6].mxu0 %vm182_vm4, %v1058_v62 }
 0x1e7   :  { %1135 = vmatprep.subr.mxu0 %v1164_v4  ;;  %1132 = vmatprep.mubr.msk.f32.mxu1 %vm1165_vm0, %v1164_v4 }
 0x1e8   :  { %1136 = vmatpush3.msk.msra.mxu0 %vm186_vm3, %v765_v2  ;;  %1140 = vmatprep.subr.mxu1 %v1164_v4 }
 0x1e9   :  { %1133 = vmatmul.mubr.msk.f32.vlgmr.msra.gmra.mrb[6].mxu1 %vm182_vm4, %v1061_v3  ;;  %1137 = vmatprep.mubr.msk.f32.mxu0 %vm1165_vm0, %v1164_v4 }
 0x1ea   :  { %1141 = vmatpush3.msk.msra.mxu1 %vm186_vm3, %v851_v1  ;;  %1138 = vmatmul.mubr.msk.f32.vlgmr.msra.gmra.mrb[8].mxu0 %vm182_vm4, %v1064_v5 }
 0x1eb   :  { %1142 = vmatprep.mubr.msk.f32.mxu1 %vm1165_vm0, %v1164_v4  ;;  %1145 = vmatprep.subr.mxu0 %v1164_v4 }
 0x1ec   :  { %1147 = vmatprep.mubr.msk.f32.mxu0 %vm1165_vm0, %v1164_v4 }
 0x1ed   :  { %1143 = vmatmul.mubr.msk.f32.vlgmr.msra.gmra.mrb[8].mxu1 %vm182_vm4, %v1068_v6 }
 0x1f6   :  { %v935_v30 = vpop.permute.xlu1 %934  ;;  %v942_v35 = vpop.permute.xlu0 %941 }
 0x1fa   :  { %v949_v37 = vpop.permute.xlu1 %948  ;;  %v958_v41 = vpop.permute.xlu0 %957 }
 0x2b0   :  { %v256_v7 = vpop.f32.mrb[0].mxu1  ;;  %v332_v9 = vpop.f32.mrb[2].mxu0 }
 0x2b1   :  { %v333_v10 = vadd.f32 %v332_v9, %v256_v7  ;;  %v1104_v11 = vpop.f32.mrb[1].mxu1  ;;  %v1109_v12 = vpop.f32.mrb[3].mxu0 }
 0x2b4   :  { %v417_v13 = vpop.f32.mrb[2].mxu1 }
 0x2b5   :  { %v421_v14 = vadd.f32 %v417_v13, %v333_v10  ;;  %v1114_v15 = vpop.f32.mrb[3].mxu1  ;;  %v503_v16 = vpop.f32.mrb[4].mxu0 }
 0x2b6   :  { %v1119_v17 = vpop.f32.mrb[5].mxu0 }
 0x2b7   :  { %v507_v18 = vadd.f32 %v503_v16, %v421_v14 }
 0x2b8   :  { %v582_v19 = vpop.f32.mrb[4].mxu1 }
 0x2b9   :  { %v586_v20 = vadd.f32 %v582_v19, %v507_v18  ;;  %v1124_v21 = vpop.f32.mrb[5].mxu1  ;;  %v668_v22 = vpop.f32.mrb[6].mxu0 }
 0x2ba   :  { %v1129_v23 = vpop.f32.mrb[7].mxu0 }
 0x2bb   :  { %v672_v24 = vadd.f32 %v668_v22, %v586_v20 }
 0x2bc   :  { %v754_v4 = vpop.f32.mrb[6].mxu1 }
 0x2bd   :  { %v758_v25 = vadd.f32 %v754_v4, %v672_v24  ;;  %v1134_v26 = vpop.f32.mrb[7].mxu1  ;;  %v840_v27 = vpop.f32.mrb[8].mxu0 }
 0x2be   :  { %v1139_v28 = vpop.f32.mrb[9].mxu0 }
 0x2bf   :  { %v844_v29 = vadd.f32 %v840_v27, %v758_v25 }
 0x2c0   :  { %v926_v31 = vpop.f32.mrb[8].mxu1 }
 0x2c1   :  { %v930_v32 = vadd.f32 %v926_v31, %v844_v29  ;;  %v1144_v33 = vpop.f32.mrb[9].mxu1 }
 0x2c3   :  { %v937_v34 = vadd.f32 %v935_v30, %v930_v32 }
 0x2c5   :  { %v944_v36 = vmul.f32 %v942_v35, %v937_v34 }
 0x2c7   :  { %v951_v38 = vadd.f32 %v949_v37, %v944_v36 }
 0x2c9   :  { %v952_v39 = vmax.f32 %v951_v38, 0.0 }
 0x2cb   :  { %1146 = vmatpush3.msk.msra.mxu0 %vm186_vm3, %v952_v39 }
 0x2cc   :  { %1148 = vmatmul.mubr.msk.f32.vlgmr.msra.gmra.mrb[10].mxu0 %vm182_vm4, %v953_v40 }
 0x39f   :  { %v1032_v42 = vpop.f32.mrb[10].mxu0 }
 0x3a0   :  { %v1033_v43 = vadd.f32 %v1032_v42, %v958_v41  ;;  %v1149_v44 = vpop.f32.mrb[11].mxu0 }
 0x3a2   :  { %v1036_v45 = vadd.f32 %v1033_v43, %v1273_v8 }
 0x3a4   :  { %1037 = vst [vmem:[%s1403_s14] sm:$0xf] %v1036_v45 }

// kernel: run.33
= control target key start
LH: loop header
LB: loop body
LE: loop exit
PB: predicated region body
PF: predicated region fallthrough
CT: control target
= control target key end

     0   :  { %v57_v0 = vmov 0   ;;  %v58_v3 = vmov 839922192   ;;  %v24_v5 = vlaneseq  ;;  %s97_s1 = inlined_call_operand.vmem [shape: f32[4,1], index: 1, kind: input, shape index: {}]   ;;  %s98_s2 = inlined_call_operand.vmem [shape: f32[4,1], index: 2, kind: input, shape index: {}]   ;;  %s99_s0 = inlined_call_operand.vmem [shape: f32[4,512], index: 0, kind: input, shape index: {}]   ;;  %s100_s3 = inlined_call_operand.vmem [shape: f32[4,512], index: 3, kind: output, shape index: {}]  }
   0x1   :  { %56 = vset.pattern.permute.xlu0 %v57_v0  ;;  %v16_v1 = vld [vmem:[%s97_s1] sm:$0xf]  ;;  %v22_v4 = vunpack.c.l.s4 %v58_v3  ;;  %v15_v12 = vld [vmem:[%s99_s0 + $0x8] sm:$0xff] }
   0x2   :  { %19 = vperm.xlu0 %56, %v16_v1   ;;  %v31_v2 = vld [vmem:[%s98_s2] sm:$0xf]  ;;  %v25_v7 = vshrl.u32 %v24_v5, 7 }
   0x3   :  { %v23_v6 = vunpack.c.0.s8 %v22_v4  ;;  %v14_v11 = vld [vmem:[%s99_s0] sm:$0xff] }
   0x5   :  { %v26_v8 = vsub.s32 %v23_v6, %v25_v7 }
   0x6   :  { %34 = vperm.xlu0 %56, %v31_v2  }
  0x81   :  { %v20_v9 = vpop.permute.xlu0 %19 }
  0x82   :  { %v27_v10 = vrot.slane %v20_v9, %v26_v8 }
  0x84   :  { %v29_v14 = vmul.f32 %v27_v10, %v14_v11  ;;  %v30_v15 = vmul.f32 %v27_v10, %v15_v12 }
  0x85   :  { %v35_v13 = vpop.permute.xlu0 %34 }
  0x86   :  { %v42_v16 = vrot.slane %v35_v13, %v26_v8 }
  0x88   :  { %v44_v17 = vadd.f32 %v42_v16, %v29_v14  ;;  %v45_v18 = vadd.f32 %v42_v16, %v30_v15 }
  0x8a   :  { %v46_v19 = vmax.f32 %v44_v17, 0.0  ;;  %v47_v20 = vmax.f32 %v45_v18, 0.0 }
  0x8c   :  { %48 = vst [vmem:[%s100_s3] sm:$0xff] %v46_v19  ;;  %49 = vst [vmem:[%s100_s3 + $0x8] sm:$0xff] %v47_v20 }

</bundles_post_ra>
